<compile_context>
chip_gen: v6e
topology: v6e:2x2x1
jax: 0.10.0
libtpu: 0.0.40
codegen_flags: <defaults>
</compile_context>

<pallas_src>
import functools

import jax
import jax.numpy as jnp
from jax.experimental import pallas as pl
from jax.experimental.pallas import tpu as pltpu

_MXU_DTYPE = jnp.bfloat16   # matmul input dtype (accumulate in f32)
_NEG = -1e30                # masked-max sentinel (safe for f32)


# ----------------------------------------------------------------------------
# Fused bidirectional LSTM layer kernel
# ----------------------------------------------------------------------------
def _make_bilstm_kernel(T, B, H, n_per_w, emit_seq, emit_max, mxu_dtype):
    """Builds a kernel computing one BiLSTM layer.

    Inputs (in order): lens(B,1) int32, x_0..x_{n-1} (T,B,D_i) streams,
    W_0..W_{m-1} (D_i, 8H) gate weights (fwd|bwd packed on columns, gate order i,f,g,o),
    bias (1,8H), W_hh_fwd (H,4H), W_hh_bwd (H,4H).
    Streams are grouped per weight by n_per_w (groups are summed before the matmul,
    which realizes the residual add l1+l2 in VMEM).
    Outputs: [seq_fwd (T,B,H), seq_bwd (T,B,H)] if emit_seq,
             [max_fwd (B,H),  max_bwd (B,H)]  if emit_max (masked max over time).
    """
    G = 4 * H
    n_w = len(n_per_w)
    n_x = sum(n_per_w)

    def kernel(*refs):
        p = 0
        lens_ref = refs[p]; p += 1
        x_refs = refs[p:p + n_x]; p += n_x
        w_refs = refs[p:p + n_w]; p += n_w
        b_ref = refs[p]; p += 1
        whhf_ref = refs[p]; p += 1
        whhb_ref = refs[p]; p += 1
        if emit_seq:
            seqf_ref = refs[p]; p += 1
            seqb_ref = refs[p]; p += 1
        if emit_max:
            maxf_ref = refs[p]; p += 1
            maxb_ref = refs[p]; p += 1
        gxf_sc = refs[p]; p += 1
        gxb_sc = refs[p]; p += 1
        hf_sc = refs[p]; p += 1
        cf_sc = refs[p]; p += 1
        hb_sc = refs[p]; p += 1
        cb_sc = refs[p]; p += 1
        if emit_max:
            mxf_sc = refs[p]; p += 1
            mxb_sc = refs[p]; p += 1

        # ---- fused input-gate projection (virtual concat = sum of per-stream matmuls) ----
        gx = None
        xi = 0
        for wi in range(n_w):
            group = x_refs[xi:xi + n_per_w[wi]]
            xi += n_per_w[wi]
            acc = group[0][...]
            for extra in group[1:]:
                acc = acc + extra[...]               # residual sum fused in VMEM
            a2d = acc.reshape(T * B, acc.shape[-1]).astype(mxu_dtype)
            contrib = jnp.dot(a2d, w_refs[wi][...].astype(mxu_dtype),
                              preferred_element_type=jnp.float32)
            gx = contrib if gx is None else gx + contrib
        gx = (gx + b_ref[...]).reshape(T, B, 2 * G)
        gxf_sc[...] = gx[:, :, :G]
        gxb_sc[...] = gx[:, :, G:]

        # ---- state init ----
        hf_sc[...] = jnp.zeros_like(hf_sc)
        cf_sc[...] = jnp.zeros_like(cf_sc)
        hb_sc[...] = jnp.zeros_like(hb_sc)
        cb_sc[...] = jnp.zeros_like(cb_sc)
        if emit_max:
            mxf_sc[...] = jnp.full(mxf_sc.shape, _NEG, jnp.float32)
            mxb_sc[...] = jnp.full(mxb_sc.shape, _NEG, jnp.float32)

        lens = lens_ref[...]                          # (B, 1) int32
        whh_f = whhf_ref[...].astype(mxu_dtype)       # hoisted weight casts
        whh_b = whhb_ref[...].astype(mxu_dtype)

        def cell(gates, c_prev):
            i_g = jax.nn.sigmoid(gates[:, 0:H])
            f_g = jax.nn.sigmoid(gates[:, H:2 * H])
            g_g = jnp.tanh(gates[:, 2 * H:3 * H])
            o_g = jax.nn.sigmoid(gates[:, 3 * H:4 * H])
            c_new = f_g * c_prev + i_g * g_g
            h_new = o_g * jnp.tanh(c_new)
            return h_new, c_new

        def step(s, carry):
            t_f = s
            t_b = T - 1 - s
            h_f = hf_sc[...]; c_f = cf_sc[...]
            h_b = hb_sc[...]; c_b = cb_sc[...]
            # two independent recurrence matmuls interleave on the MXU
            g_f = gxf_sc[t_f] + jnp.dot(h_f.astype(mxu_dtype), whh_f,
                                        preferred_element_type=jnp.float32)
            g_b = gxb_sc[t_b] + jnp.dot(h_b.astype(mxu_dtype), whh_b,
                                        preferred_element_type=jnp.float32)
            hf_new, cf_new = cell(g_f, c_f)
            hb_new, cb_new = cell(g_b, c_b)
            m_f = lens > t_f                          # (B,1) valid-step masks
            m_b = lens > t_b
            hf_sc[...] = jnp.where(m_f, hf_new, h_f)
            cf_sc[...] = jnp.where(m_f, cf_new, c_f)
            hb_sc[...] = jnp.where(m_b, hb_new, h_b)
            cb_sc[...] = jnp.where(m_b, cb_new, c_b)
            if emit_seq:
                seqf_ref[t_f] = jnp.where(m_f, hf_new, 0.0)   # packed-seq: zeros at pads
                seqb_ref[t_b] = jnp.where(m_b, hb_new, 0.0)
            if emit_max:
                mxf_sc[...] = jnp.maximum(mxf_sc[...], jnp.where(m_f, hf_new, _NEG))
                mxb_sc[...] = jnp.maximum(mxb_sc[...], jnp.where(m_b, hb_new, _NEG))
            return carry

        jax.lax.fori_loop(0, T, step, 0)

        if emit_max:
            mf = mxf_sc[...]
            mb = mxb_sc[...]
            # rows with no valid timestep (batch padding) -> 0 instead of -1e30
            maxf_ref[...] = jnp.where(mf > -1e29, mf, 0.0)
            maxb_ref[...] = jnp.where(mb > -1e29, mb, 0.0)

    return kernel


def fused_bilstm(lens_b1, xs, ws, n_per_w, bias, whh_f, whh_b, H,
                 emit_seq, emit_max, mxu_dtype=_MXU_DTYPE):
    T, B = xs[0].shape[0], xs[0].shape[1]
    G = 4 * H
    kernel = _make_bilstm_kernel(T, B, H, tuple(n_per_w), emit_seq, emit_max, mxu_dtype)

    out_shape = []
    out_specs = []
    if emit_seq:
        out_shape += [jax.ShapeDtypeStruct((T, B, H), jnp.float32)] * 2
        out_specs += [pl.BlockSpec((T, B, H), lambda i: (0, 0, 0))] * 2
    if emit_max:
        out_shape += [jax.ShapeDtypeStruct((B, H), jnp.float32)] * 2
        out_specs += [pl.BlockSpec((B, H), lambda i: (0, 0))] * 2

    in_specs = [pl.BlockSpec((B, 1), lambda i: (0, 0))]                      # lens
    in_specs += [pl.BlockSpec(x.shape, lambda i: (0, 0, 0)) for x in xs]     # streams
    in_specs += [pl.BlockSpec(w.shape, lambda i: (0, 0)) for w in ws]        # gate weights
    in_specs += [pl.BlockSpec((1, 2 * G), lambda i: (0, 0)),                 # bias
                 pl.BlockSpec((H, G), lambda i: (0, 0)),                     # W_hh fwd
                 pl.BlockSpec((H, G), lambda i: (0, 0))]                     # W_hh bwd

    scratch = [pltpu.VMEM((T, B, G), jnp.float32),   # gx fwd
               pltpu.VMEM((T, B, G), jnp.float32),   # gx bwd
               pltpu.VMEM((B, H), jnp.float32),      # h fwd
               pltpu.VMEM((B, H), jnp.float32),      # c fwd
               pltpu.VMEM((B, H), jnp.float32),      # h bwd
               pltpu.VMEM((B, H), jnp.float32)]      # c bwd
    if emit_max:
        scratch += [pltpu.VMEM((B, H), jnp.float32),  # running max fwd
                    pltpu.VMEM((B, H), jnp.float32)]  # running max bwd

    return pl.pallas_call(
        kernel,
        out_shape=tuple(out_shape),
        grid=(1,),
        in_specs=in_specs,
        out_specs=tuple(out_specs),
        scratch_shapes=scratch,
        compiler_params=pltpu.CompilerParams(
            dimension_semantics=("arbitrary",),
            vmem_limit_bytes=32 * 1024 * 1024),
    )(lens_b1, *xs, *ws, bias, whh_f, whh_b)


# ----------------------------------------------------------------------------
# Classifier: Linear + ReLU + (Dropout=identity) + Linear, maxout halves fused
# ----------------------------------------------------------------------------
def _classifier_kernel(xf_ref, xb_ref, w1f_ref, w1b_ref, b1_ref, w2_ref, b2_ref, o_ref):
    h = (jnp.dot(xf_ref[...], w1f_ref[...], preferred_element_type=jnp.float32)
         + jnp.dot(xb_ref[...], w1b_ref[...], preferred_element_type=jnp.float32)
         + b1_ref[...])
    h = jnp.maximum(h, 0.0)
    # TODO(synk): nn.Dropout is identity at inference; training-mode dropout not implemented.
    o_ref[...] = jnp.dot(h, w2_ref[...], preferred_element_type=jnp.float32) + b2_ref[...]


def classifier(max_f, max_b, w1, b1, w2, b2):
    B, H = max_f.shape
    Dm = w1.shape[1]
    L = w2.shape[1]
    w1f, w1b = w1[:H], w1[H:]      # split so concat([max_f, max_b]) stays virtual
    return pl.pallas_call(
        _classifier_kernel,
        out_shape=jax.ShapeDtypeStruct((B, L), jnp.float32),
        grid=(1,),
        in_specs=[
            pl.BlockSpec((B, H), lambda i: (0, 0)),
            pl.BlockSpec((B, H), lambda i: (0, 0)),
            pl.BlockSpec((H, Dm), lambda i: (0, 0)),
            pl.BlockSpec((H, Dm), lambda i: (0, 0)),
            pl.BlockSpec((1, Dm), lambda i: (0, 0)),
            pl.BlockSpec((Dm, L), lambda i: (0, 0)),
            pl.BlockSpec((1, L), lambda i: (0, 0)),
        ],
        out_specs=pl.BlockSpec((B, L), lambda i: (0, 0)),
        compiler_params=pltpu.CompilerParams(
            dimension_semantics=("arbitrary",),
            vmem_limit_bytes=32 * 1024 * 1024),
    )(max_f, max_b, w1f, w1b, b1, w2, b2)


# ----------------------------------------------------------------------------
# Parameters & model wrapper (glue in plain JAX)
# ----------------------------------------------------------------------------
def init_params(key, v_size, embd_dim, h_size, mlp_d, num_labels):
    keys = jax.random.split(key, 24)
    it = iter(keys)

    def u(shape, scale):
        return jax.random.uniform(next(it), shape, jnp.float32, -scale, scale)

    def lstm_params(in_dim, H):
        s = 1.0 / float(H) ** 0.5
        return {
            "w_ih": u((in_dim, 8 * H), s),   # [fwd i,f,g,o | bwd i,f,g,o], transposed
            "bias": u((1, 8 * H), s),        # b_ih + b_hh folded together
            "whh_f": u((H, 4 * H), s),       # transposed: h @ w_hh
            "whh_b": u((H, 4 * H), s),
        }

    return {
        "embd": u((v_size, embd_dim), 0.1),
        "lstm": lstm_params(embd_dim, h_size[0]),
        "lstm_1": lstm_params(embd_dim + 2 * h_size[0], h_size[1]),
        "lstm_2": lstm_params(embd_dim + 2 * h_size[0], h_size[2]),
        "mlp1_w": u((2 * h_size[2], mlp_d), 1.0 / (2.0 * h_size[2]) ** 0.5),
        "mlp1_b": u((1, mlp_d), 0.05),
        "sm_w": u((mlp_d, num_labels), 1.0 / float(mlp_d) ** 0.5),
        "sm_b": u((1, num_labels), 0.05),
    }


def res_encoder_forward(params, input_ids, attention_mask, h_size, labels=None):
    B, T = input_ids.shape
    E = params["embd"].shape[1]
    H0, H1, H2 = h_size

    # pad batch to a multiple of 8 (f32 sublane count); padded rows have length 0
    B_pad = max(8, ((B + 7) // 8) * 8)
    pad = B_pad - B
    ids_p = jnp.pad(input_ids, ((0, pad), (0, 0)))
    lens = jnp.sum(attention_mask, axis=1).astype(jnp.int32)
    lens_b1 = jnp.pad(lens, (0, pad))[:, None]                   # (B_pad, 1) int32

    # embedding gather (JAX glue), produced directly time-major: (T, B_pad, E)
    embedding = jnp.take(params["embd"], ids_p.T, axis=0)

    # layer 1
    p1 = params["lstm"]
    l1_f, l1_b = fused_bilstm(lens_b1, [embedding], [p1["w_ih"]], [1],
                              p1["bias"], p1["whh_f"], p1["whh_b"], H0,
                              emit_seq=True, emit_max=False)

    # layer 2: input = cat(emb, l1) realized virtually via split gate weights
    p2 = params["lstm_1"]
    w2 = p2["w_ih"]
    l2_f, l2_b = fused_bilstm(
        lens_b1, [embedding, l1_f, l1_b],
        [w2[:E], w2[E:E + H0], w2[E + H0:]], [1, 1, 1],
        p2["bias"], p2["whh_f"], p2["whh_b"], H1,
        emit_seq=True, emit_max=False)

    # layer 3: input = cat(emb, l1 + l2); residual add + masked time-max fused in-kernel
    p3 = params["lstm_2"]
    w3 = p3["w_ih"]
    max_f, max_b = fused_bilstm(
        lens_b1, [embedding, l1_f, l2_f, l1_b, l2_b],
        [w3[:E], w3[E:E + H0], w3[E + H0:]], [1, 2, 2],
        p3["bias"], p3["whh_f"], p3["whh_b"], H2,
        emit_seq=False, emit_max=True)

    logits = classifier(max_f, max_b, params["mlp1_w"], params["mlp1_b"],
                        params["sm_w"], params["sm_b"])[:B]

    loss = None
    if labels is not None:
        # cross-entropy (num_labels > 1 path), plain JAX glue
        logp = jax.nn.log_softmax(logits, axis=-1)
        loss = -jnp.mean(jnp.take_along_axis(logp, labels[:, None], axis=1))
    return loss, logits


# ----------------------------------------------------------------------------
if __name__ == "__main__":
    # Small, layout-friendly config consistent with the module structure.
    V_SIZE = 10
    EMBD_DIM = 128
    H_SIZE = (128, 128, 128)
    MLP_D = 128
    NUM_LABELS = 3
    B, T = 2, 8

    key = jax.random.PRNGKey(0)
    k_param, k_ids = jax.random.split(key)
    params = init_params(k_param, V_SIZE, EMBD_DIM, H_SIZE, MLP_D, NUM_LABELS)

    input_ids = jax.random.randint(k_ids, (B, T), 0, V_SIZE, dtype=jnp.int32)
    # variable lengths: first sequence full length, second length 5
    attention_mask = jnp.array([[1] * T, [1, 1, 1, 1, 1, 0, 0, 0]], dtype=jnp.int32)

    fwd = jax.jit(functools.partial(res_encoder_forward, h_size=H_SIZE))
    loss, logits = fwd(params, input_ids, attention_mask)
    logits = jax.block_until_ready(logits)
    assert logits.shape == (B, NUM_LABELS)
    assert bool(jnp.all(jnp.isfinite(logits)))
    print("KERNEL_OK")
</pallas_src>

<mosaic_0001>
module attributes {stable_mosaic.version = 11 : i64} {
  func.func @kernel(%arg0: i32, %arg1: memref<8x1xi32, #tpu.memory_space<vmem>>, %arg2: memref<8x8x128xf32, #tpu.memory_space<vmem>>, %arg3: memref<8x8x128xf32, #tpu.memory_space<vmem>>, %arg4: memref<8x8x128xf32, #tpu.memory_space<vmem>>, %arg5: memref<8x8x128xf32, #tpu.memory_space<vmem>>, %arg6: memref<8x8x128xf32, #tpu.memory_space<vmem>>, %arg7: memref<128x1024xf32, #tpu.memory_space<vmem>>, %arg8: memref<128x1024xf32, #tpu.memory_space<vmem>>, %arg9: memref<128x1024xf32, #tpu.memory_space<vmem>>, %arg10: memref<1x1024xf32, #tpu.memory_space<vmem>>, %arg11: memref<128x512xf32, #tpu.memory_space<vmem>>, %arg12: memref<128x512xf32, #tpu.memory_space<vmem>>, %arg13: memref<8x128xf32, #tpu.memory_space<vmem>>, %arg14: memref<8x128xf32, #tpu.memory_space<vmem>>, %arg15: memref<8x8x512xf32, #tpu.memory_space<vmem>>, %arg16: memref<8x8x512xf32, #tpu.memory_space<vmem>>, %arg17: memref<8x128xf32, #tpu.memory_space<vmem>>, %arg18: memref<8x128xf32, #tpu.memory_space<vmem>>, %arg19: memref<8x128xf32, #tpu.memory_space<vmem>>, %arg20: memref<8x128xf32, #tpu.memory_space<vmem>>, %arg21: memref<8x128xf32, #tpu.memory_space<vmem>>, %arg22: memref<8x128xf32, #tpu.memory_space<vmem>>) attributes {dimension_semantics = [#tpu.dimension_semantics<arbitrary>], iteration_bounds = array<i64: 1>, scalar_prefetch = 0 : i64, scratch_operands = 8 : i64, tpu.core_type = #tpu.core_type<tc>, window_params = [{pipeline_mode = #tpu.pipeline_mode<synchronous>, transform_indices = @transform_0, window_bounds = array<i64: 8, 1>}, {pipeline_mode = #tpu.pipeline_mode<synchronous>, transform_indices = @transform_1, window_bounds = array<i64: 8, 8, 128>}, {pipeline_mode = #tpu.pipeline_mode<synchronous>, transform_indices = @transform_2, window_bounds = array<i64: 8, 8, 128>}, {pipeline_mode = #tpu.pipeline_mode<synchronous>, transform_indices = @transform_3, window_bounds = array<i64: 8, 8, 128>}, {pipeline_mode = #tpu.pipeline_mode<synchronous>, transform_indices = @transform_4, window_bounds = array<i64: 8, 8, 128>}, {pipeline_mode = #tpu.pipeline_mode<synchronous>, transform_indices = @transform_5, window_bounds = array<i64: 8, 8, 128>}, {pipeline_mode = #tpu.pipeline_mode<synchronous>, transform_indices = @transform_6, window_bounds = array<i64: 128, 1024>}, {pipeline_mode = #tpu.pipeline_mode<synchronous>, transform_indices = @transform_7, window_bounds = array<i64: 128, 1024>}, {pipeline_mode = #tpu.pipeline_mode<synchronous>, transform_indices = @transform_8, window_bounds = array<i64: 128, 1024>}, {pipeline_mode = #tpu.pipeline_mode<synchronous>, transform_indices = @transform_9, window_bounds = array<i64: 1, 1024>}, {pipeline_mode = #tpu.pipeline_mode<synchronous>, transform_indices = @transform_10, window_bounds = array<i64: 128, 512>}, {pipeline_mode = #tpu.pipeline_mode<synchronous>, transform_indices = @transform_11, window_bounds = array<i64: 128, 512>}, {pipeline_mode = #tpu.pipeline_mode<synchronous>, transform_indices = @transform_12, window_bounds = array<i64: 8, 128>}, {pipeline_mode = #tpu.pipeline_mode<synchronous>, transform_indices = @transform_13, window_bounds = array<i64: 8, 128>}]} {
    %c0 = arith.constant 0 : index
    %c0_0 = arith.constant 0 : index
    %c0_1 = arith.constant 0 : index
    %0 = vector.load %arg2[%c0, %c0_0, %c0_1] : memref<8x8x128xf32, #tpu.memory_space<vmem>>, vector<8x8x128xf32>
    %1 = vector.shape_cast %0 : vector<8x8x128xf32> to vector<64x128xf32>
    %2 = arith.truncf %1 : vector<64x128xf32> to vector<64x128xbf16>
    %c0_2 = arith.constant 0 : index
    %c0_3 = arith.constant 0 : index
    %3 = vector.load %arg7[%c0_2, %c0_3] : memref<128x1024xf32, #tpu.memory_space<vmem>>, vector<128x1024xf32>
    %4 = arith.truncf %3 : vector<128x1024xf32> to vector<128x1024xbf16>
    %cst = arith.constant dense<0.000000e+00> : vector<64x1024xf32>
    %5 = tpu.matmul %2, %4, %cst {dimension_numbers = #tpu.dot_dimension_numbers<[1], [0], [0], [1], [0, 0, 1, 1], [], []>} : vector<64x128xbf16>, vector<128x1024xbf16>, vector<64x1024xf32> -> vector<64x1024xf32>
    %c0_4 = arith.constant 0 : index
    %c0_5 = arith.constant 0 : index
    %c0_6 = arith.constant 0 : index
    %6 = vector.load %arg3[%c0_4, %c0_5, %c0_6] : memref<8x8x128xf32, #tpu.memory_space<vmem>>, vector<8x8x128xf32>
    %c0_7 = arith.constant 0 : index
    %c0_8 = arith.constant 0 : index
    %c0_9 = arith.constant 0 : index
    %7 = vector.load %arg4[%c0_7, %c0_8, %c0_9] : memref<8x8x128xf32, #tpu.memory_space<vmem>>, vector<8x8x128xf32>
    %8 = arith.addf %6, %7 : vector<8x8x128xf32>
    %9 = vector.shape_cast %8 : vector<8x8x128xf32> to vector<64x128xf32>
    %10 = arith.truncf %9 : vector<64x128xf32> to vector<64x128xbf16>
    %c0_10 = arith.constant 0 : index
    %c0_11 = arith.constant 0 : index
    %11 = vector.load %arg8[%c0_10, %c0_11] : memref<128x1024xf32, #tpu.memory_space<vmem>>, vector<128x1024xf32>
    %12 = arith.truncf %11 : vector<128x1024xf32> to vector<128x1024xbf16>
    %cst_12 = arith.constant dense<0.000000e+00> : vector<64x1024xf32>
    %13 = tpu.matmul %10, %12, %cst_12 {dimension_numbers = #tpu.dot_dimension_numbers<[1], [0], [0], [1], [0, 0, 1, 1], [], []>} : vector<64x128xbf16>, vector<128x1024xbf16>, vector<64x1024xf32> -> vector<64x1024xf32>
    %14 = arith.addf %5, %13 : vector<64x1024xf32>
    %c0_13 = arith.constant 0 : index
    %c0_14 = arith.constant 0 : index
    %c0_15 = arith.constant 0 : index
    %15 = vector.load %arg5[%c0_13, %c0_14, %c0_15] : memref<8x8x128xf32, #tpu.memory_space<vmem>>, vector<8x8x128xf32>
    %c0_16 = arith.constant 0 : index
    %c0_17 = arith.constant 0 : index
    %c0_18 = arith.constant 0 : index
    %16 = vector.load %arg6[%c0_16, %c0_17, %c0_18] : memref<8x8x128xf32, #tpu.memory_space<vmem>>, vector<8x8x128xf32>
    %17 = arith.addf %15, %16 : vector<8x8x128xf32>
    %18 = vector.shape_cast %17 : vector<8x8x128xf32> to vector<64x128xf32>
    %19 = arith.truncf %18 : vector<64x128xf32> to vector<64x128xbf16>
    %c0_19 = arith.constant 0 : index
    %c0_20 = arith.constant 0 : index
    %20 = vector.load %arg9[%c0_19, %c0_20] : memref<128x1024xf32, #tpu.memory_space<vmem>>, vector<128x1024xf32>
    %21 = arith.truncf %20 : vector<128x1024xf32> to vector<128x1024xbf16>
    %cst_21 = arith.constant dense<0.000000e+00> : vector<64x1024xf32>
    %22 = tpu.matmul %19, %21, %cst_21 {dimension_numbers = #tpu.dot_dimension_numbers<[1], [0], [0], [1], [0, 0, 1, 1], [], []>} : vector<64x128xbf16>, vector<128x1024xbf16>, vector<64x1024xf32> -> vector<64x1024xf32>
    %23 = arith.addf %14, %22 : vector<64x1024xf32>
    %c0_22 = arith.constant 0 : index
    %c0_23 = arith.constant 0 : index
    %24 = vector.load %arg10[%c0_22, %c0_23] : memref<1x1024xf32, #tpu.memory_space<vmem>>, vector<1x1024xf32>
    %25 = vector.broadcast %24 : vector<1x1024xf32> to vector<64x1024xf32>
    %26 = arith.addf %23, %25 : vector<64x1024xf32>
    %27 = vector.shape_cast %26 : vector<64x1024xf32> to vector<8x8x1024xf32>
    %28 = vector.extract_strided_slice %27 {offsets = [0, 0, 0], sizes = [8, 8, 512], strides = [1, 1, 1]} : vector<8x8x1024xf32> to vector<8x8x512xf32>
    %c0_24 = arith.constant 0 : index
    %c0_25 = arith.constant 0 : index
    %c0_26 = arith.constant 0 : index
    %29 = vector.load %arg15[%c0_24, %c0_25, %c0_26] : memref<8x8x512xf32, #tpu.memory_space<vmem>>, vector<8x8x512xf32>
    tpu.vector_store %arg15[%c0_24, %c0_25, %c0_26], %28 {strides = array<i32>} : memref<8x8x512xf32, #tpu.memory_space<vmem>>, vector<8x8x512xf32>,
    %30 = vector.extract_strided_slice %27 {offsets = [0, 0, 512], sizes = [8, 8, 512], strides = [1, 1, 1]} : vector<8x8x1024xf32> to vector<8x8x512xf32>
    %c0_27 = arith.constant 0 : index
    %c0_28 = arith.constant 0 : index
    %c0_29 = arith.constant 0 : index
    %31 = vector.load %arg16[%c0_27, %c0_28, %c0_29] : memref<8x8x512xf32, #tpu.memory_space<vmem>>, vector<8x8x512xf32>
    tpu.vector_store %arg16[%c0_27, %c0_28, %c0_29], %30 {strides = array<i32>} : memref<8x8x512xf32, #tpu.memory_space<vmem>>, vector<8x8x512xf32>,
    %cst_30 = arith.constant 0.000000e+00 : f32
    %32 = vector.broadcast %cst_30 : f32 to vector<8x128xf32>
    %c0_31 = arith.constant 0 : index
    %c0_32 = arith.constant 0 : index
    %33 = vector.load %arg17[%c0_31, %c0_32] : memref<8x128xf32, #tpu.memory_space<vmem>>, vector<8x128xf32>
    tpu.vector_store %arg17[%c0_31, %c0_32], %32 {strides = array<i32>} : memref<8x128xf32, #tpu.memory_space<vmem>>, vector<8x128xf32>,
    %cst_33 = arith.constant 0.000000e+00 : f32
    %34 = vector.broadcast %cst_33 : f32 to vector<8x128xf32>
    %c0_34 = arith.constant 0 : index
    %c0_35 = arith.constant 0 : index
    %35 = vector.load %arg18[%c0_34, %c0_35] : memref<8x128xf32, #tpu.memory_space<vmem>>, vector<8x128xf32>
    tpu.vector_store %arg18[%c0_34, %c0_35], %34 {strides = array<i32>} : memref<8x128xf32, #tpu.memory_space<vmem>>, vector<8x128xf32>,
    %cst_36 = arith.constant 0.000000e+00 : f32
    %36 = vector.broadcast %cst_36 : f32 to vector<8x128xf32>
    %c0_37 = arith.constant 0 : index
    %c0_38 = arith.constant 0 : index
    %37 = vector.load %arg19[%c0_37, %c0_38] : memref<8x128xf32, #tpu.memory_space<vmem>>, vector<8x128xf32>
    tpu.vector_store %arg19[%c0_37, %c0_38], %36 {strides = array<i32>} : memref<8x128xf32, #tpu.memory_space<vmem>>, vector<8x128xf32>,
    %cst_39 = arith.constant 0.000000e+00 : f32
    %38 = vector.broadcast %cst_39 : f32 to vector<8x128xf32>
    %c0_40 = arith.constant 0 : index
    %c0_41 = arith.constant 0 : index
    %39 = vector.load %arg20[%c0_40, %c0_41] : memref<8x128xf32, #tpu.memory_space<vmem>>, vector<8x128xf32>
    tpu.vector_store %arg20[%c0_40, %c0_41], %38 {strides = array<i32>} : memref<8x128xf32, #tpu.memory_space<vmem>>, vector<8x128xf32>,
    %cst_42 = arith.constant -1.000000e+30 : f32
    %40 = vector.broadcast %cst_42 : f32 to vector<8x128xf32>
    %c0_43 = arith.constant 0 : index
    %c0_44 = arith.constant 0 : index
    %41 = vector.load %arg21[%c0_43, %c0_44] : memref<8x128xf32, #tpu.memory_space<vmem>>, vector<8x128xf32>
    tpu.vector_store %arg21[%c0_43, %c0_44], %40 {strides = array<i32>} : memref<8x128xf32, #tpu.memory_space<vmem>>, vector<8x128xf32>,
    %cst_45 = arith.constant -1.000000e+30 : f32
    %42 = vector.broadcast %cst_45 : f32 to vector<8x128xf32>
    %c0_46 = arith.constant 0 : index
    %c0_47 = arith.constant 0 : index
    %43 = vector.load %arg22[%c0_46, %c0_47] : memref<8x128xf32, #tpu.memory_space<vmem>>, vector<8x128xf32>
    tpu.vector_store %arg22[%c0_46, %c0_47], %42 {strides = array<i32>} : memref<8x128xf32, #tpu.memory_space<vmem>>, vector<8x128xf32>,
    %c0_48 = arith.constant 0 : index
    %c0_49 = arith.constant 0 : index
    %44 = vector.load %arg1[%c0_48, %c0_49] : memref<8x1xi32, #tpu.memory_space<vmem>>, vector<8x1xi32>
    %c0_50 = arith.constant 0 : index
    %c0_51 = arith.constant 0 : index
    %45 = vector.load %arg11[%c0_50, %c0_51] : memref<128x512xf32, #tpu.memory_space<vmem>>, vector<128x512xf32>
    %46 = arith.truncf %45 : vector<128x512xf32> to vector<128x512xbf16>
    %c0_52 = arith.constant 0 : index
    %c0_53 = arith.constant 0 : index
    %47 = vector.load %arg12[%c0_52, %c0_53] : memref<128x512xf32, #tpu.memory_space<vmem>>, vector<128x512xf32>
    %48 = arith.truncf %47 : vector<128x512xf32> to vector<128x512xbf16>
    %c0_i32 = arith.constant 0 : i32
    %c8_i32 = arith.constant 8 : i32
    %49 = arith.addi %c0_i32, %c8_i32 : i32
    %c1_i32 = arith.constant 1 : i32
    scf.for %arg23 = %c0_i32 to %49 step %c1_i32  : i32 {
      %c7_i32 = arith.constant 7 : i32
      %62 = arith.subi %c7_i32, %arg23 : i32
      %c0_67 = arith.constant 0 : index
      %c0_68 = arith.constant 0 : index
      %63 = vector.load %arg17[%c0_67, %c0_68] : memref<8x128xf32, #tpu.memory_space<vmem>>, vector<8x128xf32>
      %c0_69 = arith.constant 0 : index
      %c0_70 = arith.constant 0 : index
      %64 = vector.load %arg18[%c0_69, %c0_70] : memref<8x128xf32, #tpu.memory_space<vmem>>, vector<8x128xf32>
      %c0_71 = arith.constant 0 : index
      %c0_72 = arith.constant 0 : index
      %65 = vector.load %arg19[%c0_71, %c0_72] : memref<8x128xf32, #tpu.memory_space<vmem>>, vector<8x128xf32>
      %c0_73 = arith.constant 0 : index
      %c0_74 = arith.constant 0 : index
      %66 = vector.load %arg20[%c0_73, %c0_74] : memref<8x128xf32, #tpu.memory_space<vmem>>, vector<8x128xf32>
      %67 = arith.index_cast %arg23 : i32 to index
      %c0_75 = arith.constant 0 : index
      %c0_76 = arith.constant 0 : index
      %68 = vector.load %arg15[%67, %c0_75, %c0_76] : memref<8x8x512xf32, #tpu.memory_space<vmem>>, vector<1x8x512xf32>
      %69 = vector.shape_cast %68 : vector<1x8x512xf32> to vector<8x512xf32>
      %70 = arith.truncf %63 : vector<8x128xf32> to vector<8x128xbf16>
      %cst_77 = arith.constant dense<0.000000e+00> : vector<8x512xf32>
      %71 = tpu.matmul %70, %46, %cst_77 {dimension_numbers = #tpu.dot_dimension_numbers<[1], [0], [0], [1], [0, 0, 1, 1], [], []>} : vector<8x128xbf16>, vector<128x512xbf16>, vector<8x512xf32> -> vector<8x512xf32>
      %72 = arith.addf %69, %71 : vector<8x512xf32>
      %73 = arith.index_cast %62 : i32 to index
      %c0_78 = arith.constant 0 : index
      %c0_79 = arith.constant 0 : index
      %74 = vector.load %arg16[%73, %c0_78, %c0_79] : memref<8x8x512xf32, #tpu.memory_space<vmem>>, vector<1x8x512xf32>
      %75 = vector.shape_cast %74 : vector<1x8x512xf32> to vector<8x512xf32>
      %76 = arith.truncf %65 : vector<8x128xf32> to vector<8x128xbf16>
      %cst_80 = arith.constant dense<0.000000e+00> : vector<8x512xf32>
      %77 = tpu.matmul %76, %48, %cst_80 {dimension_numbers = #tpu.dot_dimension_numbers<[1], [0], [0], [1], [0, 0, 1, 1], [], []>} : vector<8x128xbf16>, vector<128x512xbf16>, vector<8x512xf32> -> vector<8x512xf32>
      %78 = arith.addf %75, %77 : vector<8x512xf32>
      %79 = vector.extract_strided_slice %72 {offsets = [0, 0], sizes = [8, 128], strides = [1, 1]} : vector<8x512xf32> to vector<8x128xf32>
      %80 = arith.negf %79 : vector<8x128xf32>
      %81 = math.exp %80 : vector<8x128xf32>
      %cst_81 = arith.constant 1.000000e+00 : f32
      %82 = vector.broadcast %cst_81 : f32 to vector<8x128xf32>
      %83 = arith.addf %82, %81 : vector<8x128xf32>
      %84 = arith.divf %82, %83 : vector<8x128xf32>
      %85 = vector.extract_strided_slice %72 {offsets = [0, 128], sizes = [8, 128], strides = [1, 1]} : vector<8x512xf32> to vector<8x128xf32>
      %86 = arith.negf %85 : vector<8x128xf32>
      %87 = math.exp %86 : vector<8x128xf32>
      %cst_82 = arith.constant 1.000000e+00 : f32
      %88 = vector.broadcast %cst_82 : f32 to vector<8x128xf32>
      %89 = arith.addf %88, %87 : vector<8x128xf32>
      %90 = arith.divf %88, %89 : vector<8x128xf32>
      %91 = vector.extract_strided_slice %72 {offsets = [0, 256], sizes = [8, 128], strides = [1, 1]} : vector<8x512xf32> to vector<8x128xf32>
      %92 = math.tanh %91 : vector<8x128xf32>
      %93 = vector.extract_strided_slice %72 {offsets = [0, 384], sizes = [8, 128], strides = [1, 1]} : vector<8x512xf32> to vector<8x128xf32>
      %94 = arith.negf %93 : vector<8x128xf32>
      %95 = math.exp %94 : vector<8x128xf32>
      %cst_83 = arith.constant 1.000000e+00 : f32
      %96 = vector.broadcast %cst_83 : f32 to vector<8x128xf32>
      %97 = arith.addf %96, %95 : vector<8x128xf32>
      %98 = arith.divf %96, %97 : vector<8x128xf32>
      %99 = arith.mulf %90, %64 : vector<8x128xf32>
      %100 = arith.mulf %84, %92 : vector<8x128xf32>
      %101 = arith.addf %99, %100 : vector<8x128xf32>
      %102 = math.tanh %101 : vector<8x128xf32>
      %103 = arith.mulf %98, %102 : vector<8x128xf32>
      %104 = vector.extract_strided_slice %78 {offsets = [0, 0], sizes = [8, 128], strides = [1, 1]} : vector<8x512xf32> to vector<8x128xf32>
      %105 = arith.negf %104 : vector<8x128xf32>
      %106 = math.exp %105 : vector<8x128xf32>
      %cst_84 = arith.constant 1.000000e+00 : f32
      %107 = vector.broadcast %cst_84 : f32 to vector<8x128xf32>
      %108 = arith.addf %107, %106 : vector<8x128xf32>
      %109 = arith.divf %107, %108 : vector<8x128xf32>
      %110 = vector.extract_strided_slice %78 {offsets = [0, 128], sizes = [8, 128], strides = [1, 1]} : vector<8x512xf32> to vector<8x128xf32>
      %111 = arith.negf %110 : vector<8x128xf32>
      %112 = math.exp %111 : vector<8x128xf32>
      %cst_85 = arith.constant 1.000000e+00 : f32
      %113 = vector.broadcast %cst_85 : f32 to vector<8x128xf32>
      %114 = arith.addf %113, %112 : vector<8x128xf32>
      %115 = arith.divf %113, %114 : vector<8x128xf32>
      %116 = vector.extract_strided_slice %78 {offsets = [0, 256], sizes = [8, 128], strides = [1, 1]} : vector<8x512xf32> to vector<8x128xf32>
      %117 = math.tanh %116 : vector<8x128xf32>
      %118 = vector.extract_strided_slice %78 {offsets = [0, 384], sizes = [8, 128], strides = [1, 1]} : vector<8x512xf32> to vector<8x128xf32>
      %119 = arith.negf %118 : vector<8x128xf32>
      %120 = math.exp %119 : vector<8x128xf32>
      %cst_86 = arith.constant 1.000000e+00 : f32
      %121 = vector.broadcast %cst_86 : f32 to vector<8x128xf32>
      %122 = arith.addf %121, %120 : vector<8x128xf32>
      %123 = arith.divf %121, %122 : vector<8x128xf32>
      %124 = arith.mulf %115, %66 : vector<8x128xf32>
      %125 = arith.mulf %109, %117 : vector<8x128xf32>
      %126 = arith.addf %124, %125 : vector<8x128xf32>
      %127 = math.tanh %126 : vector<8x128xf32>
      %128 = arith.mulf %123, %127 : vector<8x128xf32>
      %129 = vector.broadcast %arg23 : i32 to vector<8x1xi32>
      %130 = arith.cmpi sgt, %44, %129 : vector<8x1xi32>
      %131 = vector.broadcast %62 : i32 to vector<8x1xi32>
      %132 = arith.cmpi sgt, %44, %131 : vector<8x1xi32>
      %133 = vector.shape_cast %130 : vector<8x1xi1> to vector<8x1xi1>
      %134 = vector.broadcast %133 : vector<8x1xi1> to vector<8x128xi1>
      %135 = arith.select %134, %103, %63 : vector<8x128xi1>, vector<8x128xf32>
      %c0_87 = arith.constant 0 : index
      %c0_88 = arith.constant 0 : index
      %136 = vector.load %arg17[%c0_87, %c0_88] : memref<8x128xf32, #tpu.memory_space<vmem>>, vector<8x128xf32>
      tpu.vector_store %arg17[%c0_87, %c0_88], %135 {strides = array<i32>} : memref<8x128xf32, #tpu.memory_space<vmem>>, vector<8x128xf32>,
      %137 = vector.shape_cast %130 : vector<8x1xi1> to vector<8x1xi1>
      %138 = vector.broadcast %137 : vector<8x1xi1> to vector<8x128xi1>
      %139 = arith.select %138, %101, %64 : vector<8x128xi1>, vector<8x128xf32>
      %c0_89 = arith.constant 0 : index
      %c0_90 = arith.constant 0 : index
      %140 = vector.load %arg18[%c0_89, %c0_90] : memref<8x128xf32, #tpu.memory_space<vmem>>, vector<8x128xf32>
      tpu.vector_store %arg18[%c0_89, %c0_90], %139 {strides = array<i32>} : memref<8x128xf32, #tpu.memory_space<vmem>>, vector<8x128xf32>,
      %141 = vector.shape_cast %132 : vector<8x1xi1> to vector<8x1xi1>
      %142 = vector.broadcast %141 : vector<8x1xi1> to vector<8x128xi1>
      %143 = arith.select %142, %128, %65 : vector<8x128xi1>, vector<8x128xf32>
      %c0_91 = arith.constant 0 : index
      %c0_92 = arith.constant 0 : index
      %144 = vector.load %arg19[%c0_91, %c0_92] : memref<8x128xf32, #tpu.memory_space<vmem>>, vector<8x128xf32>
      tpu.vector_store %arg19[%c0_91, %c0_92], %143 {strides = array<i32>} : memref<8x128xf32, #tpu.memory_space<vmem>>, vector<8x128xf32>,
      %145 = vector.shape_cast %132 : vector<8x1xi1> to vector<8x1xi1>
      %146 = vector.broadcast %145 : vector<8x1xi1> to vector<8x128xi1>
      %147 = arith.select %146, %126, %66 : vector<8x128xi1>, vector<8x128xf32>
      %c0_93 = arith.constant 0 : index
      %c0_94 = arith.constant 0 : index
      %148 = vector.load %arg20[%c0_93, %c0_94] : memref<8x128xf32, #tpu.memory_space<vmem>>, vector<8x128xf32>
      tpu.vector_store %arg20[%c0_93, %c0_94], %147 {strides = array<i32>} : memref<8x128xf32, #tpu.memory_space<vmem>>, vector<8x128xf32>,
      %c0_95 = arith.constant 0 : index
      %c0_96 = arith.constant 0 : index
      %149 = vector.load %arg21[%c0_95, %c0_96] : memref<8x128xf32, #tpu.memory_space<vmem>>, vector<8x128xf32>
      %cst_97 = arith.constant -1.000000e+30 : f32
      %150 = vector.shape_cast %130 : vector<8x1xi1> to vector<8x1xi1>
      %151 = vector.broadcast %150 : vector<8x1xi1> to vector<8x128xi1>
      %152 = vector.broadcast %cst_97 : f32 to vector<8x128xf32>
      %153 = arith.select %151, %103, %152 : vector<8x128xi1>, vector<8x128xf32>
      %154 = arith.maximumf %149, %153 : vector<8x128xf32>
      %c0_98 = arith.constant 0 : index
      %c0_99 = arith.constant 0 : index
      %155 = vector.load %arg21[%c0_98, %c0_99] : memref<8x128xf32, #tpu.memory_space<vmem>>, vector<8x128xf32>
      tpu.vector_store %arg21[%c0_98, %c0_99], %154 {strides = array<i32>} : memref<8x128xf32, #tpu.memory_space<vmem>>, vector<8x128xf32>,
      %c0_100 = arith.constant 0 : index
      %c0_101 = arith.constant 0 : index
      %156 = vector.load %arg22[%c0_100, %c0_101] : memref<8x128xf32, #tpu.memory_space<vmem>>, vector<8x128xf32>
      %cst_102 = arith.constant -1.000000e+30 : f32
      %157 = vector.shape_cast %132 : vector<8x1xi1> to vector<8x1xi1>
      %158 = vector.broadcast %157 : vector<8x1xi1> to vector<8x128xi1>
      %159 = vector.broadcast %cst_102 : f32 to vector<8x128xf32>
      %160 = arith.select %158, %128, %159 : vector<8x128xi1>, vector<8x128xf32>
      %161 = arith.maximumf %156, %160 : vector<8x128xf32>
      %c0_103 = arith.constant 0 : index
      %c0_104 = arith.constant 0 : index
      %162 = vector.load %arg22[%c0_103, %c0_104] : memref<8x128xf32, #tpu.memory_space<vmem>>, vector<8x128xf32>
      tpu.vector_store %arg22[%c0_103, %c0_104], %161 {strides = array<i32>} : memref<8x128xf32, #tpu.memory_space<vmem>>, vector<8x128xf32>,
    }
    %c8_i32_54 = arith.constant 8 : i32
    %c0_55 = arith.constant 0 : index
    %c0_56 = arith.constant 0 : index
    %50 = vector.load %arg21[%c0_55, %c0_56] : memref<8x128xf32, #tpu.memory_space<vmem>>, vector<8x128xf32>
    %c0_57 = arith.constant 0 : index
    %c0_58 = arith.constant 0 : index
    %51 = vector.load %arg22[%c0_57, %c0_58] : memref<8x128xf32, #tpu.memory_space<vmem>>, vector<8x128xf32>
    %cst_59 = arith.constant -1.000000e+29 : f32
    %52 = vector.broadcast %cst_59 : f32 to vector<8x128xf32>
    %53 = arith.cmpf ogt, %50, %52 : vector<8x128xf32>
    %cst_60 = arith.constant 0.000000e+00 : f32
    %54 = vector.broadcast %cst_60 : f32 to vector<8x128xf32>
    %55 = arith.select %53, %50, %54 : vector<8x128xi1>, vector<8x128xf32>
    %c0_61 = arith.constant 0 : index
    %c0_62 = arith.constant 0 : index
    %56 = vector.load %arg13[%c0_61, %c0_62] : memref<8x128xf32, #tpu.memory_space<vmem>>, vector<8x128xf32>
    tpu.vector_store %arg13[%c0_61, %c0_62], %55 {strides = array<i32>} : memref<8x128xf32, #tpu.memory_space<vmem>>, vector<8x128xf32>,
    %cst_63 = arith.constant -1.000000e+29 : f32
    %57 = vector.broadcast %cst_63 : f32 to vector<8x128xf32>
    %58 = arith.cmpf ogt, %51, %57 : vector<8x128xf32>
    %cst_64 = arith.constant 0.000000e+00 : f32
    %59 = vector.broadcast %cst_64 : f32 to vector<8x128xf32>
    %60 = arith.select %58, %51, %59 : vector<8x128xi1>, vector<8x128xf32>
    %c0_65 = arith.constant 0 : index
    %c0_66 = arith.constant 0 : index
    %61 = vector.load %arg14[%c0_65, %c0_66] : memref<8x128xf32, #tpu.memory_space<vmem>>, vector<8x128xf32>
    tpu.vector_store %arg14[%c0_65, %c0_66], %60 {strides = array<i32>} : memref<8x128xf32, #tpu.memory_space<vmem>>, vector<8x128xf32>,
    return
  }
  func.func @transform_0(%arg0: i32) -> (i32, i32) {
    %c0_i32 = arith.constant 0 : i32
    %c0_i32_0 = arith.constant 0 : i32
    %c0_i32_1 = arith.constant 0 : i32
    return %c0_i32, %c0_i32_0 : i32, i32
  }
  func.func @transform_1(%arg0: i32) -> (i32, i32, i32) {
    %c0_i32 = arith.constant 0 : i32
    %c0_i32_0 = arith.constant 0 : i32
    %c0_i32_1 = arith.constant 0 : i32
    %c0_i32_2 = arith.constant 0 : i32
    return %c0_i32, %c0_i32_0, %c0_i32_1 : i32, i32, i32
  }
  func.func @transform_2(%arg0: i32) -> (i32, i32, i32) {
    %c0_i32 = arith.constant 0 : i32
    %c0_i32_0 = arith.constant 0 : i32
    %c0_i32_1 = arith.constant 0 : i32
    %c0_i32_2 = arith.constant 0 : i32
    return %c0_i32, %c0_i32_0, %c0_i32_1 : i32, i32, i32
  }
  func.func @transform_3(%arg0: i32) -> (i32, i32, i32) {
    %c0_i32 = arith.constant 0 : i32
    %c0_i32_0 = arith.constant 0 : i32
    %c0_i32_1 = arith.constant 0 : i32
    %c0_i32_2 = arith.constant 0 : i32
    return %c0_i32, %c0_i32_0, %c0_i32_1 : i32, i32, i32
  }
  func.func @transform_4(%arg0: i32) -> (i32, i32, i32) {
    %c0_i32 = arith.constant 0 : i32
    %c0_i32_0 = arith.constant 0 : i32
    %c0_i32_1 = arith.constant 0 : i32
    %c0_i32_2 = arith.constant 0 : i32
    return %c0_i32, %c0_i32_0, %c0_i32_1 : i32, i32, i32
  }
  func.func @transform_5(%arg0: i32) -> (i32, i32, i32) {
    %c0_i32 = arith.constant 0 : i32
    %c0_i32_0 = arith.constant 0 : i32
    %c0_i32_1 = arith.constant 0 : i32
    %c0_i32_2 = arith.constant 0 : i32
    return %c0_i32, %c0_i32_0, %c0_i32_1 : i32, i32, i32
  }
  func.func @transform_6(%arg0: i32) -> (i32, i32) {
    %c0_i32 = arith.constant 0 : i32
    %c0_i32_0 = arith.constant 0 : i32
    %c0_i32_1 = arith.constant 0 : i32
    return %c0_i32, %c0_i32_0 : i32, i32
  }
  func.func @transform_7(%arg0: i32) -> (i32, i32) {
    %c0_i32 = arith.constant 0 : i32
    %c0_i32_0 = arith.constant 0 : i32
    %c0_i32_1 = arith.constant 0 : i32
    return %c0_i32, %c0_i32_0 : i32, i32
  }
  func.func @transform_8(%arg0: i32) -> (i32, i32) {
    %c0_i32 = arith.constant 0 : i32
    %c0_i32_0 = arith.constant 0 : i32
    %c0_i32_1 = arith.constant 0 : i32
    return %c0_i32, %c0_i32_0 : i32, i32
  }
  func.func @transform_9(%arg0: i32) -> (i32, i32) {
    %c0_i32 = arith.constant 0 : i32
    %c0_i32_0 = arith.constant 0 : i32
    %c0_i32_1 = arith.constant 0 : i32
    return %c0_i32, %c0_i32_0 : i32, i32
  }
  func.func @transform_10(%arg0: i32) -> (i32, i32) {
    %c0_i32 = arith.constant 0 : i32
    %c0_i32_0 = arith.constant 0 : i32
    %c0_i32_1 = arith.constant 0 : i32
    return %c0_i32, %c0_i32_0 : i32, i32
  }
  func.func @transform_11(%arg0: i32) -> (i32, i32) {
    %c0_i32 = arith.constant 0 : i32
    %c0_i32_0 = arith.constant 0 : i32
    %c0_i32_1 = arith.constant 0 : i32
    return %c0_i32, %c0_i32_0 : i32, i32
  }
  func.func @transform_12(%arg0: i32) -> (i32, i32) {
    %c0_i32 = arith.constant 0 : i32
    %c0_i32_0 = arith.constant 0 : i32
    %c0_i32_1 = arith.constant 0 : i32
    return %c0_i32, %c0_i32_0 : i32, i32
  }
  func.func @transform_13(%arg0: i32) -> (i32, i32) {
    %c0_i32 = arith.constant 0 : i32
    %c0_i32_0 = arith.constant 0 : i32
    %c0_i32_1 = arith.constant 0 : i32
    return %c0_i32, %c0_i32_0 : i32, i32
  }
}

module attributes {stable_mosaic.version = 11 : i64} {
  func.func @kernel(%arg0: i32, %arg1: memref<8x1xi32, #tpu.memory_space<vmem>>, %arg2: memref<8x8x128xf32, #tpu.memory_space<vmem>>, %arg3: memref<128x1024xf32, #tpu.memory_space<vmem>>, %arg4: memref<1x1024xf32, #tpu.memory_space<vmem>>, %arg5: memref<128x512xf32, #tpu.memory_space<vmem>>, %arg6: memref<128x512xf32, #tpu.memory_space<vmem>>, %arg7: memref<8x8x128xf32, #tpu.memory_space<vmem>>, %arg8: memref<8x8x128xf32, #tpu.memory_space<vmem>>, %arg9: memref<8x8x512xf32, #tpu.memory_space<vmem>>, %arg10: memref<8x8x512xf32, #tpu.memory_space<vmem>>, %arg11: memref<8x128xf32, #tpu.memory_space<vmem>>, %arg12: memref<8x128xf32, #tpu.memory_space<vmem>>, %arg13: memref<8x128xf32, #tpu.memory_space<vmem>>, %arg14: memref<8x128xf32, #tpu.memory_space<vmem>>) attributes {dimension_semantics = [#tpu.dimension_semantics<arbitrary>], iteration_bounds = array<i64: 1>, scalar_prefetch = 0 : i64, scratch_operands = 6 : i64, tpu.core_type = #tpu.core_type<tc>, window_params = [{pipeline_mode = #tpu.pipeline_mode<synchronous>, transform_indices = @transform_0, window_bounds = array<i64: 8, 1>}, {pipeline_mode = #tpu.pipeline_mode<synchronous>, transform_indices = @transform_1, window_bounds = array<i64: 8, 8, 128>}, {pipeline_mode = #tpu.pipeline_mode<synchronous>, transform_indices = @transform_2, window_bounds = array<i64: 128, 1024>}, {pipeline_mode = #tpu.pipeline_mode<synchronous>, transform_indices = @transform_3, window_bounds = array<i64: 1, 1024>}, {pipeline_mode = #tpu.pipeline_mode<synchronous>, transform_indices = @transform_4, window_bounds = array<i64: 128, 512>}, {pipeline_mode = #tpu.pipeline_mode<synchronous>, transform_indices = @transform_5, window_bounds = array<i64: 128, 512>}, {pipeline_mode = #tpu.pipeline_mode<synchronous>, transform_indices = @transform_6, window_bounds = array<i64: 8, 8, 128>}, {pipeline_mode = #tpu.pipeline_mode<synchronous>, transform_indices = @transform_7, window_bounds = array<i64: 8, 8, 128>}]} {
    %c0 = arith.constant 0 : index
    %c0_0 = arith.constant 0 : index
    %c0_1 = arith.constant 0 : index
    %0 = vector.load %arg2[%c0, %c0_0, %c0_1] : memref<8x8x128xf32, #tpu.memory_space<vmem>>, vector<8x8x128xf32>
    %1 = vector.shape_cast %0 : vector<8x8x128xf32> to vector<64x128xf32>
    %2 = arith.truncf %1 : vector<64x128xf32> to vector<64x128xbf16>
    %c0_2 = arith.constant 0 : index
    %c0_3 = arith.constant 0 : index
    %3 = vector.load %arg3[%c0_2, %c0_3] : memref<128x1024xf32, #tpu.memory_space<vmem>>, vector<128x1024xf32>
    %4 = arith.truncf %3 : vector<128x1024xf32> to vector<128x1024xbf16>
    %cst = arith.constant dense<0.000000e+00> : vector<64x1024xf32>
    %5 = tpu.matmul %2, %4, %cst {dimension_numbers = #tpu.dot_dimension_numbers<[1], [0], [0], [1], [0, 0, 1, 1], [], []>} : vector<64x128xbf16>, vector<128x1024xbf16>, vector<64x1024xf32> -> vector<64x1024xf32>
    %c0_4 = arith.constant 0 : index
    %c0_5 = arith.constant 0 : index
    %6 = vector.load %arg4[%c0_4, %c0_5] : memref<1x1024xf32, #tpu.memory_space<vmem>>, vector<1x1024xf32>
    %7 = vector.broadcast %6 : vector<1x1024xf32> to vector<64x1024xf32>
    %8 = arith.addf %5, %7 : vector<64x1024xf32>
    %9 = vector.shape_cast %8 : vector<64x1024xf32> to vector<8x8x1024xf32>
    %10 = vector.extract_strided_slice %9 {offsets = [0, 0, 0], sizes = [8, 8, 512], strides = [1, 1, 1]} : vector<8x8x1024xf32> to vector<8x8x512xf32>
    %c0_6 = arith.constant 0 : index
    %c0_7 = arith.constant 0 : index
    %c0_8 = arith.constant 0 : index
    %11 = vector.load %arg9[%c0_6, %c0_7, %c0_8] : memref<8x8x512xf32, #tpu.memory_space<vmem>>, vector<8x8x512xf32>
    tpu.vector_store %arg9[%c0_6, %c0_7, %c0_8], %10 {strides = array<i32>} : memref<8x8x512xf32, #tpu.memory_space<vmem>>, vector<8x8x512xf32>,
    %12 = vector.extract_strided_slice %9 {offsets = [0, 0, 512], sizes = [8, 8, 512], strides = [1, 1, 1]} : vector<8x8x1024xf32> to vector<8x8x512xf32>
    %c0_9 = arith.constant 0 : index
    %c0_10 = arith.constant 0 : index
    %c0_11 = arith.constant 0 : index
    %13 = vector.load %arg10[%c0_9, %c0_10, %c0_11] : memref<8x8x512xf32, #tpu.memory_space<vmem>>, vector<8x8x512xf32>
    tpu.vector_store %arg10[%c0_9, %c0_10, %c0_11], %12 {strides = array<i32>} : memref<8x8x512xf32, #tpu.memory_space<vmem>>, vector<8x8x512xf32>,
    %cst_12 = arith.constant 0.000000e+00 : f32
    %14 = vector.broadcast %cst_12 : f32 to vector<8x128xf32>
    %c0_13 = arith.constant 0 : index
    %c0_14 = arith.constant 0 : index
    %15 = vector.load %arg11[%c0_13, %c0_14] : memref<8x128xf32, #tpu.memory_space<vmem>>, vector<8x128xf32>
    tpu.vector_store %arg11[%c0_13, %c0_14], %14 {strides = array<i32>} : memref<8x128xf32, #tpu.memory_space<vmem>>, vector<8x128xf32>,
    %cst_15 = arith.constant 0.000000e+00 : f32
    %16 = vector.broadcast %cst_15 : f32 to vector<8x128xf32>
    %c0_16 = arith.constant 0 : index
    %c0_17 = arith.constant 0 : index
    %17 = vector.load %arg12[%c0_16, %c0_17] : memref<8x128xf32, #tpu.memory_space<vmem>>, vector<8x128xf32>
    tpu.vector_store %arg12[%c0_16, %c0_17], %16 {strides = array<i32>} : memref<8x128xf32, #tpu.memory_space<vmem>>, vector<8x128xf32>,
    %cst_18 = arith.constant 0.000000e+00 : f32
    %18 = vector.broadcast %cst_18 : f32 to vector<8x128xf32>
    %c0_19 = arith.constant 0 : index
    %c0_20 = arith.constant 0 : index
    %19 = vector.load %arg13[%c0_19, %c0_20] : memref<8x128xf32, #tpu.memory_space<vmem>>, vector<8x128xf32>
    tpu.vector_store %arg13[%c0_19, %c0_20], %18 {strides = array<i32>} : memref<8x128xf32, #tpu.memory_space<vmem>>, vector<8x128xf32>,
    %cst_21 = arith.constant 0.000000e+00 : f32
    %20 = vector.broadcast %cst_21 : f32 to vector<8x128xf32>
    %c0_22 = arith.constant 0 : index
    %c0_23 = arith.constant 0 : index
    %21 = vector.load %arg14[%c0_22, %c0_23] : memref<8x128xf32, #tpu.memory_space<vmem>>, vector<8x128xf32>
    tpu.vector_store %arg14[%c0_22, %c0_23], %20 {strides = array<i32>} : memref<8x128xf32, #tpu.memory_space<vmem>>, vector<8x128xf32>,
    %c0_24 = arith.constant 0 : index
    %c0_25 = arith.constant 0 : index
    %22 = vector.load %arg1[%c0_24, %c0_25] : memref<8x1xi32, #tpu.memory_space<vmem>>, vector<8x1xi32>
    %c0_26 = arith.constant 0 : index
    %c0_27 = arith.constant 0 : index
    %23 = vector.load %arg5[%c0_26, %c0_27] : memref<128x512xf32, #tpu.memory_space<vmem>>, vector<128x512xf32>
    %24 = arith.truncf %23 : vector<128x512xf32> to vector<128x512xbf16>
    %c0_28 = arith.constant 0 : index
    %c0_29 = arith.constant 0 : index
    %25 = vector.load %arg6[%c0_28, %c0_29] : memref<128x512xf32, #tpu.memory_space<vmem>>, vector<128x512xf32>
    %26 = arith.truncf %25 : vector<128x512xf32> to vector<128x512xbf16>
    %c0_i32 = arith.constant 0 : i32
    %c8_i32 = arith.constant 8 : i32
    %27 = arith.addi %c0_i32, %c8_i32 : i32
    %c1_i32 = arith.constant 1 : i32
    scf.for %arg15 = %c0_i32 to %27 step %c1_i32  : i32 {
      %c7_i32 = arith.constant 7 : i32
      %28 = arith.subi %c7_i32, %arg15 : i32
      %c0_31 = arith.constant 0 : index
      %c0_32 = arith.constant 0 : index
      %29 = vector.load %arg11[%c0_31, %c0_32] : memref<8x128xf32, #tpu.memory_space<vmem>>, vector<8x128xf32>
      %c0_33 = arith.constant 0 : index
      %c0_34 = arith.constant 0 : index
      %30 = vector.load %arg12[%c0_33, %c0_34] : memref<8x128xf32, #tpu.memory_space<vmem>>, vector<8x128xf32>
      %c0_35 = arith.constant 0 : index
      %c0_36 = arith.constant 0 : index
      %31 = vector.load %arg13[%c0_35, %c0_36] : memref<8x128xf32, #tpu.memory_space<vmem>>, vector<8x128xf32>
      %c0_37 = arith.constant 0 : index
      %c0_38 = arith.constant 0 : index
      %32 = vector.load %arg14[%c0_37, %c0_38] : memref<8x128xf32, #tpu.memory_space<vmem>>, vector<8x128xf32>
      %33 = arith.index_cast %arg15 : i32 to index
      %c0_39 = arith.constant 0 : index
      %c0_40 = arith.constant 0 : index
      %34 = vector.load %arg9[%33, %c0_39, %c0_40] : memref<8x8x512xf32, #tpu.memory_space<vmem>>, vector<1x8x512xf32>
      %35 = vector.shape_cast %34 : vector<1x8x512xf32> to vector<8x512xf32>
      %36 = arith.truncf %29 : vector<8x128xf32> to vector<8x128xbf16>
      %cst_41 = arith.constant dense<0.000000e+00> : vector<8x512xf32>
      %37 = tpu.matmul %36, %24, %cst_41 {dimension_numbers = #tpu.dot_dimension_numbers<[1], [0], [0], [1], [0, 0, 1, 1], [], []>} : vector<8x128xbf16>, vector<128x512xbf16>, vector<8x512xf32> -> vector<8x512xf32>
      %38 = arith.addf %35, %37 : vector<8x512xf32>
      %39 = arith.index_cast %28 : i32 to index
      %c0_42 = arith.constant 0 : index
      %c0_43 = arith.constant 0 : index
      %40 = vector.load %arg10[%39, %c0_42, %c0_43] : memref<8x8x512xf32, #tpu.memory_space<vmem>>, vector<1x8x512xf32>
      %41 = vector.shape_cast %40 : vector<1x8x512xf32> to vector<8x512xf32>
      %42 = arith.truncf %31 : vector<8x128xf32> to vector<8x128xbf16>
      %cst_44 = arith.constant dense<0.000000e+00> : vector<8x512xf32>
      %43 = tpu.matmul %42, %26, %cst_44 {dimension_numbers = #tpu.dot_dimension_numbers<[1], [0], [0], [1], [0, 0, 1, 1], [], []>} : vector<8x128xbf16>, vector<128x512xbf16>, vector<8x512xf32> -> vector<8x512xf32>
      %44 = arith.addf %41, %43 : vector<8x512xf32>
      %45 = vector.extract_strided_slice %38 {offsets = [0, 0], sizes = [8, 128], strides = [1, 1]} : vector<8x512xf32> to vector<8x128xf32>
      %46 = arith.negf %45 : vector<8x128xf32>
      %47 = math.exp %46 : vector<8x128xf32>
      %cst_45 = arith.constant 1.000000e+00 : f32
      %48 = vector.broadcast %cst_45 : f32 to vector<8x128xf32>
      %49 = arith.addf %48, %47 : vector<8x128xf32>
      %50 = arith.divf %48, %49 : vector<8x128xf32>
      %51 = vector.extract_strided_slice %38 {offsets = [0, 128], sizes = [8, 128], strides = [1, 1]} : vector<8x512xf32> to vector<8x128xf32>
      %52 = arith.negf %51 : vector<8x128xf32>
      %53 = math.exp %52 : vector<8x128xf32>
      %cst_46 = arith.constant 1.000000e+00 : f32
      %54 = vector.broadcast %cst_46 : f32 to vector<8x128xf32>
      %55 = arith.addf %54, %53 : vector<8x128xf32>
      %56 = arith.divf %54, %55 : vector<8x128xf32>
      %57 = vector.extract_strided_slice %38 {offsets = [0, 256], sizes = [8, 128], strides = [1, 1]} : vector<8x512xf32> to vector<8x128xf32>
      %58 = math.tanh %57 : vector<8x128xf32>
      %59 = vector.extract_strided_slice %38 {offsets = [0, 384], sizes = [8, 128], strides = [1, 1]} : vector<8x512xf32> to vector<8x128xf32>
      %60 = arith.negf %59 : vector<8x128xf32>
      %61 = math.exp %60 : vector<8x128xf32>
      %cst_47 = arith.constant 1.000000e+00 : f32
      %62 = vector.broadcast %cst_47 : f32 to vector<8x128xf32>
      %63 = arith.addf %62, %61 : vector<8x128xf32>
      %64 = arith.divf %62, %63 : vector<8x128xf32>
      %65 = arith.mulf %56, %30 : vector<8x128xf32>
      %66 = arith.mulf %50, %58 : vector<8x128xf32>
      %67 = arith.addf %65, %66 : vector<8x128xf32>
      %68 = math.tanh %67 : vector<8x128xf32>
      %69 = arith.mulf %64, %68 : vector<8x128xf32>
      %70 = vector.extract_strided_slice %44 {offsets = [0, 0], sizes = [8, 128], strides = [1, 1]} : vector<8x512xf32> to vector<8x128xf32>
      %71 = arith.negf %70 : vector<8x128xf32>
      %72 = math.exp %71 : vector<8x128xf32>
      %cst_48 = arith.constant 1.000000e+00 : f32
      %73 = vector.broadcast %cst_48 : f32 to vector<8x128xf32>
      %74 = arith.addf %73, %72 : vector<8x128xf32>
      %75 = arith.divf %73, %74 : vector<8x128xf32>
      %76 = vector.extract_strided_slice %44 {offsets = [0, 128], sizes = [8, 128], strides = [1, 1]} : vector<8x512xf32> to vector<8x128xf32>
      %77 = arith.negf %76 : vector<8x128xf32>
      %78 = math.exp %77 : vector<8x128xf32>
      %cst_49 = arith.constant 1.000000e+00 : f32
      %79 = vector.broadcast %cst_49 : f32 to vector<8x128xf32>
      %80 = arith.addf %79, %78 : vector<8x128xf32>
      %81 = arith.divf %79, %80 : vector<8x128xf32>
      %82 = vector.extract_strided_slice %44 {offsets = [0, 256], sizes = [8, 128], strides = [1, 1]} : vector<8x512xf32> to vector<8x128xf32>
      %83 = math.tanh %82 : vector<8x128xf32>
      %84 = vector.extract_strided_slice %44 {offsets = [0, 384], sizes = [8, 128], strides = [1, 1]} : vector<8x512xf32> to vector<8x128xf32>
      %85 = arith.negf %84 : vector<8x128xf32>
      %86 = math.exp %85 : vector<8x128xf32>
      %cst_50 = arith.constant 1.000000e+00 : f32
      %87 = vector.broadcast %cst_50 : f32 to vector<8x128xf32>
      %88 = arith.addf %87, %86 : vector<8x128xf32>
      %89 = arith.divf %87, %88 : vector<8x128xf32>
      %90 = arith.mulf %81, %32 : vector<8x128xf32>
      %91 = arith.mulf %75, %83 : vector<8x128xf32>
      %92 = arith.addf %90, %91 : vector<8x128xf32>
      %93 = math.tanh %92 : vector<8x128xf32>
      %94 = arith.mulf %89, %93 : vector<8x128xf32>
      %95 = vector.broadcast %arg15 : i32 to vector<8x1xi32>
      %96 = arith.cmpi sgt, %22, %95 : vector<8x1xi32>
      %97 = vector.broadcast %28 : i32 to vector<8x1xi32>
      %98 = arith.cmpi sgt, %22, %97 : vector<8x1xi32>
      %99 = vector.shape_cast %96 : vector<8x1xi1> to vector<8x1xi1>
      %100 = vector.broadcast %99 : vector<8x1xi1> to vector<8x128xi1>
      %101 = arith.select %100, %69, %29 : vector<8x128xi1>, vector<8x128xf32>
      %c0_51 = arith.constant 0 : index
      %c0_52 = arith.constant 0 : index
      %102 = vector.load %arg11[%c0_51, %c0_52] : memref<8x128xf32, #tpu.memory_space<vmem>>, vector<8x128xf32>
      tpu.vector_store %arg11[%c0_51, %c0_52], %101 {strides = array<i32>} : memref<8x128xf32, #tpu.memory_space<vmem>>, vector<8x128xf32>,
      %103 = vector.shape_cast %96 : vector<8x1xi1> to vector<8x1xi1>
      %104 = vector.broadcast %103 : vector<8x1xi1> to vector<8x128xi1>
      %105 = arith.select %104, %67, %30 : vector<8x128xi1>, vector<8x128xf32>
      %c0_53 = arith.constant 0 : index
      %c0_54 = arith.constant 0 : index
      %106 = vector.load %arg12[%c0_53, %c0_54] : memref<8x128xf32, #tpu.memory_space<vmem>>, vector<8x128xf32>
      tpu.vector_store %arg12[%c0_53, %c0_54], %105 {strides = array<i32>} : memref<8x128xf32, #tpu.memory_space<vmem>>, vector<8x128xf32>,
      %107 = vector.shape_cast %98 : vector<8x1xi1> to vector<8x1xi1>
      %108 = vector.broadcast %107 : vector<8x1xi1> to vector<8x128xi1>
      %109 = arith.select %108, %94, %31 : vector<8x128xi1>, vector<8x128xf32>
      %c0_55 = arith.constant 0 : index
      %c0_56 = arith.constant 0 : index
      %110 = vector.load %arg13[%c0_55, %c0_56] : memref<8x128xf32, #tpu.memory_space<vmem>>, vector<8x128xf32>
      tpu.vector_store %arg13[%c0_55, %c0_56], %109 {strides = array<i32>} : memref<8x128xf32, #tpu.memory_space<vmem>>, vector<8x128xf32>,
      %111 = vector.shape_cast %98 : vector<8x1xi1> to vector<8x1xi1>
      %112 = vector.broadcast %111 : vector<8x1xi1> to vector<8x128xi1>
      %113 = arith.select %112, %92, %32 : vector<8x128xi1>, vector<8x128xf32>
      %c0_57 = arith.constant 0 : index
      %c0_58 = arith.constant 0 : index
      %114 = vector.load %arg14[%c0_57, %c0_58] : memref<8x128xf32, #tpu.memory_space<vmem>>, vector<8x128xf32>
      tpu.vector_store %arg14[%c0_57, %c0_58], %113 {strides = array<i32>} : memref<8x128xf32, #tpu.memory_space<vmem>>, vector<8x128xf32>,
      %cst_59 = arith.constant 0.000000e+00 : f32
      %115 = vector.shape_cast %96 : vector<8x1xi1> to vector<8x1xi1>
      %116 = vector.broadcast %115 : vector<8x1xi1> to vector<8x128xi1>
      %117 = vector.broadcast %cst_59 : f32 to vector<8x128xf32>
      %118 = arith.select %116, %69, %117 : vector<8x128xi1>, vector<8x128xf32>
      %119 = arith.index_cast %arg15 : i32 to index
      %c0_60 = arith.constant 0 : index
      %c0_61 = arith.constant 0 : index
      %120 = vector.load %arg7[%119, %c0_60, %c0_61] : memref<8x8x128xf32, #tpu.memory_space<vmem>>, vector<1x8x128xf32>
      %121 = vector.shape_cast %120 : vector<1x8x128xf32> to vector<8x128xf32>
      %122 = vector.shape_cast %118 : vector<8x128xf32> to vector<1x8x128xf32>
      tpu.vector_store %arg7[%119, %c0_60, %c0_61], %122 {strides = array<i32>} : memref<8x8x128xf32, #tpu.memory_space<vmem>>, vector<1x8x128xf32>,
      %cst_62 = arith.constant 0.000000e+00 : f32
      %123 = vector.shape_cast %98 : vector<8x1xi1> to vector<8x1xi1>
      %124 = vector.broadcast %123 : vector<8x1xi1> to vector<8x128xi1>
      %125 = vector.broadcast %cst_62 : f32 to vector<8x128xf32>
      %126 = arith.select %124, %94, %125 : vector<8x128xi1>, vector<8x128xf32>
      %127 = arith.index_cast %28 : i32 to index
      %c0_63 = arith.constant 0 : index
      %c0_64 = arith.constant 0 : index
      %128 = vector.load %arg8[%127, %c0_63, %c0_64] : memref<8x8x128xf32, #tpu.memory_space<vmem>>, vector<1x8x128xf32>
      %129 = vector.shape_cast %128 : vector<1x8x128xf32> to vector<8x128xf32>
      %130 = vector.shape_cast %126 : vector<8x128xf32> to vector<1x8x128xf32>
      tpu.vector_store %arg8[%127, %c0_63, %c0_64], %130 {strides = array<i32>} : memref<8x8x128xf32, #tpu.memory_space<vmem>>, vector<1x8x128xf32>,
    }
    %c8_i32_30 = arith.constant 8 : i32
    return
  }
  func.func @transform_0(%arg0: i32) -> (i32, i32) {
    %c0_i32 = arith.constant 0 : i32
    %c0_i32_0 = arith.constant 0 : i32
    %c0_i32_1 = arith.constant 0 : i32
    return %c0_i32, %c0_i32_0 : i32, i32
  }
  func.func @transform_1(%arg0: i32) -> (i32, i32, i32) {
    %c0_i32 = arith.constant 0 : i32
    %c0_i32_0 = arith.constant 0 : i32
    %c0_i32_1 = arith.constant 0 : i32
    %c0_i32_2 = arith.constant 0 : i32
    return %c0_i32, %c0_i32_0, %c0_i32_1 : i32, i32, i32
  }
  func.func @transform_2(%arg0: i32) -> (i32, i32) {
    %c0_i32 = arith.constant 0 : i32
    %c0_i32_0 = arith.constant 0 : i32
    %c0_i32_1 = arith.constant 0 : i32
    return %c0_i32, %c0_i32_0 : i32, i32
  }
  func.func @transform_3(%arg0: i32) -> (i32, i32) {
    %c0_i32 = arith.constant 0 : i32
    %c0_i32_0 = arith.constant 0 : i32
    %c0_i32_1 = arith.constant 0 : i32
    return %c0_i32, %c0_i32_0 : i32, i32
  }
  func.func @transform_4(%arg0: i32) -> (i32, i32) {
    %c0_i32 = arith.constant 0 : i32
    %c0_i32_0 = arith.constant 0 : i32
    %c0_i32_1 = arith.constant 0 : i32
    return %c0_i32, %c0_i32_0 : i32, i32
  }
  func.func @transform_5(%arg0: i32) -> (i32, i32) {
    %c0_i32 = arith.constant 0 : i32
    %c0_i32_0 = arith.constant 0 : i32
    %c0_i32_1 = arith.constant 0 : i32
    return %c0_i32, %c0_i32_0 : i32, i32
  }
  func.func @transform_6(%arg0: i32) -> (i32, i32, i32) {
    %c0_i32 = arith.constant 0 : i32
    %c0_i32_0 = arith.constant 0 : i32
    %c0_i32_1 = arith.constant 0 : i32
    %c0_i32_2 = arith.constant 0 : i32
    return %c0_i32, %c0_i32_0, %c0_i32_1 : i32, i32, i32
  }
  func.func @transform_7(%arg0: i32) -> (i32, i32, i32) {
    %c0_i32 = arith.constant 0 : i32
    %c0_i32_0 = arith.constant 0 : i32
    %c0_i32_1 = arith.constant 0 : i32
    %c0_i32_2 = arith.constant 0 : i32
    return %c0_i32, %c0_i32_0, %c0_i32_1 : i32, i32, i32
  }
}

module attributes {stable_mosaic.version = 11 : i64} {
  func.func @kernel(%arg0: i32, %arg1: memref<8x1xi32, #tpu.memory_space<vmem>>, %arg2: memref<8x8x128xf32, #tpu.memory_space<vmem>>, %arg3: memref<8x8x128xf32, #tpu.memory_space<vmem>>, %arg4: memref<8x8x128xf32, #tpu.memory_space<vmem>>, %arg5: memref<128x1024xf32, #tpu.memory_space<vmem>>, %arg6: memref<128x1024xf32, #tpu.memory_space<vmem>>, %arg7: memref<128x1024xf32, #tpu.memory_space<vmem>>, %arg8: memref<1x1024xf32, #tpu.memory_space<vmem>>, %arg9: memref<128x512xf32, #tpu.memory_space<vmem>>, %arg10: memref<128x512xf32, #tpu.memory_space<vmem>>, %arg11: memref<8x8x128xf32, #tpu.memory_space<vmem>>, %arg12: memref<8x8x128xf32, #tpu.memory_space<vmem>>, %arg13: memref<8x8x512xf32, #tpu.memory_space<vmem>>, %arg14: memref<8x8x512xf32, #tpu.memory_space<vmem>>, %arg15: memref<8x128xf32, #tpu.memory_space<vmem>>, %arg16: memref<8x128xf32, #tpu.memory_space<vmem>>, %arg17: memref<8x128xf32, #tpu.memory_space<vmem>>, %arg18: memref<8x128xf32, #tpu.memory_space<vmem>>) attributes {dimension_semantics = [#tpu.dimension_semantics<arbitrary>], iteration_bounds = array<i64: 1>, scalar_prefetch = 0 : i64, scratch_operands = 6 : i64, tpu.core_type = #tpu.core_type<tc>, window_params = [{pipeline_mode = #tpu.pipeline_mode<synchronous>, transform_indices = @transform_0, window_bounds = array<i64: 8, 1>}, {pipeline_mode = #tpu.pipeline_mode<synchronous>, transform_indices = @transform_1, window_bounds = array<i64: 8, 8, 128>}, {pipeline_mode = #tpu.pipeline_mode<synchronous>, transform_indices = @transform_2, window_bounds = array<i64: 8, 8, 128>}, {pipeline_mode = #tpu.pipeline_mode<synchronous>, transform_indices = @transform_3, window_bounds = array<i64: 8, 8, 128>}, {pipeline_mode = #tpu.pipeline_mode<synchronous>, transform_indices = @transform_4, window_bounds = array<i64: 128, 1024>}, {pipeline_mode = #tpu.pipeline_mode<synchronous>, transform_indices = @transform_5, window_bounds = array<i64: 128, 1024>}, {pipeline_mode = #tpu.pipeline_mode<synchronous>, transform_indices = @transform_6, window_bounds = array<i64: 128, 1024>}, {pipeline_mode = #tpu.pipeline_mode<synchronous>, transform_indices = @transform_7, window_bounds = array<i64: 1, 1024>}, {pipeline_mode = #tpu.pipeline_mode<synchronous>, transform_indices = @transform_8, window_bounds = array<i64: 128, 512>}, {pipeline_mode = #tpu.pipeline_mode<synchronous>, transform_indices = @transform_9, window_bounds = array<i64: 128, 512>}, {pipeline_mode = #tpu.pipeline_mode<synchronous>, transform_indices = @transform_10, window_bounds = array<i64: 8, 8, 128>}, {pipeline_mode = #tpu.pipeline_mode<synchronous>, transform_indices = @transform_11, window_bounds = array<i64: 8, 8, 128>}]} {
    %c0 = arith.constant 0 : index
    %c0_0 = arith.constant 0 : index
    %c0_1 = arith.constant 0 : index
    %0 = vector.load %arg2[%c0, %c0_0, %c0_1] : memref<8x8x128xf32, #tpu.memory_space<vmem>>, vector<8x8x128xf32>
    %1 = vector.shape_cast %0 : vector<8x8x128xf32> to vector<64x128xf32>
    %2 = arith.truncf %1 : vector<64x128xf32> to vector<64x128xbf16>
    %c0_2 = arith.constant 0 : index
    %c0_3 = arith.constant 0 : index
    %3 = vector.load %arg5[%c0_2, %c0_3] : memref<128x1024xf32, #tpu.memory_space<vmem>>, vector<128x1024xf32>
    %4 = arith.truncf %3 : vector<128x1024xf32> to vector<128x1024xbf16>
    %cst = arith.constant dense<0.000000e+00> : vector<64x1024xf32>
    %5 = tpu.matmul %2, %4, %cst {dimension_numbers = #tpu.dot_dimension_numbers<[1], [0], [0], [1], [0, 0, 1, 1], [], []>} : vector<64x128xbf16>, vector<128x1024xbf16>, vector<64x1024xf32> -> vector<64x1024xf32>
    %c0_4 = arith.constant 0 : index
    %c0_5 = arith.constant 0 : index
    %c0_6 = arith.constant 0 : index
    %6 = vector.load %arg3[%c0_4, %c0_5, %c0_6] : memref<8x8x128xf32, #tpu.memory_space<vmem>>, vector<8x8x128xf32>
    %7 = vector.shape_cast %6 : vector<8x8x128xf32> to vector<64x128xf32>
    %8 = arith.truncf %7 : vector<64x128xf32> to vector<64x128xbf16>
    %c0_7 = arith.constant 0 : index
    %c0_8 = arith.constant 0 : index
    %9 = vector.load %arg6[%c0_7, %c0_8] : memref<128x1024xf32, #tpu.memory_space<vmem>>, vector<128x1024xf32>
    %10 = arith.truncf %9 : vector<128x1024xf32> to vector<128x1024xbf16>
    %cst_9 = arith.constant dense<0.000000e+00> : vector<64x1024xf32>
    %11 = tpu.matmul %8, %10, %cst_9 {dimension_numbers = #tpu.dot_dimension_numbers<[1], [0], [0], [1], [0, 0, 1, 1], [], []>} : vector<64x128xbf16>, vector<128x1024xbf16>, vector<64x1024xf32> -> vector<64x1024xf32>
    %12 = arith.addf %5, %11 : vector<64x1024xf32>
    %c0_10 = arith.constant 0 : index
    %c0_11 = arith.constant 0 : index
    %c0_12 = arith.constant 0 : index
    %13 = vector.load %arg4[%c0_10, %c0_11, %c0_12] : memref<8x8x128xf32, #tpu.memory_space<vmem>>, vector<8x8x128xf32>
    %14 = vector.shape_cast %13 : vector<8x8x128xf32> to vector<64x128xf32>
    %15 = arith.truncf %14 : vector<64x128xf32> to vector<64x128xbf16>
    %c0_13 = arith.constant 0 : index
    %c0_14 = arith.constant 0 : index
    %16 = vector.load %arg7[%c0_13, %c0_14] : memref<128x1024xf32, #tpu.memory_space<vmem>>, vector<128x1024xf32>
    %17 = arith.truncf %16 : vector<128x1024xf32> to vector<128x1024xbf16>
    %cst_15 = arith.constant dense<0.000000e+00> : vector<64x1024xf32>
    %18 = tpu.matmul %15, %17, %cst_15 {dimension_numbers = #tpu.dot_dimension_numbers<[1], [0], [0], [1], [0, 0, 1, 1], [], []>} : vector<64x128xbf16>, vector<128x1024xbf16>, vector<64x1024xf32> -> vector<64x1024xf32>
    %19 = arith.addf %12, %18 : vector<64x1024xf32>
    %c0_16 = arith.constant 0 : index
    %c0_17 = arith.constant 0 : index
    %20 = vector.load %arg8[%c0_16, %c0_17] : memref<1x1024xf32, #tpu.memory_space<vmem>>, vector<1x1024xf32>
    %21 = vector.broadcast %20 : vector<1x1024xf32> to vector<64x1024xf32>
    %22 = arith.addf %19, %21 : vector<64x1024xf32>
    %23 = vector.shape_cast %22 : vector<64x1024xf32> to vector<8x8x1024xf32>
    %24 = vector.extract_strided_slice %23 {offsets = [0, 0, 0], sizes = [8, 8, 512], strides = [1, 1, 1]} : vector<8x8x1024xf32> to vector<8x8x512xf32>
    %c0_18 = arith.constant 0 : index
    %c0_19 = arith.constant 0 : index
    %c0_20 = arith.constant 0 : index
    %25 = vector.load %arg13[%c0_18, %c0_19, %c0_20] : memref<8x8x512xf32, #tpu.memory_space<vmem>>, vector<8x8x512xf32>
    tpu.vector_store %arg13[%c0_18, %c0_19, %c0_20], %24 {strides = array<i32>} : memref<8x8x512xf32, #tpu.memory_space<vmem>>, vector<8x8x512xf32>,
    %26 = vector.extract_strided_slice %23 {offsets = [0, 0, 512], sizes = [8, 8, 512], strides = [1, 1, 1]} : vector<8x8x1024xf32> to vector<8x8x512xf32>
    %c0_21 = arith.constant 0 : index
    %c0_22 = arith.constant 0 : index
    %c0_23 = arith.constant 0 : index
    %27 = vector.load %arg14[%c0_21, %c0_22, %c0_23] : memref<8x8x512xf32, #tpu.memory_space<vmem>>, vector<8x8x512xf32>
    tpu.vector_store %arg14[%c0_21, %c0_22, %c0_23], %26 {strides = array<i32>} : memref<8x8x512xf32, #tpu.memory_space<vmem>>, vector<8x8x512xf32>,
    %cst_24 = arith.constant 0.000000e+00 : f32
    %28 = vector.broadcast %cst_24 : f32 to vector<8x128xf32>
    %c0_25 = arith.constant 0 : index
    %c0_26 = arith.constant 0 : index
    %29 = vector.load %arg15[%c0_25, %c0_26] : memref<8x128xf32, #tpu.memory_space<vmem>>, vector<8x128xf32>
    tpu.vector_store %arg15[%c0_25, %c0_26], %28 {strides = array<i32>} : memref<8x128xf32, #tpu.memory_space<vmem>>, vector<8x128xf32>,
    %cst_27 = arith.constant 0.000000e+00 : f32
    %30 = vector.broadcast %cst_27 : f32 to vector<8x128xf32>
    %c0_28 = arith.constant 0 : index
    %c0_29 = arith.constant 0 : index
    %31 = vector.load %arg16[%c0_28, %c0_29] : memref<8x128xf32, #tpu.memory_space<vmem>>, vector<8x128xf32>
    tpu.vector_store %arg16[%c0_28, %c0_29], %30 {strides = array<i32>} : memref<8x128xf32, #tpu.memory_space<vmem>>, vector<8x128xf32>,
    %cst_30 = arith.constant 0.000000e+00 : f32
    %32 = vector.broadcast %cst_30 : f32 to vector<8x128xf32>
    %c0_31 = arith.constant 0 : index
    %c0_32 = arith.constant 0 : index
    %33 = vector.load %arg17[%c0_31, %c0_32] : memref<8x128xf32, #tpu.memory_space<vmem>>, vector<8x128xf32>
    tpu.vector_store %arg17[%c0_31, %c0_32], %32 {strides = array<i32>} : memref<8x128xf32, #tpu.memory_space<vmem>>, vector<8x128xf32>,
    %cst_33 = arith.constant 0.000000e+00 : f32
    %34 = vector.broadcast %cst_33 : f32 to vector<8x128xf32>
    %c0_34 = arith.constant 0 : index
    %c0_35 = arith.constant 0 : index
    %35 = vector.load %arg18[%c0_34, %c0_35] : memref<8x128xf32, #tpu.memory_space<vmem>>, vector<8x128xf32>
    tpu.vector_store %arg18[%c0_34, %c0_35], %34 {strides = array<i32>} : memref<8x128xf32, #tpu.memory_space<vmem>>, vector<8x128xf32>,
    %c0_36 = arith.constant 0 : index
    %c0_37 = arith.constant 0 : index
    %36 = vector.load %arg1[%c0_36, %c0_37] : memref<8x1xi32, #tpu.memory_space<vmem>>, vector<8x1xi32>
    %c0_38 = arith.constant 0 : index
    %c0_39 = arith.constant 0 : index
    %37 = vector.load %arg9[%c0_38, %c0_39] : memref<128x512xf32, #tpu.memory_space<vmem>>, vector<128x512xf32>
    %38 = arith.truncf %37 : vector<128x512xf32> to vector<128x512xbf16>
    %c0_40 = arith.constant 0 : index
    %c0_41 = arith.constant 0 : index
    %39 = vector.load %arg10[%c0_40, %c0_41] : memref<128x512xf32, #tpu.memory_space<vmem>>, vector<128x512xf32>
    %40 = arith.truncf %39 : vector<128x512xf32> to vector<128x512xbf16>
    %c0_i32 = arith.constant 0 : i32
    %c8_i32 = arith.constant 8 : i32
    %41 = arith.addi %c0_i32, %c8_i32 : i32
    %c1_i32 = arith.constant 1 : i32
    scf.for %arg19 = %c0_i32 to %41 step %c1_i32  : i32 {
      %c7_i32 = arith.constant 7 : i32
      %42 = arith.subi %c7_i32, %arg19 : i32
      %c0_43 = arith.constant 0 : index
      %c0_44 = arith.constant 0 : index
      %43 = vector.load %arg15[%c0_43, %c0_44] : memref<8x128xf32, #tpu.memory_space<vmem>>, vector<8x128xf32>
      %c0_45 = arith.constant 0 : index
      %c0_46 = arith.constant 0 : index
      %44 = vector.load %arg16[%c0_45, %c0_46] : memref<8x128xf32, #tpu.memory_space<vmem>>, vector<8x128xf32>
      %c0_47 = arith.constant 0 : index
      %c0_48 = arith.constant 0 : index
      %45 = vector.load %arg17[%c0_47, %c0_48] : memref<8x128xf32, #tpu.memory_space<vmem>>, vector<8x128xf32>
      %c0_49 = arith.constant 0 : index
      %c0_50 = arith.constant 0 : index
      %46 = vector.load %arg18[%c0_49, %c0_50] : memref<8x128xf32, #tpu.memory_space<vmem>>, vector<8x128xf32>
      %47 = arith.index_cast %arg19 : i32 to index
      %c0_51 = arith.constant 0 : index
      %c0_52 = arith.constant 0 : index
      %48 = vector.load %arg13[%47, %c0_51, %c0_52] : memref<8x8x512xf32, #tpu.memory_space<vmem>>, vector<1x8x512xf32>
      %49 = vector.shape_cast %48 : vector<1x8x512xf32> to vector<8x512xf32>
      %50 = arith.truncf %43 : vector<8x128xf32> to vector<8x128xbf16>
      %cst_53 = arith.constant dense<0.000000e+00> : vector<8x512xf32>
      %51 = tpu.matmul %50, %38, %cst_53 {dimension_numbers = #tpu.dot_dimension_numbers<[1], [0], [0], [1], [0, 0, 1, 1], [], []>} : vector<8x128xbf16>, vector<128x512xbf16>, vector<8x512xf32> -> vector<8x512xf32>
      %52 = arith.addf %49, %51 : vector<8x512xf32>
      %53 = arith.index_cast %42 : i32 to index
      %c0_54 = arith.constant 0 : index
      %c0_55 = arith.constant 0 : index
      %54 = vector.load %arg14[%53, %c0_54, %c0_55] : memref<8x8x512xf32, #tpu.memory_space<vmem>>, vector<1x8x512xf32>
      %55 = vector.shape_cast %54 : vector<1x8x512xf32> to vector<8x512xf32>
      %56 = arith.truncf %45 : vector<8x128xf32> to vector<8x128xbf16>
      %cst_56 = arith.constant dense<0.000000e+00> : vector<8x512xf32>
      %57 = tpu.matmul %56, %40, %cst_56 {dimension_numbers = #tpu.dot_dimension_numbers<[1], [0], [0], [1], [0, 0, 1, 1], [], []>} : vector<8x128xbf16>, vector<128x512xbf16>, vector<8x512xf32> -> vector<8x512xf32>
      %58 = arith.addf %55, %57 : vector<8x512xf32>
      %59 = vector.extract_strided_slice %52 {offsets = [0, 0], sizes = [8, 128], strides = [1, 1]} : vector<8x512xf32> to vector<8x128xf32>
      %60 = arith.negf %59 : vector<8x128xf32>
      %61 = math.exp %60 : vector<8x128xf32>
      %cst_57 = arith.constant 1.000000e+00 : f32
      %62 = vector.broadcast %cst_57 : f32 to vector<8x128xf32>
      %63 = arith.addf %62, %61 : vector<8x128xf32>
      %64 = arith.divf %62, %63 : vector<8x128xf32>
      %65 = vector.extract_strided_slice %52 {offsets = [0, 128], sizes = [8, 128], strides = [1, 1]} : vector<8x512xf32> to vector<8x128xf32>
      %66 = arith.negf %65 : vector<8x128xf32>
      %67 = math.exp %66 : vector<8x128xf32>
      %cst_58 = arith.constant 1.000000e+00 : f32
      %68 = vector.broadcast %cst_58 : f32 to vector<8x128xf32>
      %69 = arith.addf %68, %67 : vector<8x128xf32>
      %70 = arith.divf %68, %69 : vector<8x128xf32>
      %71 = vector.extract_strided_slice %52 {offsets = [0, 256], sizes = [8, 128], strides = [1, 1]} : vector<8x512xf32> to vector<8x128xf32>
      %72 = math.tanh %71 : vector<8x128xf32>
      %73 = vector.extract_strided_slice %52 {offsets = [0, 384], sizes = [8, 128], strides = [1, 1]} : vector<8x512xf32> to vector<8x128xf32>
      %74 = arith.negf %73 : vector<8x128xf32>
      %75 = math.exp %74 : vector<8x128xf32>
      %cst_59 = arith.constant 1.000000e+00 : f32
      %76 = vector.broadcast %cst_59 : f32 to vector<8x128xf32>
      %77 = arith.addf %76, %75 : vector<8x128xf32>
      %78 = arith.divf %76, %77 : vector<8x128xf32>
      %79 = arith.mulf %70, %44 : vector<8x128xf32>
      %80 = arith.mulf %64, %72 : vector<8x128xf32>
      %81 = arith.addf %79, %80 : vector<8x128xf32>
      %82 = math.tanh %81 : vector<8x128xf32>
      %83 = arith.mulf %78, %82 : vector<8x128xf32>
      %84 = vector.extract_strided_slice %58 {offsets = [0, 0], sizes = [8, 128], strides = [1, 1]} : vector<8x512xf32> to vector<8x128xf32>
      %85 = arith.negf %84 : vector<8x128xf32>
      %86 = math.exp %85 : vector<8x128xf32>
      %cst_60 = arith.constant 1.000000e+00 : f32
      %87 = vector.broadcast %cst_60 : f32 to vector<8x128xf32>
      %88 = arith.addf %87, %86 : vector<8x128xf32>
      %89 = arith.divf %87, %88 : vector<8x128xf32>
      %90 = vector.extract_strided_slice %58 {offsets = [0, 128], sizes = [8, 128], strides = [1, 1]} : vector<8x512xf32> to vector<8x128xf32>
      %91 = arith.negf %90 : vector<8x128xf32>
      %92 = math.exp %91 : vector<8x128xf32>
      %cst_61 = arith.constant 1.000000e+00 : f32
      %93 = vector.broadcast %cst_61 : f32 to vector<8x128xf32>
      %94 = arith.addf %93, %92 : vector<8x128xf32>
      %95 = arith.divf %93, %94 : vector<8x128xf32>
      %96 = vector.extract_strided_slice %58 {offsets = [0, 256], sizes = [8, 128], strides = [1, 1]} : vector<8x512xf32> to vector<8x128xf32>
      %97 = math.tanh %96 : vector<8x128xf32>
      %98 = vector.extract_strided_slice %58 {offsets = [0, 384], sizes = [8, 128], strides = [1, 1]} : vector<8x512xf32> to vector<8x128xf32>
      %99 = arith.negf %98 : vector<8x128xf32>
      %100 = math.exp %99 : vector<8x128xf32>
      %cst_62 = arith.constant 1.000000e+00 : f32
      %101 = vector.broadcast %cst_62 : f32 to vector<8x128xf32>
      %102 = arith.addf %101, %100 : vector<8x128xf32>
      %103 = arith.divf %101, %102 : vector<8x128xf32>
      %104 = arith.mulf %95, %46 : vector<8x128xf32>
      %105 = arith.mulf %89, %97 : vector<8x128xf32>
      %106 = arith.addf %104, %105 : vector<8x128xf32>
      %107 = math.tanh %106 : vector<8x128xf32>
      %108 = arith.mulf %103, %107 : vector<8x128xf32>
      %109 = vector.broadcast %arg19 : i32 to vector<8x1xi32>
      %110 = arith.cmpi sgt, %36, %109 : vector<8x1xi32>
      %111 = vector.broadcast %42 : i32 to vector<8x1xi32>
      %112 = arith.cmpi sgt, %36, %111 : vector<8x1xi32>
      %113 = vector.shape_cast %110 : vector<8x1xi1> to vector<8x1xi1>
      %114 = vector.broadcast %113 : vector<8x1xi1> to vector<8x128xi1>
      %115 = arith.select %114, %83, %43 : vector<8x128xi1>, vector<8x128xf32>
      %c0_63 = arith.constant 0 : index
      %c0_64 = arith.constant 0 : index
      %116 = vector.load %arg15[%c0_63, %c0_64] : memref<8x128xf32, #tpu.memory_space<vmem>>, vector<8x128xf32>
      tpu.vector_store %arg15[%c0_63, %c0_64], %115 {strides = array<i32>} : memref<8x128xf32, #tpu.memory_space<vmem>>, vector<8x128xf32>,
      %117 = vector.shape_cast %110 : vector<8x1xi1> to vector<8x1xi1>
      %118 = vector.broadcast %117 : vector<8x1xi1> to vector<8x128xi1>
      %119 = arith.select %118, %81, %44 : vector<8x128xi1>, vector<8x128xf32>
      %c0_65 = arith.constant 0 : index
      %c0_66 = arith.constant 0 : index
      %120 = vector.load %arg16[%c0_65, %c0_66] : memref<8x128xf32, #tpu.memory_space<vmem>>, vector<8x128xf32>
      tpu.vector_store %arg16[%c0_65, %c0_66], %119 {strides = array<i32>} : memref<8x128xf32, #tpu.memory_space<vmem>>, vector<8x128xf32>,
      %121 = vector.shape_cast %112 : vector<8x1xi1> to vector<8x1xi1>
      %122 = vector.broadcast %121 : vector<8x1xi1> to vector<8x128xi1>
      %123 = arith.select %122, %108, %45 : vector<8x128xi1>, vector<8x128xf32>
      %c0_67 = arith.constant 0 : index
      %c0_68 = arith.constant 0 : index
      %124 = vector.load %arg17[%c0_67, %c0_68] : memref<8x128xf32, #tpu.memory_space<vmem>>, vector<8x128xf32>
      tpu.vector_store %arg17[%c0_67, %c0_68], %123 {strides = array<i32>} : memref<8x128xf32, #tpu.memory_space<vmem>>, vector<8x128xf32>,
      %125 = vector.shape_cast %112 : vector<8x1xi1> to vector<8x1xi1>
      %126 = vector.broadcast %125 : vector<8x1xi1> to vector<8x128xi1>
      %127 = arith.select %126, %106, %46 : vector<8x128xi1>, vector<8x128xf32>
      %c0_69 = arith.constant 0 : index
      %c0_70 = arith.constant 0 : index
      %128 = vector.load %arg18[%c0_69, %c0_70] : memref<8x128xf32, #tpu.memory_space<vmem>>, vector<8x128xf32>
      tpu.vector_store %arg18[%c0_69, %c0_70], %127 {strides = array<i32>} : memref<8x128xf32, #tpu.memory_space<vmem>>, vector<8x128xf32>,
      %cst_71 = arith.constant 0.000000e+00 : f32
      %129 = vector.shape_cast %110 : vector<8x1xi1> to vector<8x1xi1>
      %130 = vector.broadcast %129 : vector<8x1xi1> to vector<8x128xi1>
      %131 = vector.broadcast %cst_71 : f32 to vector<8x128xf32>
      %132 = arith.select %130, %83, %131 : vector<8x128xi1>, vector<8x128xf32>
      %133 = arith.index_cast %arg19 : i32 to index
      %c0_72 = arith.constant 0 : index
      %c0_73 = arith.constant 0 : index
      %134 = vector.load %arg11[%133, %c0_72, %c0_73] : memref<8x8x128xf32, #tpu.memory_space<vmem>>, vector<1x8x128xf32>
      %135 = vector.shape_cast %134 : vector<1x8x128xf32> to vector<8x128xf32>
      %136 = vector.shape_cast %132 : vector<8x128xf32> to vector<1x8x128xf32>
      tpu.vector_store %arg11[%133, %c0_72, %c0_73], %136 {strides = array<i32>} : memref<8x8x128xf32, #tpu.memory_space<vmem>>, vector<1x8x128xf32>,
      %cst_74 = arith.constant 0.000000e+00 : f32
      %137 = vector.shape_cast %112 : vector<8x1xi1> to vector<8x1xi1>
      %138 = vector.broadcast %137 : vector<8x1xi1> to vector<8x128xi1>
      %139 = vector.broadcast %cst_74 : f32 to vector<8x128xf32>
      %140 = arith.select %138, %108, %139 : vector<8x128xi1>, vector<8x128xf32>
      %141 = arith.index_cast %42 : i32 to index
      %c0_75 = arith.constant 0 : index
      %c0_76 = arith.constant 0 : index
      %142 = vector.load %arg12[%141, %c0_75, %c0_76] : memref<8x8x128xf32, #tpu.memory_space<vmem>>, vector<1x8x128xf32>
      %143 = vector.shape_cast %142 : vector<1x8x128xf32> to vector<8x128xf32>
      %144 = vector.shape_cast %140 : vector<8x128xf32> to vector<1x8x128xf32>
      tpu.vector_store %arg12[%141, %c0_75, %c0_76], %144 {strides = array<i32>} : memref<8x8x128xf32, #tpu.memory_space<vmem>>, vector<1x8x128xf32>,
    }
    %c8_i32_42 = arith.constant 8 : i32
    return
  }
  func.func @transform_0(%arg0: i32) -> (i32, i32) {
    %c0_i32 = arith.constant 0 : i32
    %c0_i32_0 = arith.constant 0 : i32
    %c0_i32_1 = arith.constant 0 : i32
    return %c0_i32, %c0_i32_0 : i32, i32
  }
  func.func @transform_1(%arg0: i32) -> (i32, i32, i32) {
    %c0_i32 = arith.constant 0 : i32
    %c0_i32_0 = arith.constant 0 : i32
    %c0_i32_1 = arith.constant 0 : i32
    %c0_i32_2 = arith.constant 0 : i32
    return %c0_i32, %c0_i32_0, %c0_i32_1 : i32, i32, i32
  }
  func.func @transform_2(%arg0: i32) -> (i32, i32, i32) {
    %c0_i32 = arith.constant 0 : i32
    %c0_i32_0 = arith.constant 0 : i32
    %c0_i32_1 = arith.constant 0 : i32
    %c0_i32_2 = arith.constant 0 : i32
    return %c0_i32, %c0_i32_0, %c0_i32_1 : i32, i32, i32
  }
  func.func @transform_3(%arg0: i32) -> (i32, i32, i32) {
    %c0_i32 = arith.constant 0 : i32
    %c0_i32_0 = arith.constant 0 : i32
    %c0_i32_1 = arith.constant 0 : i32
    %c0_i32_2 = arith.constant 0 : i32
    return %c0_i32, %c0_i32_0, %c0_i32_1 : i32, i32, i32
  }
  func.func @transform_4(%arg0: i32) -> (i32, i32) {
    %c0_i32 = arith.constant 0 : i32
    %c0_i32_0 = arith.constant 0 : i32
    %c0_i32_1 = arith.constant 0 : i32
    return %c0_i32, %c0_i32_0 : i32, i32
  }
  func.func @transform_5(%arg0: i32) -> (i32, i32) {
    %c0_i32 = arith.constant 0 : i32
    %c0_i32_0 = arith.constant 0 : i32
    %c0_i32_1 = arith.constant 0 : i32
    return %c0_i32, %c0_i32_0 : i32, i32
  }
  func.func @transform_6(%arg0: i32) -> (i32, i32) {
    %c0_i32 = arith.constant 0 : i32
    %c0_i32_0 = arith.constant 0 : i32
    %c0_i32_1 = arith.constant 0 : i32
    return %c0_i32, %c0_i32_0 : i32, i32
  }
  func.func @transform_7(%arg0: i32) -> (i32, i32) {
    %c0_i32 = arith.constant 0 : i32
    %c0_i32_0 = arith.constant 0 : i32
    %c0_i32_1 = arith.constant 0 : i32
    return %c0_i32, %c0_i32_0 : i32, i32
  }
  func.func @transform_8(%arg0: i32) -> (i32, i32) {
    %c0_i32 = arith.constant 0 : i32
    %c0_i32_0 = arith.constant 0 : i32
    %c0_i32_1 = arith.constant 0 : i32
    return %c0_i32, %c0_i32_0 : i32, i32
  }
  func.func @transform_9(%arg0: i32) -> (i32, i32) {
    %c0_i32 = arith.constant 0 : i32
    %c0_i32_0 = arith.constant 0 : i32
    %c0_i32_1 = arith.constant 0 : i32
    return %c0_i32, %c0_i32_0 : i32, i32
  }
  func.func @transform_10(%arg0: i32) -> (i32, i32, i32) {
    %c0_i32 = arith.constant 0 : i32
    %c0_i32_0 = arith.constant 0 : i32
    %c0_i32_1 = arith.constant 0 : i32
    %c0_i32_2 = arith.constant 0 : i32
    return %c0_i32, %c0_i32_0, %c0_i32_1 : i32, i32, i32
  }
  func.func @transform_11(%arg0: i32) -> (i32, i32, i32) {
    %c0_i32 = arith.constant 0 : i32
    %c0_i32_0 = arith.constant 0 : i32
    %c0_i32_1 = arith.constant 0 : i32
    %c0_i32_2 = arith.constant 0 : i32
    return %c0_i32, %c0_i32_0, %c0_i32_1 : i32, i32, i32
  }
}

module attributes {stable_mosaic.version = 11 : i64} {
  func.func @_classifier_kernel(%arg0: i32, %arg1: memref<8x128xf32, #tpu.memory_space<vmem>>, %arg2: memref<8x128xf32, #tpu.memory_space<vmem>>, %arg3: memref<128x128xf32, #tpu.memory_space<vmem>>, %arg4: memref<128x128xf32, #tpu.memory_space<vmem>>, %arg5: memref<1x128xf32, #tpu.memory_space<vmem>>, %arg6: memref<128x3xf32, #tpu.memory_space<vmem>>, %arg7: memref<1x3xf32, #tpu.memory_space<vmem>>, %arg8: memref<8x3xf32, #tpu.memory_space<vmem>>) attributes {dimension_semantics = [#tpu.dimension_semantics<arbitrary>], iteration_bounds = array<i64: 1>, scalar_prefetch = 0 : i64, scratch_operands = 0 : i64, tpu.core_type = #tpu.core_type<tc>, window_params = [{pipeline_mode = #tpu.pipeline_mode<synchronous>, transform_indices = @transform_0, window_bounds = array<i64: 8, 128>}, {pipeline_mode = #tpu.pipeline_mode<synchronous>, transform_indices = @transform_1, window_bounds = array<i64: 8, 128>}, {pipeline_mode = #tpu.pipeline_mode<synchronous>, transform_indices = @transform_2, window_bounds = array<i64: 128, 128>}, {pipeline_mode = #tpu.pipeline_mode<synchronous>, transform_indices = @transform_3, window_bounds = array<i64: 128, 128>}, {pipeline_mode = #tpu.pipeline_mode<synchronous>, transform_indices = @transform_4, window_bounds = array<i64: 1, 128>}, {pipeline_mode = #tpu.pipeline_mode<synchronous>, transform_indices = @transform_5, window_bounds = array<i64: 128, 3>}, {pipeline_mode = #tpu.pipeline_mode<synchronous>, transform_indices = @transform_6, window_bounds = array<i64: 1, 3>}, {pipeline_mode = #tpu.pipeline_mode<synchronous>, transform_indices = @transform_7, window_bounds = array<i64: 8, 3>}]} {
    %c0 = arith.constant 0 : index
    %c0_0 = arith.constant 0 : index
    %0 = vector.load %arg1[%c0, %c0_0] : memref<8x128xf32, #tpu.memory_space<vmem>>, vector<8x128xf32>
    %c0_1 = arith.constant 0 : index
    %c0_2 = arith.constant 0 : index
    %1 = vector.load %arg3[%c0_1, %c0_2] : memref<128x128xf32, #tpu.memory_space<vmem>>, vector<128x128xf32>
    %cst = arith.constant dense<0.000000e+00> : vector<8x128xf32>
    %2 = tpu.matmul %0, %1, %cst {dimension_numbers = #tpu.dot_dimension_numbers<[1], [0], [0], [1], [0, 0, 1, 1], [], []>} : vector<8x128xf32>, vector<128x128xf32>, vector<8x128xf32> -> vector<8x128xf32>
    %c0_3 = arith.constant 0 : index
    %c0_4 = arith.constant 0 : index
    %3 = vector.load %arg2[%c0_3, %c0_4] : memref<8x128xf32, #tpu.memory_space<vmem>>, vector<8x128xf32>
    %c0_5 = arith.constant 0 : index
    %c0_6 = arith.constant 0 : index
    %4 = vector.load %arg4[%c0_5, %c0_6] : memref<128x128xf32, #tpu.memory_space<vmem>>, vector<128x128xf32>
    %cst_7 = arith.constant dense<0.000000e+00> : vector<8x128xf32>
    %5 = tpu.matmul %3, %4, %cst_7 {dimension_numbers = #tpu.dot_dimension_numbers<[1], [0], [0], [1], [0, 0, 1, 1], [], []>} : vector<8x128xf32>, vector<128x128xf32>, vector<8x128xf32> -> vector<8x128xf32>
    %6 = arith.addf %2, %5 : vector<8x128xf32>
    %c0_8 = arith.constant 0 : index
    %c0_9 = arith.constant 0 : index
    %7 = vector.load %arg5[%c0_8, %c0_9] : memref<1x128xf32, #tpu.memory_space<vmem>>, vector<1x128xf32>
    %8 = vector.broadcast %7 : vector<1x128xf32> to vector<8x128xf32>
    %9 = arith.addf %6, %8 : vector<8x128xf32>
    %cst_10 = arith.constant 0.000000e+00 : f32
    %10 = vector.broadcast %cst_10 : f32 to vector<8x128xf32>
    %11 = arith.maximumf %9, %10 : vector<8x128xf32>
    %c0_11 = arith.constant 0 : index
    %c0_12 = arith.constant 0 : index
    %12 = vector.load %arg6[%c0_11, %c0_12] : memref<128x3xf32, #tpu.memory_space<vmem>>, vector<128x3xf32>
    %cst_13 = arith.constant dense<0.000000e+00> : vector<8x3xf32>
    %13 = tpu.matmul %11, %12, %cst_13 {dimension_numbers = #tpu.dot_dimension_numbers<[1], [0], [0], [1], [0, 0, 1, 1], [], []>} : vector<8x128xf32>, vector<128x3xf32>, vector<8x3xf32> -> vector<8x3xf32>
    %c0_14 = arith.constant 0 : index
    %c0_15 = arith.constant 0 : index
    %14 = vector.load %arg7[%c0_14, %c0_15] : memref<1x3xf32, #tpu.memory_space<vmem>>, vector<1x3xf32>
    %15 = vector.broadcast %14 : vector<1x3xf32> to vector<8x3xf32>
    %16 = arith.addf %13, %15 : vector<8x3xf32>
    %c0_16 = arith.constant 0 : index
    %c0_17 = arith.constant 0 : index
    %17 = vector.load %arg8[%c0_16, %c0_17] : memref<8x3xf32, #tpu.memory_space<vmem>>, vector<8x3xf32>
    tpu.vector_store %arg8[%c0_16, %c0_17], %16 {strides = array<i32>} : memref<8x3xf32, #tpu.memory_space<vmem>>, vector<8x3xf32>,
    return
  }
  func.func @transform_0(%arg0: i32) -> (i32, i32) {
    %c0_i32 = arith.constant 0 : i32
    %c0_i32_0 = arith.constant 0 : i32
    %c0_i32_1 = arith.constant 0 : i32
    return %c0_i32, %c0_i32_0 : i32, i32
  }
  func.func @transform_1(%arg0: i32) -> (i32, i32) {
    %c0_i32 = arith.constant 0 : i32
    %c0_i32_0 = arith.constant 0 : i32
    %c0_i32_1 = arith.constant 0 : i32
    return %c0_i32, %c0_i32_0 : i32, i32
  }
  func.func @transform_2(%arg0: i32) -> (i32, i32) {
    %c0_i32 = arith.constant 0 : i32
    %c0_i32_0 = arith.constant 0 : i32
    %c0_i32_1 = arith.constant 0 : i32
    return %c0_i32, %c0_i32_0 : i32, i32
  }
  func.func @transform_3(%arg0: i32) -> (i32, i32) {
    %c0_i32 = arith.constant 0 : i32
    %c0_i32_0 = arith.constant 0 : i32
    %c0_i32_1 = arith.constant 0 : i32
    return %c0_i32, %c0_i32_0 : i32, i32
  }
  func.func @transform_4(%arg0: i32) -> (i32, i32) {
    %c0_i32 = arith.constant 0 : i32
    %c0_i32_0 = arith.constant 0 : i32
    %c0_i32_1 = arith.constant 0 : i32
    return %c0_i32, %c0_i32_0 : i32, i32
  }
  func.func @transform_5(%arg0: i32) -> (i32, i32) {
    %c0_i32 = arith.constant 0 : i32
    %c0_i32_0 = arith.constant 0 : i32
    %c0_i32_1 = arith.constant 0 : i32
    return %c0_i32, %c0_i32_0 : i32, i32
  }
  func.func @transform_6(%arg0: i32) -> (i32, i32) {
    %c0_i32 = arith.constant 0 : i32
    %c0_i32_0 = arith.constant 0 : i32
    %c0_i32_1 = arith.constant 0 : i32
    return %c0_i32, %c0_i32_0 : i32, i32
  }
  func.func @transform_7(%arg0: i32) -> (i32, i32) {
    %c0_i32 = arith.constant 0 : i32
    %c0_i32_0 = arith.constant 0 : i32
    %c0_i32_1 = arith.constant 0 : i32
    return %c0_i32, %c0_i32_0 : i32, i32
  }
}

</mosaic_0001>

<bundles_post_ra>
// kernel: res_encoder_forward.7
= control target key start
LH: loop header
LB: loop body
LE: loop exit
PB: predicated region body
PF: predicated region fallthrough
CT: control target
= control target key end

     0   :  { %v468_v0 = vmov 0.0   ;;  %vm469_vm0 = vmmov 0   ;;  %vm302_vm1 = vcmask 23552   ;;  %s720_s3 = inlined_call_operand.vmem [shape: f32[128,128], index: 3, kind: input, shape index: {}]   ;;  %s721_s2 = inlined_call_operand.vmem [shape: f32[128,128], index: 2, kind: input, shape index: {}]   ;;  %s722_s1 = inlined_call_operand.vmem [shape: f32[8,128], index: 1, kind: input, shape index: {}]   ;;  %s723_s0 = inlined_call_operand.vmem [shape: f32[8,128], index: 0, kind: input, shape index: {}]   ;;  %s724_s5 = inlined_call_operand.vmem [shape: f32[128,3], index: 5, kind: input, shape index: {}]   ;;  %s725_s4 = inlined_call_operand.vmem [shape: f32[1,128], index: 4, kind: input, shape index: {}]   ;;  %s726_s6 = inlined_call_operand.vmem [shape: f32[1,3], index: 6, kind: input, shape index: {}]   ;;  %s727_s7 = inlined_call_operand.vmem [shape: f32[8,3], index: 7, kind: output, shape index: {}]  }
   0x1   :  { %361 = vmatprep.subr.mxu0 %v468_v0  ;;  %396 = vmatprep.subr.mxu1 %v468_v0  ;;  %v59_v1 = vld [vmem:[%s720_s3 + $0x78] sm:$0xff]  ;;  %v58_v3 = vld [vmem:[%s720_s3 + $0x70] sm:$0xff]  ;;  %v57_v5 = vld [vmem:[%s720_s3 + $0x68] sm:$0xff] }
   0x2   :  { %v42_v2 = vld [vmem:[%s721_s2 + $0x78] sm:$0xff]  ;;  %362 = vmatpush3.msra.mxu0 %v59_v1  ;;  %v41_v4 = vld [vmem:[%s721_s2 + $0x70] sm:$0xff]  ;;  %v40_v6 = vld [vmem:[%s721_s2 + $0x68] sm:$0xff]  ;;  %393 = vmatprep.mubr.msk.f32.mxu0 %vm469_vm0, %v468_v0 }
   0x3   :  { %397 = vmatpush3.msra.mxu1 %v42_v2  ;;  %363 = vmatprep.subr.mxu0 %v468_v0  ;;  %v56_v7 = vld [vmem:[%s720_s3 + $0x60] sm:$0xff]  ;;  %v55_v9 = vld [vmem:[%s720_s3 + $0x58] sm:$0xff]  ;;  %v54_v11 = vld [vmem:[%s720_s3 + $0x50] sm:$0xff] }
   0x4   :  { %398 = vmatprep.subr.mxu1 %v468_v0  ;;  %364 = vmatpush3.msra.mxu0 %v58_v3  ;;  %v39_v8 = vld [vmem:[%s721_s2 + $0x60] sm:$0xff]  ;;  %v38_v10 = vld [vmem:[%s721_s2 + $0x58] sm:$0xff]  ;;  %v37_v12 = vld [vmem:[%s721_s2 + $0x50] sm:$0xff] }
   0x5   :  { %399 = vmatpush3.msra.mxu1 %v41_v4  ;;  %365 = vmatprep.subr.mxu0 %v468_v0  ;;  %v53_v13 = vld [vmem:[%s720_s3 + $0x48] sm:$0xff]  ;;  %v52_v15 = vld [vmem:[%s720_s3 + $0x40] sm:$0xff]  ;;  %v51_v17 = vld [vmem:[%s720_s3 + $0x38] sm:$0xff] }
   0x6   :  { %400 = vmatprep.subr.mxu1 %v468_v0  ;;  %366 = vmatpush3.msra.mxu0 %v57_v5  ;;  %v36_v14 = vld [vmem:[%s721_s2 + $0x48] sm:$0xff]  ;;  %v35_v16 = vld [vmem:[%s721_s2 + $0x40] sm:$0xff]  ;;  %v34_v18 = vld [vmem:[%s721_s2 + $0x38] sm:$0xff] }
   0x7   :  { %401 = vmatpush3.msra.mxu1 %v40_v6  ;;  %367 = vmatprep.subr.mxu0 %v468_v0  ;;  %v50_v19 = vld [vmem:[%s720_s3 + $0x30] sm:$0xff]  ;;  %v49_v21 = vld [vmem:[%s720_s3 + $0x28] sm:$0xff]  ;;  %v48_v23 = vld [vmem:[%s720_s3 + $0x20] sm:$0xff] }
   0x8   :  { %402 = vmatprep.subr.mxu1 %v468_v0  ;;  %368 = vmatpush3.msra.mxu0 %v56_v7  ;;  %v33_v20 = vld [vmem:[%s721_s2 + $0x30] sm:$0xff]  ;;  %v32_v22 = vld [vmem:[%s721_s2 + $0x28] sm:$0xff]  ;;  %v31_v24 = vld [vmem:[%s721_s2 + $0x20] sm:$0xff] }
   0x9   :  { %403 = vmatpush3.msra.mxu1 %v39_v8  ;;  %369 = vmatprep.subr.mxu0 %v468_v0  ;;  %v47_v25 = vld [vmem:[%s720_s3 + $0x18] sm:$0xff]  ;;  %v46_v27 = vld [vmem:[%s720_s3 + $0x10] sm:$0xff]  ;;  %v45_v29 = vld [vmem:[%s720_s3 + $0x8] sm:$0xff] }
   0xa   :  { %404 = vmatprep.subr.mxu1 %v468_v0  ;;  %370 = vmatpush3.msra.mxu0 %v55_v9  ;;  %v30_v26 = vld [vmem:[%s721_s2 + $0x18] sm:$0xff]  ;;  %v29_v28 = vld [vmem:[%s721_s2 + $0x10] sm:$0xff]  ;;  %v28_v30 = vld [vmem:[%s721_s2 + $0x8] sm:$0xff] }
   0xb   :  { %405 = vmatpush3.msra.mxu1 %v38_v10  ;;  %371 = vmatprep.subr.mxu0 %v468_v0  ;;  %v44_v31 = vld [vmem:[%s720_s3] sm:$0xff]  ;;  %v224_v35 = vld [vmem:[%s724_s5 + $0x78] sm:$0xff]  ;;  %v223_v36 = vld [vmem:[%s724_s5 + $0x70] sm:$0xff] }
   0xc   :  { %406 = vmatprep.subr.mxu1 %v468_v0  ;;  %372 = vmatpush3.msra.mxu0 %v54_v11  ;;  %v27_v32 = vld [vmem:[%s721_s2] sm:$0xff]  ;;  %v222_v37 = vld [vmem:[%s724_s5 + $0x68] sm:$0xff]  ;;  %v220_v39 = vld [vmem:[%s724_s5 + $0x58] sm:$0xff] }
   0xd   :  { %407 = vmatpush3.msra.mxu1 %v37_v12  ;;  %373 = vmatprep.subr.mxu0 %v468_v0  ;;  %v43_v33 = vld [vmem:[%s722_s1] sm:$0xff]  ;;  %v219_v40 = vld [vmem:[%s724_s5 + $0x50] sm:$0xff]  ;;  %v218_v41 = vld [vmem:[%s724_s5 + $0x48] sm:$0xff] }
   0xe   :  { %408 = vmatprep.subr.mxu1 %v468_v0  ;;  %374 = vmatpush3.msra.mxu0 %v53_v13  ;;  %v26_v34 = vld [vmem:[%s723_s0] sm:$0xff]  ;;  %v216_v43 = vld [vmem:[%s724_s5 + $0x38] sm:$0xff]  ;;  %v215_v44 = vld [vmem:[%s724_s5 + $0x30] sm:$0xff] }
   0xf   :  { %409 = vmatpush3.msra.mxu1 %v36_v14  ;;  %375 = vmatprep.subr.mxu0 %v468_v0  ;;  %v221_v38 = vld [vmem:[%s724_s5 + $0x60] sm:$0xff]  ;;  %v214_v45 = vld [vmem:[%s724_s5 + $0x28] sm:$0xff]  ;;  %v212_v47 = vld [vmem:[%s724_s5 + $0x18] sm:$0xff] }
  0x10   :  { %410 = vmatprep.subr.mxu1 %v468_v0  ;;  %376 = vmatpush3.msra.mxu0 %v52_v15  ;;  %v217_v42 = vld [vmem:[%s724_s5 + $0x40] sm:$0xff]  ;;  %v211_v48 = vld [vmem:[%s724_s5 + $0x10] sm:$0xff]  ;;  %v210_v49 = vld [vmem:[%s724_s5 + $0x8] sm:$0xff] }
  0x11   :  { %411 = vmatpush3.msra.mxu1 %v35_v16  ;;  %377 = vmatprep.subr.mxu0 %v468_v0  ;;  %v213_v46 = vld [vmem:[%s724_s5 + $0x20] sm:$0xff] }
  0x12   :  { %412 = vmatprep.subr.mxu1 %v468_v0  ;;  %378 = vmatpush3.msra.mxu0 %v51_v17  ;;  %v209_v50 = vld [vmem:[%s724_s5] sm:$0xff] }
  0x13   :  { %413 = vmatpush3.msra.mxu1 %v34_v18  ;;  %379 = vmatprep.subr.mxu0 %v468_v0  ;;  %v308_v53 = vld [vmem:[%s725_s4] ss:$0 sm:$0xff] }
  0x14   :  { %414 = vmatprep.subr.mxu1 %v468_v0  ;;  %380 = vmatpush3.msra.mxu0 %v50_v19  ;;  %v309_v59 = vld [vmem:[%s726_s6] ss:$0 sm:$0xff] }
  0x15   :  { %415 = vmatpush3.msra.mxu1 %v33_v20  ;;  %381 = vmatprep.subr.mxu0 %v468_v0 }
  0x16   :  { %416 = vmatprep.subr.mxu1 %v468_v0  ;;  %382 = vmatpush3.msra.mxu0 %v49_v21 }
  0x17   :  { %417 = vmatpush3.msra.mxu1 %v32_v22  ;;  %383 = vmatprep.subr.mxu0 %v468_v0 }
  0x18   :  { %418 = vmatprep.subr.mxu1 %v468_v0  ;;  %384 = vmatpush3.msra.mxu0 %v48_v23 }
  0x19   :  { %419 = vmatpush3.msra.mxu1 %v31_v24  ;;  %385 = vmatprep.subr.mxu0 %v468_v0 }
  0x1a   :  { %420 = vmatprep.subr.mxu1 %v468_v0  ;;  %386 = vmatpush3.msra.mxu0 %v47_v25 }
  0x1b   :  { %421 = vmatpush3.msra.mxu1 %v30_v26  ;;  %387 = vmatprep.subr.mxu0 %v468_v0 }
  0x1c   :  { %422 = vmatprep.subr.mxu1 %v468_v0  ;;  %388 = vmatpush3.msra.mxu0 %v46_v27 }
  0x1d   :  { %423 = vmatpush3.msra.mxu1 %v29_v28  ;;  %389 = vmatprep.subr.mxu0 %v468_v0 }
  0x1e   :  { %424 = vmatprep.subr.mxu1 %v468_v0  ;;  %390 = vmatpush3.msra.mxu0 %v45_v29 }
  0x1f   :  { %425 = vmatpush3.msra.mxu1 %v28_v30  ;;  %391 = vmatprep.subr.mxu0 %v468_v0 }
  0x20   :  { %426 = vmatprep.subr.mxu1 %v468_v0  ;;  %392 = vmatpush3.msra.mxu0 %v44_v31 }
  0x21   :  { %427 = vmatpush3.msra.mxu1 %v27_v32  ;;  %428 = vmatprep.mubr.msk.f32.mxu1 %vm469_vm0, %v468_v0 }
  0x22   :  { %394 = vmatmul.mubr.f32.vlgmr.msra.gmra.mxu0 %v43_v33  ;;  %429 = vmatmul.mubr.f32.vlgmr.msra.gmra.mxu1 %v26_v34 }
  0x23   :  { %431 = vmatprep.subr.mxu0 %v468_v0  ;;  %463 = vmatprep.mubr.msk.f32.mxu0 %vm469_vm0, %v468_v0 }
  0x24   :  { %432 = vmatpush3.msra.mxu0 %v224_v35 }
  0x25   :  { %433 = vmatprep.subr.mxu0 %v468_v0 }
  0x26   :  { %434 = vmatpush3.msra.mxu0 %v223_v36 }
  0x27   :  { %435 = vmatprep.subr.mxu0 %v468_v0 }
  0x28   :  { %436 = vmatpush3.msra.mxu0 %v222_v37 }
  0x29   :  { %437 = vmatprep.subr.mxu0 %v468_v0 }
  0x2a   :  { %438 = vmatpush3.msra.mxu0 %v221_v38 }
  0x2b   :  { %439 = vmatprep.subr.mxu0 %v468_v0 }
  0x2c   :  { %440 = vmatpush3.msra.mxu0 %v220_v39 }
  0x2d   :  { %441 = vmatprep.subr.mxu0 %v468_v0 }
  0x2e   :  { %442 = vmatpush3.msra.mxu0 %v219_v40 }
  0x2f   :  { %443 = vmatprep.subr.mxu0 %v468_v0 }
  0x30   :  { %444 = vmatpush3.msra.mxu0 %v218_v41 }
  0x31   :  { %445 = vmatprep.subr.mxu0 %v468_v0 }
  0x32   :  { %446 = vmatpush3.msra.mxu0 %v217_v42 }
  0x33   :  { %447 = vmatprep.subr.mxu0 %v468_v0 }
  0x34   :  { %448 = vmatpush3.msra.mxu0 %v216_v43 }
  0x35   :  { %449 = vmatprep.subr.mxu0 %v468_v0 }
  0x36   :  { %450 = vmatpush3.msra.mxu0 %v215_v44 }
  0x37   :  { %451 = vmatprep.subr.mxu0 %v468_v0 }
  0x38   :  { %452 = vmatpush3.msra.mxu0 %v214_v45 }
  0x39   :  { %453 = vmatprep.subr.mxu0 %v468_v0 }
  0x3a   :  { %454 = vmatpush3.msra.mxu0 %v213_v46 }
  0x3b   :  { %455 = vmatprep.subr.mxu0 %v468_v0 }
  0x3c   :  { %456 = vmatpush3.msra.mxu0 %v212_v47 }
  0x3d   :  { %457 = vmatprep.subr.mxu0 %v468_v0 }
  0x3e   :  { %458 = vmatpush3.msra.mxu0 %v211_v48 }
  0x3f   :  { %459 = vmatprep.subr.mxu0 %v468_v0 }
  0x40   :  { %460 = vmatpush3.msra.mxu0 %v210_v49 }
  0x41   :  { %461 = vmatprep.subr.mxu0 %v468_v0 }
  0x42   :  { %462 = vmatpush3.msra.mxu0 %v209_v50 }
  0xe2   :  { %v126_v51 = vpop.f32.mrf.mxu0  ;;  %v196_v52 = vpop.f32.mrf.mxu1 }
  0xe3   :  { %v197_v54 = vadd.f32 %v196_v52, %v126_v51 }
  0xe4   :  { %v395_v55 = vpop.f32.mrf.mxu0  ;;  %v430_v56 = vpop.f32.mrf.mxu1 }
  0xe5   :  { %v207_v57 = vadd.f32 %v308_v53, %v197_v54 }
  0xe7   :  { %v208_v58 = vmax.f32 %v207_v57, 0.0 }
  0xe9   :  { %464 = vmatmul.mubr.f32.vlgmr.msra.gmra.mxu0 %v208_v58 }
 0x1a9   :  { %v298_v60 = vpop.f32.mrf.mxu0 }
 0x1aa   :  { %v299_v61 = vadd.f32 %v309_v59, %v298_v60 }
 0x1ab   :  { %v465_v62 = vpop.f32.mrf.mxu0 }
 0x1ac   :  { %303 = vst.msk [vmem:[%s727_s7] sm:$0xff] %vm302_vm1, %v299_v61 }

// kernel: res_encoder_forward.4
= control target key start
LH: loop header
LB: loop body
LE: loop exit
PB: predicated region body
PF: predicated region fallthrough
CT: control target
= control target key end

     0   :  { %13 = vsyncpa [#allocation9], 0  ;;  %s2185_s0 = inlined_call_operand.vmem [shape: s32[8,1], index: 0, kind: input, shape index: {}]   ;;  %s2186_s1 = inlined_call_operand.vmem [shape: f32[8,8,128], index: 1, kind: input, shape index: {}]   ;;  %s2187_s2 = inlined_call_operand.hbm [shape: f32[128,1024], index: 2, kind: input, shape index: {}]   ;;  %s2188_s3 = inlined_call_operand.hbm [shape: f32[1,1024], index: 3, kind: input, shape index: {}]   ;;  %s2189_s4 = inlined_call_operand.hbm [shape: f32[128,512], index: 4, kind: input, shape index: {}]   ;;  %s2190_s5 = inlined_call_operand.hbm [shape: f32[128,512], index: 5, kind: input, shape index: {}]   ;;  %s2191_s6 = inlined_call_operand.vmem [shape: f32[8,8,128], index: 6, kind: output, shape index: {0}]   ;;  %s2192_s7 = inlined_call_operand.vmem [shape: f32[8,8,128], index: 7, kind: output, shape index: {1}]  }
   0x1   :  { %14 = vsyncpa [#allocation11], 0 }
   0x2   :  { %15 = vsyncpa [#allocation14], 0  ;;  %s1339_s24 = smov [#allocation10]   ;;  %s1340_s26 = smov [#allocation8]  }
   0x3   :  { %s38_s25 = sshll.u32 %s1339_s24, 4  ;;  %s25_s27 = sshll.u32 %s1340_s26, 4  ;;  %s39_s25 = int_to_ptr.vmem [resolvable:$true] %s38_s25  ;;  %s26_s27 = int_to_ptr.vmem [resolvable:$true] %s25_s27 }
   0x4   :  { %s1253_s28 = scalar_lea.vmem %s39_s25, 128  ;;  %p1258_p1 = scmp.lt.s32.totalorder %s39_s25, %s39_s25 }
   0x5   :  { %p1254_p0 = scmp.ne.s32.totalorder %s39_s25, %s1253_s28  ;;  %p1259_p2 = scmp.lt.s32.totalorder %s1253_s28, %s1253_s28 }
   0x7   :  { %p1260_p3 = por %p1259_p2, %p1258_p1 }
   0x9   :  { %p1261_p4 = pnand %p1260_p3, %p1254_p0 }
   0xb   :  { %1264 = shalt.err (!%p1261_p4)
}
   0xc   :  { %41 = dma.hbm_to_vmem [thread:$0]  %s2188_s3, 128, %s39_s25, [#allocation11]  }
   0xd   :  { %s1273_s8 = scalar_lea.vmem %s26_s27, 16384  ;;  %p1278_p6 = scmp.lt.s32.totalorder %s26_s27, %s26_s27 }
   0xe   :  { %p1274_p5 = scmp.ne.s32.totalorder %s26_s27, %s1273_s8  ;;  %p1279_p7 = scmp.lt.s32.totalorder %s1273_s8, %s1273_s8 }
  0x10   :  { %p1280_p8 = por %p1279_p7, %p1278_p6 }
  0x12   :  { %p1281_p9 = pnand %p1280_p8, %p1274_p5 }
  0x14   :  { %1284 = shalt.err (!%p1281_p9)
}
  0x15   :  { %s1341_s9 = smov 1024   ;;  %s1342_s10 = smov 64  }
  0x16   :  { %31 = dma.hbm_to_vmem [thread:$0]  %s2187_s2, 16384, %s26_s27, [#allocation9], %s1341_s9, %s1341_s9, %s1342_s10  }
  0x17   :  { %s1343_s13 = smov [#allocation12]  }
  0x18   :  { %s47_s14 = sshll.u32 %s1343_s13, 4  ;;  %s48_s14 = int_to_ptr.vmem [resolvable:$true] %s47_s14 }
  0x19   :  { %s1293_s15 = scalar_lea.vmem %s48_s14, 8192  ;;  %p1298_p11 = scmp.lt.s32.totalorder %s48_s14, %s48_s14 }
  0x1a   :  { %p1294_p10 = scmp.ne.s32.totalorder %s48_s14, %s1293_s15  ;;  %p1299_p12 = scmp.lt.s32.totalorder %s1293_s15, %s1293_s15 }
  0x1c   :  { %p1300_p13 = por %p1299_p12, %p1298_p11 }
  0x1e   :  { %p1301_p0 = pnand %p1300_p13, %p1294_p10 }
  0x20   :  { %1304 = shalt.err (!%p1301_p0)
}
  0x21   :  { %s1344_s3 = smov 512   ;;  %s1345_s16 = smov 32  }
  0x22   :  { %53 = dma.hbm_to_vmem [thread:$0]  %s2189_s4, 8192, %s48_s14, [#allocation11], %s1344_s3, %s1344_s3, %s1345_s16  }
  0x23   :  { %s1346_s19 = smov [#allocation13]  }
  0x24   :  { %s59_s20 = sshll.u32 %s1346_s19, 4  ;;  %s60_s20 = int_to_ptr.vmem [resolvable:$true] %s59_s20 }
  0x25   :  { %s1313_s2 = scalar_lea.vmem %s60_s20, 8192  ;;  %p1318_p2 = scmp.lt.s32.totalorder %s60_s20, %s60_s20 }
  0x26   :  { %p1314_p1 = scmp.ne.s32.totalorder %s60_s20, %s1313_s2  ;;  %p1319_p3 = scmp.lt.s32.totalorder %s1313_s2, %s1313_s2 }
  0x28   :  { %p1320_p4 = por %p1319_p3, %p1318_p2 }
  0x2a   :  { %p1321_p5 = pnand %p1320_p4, %p1314_p1 }
  0x2c   :  { %1324 = shalt.err (!%p1321_p5)
}
  0x2d   :  { %65 = dma.hbm_to_vmem [thread:$0]  %s2190_s5, 8192, %s60_s20, [#allocation14], %s1344_s3, %s1344_s3, %s1345_s16  }
  0x2e   :  { %1329 = dma.done.wait [#allocation9], 16384  }
  0x2f   :  { %1330 = vsyncadd [#allocation9], 4294950912 }
  0x30   :  { %1331 = dma.done.wait [#allocation11], 8320  }
  0x31   :  { %1332 = vsyncadd [#allocation11], 4294958976 }
  0x32   :  { %1333 = dma.done.wait [#allocation14], 8192  }
  0x33   :  { %1334 = vsyncadd [#allocation14], 4294959104  ;;  %v1347_v0 = vmov 0.0   ;;  %v2193_v1 = vmov 0   ;;  %v1407_v2 = vld [vmem:[%s2185_s0] sm:$0xff]  ;;  %v1409_v3 = vld [vmem:[#allocation12] sm:$0xff] }
  0x34   :  { %681 = vst [vmem:[#allocation4] sm:$0xff] %v1347_v0  ;;  %682 = vst [vmem:[#allocation5] sm:$0xff] %v1347_v0  ;;  %357 = vmatprep.mubr.bf16.mxu0 %v2193_v1  ;;  %430 = vmatprep.mubr.bf16.mxu1 %v2193_v1  ;;  %v1411_v4 = vld [vmem:[#allocation12 + $0x8] sm:$0xff]  ;;  %v1413_v5 = vld [vmem:[#allocation12 + $0x10] sm:$0xff] }
  0x35   :  { %683 = vst [vmem:[#allocation6] sm:$0xff] %v1347_v0  ;;  %684 = vst [vmem:[#allocation7] sm:$0xff] %v1347_v0  ;;  %v1415_v6 = vld [vmem:[#allocation12 + $0x18] sm:$0xff]  ;;  %v1417_v7 = vld [vmem:[#allocation12 + $0x20] sm:$0xff] }
  0x36   :  { %2288 = vst [vmem:[#allocation18_spill] sm:$0xff] %v1409_v3  ;;  %2289 = vst [vmem:[#allocation19_spill] sm:$0xff] %v1411_v4  ;;  %v1419_v8 = vld [vmem:[#allocation12 + $0x28] sm:$0xff]  ;;  %v1421_v9 = vld [vmem:[#allocation12 + $0x30] sm:$0xff] }
  0x37   :  { %2290 = vst [vmem:[#allocation20_spill] sm:$0xff] %v1413_v5  ;;  %2291 = vst [vmem:[#allocation21_spill] sm:$0xff] %v1415_v6  ;;  %v1423_v10 = vld [vmem:[#allocation12 + $0x38] sm:$0xff]  ;;  %v1427_v12 = vld [vmem:[#allocation12 + $0x40] sm:$0xff] }
  0x38   :  { %2292 = vst [vmem:[#allocation22_spill] sm:$0xff] %v1417_v7  ;;  %2293 = vst [vmem:[#allocation23_spill] sm:$0xff] %v1419_v8  ;;  %v1429_v13 = vld [vmem:[#allocation12 + $0x48] sm:$0xff]  ;;  %v1431_v14 = vld [vmem:[#allocation12 + $0x50] sm:$0xff] }
  0x39   :  { %2294 = vst [vmem:[#allocation24_spill] sm:$0xff] %v1421_v9  ;;  %2295 = vst [vmem:[#allocation25_spill] sm:$0xff] %v1423_v10  ;;  %v1439_v18 = vld [vmem:[#allocation12 + $0x58] sm:$0xff]  ;;  %v1441_v19 = vld [vmem:[#allocation12 + $0x60] sm:$0xff] }
  0x3a   :  { %2296 = vst [vmem:[#allocation26_spill] sm:$0xff] %v1427_v12  ;;  %2297 = vst [vmem:[#allocation27_spill] sm:$0xff] %v1429_v13  ;;  %v1443_v20 = vld [vmem:[#allocation12 + $0x68] sm:$0xff]  ;;  %v1445_v21 = vld [vmem:[#allocation12 + $0x70] sm:$0xff] }
  0x3b   :  { %2298 = vst [vmem:[#allocation28_spill] sm:$0xff] %v1431_v14  ;;  %2299 = vst [vmem:[#allocation29_spill] sm:$0xff] %v1439_v18  ;;  %v1447_v22 = vld [vmem:[#allocation12 + $0x78] sm:$0xff]  ;;  %v1449_v23 = vld [vmem:[#allocation12 + $0x80] sm:$0xff] }
  0x3c   :  { %2300 = vst [vmem:[#allocation30_spill] sm:$0xff] %v1441_v19  ;;  %2301 = vst [vmem:[#allocation31_spill] sm:$0xff] %v1443_v20  ;;  %v1455_v26 = vld [vmem:[#allocation12 + $0x88] sm:$0xff]  ;;  %v1457_v27 = vld [vmem:[#allocation12 + $0x90] sm:$0xff] }
  0x3d   :  { %2302 = vst [vmem:[#allocation32_spill] sm:$0xff] %v1445_v21  ;;  %2303 = vst [vmem:[#allocation33_spill] sm:$0xff] %v1447_v22  ;;  %v1459_v28 = vld [vmem:[#allocation12 + $0x98] sm:$0xff]  ;;  %v1465_v31 = vld [vmem:[#allocation12 + $0xa0] sm:$0xff] }
  0x3e   :  { %2304 = vst [vmem:[#allocation34_spill] sm:$0xff] %v1449_v23  ;;  %2305 = vst [vmem:[#allocation35_spill] sm:$0xff] %v1455_v26  ;;  %v1467_v32 = vld [vmem:[#allocation12 + $0xa8] sm:$0xff]  ;;  %v1469_v33 = vld [vmem:[#allocation12 + $0xb0] sm:$0xff] }
  0x3f   :  { %2306 = vst [vmem:[#allocation36_spill] sm:$0xff] %v1457_v27  ;;  %2307 = vst [vmem:[#allocation37_spill] sm:$0xff] %v1459_v28  ;;  %v1471_v34 = vld [vmem:[#allocation12 + $0xb8] sm:$0xff]  ;;  %v1473_v35 = vld [vmem:[#allocation12 + $0xc0] sm:$0xff] }
  0x40   :  { %2308 = vst [vmem:[#allocation38_spill] sm:$0xff] %v1465_v31  ;;  %2309 = vst [vmem:[#allocation39_spill] sm:$0xff] %v1467_v32  ;;  %v1475_v36 = vld [vmem:[#allocation12 + $0xc8] sm:$0xff]  ;;  %v1483_v40 = vld [vmem:[#allocation12 + $0xd0] sm:$0xff] }
  0x41   :  { %2310 = vst [vmem:[#allocation40_spill] sm:$0xff] %v1469_v33  ;;  %2311 = vst [vmem:[#allocation41_spill] sm:$0xff] %v1471_v34  ;;  %v1485_v41 = vld [vmem:[#allocation12 + $0xd8] sm:$0xff]  ;;  %v1487_v42 = vld [vmem:[#allocation12 + $0xe0] sm:$0xff] }
  0x42   :  { %2312 = vst [vmem:[#allocation42_spill] sm:$0xff] %v1473_v35  ;;  %2313 = vst [vmem:[#allocation43_spill] sm:$0xff] %v1483_v40  ;;  %v1491_v44 = vld [vmem:[#allocation12 + $0xe8] sm:$0xff]  ;;  %v1493_v45 = vld [vmem:[#allocation12 + $0xf0] sm:$0xff] }
  0x43   :  { %2314 = vst [vmem:[#allocation44_spill] sm:$0xff] %v1485_v41  ;;  %2315 = vst [vmem:[#allocation45_spill] sm:$0xff] %v1487_v42  ;;  %v1495_v46 = vld [vmem:[#allocation12 + $0xf8] sm:$0xff]  ;;  %v1499_v48 = vld [vmem:[#allocation12 + $0x100] sm:$0xff] }
  0x44   :  { %2316 = vst [vmem:[#allocation46_spill] sm:$0xff] %v1493_v45  ;;  %v1501_v49 = vld [vmem:[#allocation12 + $0x108] sm:$0xff]  ;;  %v1503_v50 = vld [vmem:[#allocation12 + $0x110] sm:$0xff]  ;;  %v1511_v54 = vld [vmem:[#allocation12 + $0x118] sm:$0xff] }
  0x45   :  { %v1513_v55 = vld [vmem:[#allocation12 + $0x120] sm:$0xff]  ;;  %v1515_v56 = vld [vmem:[#allocation12 + $0x128] sm:$0xff]  ;;  %v1517_v57 = vld [vmem:[#allocation12 + $0x130] sm:$0xff] }
  0x46   :  { %v1519_v58 = vld [vmem:[#allocation12 + $0x138] sm:$0xff]  ;;  %v1521_v59 = vld [vmem:[#allocation12 + $0x140] sm:$0xff]  ;;  %v1527_v62 = vld [vmem:[#allocation12 + $0x148] sm:$0xff] }
  0x47   :  { %v1529_v63 = vld [vmem:[#allocation12 + $0x150] sm:$0xff]  ;;  %v1531_v0 = vld [vmem:[#allocation12 + $0x158] sm:$0xff]  ;;  %v1537_v17 = vld [vmem:[#allocation12 + $0x160] sm:$0xff] }
  0x48   :  { %v1539_v15 = vld [vmem:[#allocation12 + $0x168] sm:$0xff]  ;;  %v1541_v29 = vld [vmem:[#allocation12 + $0x170] sm:$0xff]  ;;  %v1543_v24 = vld [vmem:[#allocation12 + $0x178] sm:$0xff] }
  0x49   :  { %v1545_v30 = vld [vmem:[#allocation12 + $0x180] sm:$0xff]  ;;  %v1547_v25 = vld [vmem:[#allocation12 + $0x188] sm:$0xff]  ;;  %v1555_v38 = vld [vmem:[#allocation12 + $0x190] sm:$0xff] }
  0x4a   :  { %v1557_v52 = vld [vmem:[#allocation12 + $0x198] sm:$0xff]  ;;  %v1559_v47 = vld [vmem:[#allocation12 + $0x1a0] sm:$0xff]  ;;  %v1563_v51 = vld [vmem:[#allocation12 + $0x1a8] sm:$0xff] }
  0x4b   :  { %v1565_v16 = vld [vmem:[#allocation12 + $0x1b0] sm:$0xff]  ;;  %v1567_v60 = vld [vmem:[#allocation12 + $0x1b8] sm:$0xff]  ;;  %v1571_v61 = vld [vmem:[#allocation12 + $0x1c0] sm:$0xff] }
  0x4c   :  { %v1573_v43 = vld [vmem:[#allocation12 + $0x1c8] sm:$0xff]  ;;  %v1575_v39 = vld [vmem:[#allocation12 + $0x1d0] sm:$0xff]  ;;  %v1583_v5 = vld [vmem:[#allocation12 + $0x1d8] sm:$0xff] }
  0x4d   :  { %v1585_v9 = vld [vmem:[#allocation12 + $0x1e0] sm:$0xff]  ;;  %v1587_v11 = vld [vmem:[#allocation12 + $0x1e8] sm:$0xff]  ;;  %v1589_v3 = vld [vmem:[#allocation12 + $0x1f0] sm:$0xff] }
  0x4e   :  { %v1591_v7 = vld [vmem:[#allocation12 + $0x1f8] sm:$0xff]  ;;  %v1597_v53 = vld [vmem:[#allocation13] sm:$0xff]  ;;  %v1603_v4 = vld [vmem:[#allocation13 + $0x8] sm:$0xff] }
  0x4f   :  { %2317 = vst [vmem:[#allocation47_spill] sm:$0xff] %v1597_v53  ;;  %2318 = vst [vmem:[#allocation48_spill] sm:$0xff] %v1603_v4  ;;  %v1605_v8 = vld [vmem:[#allocation13 + $0x10] sm:$0xff]  ;;  %v1607_v14 = vld [vmem:[#allocation13 + $0x18] sm:$0xff] }
  0x50   :  { %2319 = vst [vmem:[#allocation49_spill] sm:$0xff] %v1605_v8  ;;  %2320 = vst [vmem:[#allocation50_spill] sm:$0xff] %v1607_v14  ;;  %v1609_v21 = vld [vmem:[#allocation13 + $0x20] sm:$0xff]  ;;  %v1611_v6 = vld [vmem:[#allocation13 + $0x28] sm:$0xff] }
  0x51   :  { %2321 = vst [vmem:[#allocation51_spill] sm:$0xff] %v1609_v21  ;;  %2322 = vst [vmem:[#allocation52_spill] sm:$0xff] %v1611_v6  ;;  %v1613_v12 = vld [vmem:[#allocation13 + $0x30] sm:$0xff]  ;;  %v1615_v37 = vld [vmem:[#allocation13 + $0x38] sm:$0xff] }
  0x52   :  { %2323 = vst [vmem:[#allocation53_spill] sm:$0xff] %v1613_v12  ;;  %2324 = vst [vmem:[#allocation54_spill] sm:$0xff] %v1615_v37  ;;  %v1617_v19 = vld [vmem:[#allocation13 + $0x40] sm:$0xff]  ;;  %v1619_v1 = vld [vmem:[#allocation13 + $0x48] sm:$0xff] }
  0x53   :  { %2325 = vst [vmem:[#allocation55_spill] sm:$0xff] %v1617_v19  ;;  %2326 = vst [vmem:[#allocation56_spill] sm:$0xff] %v1619_v1  ;;  %v1627_v13 = vld [vmem:[#allocation13 + $0x50] sm:$0xff]  ;;  %v1629_v20 = vld [vmem:[#allocation13 + $0x58] sm:$0xff] }
  0x54   :  { %2327 = vst [vmem:[#allocation57_spill] sm:$0xff] %v1627_v13  ;;  %2328 = vst [vmem:[#allocation58_spill] sm:$0xff] %v1629_v20  ;;  %v1631_v27 = vld [vmem:[#allocation13 + $0x60] sm:$0xff]  ;;  %v1635_v23 = vld [vmem:[#allocation13 + $0x68] sm:$0xff] }
  0x55   :  { %2329 = vst [vmem:[#allocation59_spill] sm:$0xff] %v1631_v27  ;;  %2330 = vst [vmem:[#allocation60_spill] sm:$0xff] %v1635_v23  ;;  %v1637_v31 = vld [vmem:[#allocation13 + $0x70] sm:$0xff]  ;;  %v1639_v10 = vld [vmem:[#allocation13 + $0x78] sm:$0xff] }
  0x56   :  { %2331 = vst [vmem:[#allocation61_spill] sm:$0xff] %v1637_v31  ;;  %2332 = vst [vmem:[#allocation62_spill] sm:$0xff] %v1639_v10  ;;  %v1643_v53 = vld [vmem:[#allocation13 + $0x80] sm:$0xff]  ;;  %v1645_v22 = vld [vmem:[#allocation13 + $0x88] sm:$0xff] }
  0x57   :  { %2333 = vst [vmem:[#allocation63_spill] sm:$0xff] %v1643_v53  ;;  %2334 = vst [vmem:[#allocation64_spill] sm:$0xff] %v1645_v22  ;;  %v1647_v8 = vld [vmem:[#allocation13 + $0x90] sm:$0xff]  ;;  %v1655_v14 = vld [vmem:[#allocation13 + $0x98] sm:$0xff] }
  0x58   :  { %2335 = vst [vmem:[#allocation65_spill] sm:$0xff] %v1647_v8  ;;  %2336 = vst [vmem:[#allocation66_spill] sm:$0xff] %v1655_v14  ;;  %v1657_v37 = vld [vmem:[#allocation13 + $0xa0] sm:$0xff]  ;;  %v1659_v18 = vld [vmem:[#allocation13 + $0xa8] sm:$0xff] }
  0x59   :  { %2337 = vst [vmem:[#allocation67_spill] sm:$0xff] %v1657_v37  ;;  %2338 = vst [vmem:[#allocation68_spill] sm:$0xff] %v1659_v18  ;;  %v1661_v4 = vld [vmem:[#allocation13 + $0xb0] sm:$0xff]  ;;  %v1663_v6 = vld [vmem:[#allocation13 + $0xb8] sm:$0xff] }
  0x5a   :  { %2339 = vst [vmem:[#allocation69_spill] sm:$0xff] %v1661_v4  ;;  %2340 = vst [vmem:[#allocation70_spill] sm:$0xff] %v1663_v6  ;;  %v1665_v19 = vld [vmem:[#allocation13 + $0xc0] sm:$0xff]  ;;  %v1671_v13 = vld [vmem:[#allocation13 + $0xc8] sm:$0xff] }
  0x5b   :  { %2341 = vst [vmem:[#allocation71_spill] sm:$0xff] %v1665_v19  ;;  %2342 = vst [vmem:[#allocation72_spill] sm:$0xff] %v1671_v13  ;;  %v1673_v21 = vld [vmem:[#allocation13 + $0xd0] sm:$0xff]  ;;  %v1675_v31 = vld [vmem:[#allocation13 + $0xd8] sm:$0xff] }
  0x5c   :  { %2343 = vst [vmem:[#allocation73_spill] sm:$0xff] %v1673_v21  ;;  %2344 = vst [vmem:[#allocation74_spill] sm:$0xff] %v1675_v31  ;;  %v1681_v10 = vld [vmem:[#allocation13 + $0xe0] sm:$0xff]  ;;  %v1683_v1 = vld [vmem:[#allocation13 + $0xe8] sm:$0xff] }
  0x5d   :  { %2345 = vst [vmem:[#allocation75_spill] sm:$0xff] %v1681_v10  ;;  %2346 = vst [vmem:[#allocation76_spill] sm:$0xff] %v1683_v1  ;;  %v1685_v12 = vld [vmem:[#allocation13 + $0xf0] sm:$0xff]  ;;  %v1687_v23 = vld [vmem:[#allocation13 + $0xf8] sm:$0xff] }
  0x5e   :  { %2347 = vst [vmem:[#allocation77_spill] sm:$0xff] %v1685_v12  ;;  %2348 = vst [vmem:[#allocation78_spill] sm:$0xff] %v1687_v23  ;;  %v1689_v33 = vld [vmem:[#allocation13 + $0x100] sm:$0xff]  ;;  %v1691_v53 = vld [vmem:[#allocation13 + $0x108] sm:$0xff] }
  0x5f   :  { %2349 = vst [vmem:[#allocation79_spill] sm:$0xff] %v1689_v33  ;;  %2350 = vst [vmem:[#allocation80_spill] sm:$0xff] %v1691_v53  ;;  %v1699_v8 = vld [vmem:[#allocation13 + $0x110] sm:$0xff]  ;;  %v1701_v4 = vld [vmem:[#allocation13 + $0x118] sm:$0xff] }
  0x60   :  { %2351 = vst [vmem:[#allocation81_spill] sm:$0xff] %v1699_v8  ;;  %2352 = vst [vmem:[#allocation82_spill] sm:$0xff] %v1701_v4  ;;  %v1703_v14 = vld [vmem:[#allocation13 + $0x120] sm:$0xff]  ;;  %v1707_v22 = vld [vmem:[#allocation13 + $0x128] sm:$0xff] }
  0x61   :  { %2353 = vst [vmem:[#allocation83_spill] sm:$0xff] %v1703_v14  ;;  %2354 = vst [vmem:[#allocation84_spill] sm:$0xff] %v1707_v22  ;;  %v1709_v18 = vld [vmem:[#allocation13 + $0x130] sm:$0xff]  ;;  %v1711_v37 = vld [vmem:[#allocation13 + $0x138] sm:$0xff] }
  0x62   :  { %2355 = vst [vmem:[#allocation85_spill] sm:$0xff] %v1709_v18  ;;  %2356 = vst [vmem:[#allocation86_spill] sm:$0xff] %v1711_v37  ;;  %v1715_v19 = vld [vmem:[#allocation13 + $0x140] sm:$0xff]  ;;  %v1717_v20 = vld [vmem:[#allocation13 + $0x148] sm:$0xff] }
  0x63   :  { %2357 = vst [vmem:[#allocation87_spill] sm:$0xff] %v1715_v19  ;;  %2358 = vst [vmem:[#allocation88_spill] sm:$0xff] %v1717_v20  ;;  %v1719_v21 = vld [vmem:[#allocation13 + $0x150] sm:$0xff]  ;;  %v1727_v31 = vld [vmem:[#allocation13 + $0x158] sm:$0xff] }
  0x64   :  { %2359 = vst [vmem:[#allocation89_spill] sm:$0xff] %v1719_v21  ;;  %2360 = vst [vmem:[#allocation90_spill] sm:$0xff] %v1727_v31  ;;  %v1729_v23 = vld [vmem:[#allocation13 + $0x160] sm:$0xff]  ;;  %v1731_v27 = vld [vmem:[#allocation13 + $0x168] sm:$0xff] }
  0x65   :  { %2361 = vst [vmem:[#allocation91_spill] sm:$0xff] %v1729_v23  ;;  %2362 = vst [vmem:[#allocation92_spill] sm:$0xff] %v1731_v27  ;;  %v1733_v13 = vld [vmem:[#allocation13 + $0x170] sm:$0xff]  ;;  %v1735_v1 = vld [vmem:[#allocation13 + $0x178] sm:$0xff] }
  0x66   :  { %2363 = vst [vmem:[#allocation93_spill] sm:$0xff] %v1733_v13  ;;  %2364 = vst [vmem:[#allocation94_spill] sm:$0xff] %v1735_v1  ;;  %v1737_v33 = vld [vmem:[#allocation13 + $0x180] sm:$0xff]  ;;  %v1743_v8 = vld [vmem:[#allocation13 + $0x188] sm:$0xff] }
  0x67   :  { %2365 = vst [vmem:[#allocation95_spill] sm:$0xff] %v1737_v33  ;;  %2366 = vst [vmem:[#allocation96_spill] sm:$0xff] %v1743_v8  ;;  %v1745_v10 = vld [vmem:[#allocation13 + $0x190] sm:$0xff]  ;;  %v1747_v18 = vld [vmem:[#allocation13 + $0x198] sm:$0xff] }
  0x68   :  { %2367 = vst [vmem:[#allocation97_spill] sm:$0xff] %v1745_v10  ;;  %2368 = vst [vmem:[#allocation98_spill] sm:$0xff] %v1747_v18  ;;  %v1753_v37 = vld [vmem:[#allocation13 + $0x1a0] sm:$0xff]  ;;  %v1755_v53 = vld [vmem:[#allocation13 + $0x1a8] sm:$0xff] }
  0x69   :  { %2369 = vst [vmem:[#allocation99_spill] sm:$0xff] %v1753_v37  ;;  %2370 = vst [vmem:[#allocation100_spill] sm:$0xff] %v1755_v53  ;;  %v1757_v12 = vld [vmem:[#allocation13 + $0x1b0] sm:$0xff]  ;;  %v1759_v22 = vld [vmem:[#allocation13 + $0x1b8] sm:$0xff] }
  0x6a   :  { %2371 = vst [vmem:[#allocation101_spill] sm:$0xff] %v1757_v12  ;;  %2372 = vst [vmem:[#allocation102_spill] sm:$0xff] %v1759_v22  ;;  %v1761_v6 = vld [vmem:[#allocation13 + $0x1c0] sm:$0xff]  ;;  %v1763_v19 = vld [vmem:[#allocation13 + $0x1c8] sm:$0xff] }
  0x6b   :  { %2373 = vst [vmem:[#allocation103_spill] sm:$0xff] %v1761_v6  ;;  %2374 = vst [vmem:[#allocation104_spill] sm:$0xff] %v1763_v19  ;;  %v1771_v21 = vld [vmem:[#allocation13 + $0x1d0] sm:$0xff]  ;;  %v1773_v13 = vld [vmem:[#allocation13 + $0x1d8] sm:$0xff] }
  0x6c   :  { %2375 = vst [vmem:[#allocation105_spill] sm:$0xff] %v1771_v21  ;;  %2376 = vst [vmem:[#allocation106_spill] sm:$0xff] %v1773_v13  ;;  %v1775_v31 = vld [vmem:[#allocation13 + $0x1e0] sm:$0xff]  ;;  %v1779_v20 = vld [vmem:[#allocation13 + $0x1e8] sm:$0xff] }
  0x6d   :  { %2377 = vst [vmem:[#allocation107_spill] sm:$0xff] %v1775_v31  ;;  %2378 = vst [vmem:[#allocation108_spill] sm:$0xff] %v1779_v20  ;;  %v1781_v27 = vld [vmem:[#allocation13 + $0x1f0] sm:$0xff]  ;;  %v1783_v23 = vld [vmem:[#allocation13 + $0x1f8] sm:$0xff] }
  0x6e   :  { %2379 = vst [vmem:[#allocation109_spill] sm:$0xff] %v1781_v27  ;;  %2380 = vst [vmem:[#allocation110_spill] sm:$0xff] %v1783_v23  ;;  %v204_v33 = vld [vmem:[#allocation8 + $0x388] sm:$0xff]  ;;  %v206_v37 = vld [vmem:[#allocation8 + $0x398] sm:$0xff] }
  0x6f   :  { %v212_v1 = vld [vmem:[#allocation8 + $0x3c8] sm:$0xff]  ;;  %v214_v22 = vld [vmem:[#allocation8 + $0x3d8] sm:$0xff]  ;;  %v203_v8 = vld [vmem:[#allocation8 + $0x380] sm:$0xff] }
  0x70   :  { %v276_v18 = vpack.c.bf16 %v212_v1, %v204_v33  ;;  %v211_v53 = vld [vmem:[#allocation8 + $0x3c0] sm:$0xff]  ;;  %v278_v28 = vpack.c.bf16 %v214_v22, %v206_v37  ;;  %v205_v26 = vld [vmem:[#allocation8 + $0x390] sm:$0xff]  ;;  %v188_v6 = vld [vmem:[#allocation8 + $0x308] sm:$0xff] }
  0x71   :  { %v275_v34 = vpack.c.bf16 %v211_v53, %v203_v8  ;;  %v213_v14 = vld [vmem:[#allocation8 + $0x3d0] sm:$0xff]  ;;  %v196_v31 = vld [vmem:[#allocation8 + $0x348] sm:$0xff]  ;;  %v190_v19 = vld [vmem:[#allocation8 + $0x318] sm:$0xff] }
  0x72   :  { %325 = vmatprep.subr.bf16.mxu0 %v276_v18  ;;  %v277_v4 = vpack.c.bf16 %v213_v14, %v205_v26  ;;  %v198_v10 = vld [vmem:[#allocation8 + $0x358] sm:$0xff]  ;;  %398 = vmatprep.subr.bf16.mxu1 %v278_v28  ;;  %v268_v12 = vpack.c.bf16 %v196_v31, %v188_v6  ;;  %v187_v27 = vld [vmem:[#allocation8 + $0x300] sm:$0xff]  ;;  %v189_v1 = vld [vmem:[#allocation8 + $0x310] sm:$0xff] }
  0x73   :  { %326 = vmatpush1.bf16.msra.mxu0 %v275_v34  ;;  %v270_v21 = vpack.c.bf16 %v198_v10, %v190_v19  ;;  %v195_v13 = vld [vmem:[#allocation8 + $0x340] sm:$0xff]  ;;  %v197_v23 = vld [vmem:[#allocation8 + $0x350] sm:$0xff]  ;;  %v172_v22 = vld [vmem:[#allocation8 + $0x288] sm:$0xff] }
  0x74   :  { %399 = vmatpush1.bf16.msra.mxu1 %v277_v4  ;;  %v267_v33 = vpack.c.bf16 %v195_v13, %v187_v27  ;;  %v180_v8 = vld [vmem:[#allocation8 + $0x2c8] sm:$0xff]  ;;  %327 = vmatprep.subr.bf16.mxu0 %v268_v12  ;;  %v269_v37 = vpack.c.bf16 %v197_v23, %v189_v1  ;;  %v174_v14 = vld [vmem:[#allocation8 + $0x298] sm:$0xff]  ;;  %v171_v53 = vld [vmem:[#allocation8 + $0x280] sm:$0xff] }
  0x75   :  { %400 = vmatprep.subr.bf16.mxu1 %v270_v21  ;;  %v260_v18 = vpack.c.bf16 %v180_v8, %v172_v22  ;;  %v182_v26 = vld [vmem:[#allocation8 + $0x2d8] sm:$0xff]  ;;  %v179_v28 = vld [vmem:[#allocation8 + $0x2c0] sm:$0xff]  ;;  %v173_v34 = vld [vmem:[#allocation8 + $0x290] sm:$0xff] }
  0x76   :  { %v262_v20 = vpack.c.bf16 %v182_v26, %v174_v14  ;;  %v181_v6 = vld [vmem:[#allocation8 + $0x2d0] sm:$0xff]  ;;  %v259_v10 = vpack.c.bf16 %v179_v28, %v171_v53  ;;  %v156_v19 = vld [vmem:[#allocation8 + $0x208] sm:$0xff]  ;;  %v158_v4 = vld [vmem:[#allocation8 + $0x218] sm:$0xff] }
  0x77   :  { %328 = vmatpush1.bf16.msra.mxu0 %v267_v33  ;;  %v164_v31 = vld [vmem:[#allocation8 + $0x248] sm:$0xff]  ;;  %v261_v13 = vpack.c.bf16 %v181_v6, %v173_v34  ;;  %v166_v12 = vld [vmem:[#allocation8 + $0x258] sm:$0xff]  ;;  %v155_v21 = vld [vmem:[#allocation8 + $0x200] sm:$0xff] }
  0x78   :  { %401 = vmatpush1.bf16.msra.mxu1 %v269_v37  ;;  %329 = vmatprep.subr.bf16.mxu0 %v260_v18  ;;  %v252_v27 = vpack.c.bf16 %v164_v31, %v156_v19  ;;  %v163_v23 = vld [vmem:[#allocation8 + $0x240] sm:$0xff]  ;;  %v254_v1 = vpack.c.bf16 %v166_v12, %v158_v4  ;;  %v157_v22 = vld [vmem:[#allocation8 + $0x210] sm:$0xff]  ;;  %v140_v14 = vld [vmem:[#allocation8 + $0x188] sm:$0xff] }
  0x79   :  { %402 = vmatprep.subr.bf16.mxu1 %v262_v20  ;;  %v165_v8 = vld [vmem:[#allocation8 + $0x250] sm:$0xff]  ;;  %v148_v26 = vld [vmem:[#allocation8 + $0x1c8] sm:$0xff]  ;;  %v142_v32 = vld [vmem:[#allocation8 + $0x198] sm:$0xff]  ;;  %v251_v33 = vpack.c.bf16 %v163_v23, %v155_v21 }
  0x7a   :  { %v150_v40 = vld [vmem:[#allocation8 + $0x1d8] sm:$0xff]  ;;  %v253_v53 = vpack.c.bf16 %v165_v8, %v157_v22  ;;  %v244_v37 = vpack.c.bf16 %v148_v26, %v140_v14  ;;  %v139_v18 = vld [vmem:[#allocation8 + $0x180] sm:$0xff]  ;;  %v141_v34 = vld [vmem:[#allocation8 + $0x190] sm:$0xff] }
  0x7b   :  { %330 = vmatpush1.bf16.msra.mxu0 %v259_v10  ;;  %v147_v28 = vld [vmem:[#allocation8 + $0x1c0] sm:$0xff]  ;;  %v246_v6 = vpack.c.bf16 %v150_v40, %v142_v32  ;;  %v149_v19 = vld [vmem:[#allocation8 + $0x1d0] sm:$0xff]  ;;  %v124_v20 = vld [vmem:[#allocation8 + $0x108] sm:$0xff] }
  0x7c   :  { %403 = vmatpush1.bf16.msra.mxu1 %v261_v13  ;;  %331 = vmatprep.subr.bf16.mxu0 %v252_v27  ;;  %v132_v31 = vld [vmem:[#allocation8 + $0x148] sm:$0xff]  ;;  %v126_v4 = vld [vmem:[#allocation8 + $0x118] sm:$0xff]  ;;  %v243_v45 = vpack.c.bf16 %v147_v28, %v139_v18  ;;  %v245_v10 = vpack.c.bf16 %v149_v19, %v141_v34  ;;  %v123_v13 = vld [vmem:[#allocation8 + $0x100] sm:$0xff] }
  0x7d   :  { %404 = vmatprep.subr.bf16.mxu1 %v254_v1  ;;  %v134_v12 = vld [vmem:[#allocation8 + $0x158] sm:$0xff]  ;;  %v236_v21 = vpack.c.bf16 %v132_v31, %v124_v20  ;;  %v131_v27 = vld [vmem:[#allocation8 + $0x140] sm:$0xff]  ;;  %v125_v23 = vld [vmem:[#allocation8 + $0x110] sm:$0xff] }
  0x7e   :  { %v238_v22 = vpack.c.bf16 %v134_v12, %v126_v4  ;;  %v133_v8 = vld [vmem:[#allocation8 + $0x150] sm:$0xff]  ;;  %v108_v14 = vld [vmem:[#allocation8 + $0x88] sm:$0xff]  ;;  %v110_v32 = vld [vmem:[#allocation8 + $0x98] sm:$0xff]  ;;  %v235_v26 = vpack.c.bf16 %v131_v27, %v123_v13 }
  0x7f   :  { %332 = vmatpush1.bf16.msra.mxu0 %v251_v33  ;;  %v116_v1 = vld [vmem:[#allocation8 + $0xc8] sm:$0xff]  ;;  %v118_v40 = vld [vmem:[#allocation8 + $0xd8] sm:$0xff]  ;;  %v237_v33 = vpack.c.bf16 %v133_v8, %v125_v23  ;;  %v109_v28 = vld [vmem:[#allocation8 + $0x90] sm:$0xff] }
  0x80   :  { %405 = vmatpush1.bf16.msra.mxu1 %v253_v53  ;;  %333 = vmatprep.subr.bf16.mxu0 %v244_v37  ;;  %v228_v18 = vpack.c.bf16 %v116_v1, %v108_v14  ;;  %v107_v53 = vld [vmem:[#allocation8 + $0x80] sm:$0xff]  ;;  %v230_v34 = vpack.c.bf16 %v118_v40, %v110_v32  ;;  %v117_v19 = vld [vmem:[#allocation8 + $0xd0] sm:$0xff]  ;;  %v92_v20 = vld [vmem:[#allocation8 + $0x8] sm:$0xff] }
  0x81   :  { %406 = vmatprep.subr.bf16.mxu1 %v246_v6  ;;  %v115_v37 = vld [vmem:[#allocation8 + $0xc0] sm:$0xff]  ;;  %v100_v6 = vld [vmem:[#allocation8 + $0x48] sm:$0xff]  ;;  %v94_v31 = vld [vmem:[#allocation8 + $0x18] sm:$0xff] }
  0x82   :  { %v102_v4 = vld [vmem:[#allocation8 + $0x58] sm:$0xff]  ;;  %v227_v12 = vpack.c.bf16 %v115_v37, %v107_v53  ;;  %v220_v13 = vpack.c.bf16 %v100_v6, %v92_v20  ;;  %v93_v27 = vld [vmem:[#allocation8 + $0x10] sm:$0xff]  ;;  %v208_v14 = vld [vmem:[#allocation8 + $0x3a8] sm:$0xff] }
  0x83   :  { %334 = vmatpush1.bf16.msra.mxu0 %v243_v45  ;;  %v229_v45 = vpack.c.bf16 %v117_v19, %v109_v28  ;;  %v222_v23 = vpack.c.bf16 %v102_v4, %v94_v31  ;;  %v101_v8 = vld [vmem:[#allocation8 + $0x50] sm:$0xff]  ;;  %v210_v1 = vld [vmem:[#allocation8 + $0x3b8] sm:$0xff]  ;;  %v207_v37 = vld [vmem:[#allocation8 + $0x3a0] sm:$0xff] }
  0x84   :  { %407 = vmatpush1.bf16.msra.mxu1 %v245_v10  ;;  %335 = vmatprep.subr.bf16.mxu0 %v236_v21  ;;  %v91_v10 = vld [vmem:[#allocation8] sm:$0xff]  ;;  %v218_v32 = vld [vmem:[#allocation8 + $0x3f8] sm:$0xff]  ;;  %v217_v20 = vld [vmem:[#allocation8 + $0x3f0] sm:$0xff] }
  0x85   :  { %408 = vmatprep.subr.bf16.mxu1 %v238_v22  ;;  %v99_v21 = vld [vmem:[#allocation8 + $0x40] sm:$0xff]  ;;  %v216_v22 = vld [vmem:[#allocation8 + $0x3e8] sm:$0xff]  ;;  %v282_v19 = vpack.c.bf16 %v218_v32, %v210_v1  ;;  %v170_v35 = vld [vmem:[#allocation8 + $0x278] sm:$0xff] }
  0x86   :  { %v219_v40 = vpack.c.bf16 %v99_v21, %v91_v10  ;;  %v280_v53 = vpack.c.bf16 %v216_v22, %v208_v14  ;;  %v215_v28 = vld [vmem:[#allocation8 + $0x3e0] sm:$0xff]  ;;  %v192_v6 = vld [vmem:[#allocation8 + $0x328] sm:$0xff]  ;;  %v202_v10 = vld [vmem:[#allocation8 + $0x378] sm:$0xff] }
  0x87   :  { %336 = vmatpush1.bf16.msra.mxu0 %v235_v26  ;;  %v79_v26 = vld [vmem:[%s2186_s1] sm:$0xff]  ;;  %v200_v31 = vld [vmem:[#allocation8 + $0x368] sm:$0xff]  ;;  %v279_v21 = vpack.c.bf16 %v215_v28, %v207_v37  ;;  %v193_v14 = vld [vmem:[#allocation8 + $0x330] sm:$0xff] }
  0x88   :  { %409 = vmatpush1.bf16.msra.mxu1 %v237_v33  ;;  %337 = vmatprep.subr.bf16.mxu0 %v228_v18  ;;  %v80_v33 = vld [vmem:[%s2186_s1 + $0x8] sm:$0xff]  ;;  %v221_v18 = vpack.c.bf16 %v101_v8, %v93_v27  ;;  %v191_v27 = vld [vmem:[#allocation8 + $0x320] sm:$0xff] }
  0x89   :  { %410 = vmatprep.subr.bf16.mxu1 %v230_v34  ;;  %v209_v34 = vld [vmem:[#allocation8 + $0x3b0] sm:$0xff]  ;;  %v1799_v4 = vpack.c.bf16 %v80_v33, %v79_v26  ;;  %v199_v8 = vld [vmem:[#allocation8 + $0x360] sm:$0xff]  ;;  %v176_v1 = vld [vmem:[#allocation8 + $0x2a8] sm:$0xff] }
  0x8a   :  { %v184_v32 = vld [vmem:[#allocation8 + $0x2e8] sm:$0xff]  ;;  %v178_v26 = vld [vmem:[#allocation8 + $0x2b8] sm:$0xff] }
  0x8b   :  { %338 = vmatpush1.bf16.msra.mxu0 %v227_v12  ;;  %v194_v12 = vld [vmem:[#allocation8 + $0x338] sm:$0xff]  ;;  %v264_v28 = vpack.c.bf16 %v184_v32, %v176_v1  ;;  %v161_v1 = vld [vmem:[#allocation8 + $0x230] sm:$0xff]  ;;  %v152_v42 = vld [vmem:[#allocation8 + $0x1e8] sm:$0xff] }
  0x8c   :  { %411 = vmatpush1.bf16.msra.mxu1 %v229_v45  ;;  %339 = vmatprep.subr.bf16.mxu0 %v220_v13  ;;  %v281_v45 = vpack.c.bf16 %v217_v20, %v209_v34  ;;  %v272_v13 = vpack.c.bf16 %v200_v31, %v192_v6  ;;  %v274_v22 = vpack.c.bf16 %v202_v10, %v194_v12  ;;  %v186_v33 = vld [vmem:[#allocation8 + $0x2f8] sm:$0xff]  ;;  %v175_v34 = vld [vmem:[#allocation8 + $0x2a0] sm:$0xff]  ;;  %v177_v20 = vld [vmem:[#allocation8 + $0x2b0] sm:$0xff]  ;;  %v2381_v6 = vmov 0  }
  0x8d   :  { %412 = vmatprep.subr.bf16.mxu1 %v222_v23  ;;  %v201_v23 = vld [vmem:[#allocation8 + $0x370] sm:$0xff]  ;;  %v266_v31 = vpack.c.bf16 %v186_v33, %v178_v26  ;;  %v160_v10 = vld [vmem:[#allocation8 + $0x228] sm:$0xff] }
  0x8e   :  { %v273_v37 = vpack.c.bf16 %v201_v23, %v193_v14  ;;  %v185_v12 = vld [vmem:[#allocation8 + $0x2f0] sm:$0xff]  ;;  %v159_v23 = vld [vmem:[#allocation8 + $0x220] sm:$0xff]  ;;  %v144_v33 = vld [vmem:[#allocation8 + $0x1a8] sm:$0xff] }
  0x8f   :  { %340 = vmatpush1.bf16.msra.mxu0 %v219_v40  ;;  %v271_v40 = vpack.c.bf16 %v199_v8, %v191_v27  ;;  %v162_v8 = vld [vmem:[#allocation8 + $0x238] sm:$0xff]  ;;  %v169_v26 = vld [vmem:[#allocation8 + $0x270] sm:$0xff]  ;;  %v120_v41 = vld [vmem:[#allocation8 + $0xe8] sm:$0xff] }
  0x90   :  { %413 = vmatpush1.bf16.msra.mxu1 %v221_v18  ;;  %471 = vmatprep.subr.bf16.mxu0 %v280_v53  ;;  %v81_v18 = vld [vmem:[%s2186_s1 + $0x10] sm:$0xff]  ;;  %v82_v53 = vld [vmem:[%s2186_s1 + $0x18] sm:$0xff]  ;;  %v258_v32 = vpack.c.bf16 %v170_v35, %v162_v8  ;;  %v257_v35 = vpack.c.bf16 %v169_v26, %v161_v1  ;;  %v136_v8 = vld [vmem:[#allocation8 + $0x168] sm:$0xff] }
  0x91   :  { %544 = vmatprep.subr.bf16.mxu1 %v282_v19  ;;  %v183_v19 = vld [vmem:[#allocation8 + $0x2e0] sm:$0xff]  ;;  %v1811_v27 = vpack.c.bf16 %v82_v53, %v81_v18  ;;  %v146_v18 = vld [vmem:[#allocation8 + $0x1b8] sm:$0xff]  ;;  %v129_v26 = vld [vmem:[#allocation8 + $0x130] sm:$0xff] }
  0x92   :  { %358 = vmatmul.mubr.bf16.vlgmr.msra.gmra.mxu0 %v1799_v4  ;;  %v154_v53 = vld [vmem:[#allocation8 + $0x1f8] sm:$0xff]  ;;  %v127_v1 = vld [vmem:[#allocation8 + $0x120] sm:$0xff] }
  0x93   :  { %431 = vmatmul.mubr.bf16.vlgmr.msra.gmra.mxu1 %v1799_v4  ;;  %472 = vmatpush1.bf16.msra.mxu0 %v279_v21  ;;  %v168_v21 = vld [vmem:[#allocation8 + $0x268] sm:$0xff] }
  0x94   :  { %545 = vmatpush1.bf16.msra.mxu1 %v281_v45  ;;  %473 = vmatprep.subr.bf16.mxu0 %v272_v13  ;;  %v263_v45 = vpack.c.bf16 %v183_v19, %v175_v34  ;;  %v265_v13 = vpack.c.bf16 %v185_v12, %v177_v20  ;;  %v256_v14 = vpack.c.bf16 %v168_v21, %v160_v10  ;;  %v143_v19 = vld [vmem:[#allocation8 + $0x1a0] sm:$0xff]  ;;  %v153_v10 = vld [vmem:[#allocation8 + $0x1f0] sm:$0xff]  ;;  %v128_v21 = vld [vmem:[#allocation8 + $0x128] sm:$0xff] }
  0x95   :  { %546 = vmatprep.subr.bf16.mxu1 %v274_v22  ;;  %367 = vmatprep.mubr.bf16.mxu0 %v2381_v6  ;;  %v167_v22 = vld [vmem:[#allocation8 + $0x260] sm:$0xff]  ;;  %v248_v34 = vpack.c.bf16 %v152_v42, %v144_v33  ;;  %v250_v12 = vpack.c.bf16 %v154_v53, %v146_v18  ;;  %v137_v18 = vld [vmem:[#allocation8 + $0x170] sm:$0xff]  ;;  %v112_v53 = vld [vmem:[#allocation8 + $0xa8] sm:$0xff] }
  0x96   :  { %440 = vmatprep.mubr.bf16.mxu1 %v2381_v6  ;;  %v151_v20 = vld [vmem:[#allocation8 + $0x1e0] sm:$0xff] }
  0x97   :  { %474 = vmatpush1.bf16.msra.mxu0 %v271_v40  ;;  %v255_v40 = vpack.c.bf16 %v167_v22, %v159_v23  ;;  %v130_v23 = vld [vmem:[#allocation8 + $0x138] sm:$0xff] }
  0x98   :  { %547 = vmatpush1.bf16.msra.mxu1 %v273_v37  ;;  %475 = vmatprep.subr.bf16.mxu0 %v264_v28  ;;  %v83_v37 = vld [vmem:[%s2186_s1 + $0x20] sm:$0xff]  ;;  %v84_v28 = vld [vmem:[%s2186_s1 + $0x28] sm:$0xff]  ;;  %v138_v22 = vld [vmem:[#allocation8 + $0x178] sm:$0xff] }
  0x99   :  { %548 = vmatprep.subr.bf16.mxu1 %v266_v31  ;;  %v145_v31 = vld [vmem:[#allocation8 + $0x1b0] sm:$0xff]  ;;  %v242_v33 = vpack.c.bf16 %v138_v22, %v130_v23  ;;  %v96_v23 = vld [vmem:[#allocation8 + $0x28] sm:$0xff] }
  0x9a   :  { %368 = vmatmul.mubr.bf16.gmra.mxu0 %v1811_v27  ;;  %v249_v42 = vpack.c.bf16 %v153_v10, %v145_v31  ;;  %v111_v31 = vld [vmem:[#allocation8 + $0xa0] sm:$0xff]  ;;  %v113_v10 = vld [vmem:[#allocation8 + $0xb0] sm:$0xff]  ;;  %v104_v22 = vld [vmem:[#allocation8 + $0x68] sm:$0xff] }
  0x9b   :  { %441 = vmatmul.mubr.bf16.gmra.mxu1 %v1811_v27  ;;  %476 = vmatpush1.bf16.msra.mxu0 %v263_v45  ;;  %v1823_v45 = vpack.c.bf16 %v84_v28, %v83_v37  ;;  %v114_v37 = vld [vmem:[#allocation8 + $0xb8] sm:$0xff] }
  0x9c   :  { %549 = vmatpush1.bf16.msra.mxu1 %v265_v13  ;;  %477 = vmatprep.subr.bf16.mxu0 %v256_v14  ;;  %v247_v13 = vpack.c.bf16 %v151_v20, %v143_v19  ;;  %v240_v14 = vpack.c.bf16 %v136_v8, %v128_v21  ;;  %v122_v28 = vld [vmem:[#allocation8 + $0xf8] sm:$0xff]  ;;  %v241_v19 = vpack.c.bf16 %v137_v18, %v129_v26  ;;  %v121_v8 = vld [vmem:[#allocation8 + $0xf0] sm:$0xff]  ;;  %v95_v26 = vld [vmem:[#allocation8 + $0x20] sm:$0xff] }
  0x9d   :  { %550 = vmatprep.subr.bf16.mxu1 %v258_v32  ;;  %377 = vmatprep.mubr.bf16.mxu0 %v2381_v6  ;;  %v135_v32 = vld [vmem:[#allocation8 + $0x160] sm:$0xff]  ;;  %v232_v20 = vpack.c.bf16 %v120_v41, %v112_v53  ;;  %v234_v21 = vpack.c.bf16 %v122_v28, %v114_v37  ;;  %v233_v41 = vpack.c.bf16 %v121_v8, %v113_v10  ;;  %v97_v53 = vld [vmem:[#allocation8 + $0x30] sm:$0xff] }
  0x9e   :  { %450 = vmatprep.mubr.bf16.mxu1 %v2381_v6  ;;  %v103_v18 = vld [vmem:[#allocation8 + $0x60] sm:$0xff]  ;;  %v105_v37 = vld [vmem:[#allocation8 + $0x70] sm:$0xff] }
  0x9f   :  { %478 = vmatpush1.bf16.msra.mxu0 %v255_v40  ;;  %v239_v40 = vpack.c.bf16 %v135_v32, %v127_v1  ;;  %v98_v1 = vld [vmem:[#allocation8 + $0x38] sm:$0xff]  ;;  %v223_v28 = vpack.c.bf16 %v103_v18, %v95_v26 }
  0xa0   :  { %551 = vmatpush1.bf16.msra.mxu1 %v257_v35  ;;  %479 = vmatprep.subr.bf16.mxu0 %v248_v34  ;;  %v85_v35 = vld [vmem:[%s2186_s1 + $0x30] sm:$0xff]  ;;  %v86_v34 = vld [vmem:[%s2186_s1 + $0x38] sm:$0xff]  ;;  %s1949_s1 = smov 0  }
  0xa1   :  { %552 = vmatprep.subr.bf16.mxu1 %v250_v12  ;;  %v119_v12 = vld [vmem:[#allocation8 + $0xe0] sm:$0xff]  ;;  %v106_v32 = vld [vmem:[#allocation8 + $0x78] sm:$0xff] }
  0xa2   :  { %378 = vmatmul.mubr.bf16.gmra.mxu0 %v1823_v45 }
  0xa3   :  { %451 = vmatmul.mubr.bf16.gmra.mxu1 %v1823_v45  ;;  %480 = vmatpush1.bf16.msra.mxu0 %v247_v13  ;;  %v90_v13 = vpack.c.bf16 %v86_v34, %v85_v35  ;;  %v225_v35 = vpack.c.bf16 %v105_v37, %v97_v53 }
  0xa4   :  { %553 = vmatpush1.bf16.msra.mxu1 %v249_v42  ;;  %481 = vmatprep.subr.bf16.mxu0 %v240_v14  ;;  %v231_v42 = vpack.c.bf16 %v119_v12, %v111_v31  ;;  %v224_v14 = vpack.c.bf16 %v104_v22, %v96_v23 }
  0xa5   :  { %554 = vmatprep.subr.bf16.mxu1 %v242_v33  ;;  %387 = vmatprep.mubr.bf16.mxu0 %v2381_v6  ;;  %v226_v33 = vpack.c.bf16 %v106_v32, %v98_v1 }
  0xa6   :  { %460 = vmatprep.mubr.bf16.mxu1 %v2381_v6 }
  0xa7   :  { %482 = vmatpush1.bf16.msra.mxu0 %v239_v40 }
  0xa8   :  { %555 = vmatpush1.bf16.msra.mxu1 %v241_v19  ;;  %483 = vmatprep.subr.bf16.mxu0 %v232_v20 }
  0xa9   :  { %556 = vmatprep.subr.bf16.mxu1 %v234_v21 }
  0xaa   :  { %388 = vmatmul.mubr.bf16.gmra.mxu0 %v90_v13 }
  0xab   :  { %461 = vmatmul.mubr.bf16.gmra.mxu1 %v90_v13  ;;  %484 = vmatpush1.bf16.msra.mxu0 %v231_v42 }
  0xac   :  { %557 = vmatpush1.bf16.msra.mxu1 %v233_v41  ;;  %485 = vmatprep.subr.bf16.mxu0 %v224_v14 }
  0xad   :  { %558 = vmatprep.subr.bf16.mxu1 %v226_v33  ;;  %503 = vmatprep.mubr.bf16.mxu0 %v2381_v6 }
  0xae   :  { %576 = vmatprep.mubr.bf16.mxu1 %v2381_v6 }
  0xaf   :  { %486 = vmatpush1.bf16.msra.mxu0 %v223_v28 }
  0xb0   :  { %559 = vmatpush1.bf16.msra.mxu1 %v225_v35 }
  0xb2   :  { %504 = vmatmul.mubr.bf16.vlgmr.msra.gmra.mxu0 %v1799_v4 }
  0xb3   :  { %577 = vmatmul.mubr.bf16.vlgmr.msra.gmra.mxu1 %v1799_v4  ;;  %513 = vmatprep.mubr.bf16.mxu0 %v2381_v6  ;;  %v285_v4 = vlaneseq }
  0xb4   :  { %586 = vmatprep.mubr.bf16.mxu1 %v2381_v6 }
  0xb5   :  { %v1849_v40 = vshrl.u32 %v285_v4, 7 }
  0xb7   :  { %v287_v34 = vsub.s32 0, %v1849_v40  ;;  %v295_v19 = vsub.s32 2, %v1849_v40  ;;  %v291_v20 = vsub.s32 1, %v1849_v40  ;;  %v299_v31 = vsub.s32 3, %v1849_v40 }
  0xba   :  { %514 = vmatmul.mubr.bf16.gmra.mxu0 %v1811_v27 }
  0xbb   :  { %587 = vmatmul.mubr.bf16.gmra.mxu1 %v1811_v27  ;;  %523 = vmatprep.mubr.bf16.mxu0 %v2381_v6  ;;  %v1852_v27 = vld [vmem:[#allocation10] sm:$0xff] }
  0xbc   :  { %596 = vmatprep.mubr.bf16.mxu1 %v2381_v6  ;;  %v1864_v12 = vrot.slane %v1852_v27, %v291_v20  ;;  %v1867_v21 = vrot.slane %v1852_v27, %v299_v31 }
  0xc2   :  { %524 = vmatmul.mubr.bf16.gmra.mxu0 %v1823_v45 }
  0xc3   :  { %597 = vmatmul.mubr.bf16.gmra.mxu1 %v1823_v45  ;;  %533 = vmatprep.mubr.bf16.mxu0 %v2381_v6  ;;  %v1858_v45 = vrot.slane %v1852_v27, %v287_v34 }
  0xc4   :  { %606 = vmatprep.mubr.bf16.mxu1 %v2381_v6  ;;  %v1861_v6 = vrot.slane %v1852_v27, %v295_v19 }
  0xca   :  { %534 = vmatmul.mubr.bf16.gmra.mxu0 %v90_v13 }
  0xcb   :  { %607 = vmatmul.mubr.bf16.gmra.mxu1 %v90_v13 }
 0x152   :  { %v359_v10 = vpop.f32.mrf.mxu0 }
 0x153   :  { %v360_v8 = vadd.f32 %v359_v10, %v1858_v45  ;;  %v432_v23 = vpop.f32.mrf.mxu1 }
 0x154   :  { %v433_v22 = vadd.f32 %v432_v23, %v1861_v6  ;;  %v361_v13 = vpop.f32.mrf.mxu0 }
 0x155   :  { %617 = vst [vmem:[#allocation2] sm:$0xff] %v360_v8  ;;  %v362_v1 = vadd.f32 %v361_v13, %v1864_v12  ;;  %v434_v32 = vpop.f32.mrf.mxu1 }
 0x156   :  { %619 = vst [vmem:[#allocation2 + $0x10] sm:$0xff] %v433_v22  ;;  %v435_v42 = vadd.f32 %v434_v32, %v1867_v21  ;;  %v363_v41 = vpop.f32.mrf.mxu0 }
 0x157   :  { %618 = vst [vmem:[#allocation2 + $0x8] sm:$0xff] %v362_v1  ;;  %v364_v14 = vadd.f32 %v363_v41, %v1858_v45  ;;  %v436_v26 = vpop.f32.mrf.mxu1 }
 0x158   :  { %620 = vst [vmem:[#allocation2 + $0x18] sm:$0xff] %v435_v42  ;;  %v437_v18 = vadd.f32 %v436_v26, %v1861_v6  ;;  %v365_v33 = vpop.f32.mrf.mxu0 }
 0x159   :  { %621 = vst [vmem:[#allocation2 + $0x20] sm:$0xff] %v364_v14  ;;  %v366_v53 = vadd.f32 %v365_v33, %v1864_v12  ;;  %v438_v37 = vpop.f32.mrf.mxu1 }
 0x15a   :  { %623 = vst [vmem:[#allocation2 + $0x30] sm:$0xff] %v437_v18  ;;  %v439_v28 = vadd.f32 %v438_v37, %v1867_v21  ;;  %v369_v35 = vpop.f32.mrf.mxu0 }
 0x15b   :  { %622 = vst [vmem:[#allocation2 + $0x28] sm:$0xff] %v366_v53  ;;  %v370_v4 = vadd.f32 %v369_v35, %v1858_v45  ;;  %v442_v34 = vpop.f32.mrf.mxu1 }
 0x15c   :  { %624 = vst [vmem:[#allocation2 + $0x38] sm:$0xff] %v439_v28  ;;  %v443_v19 = vadd.f32 %v442_v34, %v1861_v6  ;;  %v371_v20 = vpop.f32.mrf.mxu0 }
 0x15d   :  { %625 = vst [vmem:[#allocation2 + $0x40] sm:$0xff] %v370_v4  ;;  %v372_v31 = vadd.f32 %v371_v20, %v1864_v12  ;;  %v444_v10 = vpop.f32.mrf.mxu1 }
 0x15e   :  { %627 = vst [vmem:[#allocation2 + $0x50] sm:$0xff] %v443_v19  ;;  %v445_v8 = vadd.f32 %v444_v10, %v1867_v21  ;;  %v373_v23 = vpop.f32.mrf.mxu0 }
 0x15f   :  { %626 = vst [vmem:[#allocation2 + $0x48] sm:$0xff] %v372_v31  ;;  %v374_v22 = vadd.f32 %v373_v23, %v1858_v45  ;;  %v446_v13 = vpop.f32.mrf.mxu1 }
 0x160   :  { %628 = vst [vmem:[#allocation2 + $0x58] sm:$0xff] %v445_v8  ;;  %v447_v1 = vadd.f32 %v446_v13, %v1861_v6  ;;  %v375_v32 = vpop.f32.mrf.mxu0 }
 0x161   :  { %629 = vst [vmem:[#allocation2 + $0x60] sm:$0xff] %v374_v22  ;;  %v376_v42 = vadd.f32 %v375_v32, %v1864_v12  ;;  %v448_v41 = vpop.f32.mrf.mxu1 }
 0x162   :  { %631 = vst [vmem:[#allocation2 + $0x70] sm:$0xff] %v447_v1  ;;  %v449_v14 = vadd.f32 %v448_v41, %v1867_v21  ;;  %v379_v26 = vpop.f32.mrf.mxu0 }
 0x163   :  { %630 = vst [vmem:[#allocation2 + $0x68] sm:$0xff] %v376_v42  ;;  %v380_v18 = vadd.f32 %v379_v26, %v1858_v45  ;;  %v452_v33 = vpop.f32.mrf.mxu1  ;;  %v303_v42 = vsub.s32 4, %v1849_v40  ;;  %v311_v26 = vsub.s32 6, %v1849_v40 }
 0x164   :  { %632 = vst [vmem:[#allocation2 + $0x78] sm:$0xff] %v449_v14  ;;  %v453_v53 = vadd.f32 %v452_v33, %v1861_v6  ;;  %v381_v37 = vpop.f32.mrf.mxu0 }
 0x165   :  { %633 = vst [vmem:[#allocation2 + $0x80] sm:$0xff] %v380_v18  ;;  %v382_v28 = vadd.f32 %v381_v37, %v1864_v12  ;;  %v454_v35 = vpop.f32.mrf.mxu1 }
 0x166   :  { %635 = vst [vmem:[#allocation2 + $0x90] sm:$0xff] %v453_v53  ;;  %v455_v4 = vadd.f32 %v454_v35, %v1867_v21  ;;  %v383_v34 = vpop.f32.mrf.mxu0  ;;  %v307_v53 = vsub.s32 5, %v1849_v40  ;;  %v315_v35 = vsub.s32 7, %v1849_v40 }
 0x167   :  { %634 = vst [vmem:[#allocation2 + $0x88] sm:$0xff] %v382_v28  ;;  %v384_v19 = vadd.f32 %v383_v34, %v1858_v45  ;;  %v456_v20 = vpop.f32.mrf.mxu1 }
 0x168   :  { %636 = vst [vmem:[#allocation2 + $0x98] sm:$0xff] %v455_v4  ;;  %v457_v31 = vadd.f32 %v456_v20, %v1861_v6  ;;  %v385_v10 = vpop.f32.mrf.mxu0  ;;  %v1911_v40 = vrot.slane %v1852_v27, %v307_v53 }
 0x169   :  { %637 = vst [vmem:[#allocation2 + $0xa0] sm:$0xff] %v384_v19  ;;  %v386_v8 = vadd.f32 %v385_v10, %v1864_v12  ;;  %v458_v23 = vpop.f32.mrf.mxu1  ;;  %v1903_v19 = vrot.slane %v1852_v27, %v303_v42  ;;  %v1907_v10 = vrot.slane %v1852_v27, %v311_v26 }
 0x16a   :  { %639 = vst [vmem:[#allocation2 + $0xb0] sm:$0xff] %v457_v31  ;;  %v459_v22 = vadd.f32 %v458_v23, %v1867_v21  ;;  %v389_v13 = vpop.f32.mrf.mxu0 }
 0x16b   :  { %638 = vst [vmem:[#allocation2 + $0xa8] sm:$0xff] %v386_v8  ;;  %v390_v1 = vadd.f32 %v389_v13, %v1858_v45  ;;  %v462_v32 = vpop.f32.mrf.mxu1  ;;  %v1915_v13 = vrot.slane %v1852_v27, %v315_v35 }
 0x16c   :  { %640 = vst [vmem:[#allocation2 + $0xb8] sm:$0xff] %v459_v22  ;;  %v463_v41 = vadd.f32 %v462_v32, %v1861_v6  ;;  %v391_v14 = vpop.f32.mrf.mxu0 }
 0x16d   :  { %641 = vst [vmem:[#allocation2 + $0xc0] sm:$0xff] %v390_v1  ;;  %v392_v18 = vadd.f32 %v391_v14, %v1864_v12  ;;  %v464_v33 = vpop.f32.mrf.mxu1 }
 0x16e   :  { %643 = vst [vmem:[#allocation2 + $0xd0] sm:$0xff] %v463_v41  ;;  %v465_v37 = vadd.f32 %v464_v33, %v1867_v21  ;;  %v393_v28 = vpop.f32.mrf.mxu0 }
 0x16f   :  { %642 = vst [vmem:[#allocation2 + $0xc8] sm:$0xff] %v392_v18  ;;  %v394_v4 = vadd.f32 %v393_v28, %v1858_v45  ;;  %v466_v34 = vpop.f32.mrf.mxu1 }
 0x170   :  { %644 = vst [vmem:[#allocation2 + $0xd8] sm:$0xff] %v465_v37  ;;  %v467_v20 = vadd.f32 %v466_v34, %v1861_v6  ;;  %v395_v31 = vpop.f32.mrf.mxu0 }
 0x171   :  { %645 = vst [vmem:[#allocation2 + $0xe0] sm:$0xff] %v394_v4  ;;  %v396_v8 = vadd.f32 %v395_v31, %v1864_v12  ;;  %v468_v23 = vpop.f32.mrf.mxu1 }
 0x172   :  { %647 = vst [vmem:[#allocation2 + $0xf0] sm:$0xff] %v467_v20  ;;  %v469_v45 = vadd.f32 %v468_v23, %v1867_v21  ;;  %v505_v22 = vpop.f32.mrf.mxu0 }
 0x173   :  { %646 = vst [vmem:[#allocation2 + $0xe8] sm:$0xff] %v396_v8  ;;  %v506_v6 = vadd.f32 %v505_v22, %v1903_v19  ;;  %v578_v1 = vpop.f32.mrf.mxu1 }
 0x174   :  { %648 = vst [vmem:[#allocation2 + $0xf8] sm:$0xff] %v469_v45  ;;  %v579_v32 = vadd.f32 %v578_v1, %v1907_v10  ;;  %v507_v42 = vpop.f32.mrf.mxu0 }
 0x175   :  { %649 = vst [vmem:[#allocation3] sm:$0xff] %v506_v6  ;;  %v508_v12 = vadd.f32 %v507_v42, %v1911_v40  ;;  %v580_v41 = vpop.f32.mrf.mxu1 }
 0x176   :  { %651 = vst [vmem:[#allocation3 + $0x10] sm:$0xff] %v579_v32  ;;  %v581_v14 = vadd.f32 %v580_v41, %v1915_v13  ;;  %v509_v21 = vpop.f32.mrf.mxu0 }
 0x177   :  { %650 = vst [vmem:[#allocation3 + $0x8] sm:$0xff] %v508_v12  ;;  %v510_v27 = vadd.f32 %v509_v21, %v1903_v19  ;;  %v582_v26 = vpop.f32.mrf.mxu1 }
 0x178   :  { %652 = vst [vmem:[#allocation3 + $0x18] sm:$0xff] %v581_v14  ;;  %v583_v18 = vadd.f32 %v582_v26, %v1907_v10  ;;  %v511_v33 = vpop.f32.mrf.mxu0 }
 0x179   :  { %653 = vst [vmem:[#allocation3 + $0x20] sm:$0xff] %v510_v27  ;;  %v512_v53 = vadd.f32 %v511_v33, %v1911_v40  ;;  %v584_v37 = vpop.f32.mrf.mxu1 }
 0x17a   :  { %655 = vst [vmem:[#allocation3 + $0x30] sm:$0xff] %v583_v18  ;;  %v585_v28 = vadd.f32 %v584_v37, %v1915_v13  ;;  %v515_v35 = vpop.f32.mrf.mxu0 }
 0x17b   :  { %654 = vst [vmem:[#allocation3 + $0x28] sm:$0xff] %v512_v53  ;;  %v516_v4 = vadd.f32 %v515_v35, %v1903_v19  ;;  %v588_v34 = vpop.f32.mrf.mxu1 }
 0x17c   :  { %656 = vst [vmem:[#allocation3 + $0x38] sm:$0xff] %v585_v28  ;;  %v589_v20 = vadd.f32 %v588_v34, %v1907_v10  ;;  %v517_v31 = vpop.f32.mrf.mxu0 }
 0x17d   :  { %657 = vst [vmem:[#allocation3 + $0x40] sm:$0xff] %v516_v4  ;;  %v518_v8 = vadd.f32 %v517_v31, %v1911_v40  ;;  %v590_v23 = vpop.f32.mrf.mxu1 }
 0x17e   :  { %659 = vst [vmem:[#allocation3 + $0x50] sm:$0xff] %v589_v20  ;;  %v591_v45 = vadd.f32 %v590_v23, %v1915_v13  ;;  %v519_v22 = vpop.f32.mrf.mxu0 }
 0x17f   :  { %658 = vst [vmem:[#allocation3 + $0x48] sm:$0xff] %v518_v8  ;;  %v520_v6 = vadd.f32 %v519_v22, %v1903_v19  ;;  %v592_v1 = vpop.f32.mrf.mxu1 }
 0x180   :  { %660 = vst [vmem:[#allocation3 + $0x58] sm:$0xff] %v591_v45  ;;  %v593_v32 = vadd.f32 %v592_v1, %v1907_v10  ;;  %v521_v42 = vpop.f32.mrf.mxu0 }
 0x181   :  { %661 = vst [vmem:[#allocation3 + $0x60] sm:$0xff] %v520_v6  ;;  %v522_v12 = vadd.f32 %v521_v42, %v1911_v40  ;;  %v594_v41 = vpop.f32.mrf.mxu1 }
 0x182   :  { %663 = vst [vmem:[#allocation3 + $0x70] sm:$0xff] %v593_v32  ;;  %v595_v14 = vadd.f32 %v594_v41, %v1915_v13  ;;  %v525_v21 = vpop.f32.mrf.mxu0 }
 0x183   :  { %662 = vst [vmem:[#allocation3 + $0x68] sm:$0xff] %v522_v12  ;;  %v526_v27 = vadd.f32 %v525_v21, %v1903_v19  ;;  %v598_v26 = vpop.f32.mrf.mxu1 }
 0x184   :  { %664 = vst [vmem:[#allocation3 + $0x78] sm:$0xff] %v595_v14  ;;  %v599_v18 = vadd.f32 %v598_v26, %v1907_v10  ;;  %v527_v33 = vpop.f32.mrf.mxu0 }
 0x185   :  { %665 = vst [vmem:[#allocation3 + $0x80] sm:$0xff] %v526_v27  ;;  %v528_v53 = vadd.f32 %v527_v33, %v1911_v40  ;;  %v600_v37 = vpop.f32.mrf.mxu1 }
 0x186   :  { %667 = vst [vmem:[#allocation3 + $0x90] sm:$0xff] %v599_v18  ;;  %v601_v28 = vadd.f32 %v600_v37, %v1915_v13  ;;  %v529_v35 = vpop.f32.mrf.mxu0 }
 0x187   :  { %666 = vst [vmem:[#allocation3 + $0x88] sm:$0xff] %v528_v53  ;;  %v530_v4 = vadd.f32 %v529_v35, %v1903_v19  ;;  %v602_v34 = vpop.f32.mrf.mxu1 }
 0x188   :  { %668 = vst [vmem:[#allocation3 + $0x98] sm:$0xff] %v601_v28  ;;  %v603_v20 = vadd.f32 %v602_v34, %v1907_v10  ;;  %v531_v31 = vpop.f32.mrf.mxu0 }
 0x189   :  { %669 = vst [vmem:[#allocation3 + $0xa0] sm:$0xff] %v530_v4  ;;  %v532_v8 = vadd.f32 %v531_v31, %v1911_v40  ;;  %v604_v23 = vpop.f32.mrf.mxu1 }
 0x18a   :  { %671 = vst [vmem:[#allocation3 + $0xb0] sm:$0xff] %v603_v20  ;;  %v605_v45 = vadd.f32 %v604_v23, %v1915_v13  ;;  %v535_v22 = vpop.f32.mrf.mxu0 }
 0x18b   :  { %670 = vst [vmem:[#allocation3 + $0xa8] sm:$0xff] %v532_v8  ;;  %v536_v6 = vadd.f32 %v535_v22, %v1903_v19  ;;  %v608_v1 = vpop.f32.mrf.mxu1 }
 0x18c   :  { %672 = vst [vmem:[#allocation3 + $0xb8] sm:$0xff] %v605_v45  ;;  %v609_v32 = vadd.f32 %v608_v1, %v1907_v10  ;;  %v537_v42 = vpop.f32.mrf.mxu0 }
 0x18d   :  { %673 = vst [vmem:[#allocation3 + $0xc0] sm:$0xff] %v536_v6  ;;  %v538_v12 = vadd.f32 %v537_v42, %v1911_v40  ;;  %v610_v41 = vpop.f32.mrf.mxu1 }
 0x18e   :  { %675 = vst [vmem:[#allocation3 + $0xd0] sm:$0xff] %v609_v32  ;;  %v611_v14 = vadd.f32 %v610_v41, %v1915_v13  ;;  %v539_v21 = vpop.f32.mrf.mxu0 }
 0x18f   :  { %674 = vst [vmem:[#allocation3 + $0xc8] sm:$0xff] %v538_v12  ;;  %v540_v27 = vadd.f32 %v539_v21, %v1903_v19  ;;  %v612_v26 = vpop.f32.mrf.mxu1 }
 0x190   :  { %676 = vst [vmem:[#allocation3 + $0xd8] sm:$0xff] %v611_v14  ;;  %v613_v18 = vadd.f32 %v612_v26, %v1907_v10  ;;  %v541_v33 = vpop.f32.mrf.mxu0 }
 0x191   :  { %677 = vst [vmem:[#allocation3 + $0xe0] sm:$0xff] %v540_v27  ;;  %v542_v53 = vadd.f32 %v541_v33, %v1911_v40  ;;  %v614_v37 = vpop.f32.mrf.mxu1 }
 0x192   :  { %679 = vst [vmem:[#allocation3 + $0xf0] sm:$0xff] %v613_v18  ;;  %v615_v28 = vadd.f32 %v614_v37, %v1915_v13 }
 0x193   :  { %678 = vst [vmem:[#allocation3 + $0xe8] sm:$0xff] %v542_v53 }
 0x194   :  { %680 = vst [vmem:[#allocation3 + $0xf8] sm:$0xff] %v615_v28 }
 0x195 LB: > { %v2382_v19 = vpack.c.bf16 %v1587_v11, %v1573_v43  ;;  %v2383_v10 = vpack.c.bf16 %v1591_v7, %v1583_v5  ;;  %v2384_v40 = vpack.c.bf16 %v1585_v9, %v1571_v61  ;;  %v2385_v13 = vpack.c.bf16 %v1589_v3, %v1575_v39  ;;  %s1974_s15 = ssub.s32 7, %s1337_s1  ;;  %v2399_v26 = vld [vmem:[#allocation44_spill] sm:$0xff]  ;;  %v2401_v33 = vld [vmem:[#allocation45_spill] sm:$0xff]  ;;  %v2402_v53 = vld [vmem:[#allocation42_spill] sm:$0xff]  ;;  %s1191_s3 = sshll.u32 %s1337_s1, 5  ;;  %s1337_s1 = sphi %s1949_s1, %s883_s1  }
 0x196   : > { %v2386_v35 = vpack.c.bf16 %v1563_v51, %v1547_v25  ;;  %v2387_v4 = vpack.c.bf16 %v1567_v60, %v1557_v52  ;;  %v1125_v34 = vstv %s1337_s1  ;;  %v1349_v20 = vmov 0   ;;  %v2404_v28 = vld [vmem:[#allocation46_spill] sm:$0xff]  ;;  %s891_s16 = scalar_lea.vmem [#allocation2], %s1191_s3  ;;  %s1192_s17 = sshll.u32 %s1974_s15, 5 }
 0x197   : > { %897 = vmatprep.subr.bf16.mxu0 %v2382_v19  ;;  %938 = vmatprep.subr.bf16.mxu1 %v2383_v10  ;;  %vm1126_vm0 = vcmp.gt.s32.totalorder %v1407_v2, %v1125_v34  ;;  %v1127_v31 = vstv %s1974_s15  ;;  %v2388_v23 = vpack.c.bf16 %v1559_v47, %v1545_v30  ;;  %v2389_v45 = vpack.c.bf16 %v1565_v16, %v1555_v38  ;;  %v2405_v19 = vld [vmem:[#allocation43_spill] sm:$0xff]  ;;  %v2411_v34 = vld [vmem:[#allocation37_spill] sm:$0xff]  ;;  %s2163_s18 = scalar_lea.vmem [#allocation3], %s1192_s17  ;;  %s1189_s19 = sshll.u32 %s1337_s1, 3 }
 0x198   : > { %898 = vmatpush1.bf16.msra.mxu0 %v2384_v40  ;;  %939 = vmatpush1.bf16.msra.mxu1 %v2385_v13  ;;  %v1129_v8 = vsel %vm1126_vm0, 1, %v1349_v20  ;;  %vm1128_vm1 = vcmp.gt.s32.totalorder %v1407_v2, %v1127_v31  ;;  %v2390_v22 = vpack.c.bf16 %v1539_v15, %v1527_v62  ;;  %v2391_v6 = vpack.c.bf16 %v1543_v24, %v1531_v0  ;;  %v2407_v40 = vld [vmem:[#allocation39_spill] sm:$0xff]  ;;  %s1149_s21 = scalar_lea.vmem %s2191_s6, %s1189_s19  ;;  %s1190_s22 = sshll.u32 %s1974_s15, 3 }
 0x199   : > { %899 = vmatprep.subr.bf16.mxu0 %v2386_v35  ;;  %940 = vmatprep.subr.bf16.mxu1 %v2387_v4  ;;  %v1138_v1 = vsel %vm1128_vm1, 1, %v1349_v20  ;;  %v2392_v32 = vpack.c.bf16 %v1537_v17, %v1521_v59  ;;  %v2393_v42 = vpack.c.bf16 %v1541_v29, %v1529_v63  ;;  %v2394_v12 = vpack.c.bf16 %v1515_v56, %v1501_v49  ;;  %v2408_v13 = vld [vmem:[#allocation35_spill] sm:$0xff]  ;;  %v2410_v4 = vld [vmem:[#allocation41_spill] sm:$0xff]  ;;  %s1153_s0 = scalar_lea.vmem %s2192_s7, %s1190_s22  ;;  %s883_s1 = sadd.s32 1, %s1337_s1  }
 0x19a   : > { %929 = vmatprep.mubr.bf16.mxu0 %v1349_v20  ;;  %970 = vmatprep.mubr.bf16.mxu1 %v1349_v20  ;;  %v2395_v41 = vpack.c.bf16 %v1519_v58, %v1511_v54  ;;  %v2396_v14 = vpack.c.bf16 %v1513_v55, %v1499_v48  ;;  %v2397_v21 = vpack.c.bf16 %v1517_v57, %v1503_v50  ;;  %p880_p6 = scmp.ge.s32.totalorder %s883_s1, 8  }
 0x19b   : > { %1212 = vset.pattern.permute.xlu0 %v1349_v20  ;;  %v2398_v27 = vpack.c.bf16 %v1491_v44, %v1475_v36  ;;  %v2400_v18 = vpack.c.bf16 %v1495_v46, %v2399_v26  ;;  %v2403_v37 = vpack.c.bf16 %v2401_v33, %v2402_v53  ;;  %v2406_v10 = vpack.c.bf16 %v2404_v28, %v2405_v19  ;;  %v2426_v26 = vld [vmem:[#allocation26_spill] sm:$0xff]  ;;  %v2042_v33 = vld [vmem:[#allocation4] sm:$0xff]  ;;  %v2428_v53 = vld [vmem:[#allocation32_spill] sm:$0xff] }
 0x19c   : > { %900 = vmatpush1.bf16.msra.mxu0 %v2388_v23  ;;  %941 = vmatpush1.bf16.msra.mxu1 %v2389_v45  ;;  %v2409_v35 = vpack.c.bf16 %v2407_v40, %v2408_v13  ;;  %v2412_v31 = vpack.c.bf16 %v2410_v4, %v2411_v34  ;;  %v2414_v23 = vld [vmem:[#allocation34_spill] sm:$0xff]  ;;  %v2431_v19 = vld [vmem:[#allocation23_spill] sm:$0xff]  ;;  %v2434_v13 = vld [vmem:[#allocation25_spill] sm:$0xff]  ;;  %v896_v34 = vpack.c.bf16 %v2042_v33, %v2042_v33 }
 0x19d   : > { %901 = vmatprep.subr.bf16.mxu0 %v2390_v22  ;;  %942 = vmatprep.subr.bf16.mxu1 %v2391_v6  ;;  %v2416_v22 = vld [vmem:[#allocation40_spill] sm:$0xff] }
 0x19e   : > { %1131 = vperm.xlu0 %1212, %v1129_v8   ;;  %v2413_v8 = vld [vmem:[#allocation38_spill] sm:$0xff]  ;;  %v2417_v6 = vld [vmem:[#allocation36_spill] sm:$0xff] }
 0x19f   : > { %v2415_v45 = vpack.c.bf16 %v2413_v8, %v2414_v23  ;;  %v2438_v8 = vld [vmem:[#allocation18_spill] sm:$0xff] }
 0x1a0   : > { %902 = vmatpush1.bf16.msra.mxu0 %v2392_v32  ;;  %943 = vmatpush1.bf16.msra.mxu1 %v2393_v42  ;;  %v2419_v32 = vld [vmem:[#allocation31_spill] sm:$0xff] }
 0x1a1   : > { %903 = vmatprep.subr.bf16.mxu0 %v2394_v12  ;;  %944 = vmatprep.subr.bf16.mxu1 %v2395_v41  ;;  %v2420_v42 = vld [vmem:[#allocation27_spill] sm:$0xff]  ;;  %v2422_v41 = vld [vmem:[#allocation33_spill] sm:$0xff] }
 0x1a2   : > { %1140 = vperm.xlu0 %1212, %v1138_v1   ;;  %v2418_v1 = vpack.c.bf16 %v2416_v22, %v2417_v6  ;;  %v2421_v12 = vpack.c.bf16 %v2419_v32, %v2420_v42  ;;  %v2441_v22 = vld [vmem:[#allocation20_spill] sm:$0xff] }
 0x1a3   : > { %v2444_v32 = vld [vmem:[#allocation104_spill] sm:$0xff] }
 0x1a4   : > { %904 = vmatpush1.bf16.msra.mxu0 %v2396_v14  ;;  %945 = vmatpush1.bf16.msra.mxu1 %v2397_v21  ;;  %v2423_v14 = vld [vmem:[#allocation29_spill] sm:$0xff] }
 0x1a5   : > { %905 = vmatprep.subr.bf16.mxu0 %v2398_v27  ;;  %946 = vmatprep.subr.bf16.mxu1 %v2400_v18  ;;  %v2424_v21 = vpack.c.bf16 %v2422_v41, %v2423_v14  ;;  %v2425_v27 = vld [vmem:[#allocation30_spill] sm:$0xff] }
 0x1a6   : > { %v2427_v18 = vpack.c.bf16 %v2425_v27, %v2426_v26  ;;  %v2447_v41 = vld [vmem:[#allocation106_spill] sm:$0xff]  ;;  %v2450_v27 = vld [vmem:[#allocation103_spill] sm:$0xff] }
 0x1a8   : > { %906 = vmatpush1.bf16.msra.mxu0 %v2403_v37  ;;  %947 = vmatpush1.bf16.msra.mxu1 %v2406_v10  ;;  %v2429_v37 = vld [vmem:[#allocation28_spill] sm:$0xff]  ;;  %v2432_v10 = vld [vmem:[#allocation19_spill] sm:$0xff] }
 0x1a9   : > { %907 = vmatprep.subr.bf16.mxu0 %v2409_v35  ;;  %948 = vmatprep.subr.bf16.mxu1 %v2412_v31  ;;  %v2430_v28 = vpack.c.bf16 %v2428_v53, %v2429_v37  ;;  %v2433_v40 = vpack.c.bf16 %v2431_v19, %v2432_v10  ;;  %v2435_v35 = vld [vmem:[#allocation21_spill] sm:$0xff]  ;;  %v2437_v31 = vld [vmem:[#allocation22_spill] sm:$0xff]  ;;  %v2456_v19 = vld [vmem:[#allocation96_spill] sm:$0xff] }
 0x1aa   : > { %v2436_v4 = vpack.c.bf16 %v2434_v13, %v2435_v35  ;;  %v2439_v23 = vpack.c.bf16 %v2437_v31, %v2438_v8  ;;  %v2453_v53 = vld [vmem:[#allocation105_spill] sm:$0xff]  ;;  %v2459_v13 = vld [vmem:[#allocation98_spill] sm:$0xff] }
 0x1ab   : > { %v2464_v8 = vld [vmem:[#allocation101_spill] sm:$0xff] }
 0x1ac   : > { %908 = vmatpush1.bf16.msra.mxu0 %v2415_v45  ;;  %949 = vmatpush1.bf16.msra.mxu1 %v2418_v1  ;;  %v2440_v45 = vld [vmem:[#allocation24_spill] sm:$0xff] }
 0x1ad   : > { %909 = vmatprep.subr.bf16.mxu0 %v2421_v12  ;;  %950 = vmatprep.subr.bf16.mxu1 %v2424_v21  ;;  %v2442_v6 = vpack.c.bf16 %v2440_v45, %v2441_v22  ;;  %v2443_v1 = vld [vmem:[#allocation108_spill] sm:$0xff]  ;;  %v2446_v12 = vld [vmem:[#allocation110_spill] sm:$0xff]  ;;  %v2449_v21 = vld [vmem:[#allocation107_spill] sm:$0xff] }
 0x1ae   : > { %v2445_v42 = vpack.c.bf16 %v2443_v1, %v2444_v32  ;;  %v2448_v14 = vpack.c.bf16 %v2446_v12, %v2447_v41  ;;  %v2451_v26 = vpack.c.bf16 %v2449_v21, %v2450_v27  ;;  %v2467_v22 = vld [vmem:[#allocation92_spill] sm:$0xff]  ;;  %v2470_v32 = vld [vmem:[#allocation94_spill] sm:$0xff]  ;;  %v2473_v41 = vld [vmem:[#allocation91_spill] sm:$0xff] }
 0x1af   : > { %v2477_v27 = vld [vmem:[#allocation89_spill] sm:$0xff] }
 0x1b0   : > { %910 = vmatpush1.bf16.msra.mxu0 %v2427_v18  ;;  %951 = vmatpush1.bf16.msra.mxu1 %v2430_v28  ;;  %v2452_v18 = vld [vmem:[#allocation109_spill] sm:$0xff]  ;;  %v2455_v28 = vld [vmem:[#allocation100_spill] sm:$0xff] }
 0x1b1   : > { %911 = vmatprep.subr.bf16.mxu0 %v2433_v40  ;;  %952 = vmatprep.subr.bf16.mxu1 %v2436_v4  ;;  %v2454_v37 = vpack.c.bf16 %v2452_v18, %v2453_v53  ;;  %v2457_v10 = vpack.c.bf16 %v2455_v28, %v2456_v19  ;;  %v2458_v40 = vld [vmem:[#allocation102_spill] sm:$0xff]  ;;  %v2461_v4 = vld [vmem:[#allocation99_spill] sm:$0xff]  ;;  %v2479_v18 = vld [vmem:[#allocation84_spill] sm:$0xff] }
 0x1b2   : > { %v2460_v35 = vpack.c.bf16 %v2458_v40, %v2459_v13  ;;  %v2480_v53 = vld [vmem:[#allocation80_spill] sm:$0xff]  ;;  %v2482_v28 = vld [vmem:[#allocation86_spill] sm:$0xff]  ;;  %v2485_v40 = vld [vmem:[#allocation83_spill] sm:$0xff] }
 0x1b3   : > { %v2483_v19 = vld [vmem:[#allocation82_spill] sm:$0xff]  ;;  %v2486_v13 = vld [vmem:[#allocation79_spill] sm:$0xff] }
 0x1b4   : > { %912 = vmatpush1.bf16.msra.mxu0 %v2439_v23  ;;  %953 = vmatpush1.bf16.msra.mxu1 %v2442_v6  ;;  %v2465_v23 = vld [vmem:[#allocation97_spill] sm:$0xff]  ;;  %v2468_v6 = vld [vmem:[#allocation88_spill] sm:$0xff] }
 0x1b5   : > { %991 = vmatprep.subr.bf16.mxu0 %v2445_v42  ;;  %1032 = vmatprep.subr.bf16.mxu1 %v2448_v14  ;;  %v2466_v45 = vpack.c.bf16 %v2464_v8, %v2465_v23  ;;  %v2469_v1 = vpack.c.bf16 %v2467_v22, %v2468_v6  ;;  %v2471_v42 = vld [vmem:[#allocation90_spill] sm:$0xff]  ;;  %v2474_v14 = vld [vmem:[#allocation87_spill] sm:$0xff]  ;;  %v2491_v8 = vld [vmem:[#allocation76_spill] sm:$0xff] }
 0x1b6   : > { %v2472_v12 = vpack.c.bf16 %v2470_v32, %v2471_v42  ;;  %v2475_v21 = vpack.c.bf16 %v2473_v41, %v2474_v14  ;;  %v2492_v23 = vld [vmem:[#allocation72_spill] sm:$0xff]  ;;  %v2494_v22 = vld [vmem:[#allocation78_spill] sm:$0xff]  ;;  %v2497_v32 = vld [vmem:[#allocation75_spill] sm:$0xff] }
 0x1b7   : > { %930 = vmatmul.mubr.bf16.vlgmr.msra.gmra.mxu0 %v896_v34  ;;  %971 = vmatmul.mubr.bf16.vlgmr.msra.gmra.mxu1 %v896_v34  ;;  %v2462_v34 = vld [vmem:[#allocation95_spill] sm:$0xff]  ;;  %v2495_v6 = vld [vmem:[#allocation74_spill] sm:$0xff]  ;;  %v2500_v41 = vld [vmem:[#allocation77_spill] sm:$0xff] }
 0x1b8   : > { %992 = vmatpush1.bf16.msra.mxu0 %v2451_v26  ;;  %1033 = vmatpush1.bf16.msra.mxu1 %v2454_v37  ;;  %v2463_v31 = vpack.c.bf16 %v2461_v4, %v2462_v34  ;;  %v2481_v37 = vpack.c.bf16 %v2479_v18, %v2480_v53  ;;  %v2488_v4 = vld [vmem:[#allocation85_spill] sm:$0xff]  ;;  %v2498_v42 = vld [vmem:[#allocation71_spill] sm:$0xff]  ;;  %v2506_v18 = vld [vmem:[#allocation70_spill] sm:$0xff] }
 0x1b9   : > { %993 = vmatprep.subr.bf16.mxu0 %v2457_v10  ;;  %1034 = vmatprep.subr.bf16.mxu1 %v2460_v35  ;;  %v2484_v10 = vpack.c.bf16 %v2482_v28, %v2483_v19  ;;  %v2487_v35 = vpack.c.bf16 %v2485_v40, %v2486_v13  ;;  %v2489_v34 = vld [vmem:[#allocation81_spill] sm:$0xff]  ;;  %v2507_v53 = vld [vmem:[#allocation66_spill] sm:$0xff]  ;;  %v2509_v28 = vld [vmem:[#allocation67_spill] sm:$0xff] }
 0x1ba   : > { %1023 = vmatprep.mubr.bf16.mxu0 %v1349_v20  ;;  %1064 = vmatprep.mubr.bf16.mxu1 %v1349_v20  ;;  %v2476_v20 = vld [vmem:[#allocation93_spill] sm:$0xff]  ;;  %v2510_v19 = vld [vmem:[#allocation63_spill] sm:$0xff] }
 0x1bb   : > { %v2478_v26 = vpack.c.bf16 %v2476_v20, %v2477_v27  ;;  %v2501_v14 = vld [vmem:[#allocation73_spill] sm:$0xff]  ;;  %v2503_v20 = vld [vmem:[#allocation68_spill] sm:$0xff] }
 0x1bc   : > { %994 = vmatpush1.bf16.msra.mxu0 %v2463_v31  ;;  %1035 = vmatpush1.bf16.msra.mxu1 %v2466_v45  ;;  %v2490_v31 = vpack.c.bf16 %v2488_v4, %v2489_v34  ;;  %v2493_v45 = vpack.c.bf16 %v2491_v8, %v2492_v23  ;;  %v2504_v27 = vld [vmem:[#allocation64_spill] sm:$0xff]  ;;  %v2512_v40 = vld [vmem:[#allocation69_spill] sm:$0xff]  ;;  %v2518_v8 = vld [vmem:[#allocation62_spill] sm:$0xff] }
 0x1bd   : > { %995 = vmatprep.subr.bf16.mxu0 %v2469_v1  ;;  %1036 = vmatprep.subr.bf16.mxu1 %v2472_v12  ;;  %v2496_v1 = vpack.c.bf16 %v2494_v22, %v2495_v6  ;;  %v2499_v12 = vpack.c.bf16 %v2497_v32, %v2498_v42  ;;  %v2513_v13 = vld [vmem:[#allocation65_spill] sm:$0xff]  ;;  %v2515_v4 = vld [vmem:[#allocation60_spill] sm:$0xff]  ;;  %v2519_v23 = vld [vmem:[#allocation58_spill] sm:$0xff] }
 0x1be   : > { %v2516_v34 = vld [vmem:[#allocation56_spill] sm:$0xff]  ;;  %v2521_v22 = vld [vmem:[#allocation59_spill] sm:$0xff]  ;;  %v2524_v42 = vld [vmem:[#allocation61_spill] sm:$0xff] }
 0x1bf   : > { %v2522_v6 = vld [vmem:[#allocation55_spill] sm:$0xff] }
 0x1c0   : > { %996 = vmatpush1.bf16.msra.mxu0 %v2475_v21  ;;  %1037 = vmatpush1.bf16.msra.mxu1 %v2478_v26  ;;  %v2502_v21 = vpack.c.bf16 %v2500_v41, %v2501_v14  ;;  %v2505_v26 = vpack.c.bf16 %v2503_v20, %v2504_v27  ;;  %v2142_v32 = vld [vmem:[#allocation6] sm:$0xff]  ;;  %v2527_v14 = vld [vmem:[#allocation52_spill] sm:$0xff]  ;;  %v2530_v27 = vld [vmem:[#allocation54_spill] sm:$0xff] }
 0x1c1   : > { %997 = vmatprep.subr.bf16.mxu0 %v2481_v37  ;;  %1038 = vmatprep.subr.bf16.mxu1 %v2484_v10  ;;  %v2508_v37 = vpack.c.bf16 %v2506_v18, %v2507_v53  ;;  %v2511_v10 = vpack.c.bf16 %v2509_v28, %v2510_v19  ;;  %v990_v53 = vpack.c.bf16 %v2142_v32, %v2142_v32  ;;  %v2534_v28 = vld [vmem:[#allocation47_spill] sm:$0xff] }
 0x1c4   : > { %998 = vmatpush1.bf16.msra.mxu0 %v2487_v35  ;;  %1039 = vmatpush1.bf16.msra.mxu1 %v2490_v31  ;;  %v2514_v35 = vpack.c.bf16 %v2512_v40, %v2513_v13  ;;  %v2517_v31 = vpack.c.bf16 %v2515_v4, %v2516_v34  ;;  %v2537_v40 = vld [vmem:[#allocation49_spill] sm:$0xff]  ;;  %v893_v34 = vld [vmem:[%s891_s16 + $0x8] sm:$0xff] }
 0x1c5   : > { %999 = vmatprep.subr.bf16.mxu0 %v2493_v45  ;;  %1040 = vmatprep.subr.bf16.mxu1 %v2496_v1  ;;  %v2520_v45 = vpack.c.bf16 %v2518_v8, %v2519_v23  ;;  %v2523_v1 = vpack.c.bf16 %v2521_v22, %v2522_v6 }
 0x1c8   : > { %1000 = vmatpush1.bf16.msra.mxu0 %v2499_v12  ;;  %1041 = vmatpush1.bf16.msra.mxu1 %v2502_v21  ;;  %v2525_v12 = vld [vmem:[#allocation57_spill] sm:$0xff]  ;;  %v2528_v21 = vld [vmem:[#allocation48_spill] sm:$0xff] }
 0x1c9   : > { %1001 = vmatprep.subr.bf16.mxu0 %v2505_v26  ;;  %1042 = vmatprep.subr.bf16.mxu1 %v2508_v37  ;;  %v2526_v41 = vpack.c.bf16 %v2524_v42, %v2525_v12  ;;  %v2529_v20 = vpack.c.bf16 %v2527_v14, %v2528_v21  ;;  %v2531_v26 = vld [vmem:[#allocation50_spill] sm:$0xff]  ;;  %v2533_v37 = vld [vmem:[#allocation51_spill] sm:$0xff]  ;;  %v895_v21 = vld [vmem:[%s891_s16 + $0x18] sm:$0xff] }
 0x1ca   : > { %v2532_v18 = vpack.c.bf16 %v2530_v27, %v2531_v26  ;;  %v2535_v19 = vpack.c.bf16 %v2533_v37, %v2534_v28  ;;  %v894_v27 = vld [vmem:[%s891_s16 + $0x10] sm:$0xff] }
 0x1cc   : > { %1002 = vmatpush1.bf16.msra.mxu0 %v2511_v10  ;;  %1043 = vmatpush1.bf16.msra.mxu1 %v2514_v35  ;;  %v2536_v10 = vld [vmem:[#allocation53_spill] sm:$0xff] }
 0x1cd   : > { %1003 = vmatprep.subr.bf16.mxu0 %v2517_v31  ;;  %1044 = vmatprep.subr.bf16.mxu1 %v2520_v45  ;;  %v2538_v13 = vpack.c.bf16 %v2536_v10, %v2537_v40  ;;  %v892_v35 = vld [vmem:[%s891_s16] sm:$0xff] }
 0x1ce   : > { %v986_v10 = vld [vmem:[%s2163_s18] sm:$0xff] }
 0x1d0   : > { %1004 = vmatpush1.bf16.msra.mxu0 %v2523_v1  ;;  %1045 = vmatpush1.bf16.msra.mxu1 %v2526_v41 }
 0x1d1   : > { %1005 = vmatprep.subr.bf16.mxu0 %v2529_v20  ;;  %1046 = vmatprep.subr.bf16.mxu1 %v2532_v18 }
 0x1d4   : > { %1006 = vmatpush1.bf16.msra.mxu0 %v2535_v19  ;;  %1047 = vmatpush1.bf16.msra.mxu1 %v2538_v13 }
 0x1d7   : > { %1024 = vmatmul.mubr.bf16.vlgmr.msra.gmra.mxu0 %v990_v53  ;;  %1065 = vmatmul.mubr.bf16.vlgmr.msra.gmra.mxu1 %v990_v53 }
 0x277   : > { %v931_v4 = vpop.f32.mrf.mxu0  ;;  %v972_v31 = vpop.f32.mrf.mxu1 }
 0x278   : > { %v979_v8 = vadd.f32 %v931_v4, %v892_v35  ;;  %v981_v18 = vadd.f32 %v972_v31, %v894_v27  ;;  %v987_v4 = vld [vmem:[%s2163_s18 + $0x8] sm:$0xff] }
 0x279   : > { %v933_v23 = vpop.f32.mrf.mxu0  ;;  %v974_v45 = vpop.f32.mrf.mxu1 }
 0x27a   : > { %v1183_v22 = vmul.f32 -1.442695, %v979_v8  ;;  %v980_v6 = vadd.f32 %v933_v23, %v893_v34  ;;  %v982_v20 = vadd.f32 %v974_v45, %v895_v21 }
 0x27b   : > { %v935_v1 = vpop.f32.mrf.mxu0  ;;  %v976_v42 = vpop.f32.mrf.mxu1 }
 0x27c   : > { %1213 = vpow2.f32 %v1183_v22  ;;  %v1184_v12 = vmul.f32 -1.442695, %v980_v6  ;;  %v1185_v26 = vmul.f32 -1.442695, %v982_v20  ;;  %v886_v22 = vld [vmem:[#allocation5] sm:$0xff] }
 0x27d   : > { %v936_v41 = vpop.f32.mrf.mxu0  ;;  %v977_v14 = vpop.f32.mrf.mxu1 }
 0x27e   : > { %1215 = vpow2.f32 %v1184_v12  ;;  %v1132_v12 = vpop.permute.xlu0 %1131 }
 0x27f   : > { %1217 = vpow2.f32 %v1185_v26  ;;  %vm1133_vm2 = vcmp.eq.s32.totalorder %v1132_v12, 1 }
 0x280   : > { %1219 = vtanh.f32 %v981_v18 }
 0x289   : > { %v1214_v53 = vpop.eup %1213 }
 0x28a   : > { %v1080_v37 = vadd.f32 1.0, %v1214_v53 }
 0x28b   : > { %v1216_v28 = vpop.eup %1215 }
 0x28c   : > { %1221 = vrcp.f32 %v1080_v37  ;;  %v1086_v19 = vadd.f32 1.0, %v1216_v28  ;;  %v1218_v40 = vpop.eup %1217 }
 0x28d   : > { %v1220_v13 = vpop.eup %1219  ;;  %v1093_v23 = vadd.f32 1.0, %v1218_v40 }
 0x28e   : > { %1223 = vrcp.f32 %v1086_v19  ;;  %v989_v19 = vld [vmem:[%s2163_s18 + $0x18] sm:$0xff] }
 0x297   : > { %v1025_v35 = vpop.f32.mrf.mxu0  ;;  %v1066_v34 = vpop.f32.mrf.mxu1 }
 0x298   : > { %v1073_v31 = vadd.f32 %v1025_v35, %v986_v10  ;;  %v988_v10 = vld [vmem:[%s2163_s18 + $0x10] sm:$0xff] }
 0x299   : > { %v1222_v8 = vpop.eup %1221  ;;  %v1027_v45 = vpop.f32.mrf.mxu0 }
 0x29a   : > { %v1068_v6 = vpop.f32.mrf.mxu1  ;;  %v1186_v1 = vmul.f32 -1.442695, %v1073_v31  ;;  %v1074_v42 = vadd.f32 %v1027_v45, %v987_v4  ;;  %v1097_v41 = vmul.f32 %v1222_v8, %v1220_v13  ;;  %v1075_v13 = vadd.f32 %v1066_v34, %v988_v10 }
 0x29b   : > { %v1224_v14 = vpop.eup %1223  ;;  %v1029_v21 = vpop.f32.mrf.mxu0  ;;  %v1076_v40 = vadd.f32 %v1068_v6, %v989_v19 }
 0x29c   : > { %v1070_v20 = vpop.f32.mrf.mxu1  ;;  %1225 = vpow2.f32 %v1186_v1  ;;  %v1187_v27 = vmul.f32 -1.442695, %v1074_v42  ;;  %v1096_v26 = vmul.f32 %v1224_v14, %v886_v22  ;;  %v888_v21 = vld [vmem:[#allocation7] sm:$0xff] }
 0x29d   : > { %1227 = vrcp.f32 %v1093_v23  ;;  %v1030_v18 = vpop.f32.mrf.mxu0  ;;  %v1188_v35 = vmul.f32 -1.442695, %v1076_v40  ;;  %v1141_v20 = vpop.permute.xlu0 %1140 }
 0x29e   : > { %v1071_v53 = vpop.f32.mrf.mxu1  ;;  %1229 = vpow2.f32 %v1187_v27  ;;  %v1098_v37 = vadd.f32 %v1097_v41, %v1096_v26  ;;  %vm1142_vm3 = vcmp.eq.s32.totalorder %v1141_v20, 1 }
 0x2a0   : > { %1231 = vtanh.f32 %v1098_v37  ;;  %v1136_v28 = vsel %vm1133_vm2, %v1098_v37, %v886_v22 }
 0x2a1   : > { %1137 = vst [vmem:[#allocation5] sm:$0xff] %v1136_v28  ;;  %1233 = vtanh.f32 %v1075_v13 }
 0x2a2   : > { %1235 = vpow2.f32 %v1188_v35 }
 0x2a9   : > { %v1226_v4 = vpop.eup %1225 }
 0x2aa   : > { %v1228_v31 = vpop.eup %1227  ;;  %v1104_v8 = vadd.f32 1.0, %v1226_v4 }
 0x2ab   : > { %v1230_v23 = vpop.eup %1229 }
 0x2ac   : > { %1237 = vrcp.f32 %v1104_v8  ;;  %v1110_v45 = vadd.f32 1.0, %v1230_v23 }
 0x2ad   : > { %v1232_v1 = vpop.eup %1231 }
 0x2ae   : > { %1239 = vrcp.f32 %v1110_v45  ;;  %v1100_v22 = vmul.f32 %v1232_v1, %v1228_v31  ;;  %v1234_v42 = vpop.eup %1233 }
 0x2af   : > { %v1236_v41 = vpop.eup %1235 }
 0x2b0   : > { %v1134_v34 = vsel %vm1133_vm2, %v1100_v22, %v2042_v33  ;;  %v1147_v6 = vsel %vm1133_vm2, %v1100_v22, 0.0  ;;  %v1117_v26 = vadd.f32 1.0, %v1236_v41 }
 0x2b1   : > { %1135 = vst [vmem:[#allocation4] sm:$0xff] %v1134_v34  ;;  %1150 = vst [vmem:[%s1149_s21] sm:$0xff] %v1147_v6 }
 0x2b2   : > { %1241 = vrcp.f32 %v1117_v26 }
 0x2b9   : > { %v1238_v14 = vpop.eup %1237 }
 0x2ba   : > { %v1121_v53 = vmul.f32 %v1238_v14, %v1234_v42 }
 0x2bb   : > { %v1240_v27 = vpop.eup %1239 }
 0x2bc   : > { %v1120_v18 = vmul.f32 %v1240_v27, %v888_v21 }
 0x2be   : > { %v1122_v37 = vadd.f32 %v1121_v53, %v1120_v18 }
 0x2bf   : > { %v1242_v33 = vpop.eup %1241 }
 0x2c0   : > { %1243 = vtanh.f32 %v1122_v37  ;;  %v1145_v28 = vsel %vm1142_vm3, %v1122_v37, %v888_v21 }
 0x2c1   : > { %1146 = vst [vmem:[#allocation7] sm:$0xff] %v1145_v28 }
 0x2cd   : > { %v1244_v12 = vpop.eup %1243  ;;  %882 = sbr.rel (!%p880_p6) target bundleno = 405 (0x195), region = 79 }
 0x2ce   : > { %v1124_v19 = vmul.f32 %v1244_v12, %v1242_v33 }
 0x2d0   : > { %v1143_v10 = vsel %vm1142_vm3, %v1124_v19, %v2142_v32  ;;  %v1151_v40 = vsel %vm1142_vm3, %v1124_v19, 0.0 }
 0x2d1   : > { %1144 = vst [vmem:[#allocation6] sm:$0xff] %v1143_v10  ;;  %1154 = vst [vmem:[%s1153_s0] sm:$0xff] %v1151_v40 }
 0x2d2   :  { %1163 = vsyncpa [#allocation9], 1 }
 0x2d3   :  { %1164 = vsyncpa [#allocation11], 1 }
 0x2d4   :  { %1165 = vsyncpa [#allocation14], 1 }

// kernel: res_encoder_forward.6
= control target key start
LH: loop header
LB: loop body
LE: loop exit
PB: predicated region body
PF: predicated region fallthrough
CT: control target
= control target key end

     0   :  { %v2364_v3 = vmov 0   ;;  %s5318_s7 = inlined_call_operand.vmem [shape: f32[128,1024], index: 7, kind: input, shape index: {}]   ;;  %s5319_s12 = inlined_call_operand.vmem [shape: f32[8,128], index: 12, kind: output, shape index: {0}]   ;;  %s5320_s13 = inlined_call_operand.vmem [shape: f32[8,128], index: 13, kind: output, shape index: {1}]   ;;  %s5321_s2 = inlined_call_operand.vmem [shape: f32[8,8,128], index: 2, kind: input, shape index: {}]   ;;  %s5322_s3 = inlined_call_operand.vmem [shape: f32[8,8,128], index: 3, kind: input, shape index: {}]   ;;  %s5323_s6 = inlined_call_operand.vmem [shape: f32[128,1024], index: 6, kind: input, shape index: {}]   ;;  %s5324_s1 = inlined_call_operand.vmem [shape: f32[8,8,128], index: 1, kind: input, shape index: {}]   ;;  %s5325_s8 = inlined_call_operand.vmem [shape: f32[128,1024], index: 8, kind: input, shape index: {}]   ;;  %s5326_s4 = inlined_call_operand.vmem [shape: f32[8,8,128], index: 4, kind: input, shape index: {}]   ;;  %s5327_s5 = inlined_call_operand.vmem [shape: f32[8,8,128], index: 5, kind: input, shape index: {}]   ;;  %s5328_s10 = inlined_call_operand.vmem [shape: f32[128,512], index: 10, kind: input, shape index: {}]   ;;  %s5329_s0 = inlined_call_operand.vmem [shape: s32[8,1], index: 0, kind: input, shape index: {}]   ;;  %s5330_s11 = inlined_call_operand.vmem [shape: f32[128,512], index: 11, kind: input, shape index: {}]   ;;  %s5331_s9 = inlined_call_operand.vmem [shape: f32[1,1024], index: 9, kind: input, shape index: {}]  }
   0x1   :  { %v389_v0 = vld [vmem:[%s5318_s7 + $0x388] sm:$0xff]  ;;  %v391_v2 = vld [vmem:[%s5318_s7 + $0x398] sm:$0xff]  ;;  %500 = vmatprep.mubr.bf16.mxu0 %v2364_v3  ;;  %573 = vmatprep.mubr.bf16.mxu1 %v2364_v3  ;;  %v388_v6 = vld [vmem:[%s5318_s7 + $0x380] sm:$0xff] }
   0x2   :  { %v397_v1 = vld [vmem:[%s5318_s7 + $0x3c8] sm:$0xff]  ;;  %v399_v5 = vld [vmem:[%s5318_s7 + $0x3d8] sm:$0xff]  ;;  %v396_v7 = vld [vmem:[%s5318_s7 + $0x3c0] sm:$0xff] }
   0x3   :  { %v461_v4 = vpack.c.bf16 %v397_v1, %v389_v0  ;;  %v463_v8 = vpack.c.bf16 %v399_v5, %v391_v2  ;;  %v460_v9 = vpack.c.bf16 %v396_v7, %v388_v6  ;;  %v390_v10 = vld [vmem:[%s5318_s7 + $0x390] sm:$0xff]  ;;  %v373_v12 = vld [vmem:[%s5318_s7 + $0x308] sm:$0xff]  ;;  %v375_v15 = vld [vmem:[%s5318_s7 + $0x318] sm:$0xff] }
   0x4   :  { %v398_v11 = vld [vmem:[%s5318_s7 + $0x3d0] sm:$0xff]  ;;  %v381_v14 = vld [vmem:[%s5318_s7 + $0x348] sm:$0xff]  ;;  %v383_v16 = vld [vmem:[%s5318_s7 + $0x358] sm:$0xff] }
   0x5   :  { %468 = vmatprep.subr.bf16.mxu0 %v461_v4  ;;  %v462_v13 = vpack.c.bf16 %v398_v11, %v390_v10  ;;  %541 = vmatprep.subr.bf16.mxu1 %v463_v8  ;;  %v453_v17 = vpack.c.bf16 %v381_v14, %v373_v12  ;;  %v455_v18 = vpack.c.bf16 %v383_v16, %v375_v15  ;;  %v372_v19 = vld [vmem:[%s5318_s7 + $0x300] sm:$0xff]  ;;  %v374_v21 = vld [vmem:[%s5318_s7 + $0x310] sm:$0xff]  ;;  %v357_v24 = vld [vmem:[%s5318_s7 + $0x288] sm:$0xff] }
   0x6   :  { %469 = vmatpush1.bf16.msra.mxu0 %v460_v9  ;;  %v380_v20 = vld [vmem:[%s5318_s7 + $0x340] sm:$0xff]  ;;  %v382_v23 = vld [vmem:[%s5318_s7 + $0x350] sm:$0xff]  ;;  %v365_v25 = vld [vmem:[%s5318_s7 + $0x2c8] sm:$0xff] }
   0x7   :  { %542 = vmatpush1.bf16.msra.mxu1 %v462_v13  ;;  %v452_v22 = vpack.c.bf16 %v380_v20, %v372_v19  ;;  %470 = vmatprep.subr.bf16.mxu0 %v453_v17  ;;  %v454_v26 = vpack.c.bf16 %v382_v23, %v374_v21  ;;  %v445_v27 = vpack.c.bf16 %v365_v25, %v357_v24  ;;  %v359_v28 = vld [vmem:[%s5318_s7 + $0x298] sm:$0xff]  ;;  %v356_v30 = vld [vmem:[%s5318_s7 + $0x280] sm:$0xff]  ;;  %v358_v33 = vld [vmem:[%s5318_s7 + $0x290] sm:$0xff] }
   0x8   :  { %543 = vmatprep.subr.bf16.mxu1 %v455_v18  ;;  %v367_v29 = vld [vmem:[%s5318_s7 + $0x2d8] sm:$0xff]  ;;  %v364_v32 = vld [vmem:[%s5318_s7 + $0x2c0] sm:$0xff]  ;;  %v366_v34 = vld [vmem:[%s5318_s7 + $0x2d0] sm:$0xff] }
   0x9   :  { %v447_v31 = vpack.c.bf16 %v367_v29, %v359_v28  ;;  %v444_v35 = vpack.c.bf16 %v364_v32, %v356_v30  ;;  %v341_v36 = vld [vmem:[%s5318_s7 + $0x208] sm:$0xff]  ;;  %v343_v38 = vld [vmem:[%s5318_s7 + $0x218] sm:$0xff]  ;;  %v446_v39 = vpack.c.bf16 %v366_v34, %v358_v33  ;;  %v340_v42 = vld [vmem:[%s5318_s7 + $0x200] sm:$0xff] }
   0xa   :  { %471 = vmatpush1.bf16.msra.mxu0 %v452_v22  ;;  %v349_v37 = vld [vmem:[%s5318_s7 + $0x248] sm:$0xff]  ;;  %v351_v41 = vld [vmem:[%s5318_s7 + $0x258] sm:$0xff]  ;;  %v348_v43 = vld [vmem:[%s5318_s7 + $0x240] sm:$0xff] }
   0xb   :  { %544 = vmatpush1.bf16.msra.mxu1 %v454_v26  ;;  %472 = vmatprep.subr.bf16.mxu0 %v445_v27  ;;  %v437_v40 = vpack.c.bf16 %v349_v37, %v341_v36  ;;  %v439_v44 = vpack.c.bf16 %v351_v41, %v343_v38  ;;  %v342_v45 = vld [vmem:[%s5318_s7 + $0x210] sm:$0xff]  ;;  %v325_v47 = vld [vmem:[%s5318_s7 + $0x188] sm:$0xff]  ;;  %v327_v49 = vld [vmem:[%s5318_s7 + $0x198] sm:$0xff]  ;;  %v436_v51 = vpack.c.bf16 %v348_v43, %v340_v42 }
   0xc   :  { %545 = vmatprep.subr.bf16.mxu1 %v447_v31  ;;  %v350_v46 = vld [vmem:[%s5318_s7 + $0x250] sm:$0xff]  ;;  %v333_v48 = vld [vmem:[%s5318_s7 + $0x1c8] sm:$0xff]  ;;  %v335_v50 = vld [vmem:[%s5318_s7 + $0x1d8] sm:$0xff] }
   0xd   :  { %v438_v52 = vpack.c.bf16 %v350_v46, %v342_v45  ;;  %v429_v53 = vpack.c.bf16 %v333_v48, %v325_v47  ;;  %v324_v54 = vld [vmem:[%s5318_s7 + $0x180] sm:$0xff]  ;;  %v326_v56 = vld [vmem:[%s5318_s7 + $0x190] sm:$0xff]  ;;  %v431_v57 = vpack.c.bf16 %v335_v50, %v327_v49  ;;  %v309_v59 = vld [vmem:[%s5318_s7 + $0x108] sm:$0xff] }
   0xe   :  { %473 = vmatpush1.bf16.msra.mxu0 %v444_v35  ;;  %v332_v55 = vld [vmem:[%s5318_s7 + $0x1c0] sm:$0xff]  ;;  %v334_v58 = vld [vmem:[%s5318_s7 + $0x1d0] sm:$0xff]  ;;  %v317_v60 = vld [vmem:[%s5318_s7 + $0x148] sm:$0xff] }
   0xf   :  { %546 = vmatpush1.bf16.msra.mxu1 %v446_v39  ;;  %474 = vmatprep.subr.bf16.mxu0 %v437_v40  ;;  %v311_v61 = vld [vmem:[%s5318_s7 + $0x118] sm:$0xff]  ;;  %v428_v63 = vpack.c.bf16 %v332_v55, %v324_v54  ;;  %v430_v0 = vpack.c.bf16 %v334_v58, %v326_v56  ;;  %v421_v1 = vpack.c.bf16 %v317_v60, %v309_v59  ;;  %v308_v2 = vld [vmem:[%s5318_s7 + $0x100] sm:$0xff]  ;;  %v310_v5 = vld [vmem:[%s5318_s7 + $0x110] sm:$0xff] }
  0x10   :  { %547 = vmatprep.subr.bf16.mxu1 %v439_v44  ;;  %v319_v62 = vld [vmem:[%s5318_s7 + $0x158] sm:$0xff]  ;;  %v316_v4 = vld [vmem:[%s5318_s7 + $0x140] sm:$0xff]  ;;  %v318_v7 = vld [vmem:[%s5318_s7 + $0x150] sm:$0xff] }
  0x11   :  { %v423_v6 = vpack.c.bf16 %v319_v62, %v311_v61  ;;  %v293_v8 = vld [vmem:[%s5318_s7 + $0x88] sm:$0xff]  ;;  %v295_v10 = vld [vmem:[%s5318_s7 + $0x98] sm:$0xff]  ;;  %v420_v12 = vpack.c.bf16 %v316_v4, %v308_v2  ;;  %v422_v13 = vpack.c.bf16 %v318_v7, %v310_v5  ;;  %v292_v15 = vld [vmem:[%s5318_s7 + $0x80] sm:$0xff] }
  0x12   :  { %475 = vmatpush1.bf16.msra.mxu0 %v436_v51  ;;  %v301_v9 = vld [vmem:[%s5318_s7 + $0xc8] sm:$0xff]  ;;  %v303_v11 = vld [vmem:[%s5318_s7 + $0xd8] sm:$0xff]  ;;  %v300_v16 = vld [vmem:[%s5318_s7 + $0xc0] sm:$0xff] }
  0x13   :  { %548 = vmatpush1.bf16.msra.mxu1 %v438_v52  ;;  %476 = vmatprep.subr.bf16.mxu0 %v429_v53  ;;  %v413_v14 = vpack.c.bf16 %v301_v9, %v293_v8  ;;  %v294_v17 = vld [vmem:[%s5318_s7 + $0x90] sm:$0xff]  ;;  %v415_v18 = vpack.c.bf16 %v303_v11, %v295_v10  ;;  %v277_v20 = vld [vmem:[%s5318_s7 + $0x8] sm:$0xff]  ;;  %v279_v22 = vld [vmem:[%s5318_s7 + $0x18] sm:$0xff]  ;;  %v412_v25 = vpack.c.bf16 %v300_v16, %v292_v15 }
  0x14   :  { %549 = vmatprep.subr.bf16.mxu1 %v431_v57  ;;  %v302_v19 = vld [vmem:[%s5318_s7 + $0xd0] sm:$0xff]  ;;  %v285_v21 = vld [vmem:[%s5318_s7 + $0x48] sm:$0xff]  ;;  %v287_v23 = vld [vmem:[%s5318_s7 + $0x58] sm:$0xff] }
  0x15   :  { %v248_v24 = vld [vmem:[%s5321_s2] sm:$0xff]  ;;  %v249_v26 = vld [vmem:[%s5321_s2 + $0x8] sm:$0xff]  ;;  %v414_v29 = vpack.c.bf16 %v302_v19, %v294_v17  ;;  %v405_v30 = vpack.c.bf16 %v285_v21, %v277_v20  ;;  %v278_v33 = vld [vmem:[%s5318_s7 + $0x10] sm:$0xff]  ;;  %v407_v34 = vpack.c.bf16 %v287_v23, %v279_v22 }
  0x16   :  { %477 = vmatpush1.bf16.msra.mxu0 %v428_v63  ;;  %v256_v27 = vld [vmem:[%s5322_s3] sm:$0xff]  ;;  %v257_v28 = vld [vmem:[%s5322_s3 + $0x8] sm:$0xff]  ;;  %v286_v35 = vld [vmem:[%s5318_s7 + $0x50] sm:$0xff] }
  0x17   :  { %550 = vmatpush1.bf16.msra.mxu1 %v430_v0  ;;  %478 = vmatprep.subr.bf16.mxu0 %v421_v1  ;;  %v276_v31 = vld [vmem:[%s5318_s7] sm:$0xff]  ;;  %v393_v36 = vld [vmem:[%s5318_s7 + $0x3a8] sm:$0xff]  ;;  %v264_v38 = vadd.f32 %v256_v27, %v248_v24  ;;  %v265_v39 = vadd.f32 %v257_v28, %v249_v26  ;;  %v395_v40 = vld [vmem:[%s5318_s7 + $0x3b8] sm:$0xff]  ;;  %v406_v43 = vpack.c.bf16 %v286_v35, %v278_v33 }
  0x18   :  { %551 = vmatprep.subr.bf16.mxu1 %v423_v6  ;;  %v284_v32 = vld [vmem:[%s5318_s7 + $0x40] sm:$0xff]  ;;  %v401_v37 = vld [vmem:[%s5318_s7 + $0x3e8] sm:$0xff]  ;;  %v403_v41 = vld [vmem:[%s5318_s7 + $0x3f8] sm:$0xff] }
  0x19   :  { %v404_v42 = vpack.c.bf16 %v284_v32, %v276_v31  ;;  %v465_v44 = vpack.c.bf16 %v401_v37, %v393_v36  ;;  %v392_v45 = vld [vmem:[%s5318_s7 + $0x3a0] sm:$0xff]  ;;  %v394_v47 = vld [vmem:[%s5318_s7 + $0x3b0] sm:$0xff]  ;;  %v467_v48 = vpack.c.bf16 %v403_v41, %v395_v40  ;;  %v377_v50 = vld [vmem:[%s5318_s7 + $0x328] sm:$0xff]  ;;  %v2674_v52 = vpack.c.bf16 %v265_v39, %v264_v38 }
  0x1a   :  { %479 = vmatpush1.bf16.msra.mxu0 %v420_v12  ;;  %v400_v46 = vld [vmem:[%s5318_s7 + $0x3e0] sm:$0xff]  ;;  %v402_v49 = vld [vmem:[%s5318_s7 + $0x3f0] sm:$0xff]  ;;  %v385_v51 = vld [vmem:[%s5318_s7 + $0x368] sm:$0xff] }
  0x1b   :  { %552 = vmatpush1.bf16.msra.mxu1 %v422_v13  ;;  %480 = vmatprep.subr.bf16.mxu0 %v413_v14  ;;  %v379_v53 = vld [vmem:[%s5318_s7 + $0x338] sm:$0xff]  ;;  %v250_v55 = vld [vmem:[%s5321_s2 + $0x10] sm:$0xff]  ;;  %v464_v56 = vpack.c.bf16 %v400_v46, %v392_v45  ;;  %v466_v60 = vpack.c.bf16 %v402_v49, %v394_v47  ;;  %v457_v61 = vpack.c.bf16 %v385_v51, %v377_v50  ;;  %v376_v62 = vld [vmem:[%s5318_s7 + $0x320] sm:$0xff] }
  0x1c   :  { %553 = vmatprep.subr.bf16.mxu1 %v415_v18  ;;  %v387_v54 = vld [vmem:[%s5318_s7 + $0x378] sm:$0xff]  ;;  %v258_v58 = vld [vmem:[%s5322_s3 + $0x10] sm:$0xff]  ;;  %v384_v63 = vld [vmem:[%s5318_s7 + $0x360] sm:$0xff] }
  0x1d   :  { %v251_v57 = vld [vmem:[%s5321_s2 + $0x18] sm:$0xff]  ;;  %v378_v0 = vld [vmem:[%s5318_s7 + $0x330] sm:$0xff]  ;;  %v459_v1 = vpack.c.bf16 %v387_v54, %v379_v53  ;;  %v361_v4 = vld [vmem:[%s5318_s7 + $0x2a8] sm:$0xff]  ;;  %v266_v6 = vadd.f32 %v258_v58, %v250_v55  ;;  %v456_v10 = vpack.c.bf16 %v384_v63, %v376_v62 }
  0x1e   :  { %481 = vmatpush1.bf16.msra.mxu0 %v412_v25  ;;  %v259_v59 = vld [vmem:[%s5322_s3 + $0x18] sm:$0xff]  ;;  %v386_v2 = vld [vmem:[%s5318_s7 + $0x370] sm:$0xff]  ;;  %v369_v5 = vld [vmem:[%s5318_s7 + $0x2e8] sm:$0xff] }
  0x1f   :  { %554 = vmatpush1.bf16.msra.mxu1 %v414_v29  ;;  %482 = vmatprep.subr.bf16.mxu0 %v405_v30  ;;  %v267_v7 = vadd.f32 %v259_v59, %v251_v57  ;;  %v363_v8 = vld [vmem:[%s5318_s7 + $0x2b8] sm:$0xff]  ;;  %v458_v11 = vpack.c.bf16 %v386_v2, %v378_v0  ;;  %v449_v12 = vpack.c.bf16 %v369_v5, %v361_v4  ;;  %v360_v13 = vld [vmem:[%s5318_s7 + $0x2a0] sm:$0xff]  ;;  %v362_v15 = vld [vmem:[%s5318_s7 + $0x2b0] sm:$0xff] }
  0x20   :  { %555 = vmatprep.subr.bf16.mxu1 %v407_v34  ;;  %v371_v9 = vld [vmem:[%s5318_s7 + $0x2f8] sm:$0xff]  ;;  %v368_v14 = vld [vmem:[%s5318_s7 + $0x2e0] sm:$0xff]  ;;  %v370_v17 = vld [vmem:[%s5318_s7 + $0x2f0] sm:$0xff] }
  0x21   :  { %v451_v16 = vpack.c.bf16 %v371_v9, %v363_v8  ;;  %v345_v18 = vld [vmem:[%s5318_s7 + $0x228] sm:$0xff]  ;;  %v2740_v20 = vpack.c.bf16 %v267_v7, %v266_v6  ;;  %v347_v21 = vld [vmem:[%s5318_s7 + $0x238] sm:$0xff]  ;;  %v252_v23 = vld [vmem:[%s5321_s2 + $0x20] sm:$0xff]  ;;  %v448_v24 = vpack.c.bf16 %v368_v14, %v360_v13  ;;  %v450_v28 = vpack.c.bf16 %v370_v17, %v362_v15 }
  0x22   :  { %483 = vmatpush1.bf16.msra.mxu0 %v404_v42  ;;  %v353_v19 = vld [vmem:[%s5318_s7 + $0x268] sm:$0xff]  ;;  %v355_v22 = vld [vmem:[%s5318_s7 + $0x278] sm:$0xff]  ;;  %v260_v26 = vld [vmem:[%s5322_s3 + $0x20] sm:$0xff] }
  0x23   :  { %556 = vmatpush1.bf16.msra.mxu1 %v406_v43  ;;  %614 = vmatprep.subr.bf16.mxu0 %v465_v44  ;;  %v253_v25 = vld [vmem:[%s5321_s2 + $0x28] sm:$0xff]  ;;  %v441_v29 = vpack.c.bf16 %v353_v19, %v345_v18  ;;  %v344_v30 = vld [vmem:[%s5318_s7 + $0x220] sm:$0xff]  ;;  %v346_v32 = vld [vmem:[%s5318_s7 + $0x230] sm:$0xff]  ;;  %v443_v33 = vpack.c.bf16 %v355_v22, %v347_v21  ;;  %v268_v37 = vadd.f32 %v260_v26, %v252_v23 }
  0x24   :  { %687 = vmatprep.subr.bf16.mxu1 %v467_v48  ;;  %v261_v27 = vld [vmem:[%s5322_s3 + $0x28] sm:$0xff]  ;;  %v352_v31 = vld [vmem:[%s5318_s7 + $0x260] sm:$0xff]  ;;  %v354_v34 = vld [vmem:[%s5318_s7 + $0x270] sm:$0xff] }
  0x25   :  { %501 = vmatmul.mubr.bf16.vlgmr.msra.gmra.mxu0 %v2674_v52  ;;  %v329_v35 = vld [vmem:[%s5318_s7 + $0x1a8] sm:$0xff]  ;;  %v269_v38 = vadd.f32 %v261_v27, %v253_v25  ;;  %v331_v39 = vld [vmem:[%s5318_s7 + $0x1b8] sm:$0xff]  ;;  %v440_v41 = vpack.c.bf16 %v352_v31, %v344_v30  ;;  %v442_v42 = vpack.c.bf16 %v354_v34, %v346_v32  ;;  %v328_v44 = vld [vmem:[%s5318_s7 + $0x1a0] sm:$0xff] }
  0x26   :  { %574 = vmatmul.mubr.bf16.vlgmr.msra.gmra.mxu1 %v2674_v52  ;;  %615 = vmatpush1.bf16.msra.mxu0 %v464_v56  ;;  %v337_v36 = vld [vmem:[%s5318_s7 + $0x1e8] sm:$0xff]  ;;  %v339_v40 = vld [vmem:[%s5318_s7 + $0x1f8] sm:$0xff]  ;;  %v336_v45 = vld [vmem:[%s5318_s7 + $0x1e0] sm:$0xff] }
  0x27   :  { %688 = vmatpush1.bf16.msra.mxu1 %v466_v60  ;;  %616 = vmatprep.subr.bf16.mxu0 %v457_v61  ;;  %v433_v43 = vpack.c.bf16 %v337_v36, %v329_v35  ;;  %v330_v46 = vld [vmem:[%s5318_s7 + $0x1b0] sm:$0xff]  ;;  %v435_v47 = vpack.c.bf16 %v339_v40, %v331_v39  ;;  %v313_v49 = vld [vmem:[%s5318_s7 + $0x128] sm:$0xff]  ;;  %v2806_v51 = vpack.c.bf16 %v269_v38, %v268_v37  ;;  %v315_v53 = vld [vmem:[%s5318_s7 + $0x138] sm:$0xff] }
  0x28   :  { %689 = vmatprep.subr.bf16.mxu1 %v459_v1  ;;  %510 = vmatprep.mubr.bf16.mxu0 %v2364_v3  ;;  %v338_v48 = vld [vmem:[%s5318_s7 + $0x1f0] sm:$0xff]  ;;  %v321_v50 = vld [vmem:[%s5318_s7 + $0x168] sm:$0xff]  ;;  %v323_v54 = vld [vmem:[%s5318_s7 + $0x178] sm:$0xff]  ;;  %v432_v56 = vpack.c.bf16 %v336_v45, %v328_v44 }
  0x29   :  { %583 = vmatprep.mubr.bf16.mxu1 %v2364_v3  ;;  %v254_v55 = vld [vmem:[%s5321_s2 + $0x30] sm:$0xff]  ;;  %v255_v57 = vld [vmem:[%s5321_s2 + $0x38] sm:$0xff]  ;;  %v434_v60 = vpack.c.bf16 %v338_v48, %v330_v46  ;;  %v425_v61 = vpack.c.bf16 %v321_v50, %v313_v49  ;;  %v312_v62 = vld [vmem:[%s5318_s7 + $0x120] sm:$0xff]  ;;  %v427_v1 = vpack.c.bf16 %v323_v54, %v315_v53 }
  0x2a   :  { %617 = vmatpush1.bf16.msra.mxu0 %v456_v10  ;;  %v262_v58 = vld [vmem:[%s5322_s3 + $0x30] sm:$0xff]  ;;  %v263_v59 = vld [vmem:[%s5322_s3 + $0x38] sm:$0xff]  ;;  %v320_v63 = vld [vmem:[%s5318_s7 + $0x160] sm:$0xff] }
  0x2b   :  { %690 = vmatpush1.bf16.msra.mxu1 %v458_v11  ;;  %618 = vmatprep.subr.bf16.mxu0 %v449_v12  ;;  %v314_v0 = vld [vmem:[%s5318_s7 + $0x130] sm:$0xff]  ;;  %v297_v4 = vld [vmem:[%s5318_s7 + $0xa8] sm:$0xff]  ;;  %v270_v6 = vadd.f32 %v262_v58, %v254_v55  ;;  %v271_v7 = vadd.f32 %v263_v59, %v255_v57  ;;  %v299_v8 = vld [vmem:[%s5318_s7 + $0xb8] sm:$0xff]  ;;  %v424_v10 = vpack.c.bf16 %v320_v63, %v312_v62 }
  0x2c   :  { %691 = vmatprep.subr.bf16.mxu1 %v451_v16  ;;  %v322_v2 = vld [vmem:[%s5318_s7 + $0x170] sm:$0xff]  ;;  %v305_v5 = vld [vmem:[%s5318_s7 + $0xe8] sm:$0xff]  ;;  %v307_v9 = vld [vmem:[%s5318_s7 + $0xf8] sm:$0xff] }
  0x2d   :  { %511 = vmatmul.mubr.bf16.gmra.mxu0 %v2740_v20  ;;  %v426_v11 = vpack.c.bf16 %v322_v2, %v314_v0  ;;  %v417_v12 = vpack.c.bf16 %v305_v5, %v297_v4  ;;  %v296_v13 = vld [vmem:[%s5318_s7 + $0xa0] sm:$0xff]  ;;  %v298_v15 = vld [vmem:[%s5318_s7 + $0xb0] sm:$0xff]  ;;  %v419_v16 = vpack.c.bf16 %v307_v9, %v299_v8  ;;  %v281_v18 = vld [vmem:[%s5318_s7 + $0x28] sm:$0xff]  ;;  %v2872_v21 = vpack.c.bf16 %v271_v7, %v270_v6 }
  0x2e   :  { %584 = vmatmul.mubr.bf16.gmra.mxu1 %v2740_v20  ;;  %619 = vmatpush1.bf16.msra.mxu0 %v448_v24  ;;  %v304_v14 = vld [vmem:[%s5318_s7 + $0xe0] sm:$0xff]  ;;  %v306_v17 = vld [vmem:[%s5318_s7 + $0xf0] sm:$0xff]  ;;  %v289_v19 = vld [vmem:[%s5318_s7 + $0x68] sm:$0xff] }
  0x2f   :  { %692 = vmatpush1.bf16.msra.mxu1 %v450_v28  ;;  %620 = vmatprep.subr.bf16.mxu0 %v441_v29  ;;  %v283_v22 = vld [vmem:[%s5318_s7 + $0x38] sm:$0xff]  ;;  %v416_v24 = vpack.c.bf16 %v304_v14, %v296_v13  ;;  %v418_v25 = vpack.c.bf16 %v306_v17, %v298_v15  ;;  %v409_v26 = vpack.c.bf16 %v289_v19, %v281_v18  ;;  %v280_v27 = vld [vmem:[%s5318_s7 + $0x20] sm:$0xff]  ;;  %v282_v29 = vld [vmem:[%s5318_s7 + $0x30] sm:$0xff] }
  0x30   :  { %693 = vmatprep.subr.bf16.mxu1 %v443_v33  ;;  %520 = vmatprep.mubr.bf16.mxu0 %v2364_v3  ;;  %v291_v23 = vld [vmem:[%s5318_s7 + $0x78] sm:$0xff]  ;;  %v288_v28 = vld [vmem:[%s5318_s7 + $0x60] sm:$0xff]  ;;  %v290_v31 = vld [vmem:[%s5318_s7 + $0x70] sm:$0xff] }
  0x31   :  { %593 = vmatprep.mubr.bf16.mxu1 %v2364_v3  ;;  %v411_v30 = vpack.c.bf16 %v291_v23, %v283_v22  ;;  %v169_v32 = vld [vmem:[%s5323_s6 + $0x388] sm:$0xff]  ;;  %v171_v34 = vld [vmem:[%s5323_s6 + $0x398] sm:$0xff]  ;;  %v408_v36 = vpack.c.bf16 %v288_v28, %v280_v27  ;;  %v410_v37 = vpack.c.bf16 %v290_v31, %v282_v29  ;;  %v168_v39 = vld [vmem:[%s5323_s6 + $0x380] sm:$0xff] }
  0x32   :  { %621 = vmatpush1.bf16.msra.mxu0 %v440_v41  ;;  %v177_v33 = vld [vmem:[%s5323_s6 + $0x3c8] sm:$0xff]  ;;  %v179_v35 = vld [vmem:[%s5323_s6 + $0x3d8] sm:$0xff]  ;;  %v176_v40 = vld [vmem:[%s5323_s6 + $0x3c0] sm:$0xff] }
  0x33   :  { %694 = vmatpush1.bf16.msra.mxu1 %v442_v42  ;;  %622 = vmatprep.subr.bf16.mxu0 %v433_v43  ;;  %v241_v38 = vpack.c.bf16 %v177_v33, %v169_v32  ;;  %v170_v41 = vld [vmem:[%s5323_s6 + $0x390] sm:$0xff]  ;;  %v243_v42 = vpack.c.bf16 %v179_v35, %v171_v34  ;;  %v153_v44 = vld [vmem:[%s5323_s6 + $0x308] sm:$0xff]  ;;  %v155_v46 = vld [vmem:[%s5323_s6 + $0x318] sm:$0xff]  ;;  %v240_v48 = vpack.c.bf16 %v176_v40, %v168_v39 }
  0x34   :  { %695 = vmatprep.subr.bf16.mxu1 %v435_v47  ;;  %v178_v43 = vld [vmem:[%s5323_s6 + $0x3d0] sm:$0xff]  ;;  %v161_v45 = vld [vmem:[%s5323_s6 + $0x348] sm:$0xff]  ;;  %v163_v47 = vld [vmem:[%s5323_s6 + $0x358] sm:$0xff] }
  0x35   :  { %521 = vmatmul.mubr.bf16.gmra.mxu0 %v2806_v51  ;;  %v242_v49 = vpack.c.bf16 %v178_v43, %v170_v41  ;;  %v233_v50 = vpack.c.bf16 %v161_v45, %v153_v44  ;;  %v152_v53 = vld [vmem:[%s5323_s6 + $0x300] sm:$0xff]  ;;  %v154_v55 = vld [vmem:[%s5323_s6 + $0x310] sm:$0xff]  ;;  %v137_v58 = vld [vmem:[%s5323_s6 + $0x288] sm:$0xff] }
  0x36   :  { %594 = vmatmul.mubr.bf16.gmra.mxu1 %v2806_v51  ;;  %623 = vmatpush1.bf16.msra.mxu0 %v432_v56  ;;  %v160_v54 = vld [vmem:[%s5323_s6 + $0x340] sm:$0xff]  ;;  %v235_v56 = vpack.c.bf16 %v163_v47, %v155_v46  ;;  %v162_v57 = vld [vmem:[%s5323_s6 + $0x350] sm:$0xff]  ;;  %v145_v59 = vld [vmem:[%s5323_s6 + $0x2c8] sm:$0xff] }
  0x37   :  { %696 = vmatpush1.bf16.msra.mxu1 %v434_v60  ;;  %624 = vmatprep.subr.bf16.mxu0 %v425_v61  ;;  %v139_v60 = vld [vmem:[%s5323_s6 + $0x298] sm:$0xff]  ;;  %v232_v62 = vpack.c.bf16 %v160_v54, %v152_v53  ;;  %v234_v63 = vpack.c.bf16 %v162_v57, %v154_v55  ;;  %v225_v0 = vpack.c.bf16 %v145_v59, %v137_v58  ;;  %v144_v2 = vld [vmem:[%s5323_s6 + $0x2c0] sm:$0xff]  ;;  %v138_v4 = vld [vmem:[%s5323_s6 + $0x290] sm:$0xff] }
  0x38   :  { %697 = vmatprep.subr.bf16.mxu1 %v427_v1  ;;  %530 = vmatprep.mubr.bf16.mxu0 %v2364_v3  ;;  %v147_v61 = vld [vmem:[%s5323_s6 + $0x2d8] sm:$0xff]  ;;  %v136_v1 = vld [vmem:[%s5323_s6 + $0x280] sm:$0xff]  ;;  %v146_v5 = vld [vmem:[%s5323_s6 + $0x2d0] sm:$0xff] }
  0x39   :  { %603 = vmatprep.mubr.bf16.mxu1 %v2364_v3  ;;  %v121_v6 = vld [vmem:[%s5323_s6 + $0x208] sm:$0xff]  ;;  %v123_v8 = vld [vmem:[%s5323_s6 + $0x218] sm:$0xff]  ;;  %v120_v13 = vld [vmem:[%s5323_s6 + $0x200] sm:$0xff] }
  0x3a   :  { %625 = vmatpush1.bf16.msra.mxu0 %v424_v10  ;;  %v129_v7 = vld [vmem:[%s5323_s6 + $0x248] sm:$0xff]  ;;  %v131_v9 = vld [vmem:[%s5323_s6 + $0x258] sm:$0xff]  ;;  %v224_v10 = vpack.c.bf16 %v144_v2, %v136_v1  ;;  %v128_v14 = vld [vmem:[%s5323_s6 + $0x240] sm:$0xff] }
  0x3b   :  { %698 = vmatpush1.bf16.msra.mxu1 %v426_v11  ;;  %626 = vmatprep.subr.bf16.mxu0 %v417_v12  ;;  %v226_v11 = vpack.c.bf16 %v146_v5, %v138_v4  ;;  %v217_v12 = vpack.c.bf16 %v129_v7, %v121_v6  ;;  %v122_v15 = vld [vmem:[%s5323_s6 + $0x210] sm:$0xff]  ;;  %v105_v18 = vld [vmem:[%s5323_s6 + $0x188] sm:$0xff]  ;;  %v107_v22 = vld [vmem:[%s5323_s6 + $0x198] sm:$0xff] }
  0x3c   :  { %699 = vmatprep.subr.bf16.mxu1 %v419_v16  ;;  %v219_v16 = vpack.c.bf16 %v131_v9, %v123_v8  ;;  %v130_v17 = vld [vmem:[%s5323_s6 + $0x250] sm:$0xff]  ;;  %v113_v19 = vld [vmem:[%s5323_s6 + $0x1c8] sm:$0xff]  ;;  %v115_v23 = vld [vmem:[%s5323_s6 + $0x1d8] sm:$0xff] }
  0x3d   :  { %531 = vmatmul.mubr.bf16.gmra.mxu0 %v2872_v21  ;;  %v104_v27 = vld [vmem:[%s5323_s6 + $0x180] sm:$0xff]  ;;  %v106_v29 = vld [vmem:[%s5323_s6 + $0x190] sm:$0xff]  ;;  %v89_v31 = vld [vmem:[%s5323_s6 + $0x108] sm:$0xff] }
  0x3e   :  { %604 = vmatmul.mubr.bf16.gmra.mxu1 %v2872_v21  ;;  %627 = vmatpush1.bf16.msra.mxu0 %v416_v24  ;;  %v216_v24 = vpack.c.bf16 %v128_v14, %v120_v13  ;;  %v112_v28 = vld [vmem:[%s5323_s6 + $0x1c0] sm:$0xff]  ;;  %v97_v32 = vld [vmem:[%s5323_s6 + $0x148] sm:$0xff]  ;;  %v91_v33 = vld [vmem:[%s5323_s6 + $0x118] sm:$0xff] }
  0x3f   :  { %700 = vmatpush1.bf16.msra.mxu1 %v418_v25  ;;  %628 = vmatprep.subr.bf16.mxu0 %v409_v26  ;;  %v218_v25 = vpack.c.bf16 %v130_v17, %v122_v15  ;;  %v209_v26 = vpack.c.bf16 %v113_v19, %v105_v18  ;;  %v99_v34 = vld [vmem:[%s5323_s6 + $0x158] sm:$0xff]  ;;  %v208_v35 = vpack.c.bf16 %v112_v28, %v104_v27  ;;  %v96_v39 = vld [vmem:[%s5323_s6 + $0x140] sm:$0xff]  ;;  %v90_v40 = vld [vmem:[%s5323_s6 + $0x110] sm:$0xff] }
  0x40   :  { %701 = vmatprep.subr.bf16.mxu1 %v411_v30  ;;  %646 = vmatprep.mubr.bf16.mxu0 %v2364_v3  ;;  %v114_v30 = vld [vmem:[%s5323_s6 + $0x1d0] sm:$0xff]  ;;  %v203_v41 = vpack.c.bf16 %v99_v34, %v91_v33  ;;  %v73_v43 = vld [vmem:[%s5323_s6 + $0x88] sm:$0xff]  ;;  %v75_v45 = vld [vmem:[%s5323_s6 + $0x98] sm:$0xff] }
  0x41   :  { %719 = vmatprep.mubr.bf16.mxu1 %v2364_v3  ;;  %v81_v44 = vld [vmem:[%s5323_s6 + $0xc8] sm:$0xff]  ;;  %v83_v46 = vld [vmem:[%s5323_s6 + $0xd8] sm:$0xff]  ;;  %v80_v53 = vld [vmem:[%s5323_s6 + $0xc0] sm:$0xff] }
  0x42   :  { %629 = vmatpush1.bf16.msra.mxu0 %v408_v36  ;;  %v210_v36 = vpack.c.bf16 %v114_v30, %v106_v29  ;;  %v74_v54 = vld [vmem:[%s5323_s6 + $0x90] sm:$0xff]  ;;  %v65_v57 = vld [vmem:[%s5323_s6 + $0x48] sm:$0xff]  ;;  %v59_v58 = vld [vmem:[%s5323_s6 + $0x18] sm:$0xff] }
  0x43   :  { %702 = vmatpush1.bf16.msra.mxu1 %v410_v37  ;;  %760 = vmatprep.subr.bf16.mxu0 %v241_v38  ;;  %v201_v37 = vpack.c.bf16 %v97_v32, %v89_v31  ;;  %v88_v38 = vld [vmem:[%s5323_s6 + $0x100] sm:$0xff]  ;;  %v82_v55 = vld [vmem:[%s5323_s6 + $0xd0] sm:$0xff]  ;;  %v67_v59 = vld [vmem:[%s5323_s6 + $0x58] sm:$0xff] }
  0x44   :  { %833 = vmatprep.subr.bf16.mxu1 %v243_v42  ;;  %v98_v42 = vld [vmem:[%s5323_s6 + $0x150] sm:$0xff]  ;;  %v200_v47 = vpack.c.bf16 %v96_v39, %v88_v38  ;;  %v187_v2 = vpack.c.bf16 %v67_v59, %v59_v58  ;;  %v181_v5 = vld [vmem:[%s5323_s6 + $0x3e8] sm:$0xff]  ;;  %v175_v6 = vld [vmem:[%s5323_s6 + $0x3b8] sm:$0xff] }
  0x45   :  { %647 = vmatmul.mubr.bf16.vlgmr.msra.gmra.mxu0 %v2674_v52  ;;  %v58_v1 = vld [vmem:[%s5323_s6 + $0x10] sm:$0xff]  ;;  %v183_v7 = vld [vmem:[%s5323_s6 + $0x3f8] sm:$0xff]  ;;  %v44_v9 = vld [vmem:[%s5324_s1] sm:$0xff] }
  0x46   :  { %720 = vmatmul.mubr.bf16.vlgmr.msra.gmra.mxu1 %v2674_v52  ;;  %761 = vmatpush1.bf16.msra.mxu0 %v240_v48  ;;  %v227_v52 = vpack.c.bf16 %v147_v61, %v139_v60  ;;  %v202_v48 = vpack.c.bf16 %v98_v42, %v90_v40  ;;  %v194_v61 = vpack.c.bf16 %v82_v55, %v74_v54  ;;  %v66_v4 = vld [vmem:[%s5323_s6 + $0x50] sm:$0xff]  ;;  %v172_v13 = vld [vmem:[%s5323_s6 + $0x3a0] sm:$0xff]  ;;  %v157_v17 = vld [vmem:[%s5323_s6 + $0x328] sm:$0xff] }
  0x47   :  { %834 = vmatpush1.bf16.msra.mxu1 %v242_v49  ;;  %762 = vmatprep.subr.bf16.mxu0 %v233_v50  ;;  %v193_v49 = vpack.c.bf16 %v81_v44, %v73_v43  ;;  %v72_v50 = vld [vmem:[%s5323_s6 + $0x80] sm:$0xff]  ;;  %v174_v14 = vld [vmem:[%s5323_s6 + $0x3b0] sm:$0xff]  ;;  %v247_v15 = vpack.c.bf16 %v183_v7, %v175_v6  ;;  %v165_v18 = vld [vmem:[%s5323_s6 + $0x368] sm:$0xff] }
  0x48   :  { %835 = vmatprep.subr.bf16.mxu1 %v235_v56  ;;  %656 = vmatprep.mubr.bf16.mxu0 %v2364_v3  ;;  %v57_v56 = vld [vmem:[%s5323_s6 + $0x8] sm:$0xff]  ;;  %v192_v60 = vpack.c.bf16 %v80_v53, %v72_v50  ;;  %v156_v27 = vld [vmem:[%s5323_s6 + $0x320] sm:$0xff]  ;;  %v158_v29 = vld [vmem:[%s5323_s6 + $0x330] sm:$0xff] }
  0x49   :  { %729 = vmatprep.mubr.bf16.mxu1 %v2364_v3  ;;  %v164_v28 = vld [vmem:[%s5323_s6 + $0x360] sm:$0xff]  ;;  %v166_v30 = vld [vmem:[%s5323_s6 + $0x370] sm:$0xff]  ;;  %v141_v31 = vld [vmem:[%s5323_s6 + $0x2a8] sm:$0xff] }
  0x4a   :  { %763 = vmatpush1.bf16.msra.mxu0 %v232_v62  ;;  %v185_v62 = vpack.c.bf16 %v65_v57, %v57_v56  ;;  %v149_v32 = vld [vmem:[%s5323_s6 + $0x2e8] sm:$0xff]  ;;  %v143_v33 = vld [vmem:[%s5323_s6 + $0x2b8] sm:$0xff]  ;;  %v238_v38 = vpack.c.bf16 %v166_v30, %v158_v29  ;;  %v140_v40 = vld [vmem:[%s5323_s6 + $0x2a0] sm:$0xff] }
  0x4b   :  { %836 = vmatpush1.bf16.msra.mxu1 %v234_v63  ;;  %764 = vmatprep.subr.bf16.mxu0 %v225_v0  ;;  %v56_v63 = vld [vmem:[%s5323_s6] sm:$0xff]  ;;  %v151_v34 = vld [vmem:[%s5323_s6 + $0x2f8] sm:$0xff]  ;;  %v229_v39 = vpack.c.bf16 %v149_v32, %v141_v31  ;;  %v142_v42 = vld [vmem:[%s5323_s6 + $0x2b0] sm:$0xff] }
  0x4c   :  { %837 = vmatprep.subr.bf16.mxu1 %v227_v52  ;;  %v64_v0 = vld [vmem:[%s5323_s6 + $0x40] sm:$0xff]  ;;  %v173_v52 = vld [vmem:[%s5323_s6 + $0x3a8] sm:$0xff]  ;;  %v231_v43 = vpack.c.bf16 %v151_v34, %v143_v33  ;;  %v150_v44 = vld [vmem:[%s5323_s6 + $0x2f0] sm:$0xff] }
  0x4d   :  { %657 = vmatmul.mubr.bf16.gmra.mxu0 %v2740_v20  ;;  %v184_v8 = vpack.c.bf16 %v64_v0, %v56_v63  ;;  %v230_v53 = vpack.c.bf16 %v150_v44, %v142_v42  ;;  %v132_v55 = vld [vmem:[%s5323_s6 + $0x260] sm:$0xff]  ;;  %v126_v56 = vld [vmem:[%s5323_s6 + $0x230] sm:$0xff]  ;;  %v109_v59 = vld [vmem:[%s5323_s6 + $0x1a8] sm:$0xff] }
  0x4e   :  { %730 = vmatmul.mubr.bf16.gmra.mxu1 %v2740_v20  ;;  %765 = vmatpush1.bf16.msra.mxu0 %v224_v10  ;;  %v211_v20 = vpack.c.bf16 %v115_v23, %v107_v22  ;;  %v45_v10 = vld [vmem:[%s5324_s1 + $0x8] sm:$0xff]  ;;  %v159_v22 = vld [vmem:[%s5323_s6 + $0x338] sm:$0xff]  ;;  %v134_v58 = vld [vmem:[%s5323_s6 + $0x270] sm:$0xff] }
  0x4f   :  { %838 = vmatpush1.bf16.msra.mxu1 %v226_v11  ;;  %766 = vmatprep.subr.bf16.mxu0 %v217_v12  ;;  %v186_v11 = vpack.c.bf16 %v66_v4, %v58_v1  ;;  %v245_v12 = vpack.c.bf16 %v181_v5, %v173_v52  ;;  %v3140_v19 = vpack.c.bf16 %v45_v10, %v44_v9  ;;  %v167_v23 = vld [vmem:[%s5323_s6 + $0x378] sm:$0xff]  ;;  %v48_v0 = vld [vmem:[%s5324_s1 + $0x20] sm:$0xff]  ;;  %v49_v1 = vld [vmem:[%s5324_s1 + $0x28] sm:$0xff] }
  0x50   :  { %839 = vmatprep.subr.bf16.mxu1 %v219_v16  ;;  %666 = vmatprep.mubr.bf16.mxu0 %v2364_v3  ;;  %v182_v16 = vld [vmem:[%s5323_s6 + $0x3f0] sm:$0xff]  ;;  %v108_v52 = vld [vmem:[%s5323_s6 + $0x1a0] sm:$0xff]  ;;  %v93_v9 = vld [vmem:[%s5323_s6 + $0x128] sm:$0xff] }
  0x51   :  { %739 = vmatprep.mubr.bf16.mxu1 %v2364_v3  ;;  %v116_v5 = vld [vmem:[%s5323_s6 + $0x1e0] sm:$0xff]  ;;  %v110_v6 = vld [vmem:[%s5323_s6 + $0x1b0] sm:$0xff]  ;;  %v101_v10 = vld [vmem:[%s5323_s6 + $0x168] sm:$0xff] }
  0x52   :  { %767 = vmatpush1.bf16.msra.mxu0 %v216_v24  ;;  %v50_v29 = vld [vmem:[%s5324_s1 + $0x30] sm:$0xff]  ;;  %v76_v32 = vld [vmem:[%s5323_s6 + $0xa0] sm:$0xff] }
  0x53   :  { %840 = vmatpush1.bf16.msra.mxu1 %v218_v25  ;;  %768 = vmatprep.subr.bf16.mxu0 %v209_v26  ;;  %v246_v25 = vpack.c.bf16 %v182_v16, %v174_v14  ;;  %v237_v26 = vpack.c.bf16 %v165_v18, %v157_v17  ;;  %v92_v16 = vld [vmem:[%s5323_s6 + $0x120] sm:$0xff]  ;;  %v94_v18 = vld [vmem:[%s5323_s6 + $0x130] sm:$0xff] }
  0x54   :  { %841 = vmatprep.subr.bf16.mxu1 %v211_v20  ;;  %v239_v20 = vpack.c.bf16 %v167_v23, %v159_v22  ;;  %v100_v17 = vld [vmem:[%s5323_s6 + $0x160] sm:$0xff]  ;;  %v102_v23 = vld [vmem:[%s5323_s6 + $0x170] sm:$0xff] }
  0x55   :  { %667 = vmatmul.mubr.bf16.gmra.mxu0 %v2806_v51  ;;  %v206_v30 = vpack.c.bf16 %v102_v23, %v94_v18  ;;  %v84_v33 = vld [vmem:[%s5323_s6 + $0xe0] sm:$0xff]  ;;  %v78_v34 = vld [vmem:[%s5323_s6 + $0xb0] sm:$0xff] }
  0x56   :  { %740 = vmatmul.mubr.bf16.gmra.mxu1 %v2806_v51  ;;  %769 = vmatpush1.bf16.msra.mxu0 %v208_v35  ;;  %v195_v51 = vpack.c.bf16 %v83_v46, %v75_v45  ;;  %v236_v35 = vpack.c.bf16 %v164_v28, %v156_v27  ;;  %v125_v45 = vld [vmem:[%s5323_s6 + $0x228] sm:$0xff]  ;;  %v87_v27 = vld [vmem:[%s5323_s6 + $0xf8] sm:$0xff]  ;;  %v204_v28 = vpack.c.bf16 %v100_v17, %v92_v16  ;;  %v1168_v23 = vld [vmem:[%s5325_s8 + $0x2c0] sm:$0xff] }
  0x57   :  { %842 = vmatpush1.bf16.msra.mxu1 %v210_v36  ;;  %770 = vmatprep.subr.bf16.mxu0 %v201_v37  ;;  %v46_v36 = vld [vmem:[%s5324_s1 + $0x10] sm:$0xff]  ;;  %v47_v37 = vld [vmem:[%s5324_s1 + $0x18] sm:$0xff]  ;;  %v133_v46 = vld [vmem:[%s5323_s6 + $0x268] sm:$0xff]  ;;  %v196_v42 = vpack.c.bf16 %v84_v33, %v76_v32 }
  0x58   :  { %843 = vmatprep.subr.bf16.mxu1 %v203_v41  ;;  %676 = vmatprep.mubr.bf16.mxu0 %v2364_v3  ;;  %v148_v41 = vld [vmem:[%s5323_s6 + $0x2e0] sm:$0xff]  ;;  %v221_v54 = vpack.c.bf16 %v133_v46, %v125_v45 }
  0x59   :  { %749 = vmatprep.mubr.bf16.mxu1 %v2364_v3  ;;  %v228_v50 = vpack.c.bf16 %v148_v41, %v140_v40  ;;  %v63_v40 = vld [vmem:[%s5323_s6 + $0x38] sm:$0xff]  ;;  %v60_v45 = vld [vmem:[%s5323_s6 + $0x20] sm:$0xff] }
  0x5a   :  { %771 = vmatpush1.bf16.msra.mxu0 %v200_v47  ;;  %v3200_v47 = vpack.c.bf16 %v47_v37, %v46_v36  ;;  %v86_v36 = vld [vmem:[%s5323_s6 + $0xf0] sm:$0xff]  ;;  %v61_v37 = vld [vmem:[%s5323_s6 + $0x28] sm:$0xff]  ;;  %v71_v41 = vld [vmem:[%s5323_s6 + $0x78] sm:$0xff] }
  0x5b   :  { %844 = vmatpush1.bf16.msra.mxu1 %v202_v48  ;;  %772 = vmatprep.subr.bf16.mxu0 %v193_v49  ;;  %v127_v48 = vld [vmem:[%s5323_s6 + $0x238] sm:$0xff]  ;;  %v68_v46 = vld [vmem:[%s5323_s6 + $0x60] sm:$0xff] }
  0x5c   :  { %845 = vmatprep.subr.bf16.mxu1 %v195_v51  ;;  %v135_v49 = vld [vmem:[%s5323_s6 + $0x278] sm:$0xff]  ;;  %v124_v51 = vld [vmem:[%s5323_s6 + $0x220] sm:$0xff] }
  0x5d   :  { %677 = vmatmul.mubr.bf16.gmra.mxu0 %v2872_v21  ;;  %v223_v57 = vpack.c.bf16 %v135_v49, %v127_v48  ;;  %v220_v63 = vpack.c.bf16 %v132_v55, %v124_v51  ;;  %v62_v48 = vld [vmem:[%s5323_s6 + $0x30] sm:$0xff]  ;;  %v191_v49 = vpack.c.bf16 %v71_v41, %v63_v40  ;;  %v1195_v51 = vld [vmem:[%s5325_s8 + $0x398] sm:$0xff]  ;;  %v1144_v32 = vld [vmem:[%s5325_s8 + $0x200] sm:$0xff] }
  0x5e   :  { %750 = vmatmul.mubr.bf16.gmra.mxu1 %v2872_v21  ;;  %773 = vmatpush1.bf16.msra.mxu0 %v192_v60  ;;  %v180_v21 = vld [vmem:[%s5323_s6 + $0x3e0] sm:$0xff]  ;;  %v117_v60 = vld [vmem:[%s5323_s6 + $0x1e8] sm:$0xff]  ;;  %v1203_v55 = vld [vmem:[%s5325_s8 + $0x3d8] sm:$0xff] }
  0x5f   :  { %846 = vmatpush1.bf16.msra.mxu1 %v194_v61  ;;  %774 = vmatprep.subr.bf16.mxu0 %v185_v62  ;;  %v244_v24 = vpack.c.bf16 %v180_v21, %v172_v13  ;;  %v111_v61 = vld [vmem:[%s5323_s6 + $0x1b8] sm:$0xff]  ;;  %v213_v4 = vpack.c.bf16 %v117_v60, %v109_v59  ;;  %v212_v21 = vpack.c.bf16 %v116_v5, %v108_v52  ;;  %v1192_v59 = vld [vmem:[%s5325_s8 + $0x380] sm:$0xff] }
  0x60   :  { %847 = vmatprep.subr.bf16.mxu1 %v187_v2  ;;  %792 = vmatprep.mubr.bf16.mxu0 %v2364_v3  ;;  %v119_v62 = vld [vmem:[%s5323_s6 + $0x1f8] sm:$0xff]  ;;  %v222_v2 = vpack.c.bf16 %v134_v58, %v126_v56  ;;  %v188_v56 = vpack.c.bf16 %v68_v46, %v60_v45  ;;  %v1200_v60 = vld [vmem:[%s5325_s8 + $0x3c0] sm:$0xff] }
  0x61   :  { %865 = vmatprep.mubr.bf16.mxu1 %v2364_v3  ;;  %v215_v7 = vpack.c.bf16 %v119_v62, %v111_v61  ;;  %v103_v13 = vld [vmem:[%s5323_s6 + $0x178] sm:$0xff]  ;;  %v1194_v61 = vld [vmem:[%s5325_s8 + $0x390] sm:$0xff]  ;;  %v1267_v62 = vpack.c.bf16 %v1203_v55, %v1195_v51  ;;  %v1264_v52 = vpack.c.bf16 %v1200_v60, %v1192_v59  ;;  %v1152_v33 = vld [vmem:[%s5325_s8 + $0x240] sm:$0xff] }
  0x62   :  { %775 = vmatpush1.bf16.msra.mxu0 %v184_v8  ;;  %v118_v8 = vld [vmem:[%s5323_s6 + $0x1f0] sm:$0xff]  ;;  %v1131_v40 = vld [vmem:[%s5325_s8 + $0x198] sm:$0xff]  ;;  %v1128_v45 = vld [vmem:[%s5325_s8 + $0x180] sm:$0xff] }
  0x63   :  { %848 = vmatpush1.bf16.msra.mxu1 %v186_v11  ;;  %906 = vmatprep.subr.bf16.mxu0 %v245_v12  ;;  %v3260_v11 = vpack.c.bf16 %v49_v1, %v48_v0  ;;  %v95_v12 = vld [vmem:[%s5323_s6 + $0x138] sm:$0xff]  ;;  %v214_v14 = vpack.c.bf16 %v118_v8, %v110_v6  ;;  %v1177_v0 = vld [vmem:[%s5325_s8 + $0x308] sm:$0xff]  ;;  %v1184_v8 = vld [vmem:[%s5325_s8 + $0x340] sm:$0xff] }
  0x64   :  { %979 = vmatprep.subr.bf16.mxu1 %v247_v15  ;;  %v205_v15 = vpack.c.bf16 %v101_v10, %v93_v9  ;;  %v207_v22 = vpack.c.bf16 %v103_v13, %v95_v12  ;;  %v1185_v1 = vld [vmem:[%s5325_s8 + $0x348] sm:$0xff]  ;;  %v1178_v9 = vld [vmem:[%s5325_s8 + $0x310] sm:$0xff]  ;;  %v1139_v41 = vld [vmem:[%s5325_s8 + $0x1d8] sm:$0xff] }
  0x65   :  { %793 = vmatmul.mubr.bf16.vlgmr.msra.gmra.mxu0 %v3140_v19  ;;  %v1257_v6 = vpack.c.bf16 %v1185_v1, %v1177_v0  ;;  %v1186_v12 = vld [vmem:[%s5325_s8 + $0x350] sm:$0xff]  ;;  %v1161_v13 = vld [vmem:[%s5325_s8 + $0x288] sm:$0xff]  ;;  %v1136_v46 = vld [vmem:[%s5325_s8 + $0x1c0] sm:$0xff] }
  0x66   :  { %866 = vmatmul.mubr.bf16.vlgmr.msra.gmra.mxu1 %v3140_v19  ;;  %907 = vmatpush1.bf16.msra.mxu0 %v244_v24  ;;  %v77_v24 = vld [vmem:[%s5323_s6 + $0xa8] sm:$0xff]  ;;  %v1258_v17 = vpack.c.bf16 %v1186_v12, %v1178_v9  ;;  %v1123_v51 = vld [vmem:[%s5325_s8 + $0x158] sm:$0xff]  ;;  %v1232_v55 = vpack.c.bf16 %v1136_v46, %v1128_v45  ;;  %v1120_v59 = vld [vmem:[%s5325_s8 + $0x140] sm:$0xff] }
  0x67   :  { %980 = vmatpush1.bf16.msra.mxu1 %v246_v25  ;;  %908 = vmatprep.subr.bf16.mxu0 %v237_v26  ;;  %v85_v25 = vld [vmem:[%s5323_s6 + $0xe8] sm:$0xff]  ;;  %v79_v26 = vld [vmem:[%s5323_s6 + $0xb8] sm:$0xff]  ;;  %v1114_v60 = vld [vmem:[%s5325_s8 + $0x110] sm:$0xff] }
  0x68   :  { %981 = vmatprep.subr.bf16.mxu1 %v239_v20  ;;  %802 = vmatprep.mubr.bf16.mxu0 %v2364_v3  ;;  %v51_v20 = vld [vmem:[%s5324_s1 + $0x38] sm:$0xff]  ;;  %v197_v31 = vpack.c.bf16 %v85_v25, %v77_v24  ;;  %v1162_v24 = vld [vmem:[%s5325_s8 + $0x290] sm:$0xff]  ;;  %v1105_v0 = vld [vmem:[%s5325_s8 + $0xc8] sm:$0xff] }
  0x69   :  { %875 = vmatprep.mubr.bf16.mxu1 %v2364_v3  ;;  %v1170_v25 = vld [vmem:[%s5325_s8 + $0x2d0] sm:$0xff]  ;;  %v1099_v1 = vld [vmem:[%s5325_s8 + $0x98] sm:$0xff]  ;;  %v1089_v12 = vld [vmem:[%s5325_s8 + $0x48] sm:$0xff] }
  0x6a   :  { %909 = vmatpush1.bf16.msra.mxu0 %v236_v35  ;;  %v199_v35 = vpack.c.bf16 %v87_v27, %v79_v26  ;;  %v1145_v26 = vld [vmem:[%s5325_s8 + $0x208] sm:$0xff]  ;;  %v1106_v9 = vld [vmem:[%s5325_s8 + $0xd0] sm:$0xff]  ;;  %v1191_v45 = vld [vmem:[%s5325_s8 + $0x378] sm:$0xff] }
  0x6b   :  { %982 = vmatpush1.bf16.msra.mxu1 %v238_v38  ;;  %910 = vmatprep.subr.bf16.mxu0 %v229_v39  ;;  %v69_v38 = vld [vmem:[%s5323_s6 + $0x68] sm:$0xff]  ;;  %v3320_v39 = vpack.c.bf16 %v51_v20, %v50_v29  ;;  %v1155_v29 = vld [vmem:[%s5325_s8 + $0x258] sm:$0xff]  ;;  %v1054_v46 = vld [vmem:[%s5326_s4 + $0x10] sm:$0xff] }
  0x6c   :  { %983 = vmatprep.subr.bf16.mxu1 %v231_v43  ;;  %v198_v43 = vpack.c.bf16 %v86_v36, %v78_v34  ;;  %v189_v44 = vpack.c.bf16 %v69_v38, %v61_v37  ;;  %v1153_v27 = vld [vmem:[%s5325_s8 + $0x248] sm:$0xff]  ;;  %v1146_v34 = vld [vmem:[%s5325_s8 + $0x210] sm:$0xff] }
  0x6d   :  { %803 = vmatmul.mubr.bf16.gmra.mxu0 %v3200_v47  ;;  %v1154_v36 = vld [vmem:[%s5325_s8 + $0x250] sm:$0xff]  ;;  %v1129_v37 = vld [vmem:[%s5325_s8 + $0x188] sm:$0xff] }
  0x6e   :  { %876 = vmatmul.mubr.bf16.gmra.mxu1 %v3200_v47  ;;  %911 = vmatpush1.bf16.msra.mxu0 %v228_v50  ;;  %v70_v50 = vld [vmem:[%s5323_s6 + $0x70] sm:$0xff]  ;;  %v1137_v38 = vld [vmem:[%s5325_s8 + $0x1c8] sm:$0xff] }
  0x6f   :  { %984 = vmatpush1.bf16.msra.mxu1 %v230_v53  ;;  %912 = vmatprep.subr.bf16.mxu0 %v221_v54  ;;  %v1193_v53 = vld [vmem:[%s5325_s8 + $0x388] sm:$0xff] }
  0x70   :  { %985 = vmatprep.subr.bf16.mxu1 %v223_v57  ;;  %812 = vmatprep.mubr.bf16.mxu0 %v2364_v3  ;;  %v1201_v54 = vld [vmem:[%s5325_s8 + $0x3c8] sm:$0xff]  ;;  %v190_v57 = vpack.c.bf16 %v70_v50, %v62_v48  ;;  %v1130_v48 = vld [vmem:[%s5325_s8 + $0x190] sm:$0xff] }
  0x71   :  { %885 = vmatprep.mubr.bf16.mxu1 %v2364_v3  ;;  %v1265_v58 = vpack.c.bf16 %v1201_v54, %v1193_v53  ;;  %v1113_v50 = vld [vmem:[%s5325_s8 + $0x108] sm:$0xff]  ;;  %v1115_v54 = vld [vmem:[%s5325_s8 + $0x118] sm:$0xff] }
  0x72   :  { %913 = vmatpush1.bf16.msra.mxu0 %v220_v63  ;;  %v1202_v63 = vld [vmem:[%s5325_s8 + $0x3d0] sm:$0xff]  ;;  %v1121_v53 = vld [vmem:[%s5325_s8 + $0x148] sm:$0xff] }
  0x73   :  { %986 = vmatpush1.bf16.msra.mxu1 %v222_v2  ;;  %914 = vmatprep.subr.bf16.mxu0 %v213_v4  ;;  %v1179_v2 = vld [vmem:[%s5325_s8 + $0x318] sm:$0xff]  ;;  %v1266_v5 = vpack.c.bf16 %v1202_v63, %v1194_v61  ;;  %v1227_v61 = vpack.c.bf16 %v1123_v51, %v1115_v54  ;;  %v1097_v63 = vld [vmem:[%s5325_s8 + $0x88] sm:$0xff]  ;;  %v1180_v51 = vld [vmem:[%s5325_s8 + $0x320] sm:$0xff] }
  0x74   :  { %987 = vmatprep.subr.bf16.mxu1 %v215_v7  ;;  %v1187_v4 = vld [vmem:[%s5325_s8 + $0x358] sm:$0xff]  ;;  %v1176_v7 = vld [vmem:[%s5325_s8 + $0x300] sm:$0xff] }
  0x75   :  { %813 = vmatmul.mubr.bf16.gmra.mxu0 %v3260_v11  ;;  %v1259_v10 = vpack.c.bf16 %v1187_v4, %v1179_v2  ;;  %v1256_v16 = vpack.c.bf16 %v1184_v8, %v1176_v7  ;;  %v1107_v2 = vld [vmem:[%s5325_s8 + $0xd8] sm:$0xff]  ;;  %v1104_v7 = vld [vmem:[%s5325_s8 + $0xc0] sm:$0xff]  ;;  %v1098_v8 = vld [vmem:[%s5325_s8 + $0x90] sm:$0xff] }
  0x76   :  { %886 = vmatmul.mubr.bf16.gmra.mxu1 %v3260_v11  ;;  %915 = vmatpush1.bf16.msra.mxu0 %v212_v21  ;;  %v1169_v21 = vld [vmem:[%s5325_s8 + $0x2c8] sm:$0xff] }
  0x77   :  { %988 = vmatpush1.bf16.msra.mxu1 %v214_v14  ;;  %916 = vmatprep.subr.bf16.mxu0 %v205_v15  ;;  %v1163_v14 = vld [vmem:[%s5325_s8 + $0x298] sm:$0xff]  ;;  %v1249_v18 = vpack.c.bf16 %v1169_v21, %v1161_v13 }
  0x78   :  { %989 = vmatprep.subr.bf16.mxu1 %v207_v22  ;;  %822 = vmatprep.mubr.bf16.mxu0 %v2364_v3  ;;  %v1171_v15 = vld [vmem:[%s5325_s8 + $0x2d8] sm:$0xff]  ;;  %v1160_v22 = vld [vmem:[%s5325_s8 + $0x280] sm:$0xff] }
  0x79   :  { %895 = vmatprep.mubr.bf16.mxu1 %v2364_v3  ;;  %v1248_v20 = vpack.c.bf16 %v1168_v23, %v1160_v22  ;;  %v1083_v13 = vld [vmem:[%s5325_s8 + $0x18] sm:$0xff]  ;;  %v1218_v22 = vpack.c.bf16 %v1106_v9, %v1098_v8  ;;  %v1174_v8 = vld [vmem:[%s5325_s8 + $0x2f0] sm:$0xff]  ;;  %v1157_v9 = vld [vmem:[%s5325_s8 + $0x268] sm:$0xff] }
  0x7a   :  { %917 = vmatpush1.bf16.msra.mxu0 %v204_v28  ;;  %v1147_v28 = vld [vmem:[%s5325_s8 + $0x218] sm:$0xff] }
  0x7b   :  { %990 = vmatpush1.bf16.msra.mxu1 %v206_v30  ;;  %918 = vmatprep.subr.bf16.mxu0 %v197_v31  ;;  %v1250_v30 = vpack.c.bf16 %v1170_v25, %v1162_v24  ;;  %v1241_v31 = vpack.c.bf16 %v1153_v27, %v1145_v26  ;;  %v1091_v21 = vld [vmem:[%s5325_s8 + $0x58] sm:$0xff]  ;;  %v1080_v24 = vld [vmem:[%s5325_s8] sm:$0xff]  ;;  %v1082_v25 = vld [vmem:[%s5325_s8 + $0x10] sm:$0xff] }
  0x7c   :  { %991 = vmatprep.subr.bf16.mxu1 %v199_v35  ;;  %v1243_v35 = vpack.c.bf16 %v1155_v29, %v1147_v28  ;;  %v1211_v26 = vpack.c.bf16 %v1091_v21, %v1083_v13  ;;  %v1090_v27 = vld [vmem:[%s5325_s8 + $0x50] sm:$0xff]  ;;  %v1197_v28 = vld [vmem:[%s5325_s8 + $0x3a8] sm:$0xff]  ;;  %v1159_v13 = vld [vmem:[%s5325_s8 + $0x278] sm:$0xff] }
  0x7d   :  { %823 = vmatmul.mubr.bf16.gmra.mxu0 %v3320_v39  ;;  %v1205_v29 = vld [vmem:[%s5325_s8 + $0x3e8] sm:$0xff]  ;;  %v1056_v21 = vld [vmem:[%s5326_s4 + $0x20] sm:$0xff] }
  0x7e   :  { %896 = vmatmul.mubr.bf16.gmra.mxu1 %v3320_v39  ;;  %919 = vmatpush1.bf16.msra.mxu0 %v196_v42  ;;  %v1240_v42 = vpack.c.bf16 %v1152_v33, %v1144_v32  ;;  %v1207_v32 = vld [vmem:[%s5325_s8 + $0x3f8] sm:$0xff] }
  0x7f   :  { %992 = vmatpush1.bf16.msra.mxu1 %v198_v43  ;;  %920 = vmatprep.subr.bf16.mxu0 %v189_v44  ;;  %v1242_v43 = vpack.c.bf16 %v1154_v36, %v1146_v34  ;;  %v1233_v44 = vpack.c.bf16 %v1137_v38, %v1129_v37  ;;  %v1210_v34 = vpack.c.bf16 %v1090_v27, %v1082_v25  ;;  %v1196_v36 = vld [vmem:[%s5325_s8 + $0x3a0] sm:$0xff]  ;;  %v1198_v38 = vld [vmem:[%s5325_s8 + $0x3b0] sm:$0xff]  ;;  %v1133_v27 = vld [vmem:[%s5325_s8 + $0x1a8] sm:$0xff] }
  0x80   :  { %993 = vmatprep.subr.bf16.mxu1 %v191_v49  ;;  %938 = vmatprep.mubr.bf16.mxu0 %v2364_v3  ;;  %v1138_v49 = vld [vmem:[%s5325_s8 + $0x1d0] sm:$0xff]  ;;  %v1204_v37 = vld [vmem:[%s5325_s8 + $0x3e0] sm:$0xff] }
  0x81   :  { %1011 = vmatprep.mubr.bf16.mxu1 %v2364_v3 }
  0x82   :  { %921 = vmatpush1.bf16.msra.mxu0 %v188_v56  ;;  %v1234_v56 = vpack.c.bf16 %v1138_v49, %v1130_v48  ;;  %v1268_v48 = vpack.c.bf16 %v1204_v37, %v1196_v36  ;;  %v1062_v49 = vld [vmem:[%s5327_s5 + $0x10] sm:$0xff]  ;;  %v1140_v36 = vld [vmem:[%s5325_s8 + $0x1e0] sm:$0xff] }
  0x83   :  { %994 = vmatpush1.bf16.msra.mxu1 %v190_v57  ;;  %1272 = vmatprep.subr.bf16.mxu0 %v1265_v58  ;;  %v1225_v57 = vpack.c.bf16 %v1121_v53, %v1113_v50  ;;  %v1112_v58 = vld [vmem:[%s5325_s8 + $0x100] sm:$0xff]  ;;  %v1063_v50 = vld [vmem:[%s5327_s5 + $0x18] sm:$0xff]  ;;  %v1134_v37 = vld [vmem:[%s5325_s8 + $0x1b0] sm:$0xff] }
  0x84   :  { %1345 = vmatprep.subr.bf16.mxu1 %v1267_v62  ;;  %v1122_v62 = vld [vmem:[%s5325_s8 + $0x150] sm:$0xff]  ;;  %v1224_v4 = vpack.c.bf16 %v1120_v59, %v1112_v58  ;;  %v1165_v59 = vld [vmem:[%s5325_s8 + $0x2a8] sm:$0xff] }
  0x85   :  { %939 = vmatmul.mubr.bf16.vlgmr.msra.gmra.mxu0 %v3140_v19  ;;  %v1190_v58 = vld [vmem:[%s5325_s8 + $0x370] sm:$0xff] }
  0x86   :  { %1012 = vmatmul.mubr.bf16.vlgmr.msra.gmra.mxu1 %v3140_v19  ;;  %1273 = vmatpush1.bf16.msra.mxu0 %v1264_v52  ;;  %v1251_v19 = vpack.c.bf16 %v1171_v15, %v1163_v14  ;;  %v1226_v52 = vpack.c.bf16 %v1122_v62, %v1114_v60  ;;  %v1052_v14 = vld [vmem:[%s5326_s4] sm:$0xff]  ;;  %v1173_v60 = vld [vmem:[%s5325_s8 + $0x2e8] sm:$0xff] }
  0x87   :  { %1346 = vmatpush1.bf16.msra.mxu1 %v1266_v5  ;;  %1274 = vmatprep.subr.bf16.mxu0 %v1257_v6  ;;  %v1217_v5 = vpack.c.bf16 %v1105_v0, %v1097_v63  ;;  %v1096_v6 = vld [vmem:[%s5325_s8 + $0x80] sm:$0xff]  ;;  %v1167_v63 = vld [vmem:[%s5325_s8 + $0x2b8] sm:$0xff] }
  0x88   :  { %1347 = vmatprep.subr.bf16.mxu1 %v1259_v10  ;;  %948 = vmatprep.mubr.bf16.mxu0 %v2364_v3  ;;  %v1081_v10 = vld [vmem:[%s5325_s8 + $0x8] sm:$0xff]  ;;  %v1216_v15 = vpack.c.bf16 %v1104_v7, %v1096_v6  ;;  %v1175_v0 = vld [vmem:[%s5325_s8 + $0x2f8] sm:$0xff]  ;;  %v1166_v6 = vld [vmem:[%s5325_s8 + $0x2b0] sm:$0xff] }
  0x89   :  { %1021 = vmatprep.mubr.bf16.mxu1 %v2364_v3  ;;  %v1209_v23 = vpack.c.bf16 %v1089_v12, %v1081_v10  ;;  %v1255_v7 = vpack.c.bf16 %v1175_v0, %v1167_v63  ;;  %v1151_v12 = vld [vmem:[%s5325_s8 + $0x238] sm:$0xff] }
  0x8a   :  { %1275 = vmatpush1.bf16.msra.mxu0 %v1256_v16  ;;  %v1053_v16 = vld [vmem:[%s5326_s4 + $0x8] sm:$0xff]  ;;  %v1247_v25 = vpack.c.bf16 %v1159_v13, %v1151_v12  ;;  %v1103_v63 = vld [vmem:[%s5325_s8 + $0xb8] sm:$0xff] }
  0x8b   :  { %1348 = vmatpush1.bf16.msra.mxu1 %v1258_v17  ;;  %1276 = vmatprep.subr.bf16.mxu0 %v1249_v18  ;;  %v1060_v17 = vld [vmem:[%s5327_s5] sm:$0xff]  ;;  %v1061_v18 = vld [vmem:[%s5327_s5 + $0x8] sm:$0xff]  ;;  %v1111_v0 = vld [vmem:[%s5325_s8 + $0xf8] sm:$0xff] }
  0x8c   :  { %1349 = vmatprep.subr.bf16.mxu1 %v1251_v19  ;;  %v1088_v19 = vld [vmem:[%s5325_s8 + $0x40] sm:$0xff]  ;;  %v1087_v13 = vld [vmem:[%s5325_s8 + $0x38] sm:$0xff] }
  0x8d   :  { %949 = vmatmul.mubr.bf16.gmra.mxu0 %v3200_v47  ;;  %v1208_v33 = vpack.c.bf16 %v1088_v19, %v1080_v24  ;;  %v1156_v24 = vld [vmem:[%s5325_s8 + $0x260] sm:$0xff]  ;;  %v1150_v19 = vld [vmem:[%s5325_s8 + $0x230] sm:$0xff] }
  0x8e   :  { %1022 = vmatmul.mubr.bf16.gmra.mxu1 %v3200_v47  ;;  %1277 = vmatpush1.bf16.msra.mxu0 %v1248_v20  ;;  %v1235_v47 = vpack.c.bf16 %v1139_v41, %v1131_v40  ;;  %v1068_v20 = vadd.f32 %v1060_v17, %v1052_v14  ;;  %v1206_v40 = vld [vmem:[%s5325_s8 + $0x3f0] sm:$0xff]  ;;  %v1181_v41 = vld [vmem:[%s5325_s8 + $0x328] sm:$0xff] }
  0x8f   :  { %1350 = vmatpush1.bf16.msra.mxu1 %v1250_v30  ;;  %1278 = vmatprep.subr.bf16.mxu0 %v1241_v31  ;;  %v1069_v30 = vadd.f32 %v1061_v18, %v1053_v16  ;;  %v1199_v31 = vld [vmem:[%s5325_s8 + $0x3b8] sm:$0xff]  ;;  %v1270_v53 = vpack.c.bf16 %v1206_v40, %v1198_v38  ;;  %v1064_v16 = vld [vmem:[%s5327_s5 + $0x20] sm:$0xff]  ;;  %v1065_v17 = vld [vmem:[%s5327_s5 + $0x28] sm:$0xff]  ;;  %v1254_v18 = vpack.c.bf16 %v1174_v8, %v1166_v6 }
  0x90   :  { %1351 = vmatprep.subr.bf16.mxu1 %v1243_v35  ;;  %958 = vmatprep.mubr.bf16.mxu0 %v2364_v3  ;;  %v1269_v35 = vpack.c.bf16 %v1205_v29, %v1197_v28  ;;  %v1141_v28 = vld [vmem:[%s5325_s8 + $0x1e8] sm:$0xff]  ;;  %v1072_v29 = vadd.f32 %v1064_v16, %v1056_v21  ;;  %v1102_v6 = vld [vmem:[%s5325_s8 + $0xb0] sm:$0xff]  ;;  %v1095_v21 = vld [vmem:[%s5325_s8 + $0x78] sm:$0xff] }
  0x91   :  { %1031 = vmatprep.mubr.bf16.mxu1 %v2364_v3  ;;  %v1117_v40 = vld [vmem:[%s5325_s8 + $0x128] sm:$0xff]  ;;  %v1110_v8 = vld [vmem:[%s5325_s8 + $0xf0] sm:$0xff] }
  0x92   :  { %1279 = vmatpush1.bf16.msra.mxu0 %v1240_v42  ;;  %v1189_v42 = vld [vmem:[%s5325_s8 + $0x368] sm:$0xff] }
  0x93   :  { %1352 = vmatpush1.bf16.msra.mxu1 %v1242_v43  ;;  %1280 = vmatprep.subr.bf16.mxu0 %v1233_v44  ;;  %v3594_v43 = vpack.c.bf16 %v1069_v30, %v1068_v20  ;;  %v1183_v44 = vld [vmem:[%s5325_s8 + $0x338] sm:$0xff]  ;;  %v1261_v54 = vpack.c.bf16 %v1189_v42, %v1181_v41  ;;  %v1125_v41 = vld [vmem:[%s5325_s8 + $0x168] sm:$0xff] }
  0x94   :  { %1353 = vmatprep.subr.bf16.mxu1 %v1235_v47  ;;  %v1055_v47 = vld [vmem:[%s5326_s4 + $0x18] sm:$0xff] }
  0x95   :  { %959 = vmatmul.mubr.bf16.gmra.mxu0 %v3260_v11  ;;  %v1071_v62 = vadd.f32 %v1063_v50, %v1055_v47  ;;  %v1135_v30 = vld [vmem:[%s5325_s8 + $0x1b8] sm:$0xff] }
  0x96   :  { %1032 = vmatmul.mubr.bf16.gmra.mxu1 %v3260_v11  ;;  %1281 = vmatpush1.bf16.msra.mxu0 %v1232_v55  ;;  %v1219_v11 = vpack.c.bf16 %v1107_v2, %v1099_v1  ;;  %v1188_v55 = vld [vmem:[%s5325_s8 + $0x360] sm:$0xff]  ;;  %v1059_v47 = vld [vmem:[%s5326_s4 + $0x38] sm:$0xff] }
  0x97   :  { %1354 = vmatpush1.bf16.msra.mxu1 %v1234_v56  ;;  %1282 = vmatprep.subr.bf16.mxu0 %v1225_v57  ;;  %v1182_v56 = vld [vmem:[%s5325_s8 + $0x330] sm:$0xff]  ;;  %v1263_v57 = vpack.c.bf16 %v1191_v45, %v1183_v44  ;;  %v1260_v1 = vpack.c.bf16 %v1188_v55, %v1180_v51  ;;  %v1119_v44 = vld [vmem:[%s5325_s8 + $0x138] sm:$0xff]  ;;  %v1116_v51 = vld [vmem:[%s5325_s8 + $0x120] sm:$0xff] }
  0x98   :  { %1355 = vmatprep.subr.bf16.mxu1 %v1227_v61  ;;  %968 = vmatprep.mubr.bf16.mxu0 %v2364_v3  ;;  %v1070_v61 = vadd.f32 %v1062_v49, %v1054_v46  ;;  %v1262_v2 = vpack.c.bf16 %v1190_v58, %v1182_v56  ;;  %v1127_v45 = vld [vmem:[%s5325_s8 + $0x178] sm:$0xff]  ;;  %v1058_v46 = vld [vmem:[%s5326_s4 + $0x30] sm:$0xff]  ;;  %v1124_v55 = vld [vmem:[%s5325_s8 + $0x160] sm:$0xff] }
  0x99   :  { %1041 = vmatprep.mubr.bf16.mxu1 %v2364_v3  ;;  %v1066_v49 = vld [vmem:[%s5327_s5 + $0x30] sm:$0xff]  ;;  %v1067_v50 = vld [vmem:[%s5327_s5 + $0x38] sm:$0xff] }
  0x9a   :  { %1283 = vmatpush1.bf16.msra.mxu0 %v1224_v4  ;;  %v1253_v4 = vpack.c.bf16 %v1173_v60, %v1165_v59  ;;  %v3660_v10 = vpack.c.bf16 %v1071_v62, %v1070_v61  ;;  %v1118_v56 = vld [vmem:[%s5325_s8 + $0x130] sm:$0xff]  ;;  %v1101_v59 = vld [vmem:[%s5325_s8 + $0xa8] sm:$0xff]  ;;  %v1074_v61 = vadd.f32 %v1066_v49, %v1058_v46  ;;  %v1075_v62 = vadd.f32 %v1067_v50, %v1059_v47 }
  0x9b   :  { %1356 = vmatpush1.bf16.msra.mxu1 %v1226_v52  ;;  %1284 = vmatprep.subr.bf16.mxu0 %v1217_v5  ;;  %v1164_v52 = vld [vmem:[%s5325_s8 + $0x2a0] sm:$0xff]  ;;  %v1126_v58 = vld [vmem:[%s5325_s8 + $0x170] sm:$0xff]  ;;  %v1109_v60 = vld [vmem:[%s5325_s8 + $0xe8] sm:$0xff] }
  0x9c   :  { %1357 = vmatprep.subr.bf16.mxu1 %v1219_v11  ;;  %v1172_v5 = vld [vmem:[%s5325_s8 + $0x2e0] sm:$0xff]  ;;  %v1149_v11 = vld [vmem:[%s5325_s8 + $0x228] sm:$0xff]  ;;  %v1079_v12 = vpack.c.bf16 %v1075_v62, %v1074_v61 }
  0x9d   :  { %969 = vmatmul.mubr.bf16.gmra.mxu0 %v3320_v39  ;;  %v1252_v14 = vpack.c.bf16 %v1172_v5, %v1164_v52  ;;  %v1100_v52 = vld [vmem:[%s5325_s8 + $0xa0] sm:$0xff] }
  0x9e   :  { %1042 = vmatmul.mubr.bf16.gmra.mxu1 %v3320_v39  ;;  %1285 = vmatpush1.bf16.msra.mxu0 %v1216_v15  ;;  %v1271_v39 = vpack.c.bf16 %v1207_v32, %v1199_v31  ;;  %v1057_v15 = vld [vmem:[%s5326_s4 + $0x28] sm:$0xff]  ;;  %v1143_v31 = vld [vmem:[%s5325_s8 + $0x1f8] sm:$0xff]  ;;  %v1108_v5 = vld [vmem:[%s5325_s8 + $0xe0] sm:$0xff] }
  0x9f   :  { %1358 = vmatpush1.bf16.msra.mxu1 %v1218_v22  ;;  %1286 = vmatprep.subr.bf16.mxu0 %v1209_v23  ;;  %v1245_v22 = vpack.c.bf16 %v1157_v9, %v1149_v11  ;;  %v1148_v23 = vld [vmem:[%s5325_s8 + $0x220] sm:$0xff]  ;;  %v1073_v20 = vadd.f32 %v1065_v17, %v1057_v15  ;;  %v1239_v38 = vpack.c.bf16 %v1143_v31, %v1135_v30  ;;  %v1085_v11 = vld [vmem:[%s5325_s8 + $0x28] sm:$0xff] }
  0xa0   :  { %1359 = vmatprep.subr.bf16.mxu1 %v1211_v26  ;;  %1304 = vmatprep.mubr.bf16.mxu0 %v2364_v3  ;;  %v1158_v26 = vld [vmem:[%s5325_s8 + $0x270] sm:$0xff]  ;;  %v1244_v32 = vpack.c.bf16 %v1156_v24, %v1148_v23  ;;  %v1093_v9 = vld [vmem:[%s5325_s8 + $0x68] sm:$0xff]  ;;  %v1222_v15 = vpack.c.bf16 %v1110_v8, %v1102_v6  ;;  %v1084_v17 = vld [vmem:[%s5325_s8 + $0x20] sm:$0xff] }
  0xa1   :  { %1377 = vmatprep.mubr.bf16.mxu1 %v2364_v3  ;;  %v3726_v42 = vpack.c.bf16 %v1073_v20, %v1072_v29  ;;  %v1213_v16 = vpack.c.bf16 %v1093_v9, %v1085_v11  ;;  %v1086_v23 = vld [vmem:[%s5325_s8 + $0x30] sm:$0xff] }
  0xa2   :  { %1287 = vmatpush1.bf16.msra.mxu0 %v1208_v33  ;;  %v1246_v33 = vpack.c.bf16 %v1158_v26, %v1150_v19  ;;  %v1094_v24 = vld [vmem:[%s5325_s8 + $0x70] sm:$0xff] }
  0xa3   :  { %1360 = vmatpush1.bf16.msra.mxu1 %v1210_v34  ;;  %1418 = vmatprep.subr.bf16.mxu0 %v1269_v35  ;;  %v1237_v34 = vpack.c.bf16 %v1141_v28, %v1133_v27  ;;  %v1132_v35 = vld [vmem:[%s5325_s8 + $0x1a0] sm:$0xff] }
  0xa4   :  { %1491 = vmatprep.subr.bf16.mxu1 %v1271_v39  ;;  %v1142_v39 = vld [vmem:[%s5325_s8 + $0x1f0] sm:$0xff] }
  0xa5   :  { %1305 = vmatmul.mubr.bf16.vlgmr.msra.gmra.mxu0 %v3594_v43 }
  0xa6   :  { %1378 = vmatmul.mubr.bf16.vlgmr.msra.gmra.mxu1 %v3594_v43  ;;  %1419 = vmatpush1.bf16.msra.mxu0 %v1268_v48  ;;  %v1236_v48 = vpack.c.bf16 %v1140_v36, %v1132_v35 }
  0xa7   :  { %1492 = vmatpush1.bf16.msra.mxu1 %v1270_v53  ;;  %1420 = vmatprep.subr.bf16.mxu0 %v1261_v54  ;;  %v1238_v53 = vpack.c.bf16 %v1142_v39, %v1134_v37  ;;  %v1229_v54 = vpack.c.bf16 %v1125_v41, %v1117_v40 }
  0xa8   :  { %1493 = vmatprep.subr.bf16.mxu1 %v1263_v57  ;;  %1314 = vmatprep.mubr.bf16.mxu0 %v2364_v3  ;;  %v1231_v57 = vpack.c.bf16 %v1127_v45, %v1119_v44 }
  0xa9   :  { %1387 = vmatprep.mubr.bf16.mxu1 %v2364_v3 }
  0xaa   :  { %1421 = vmatpush1.bf16.msra.mxu0 %v1260_v1  ;;  %v1228_v1 = vpack.c.bf16 %v1124_v55, %v1116_v51 }
  0xab   :  { %1494 = vmatpush1.bf16.msra.mxu1 %v1262_v2  ;;  %1422 = vmatprep.subr.bf16.mxu0 %v1253_v4  ;;  %v1230_v2 = vpack.c.bf16 %v1126_v58, %v1118_v56  ;;  %v1221_v4 = vpack.c.bf16 %v1109_v60, %v1101_v59 }
  0xac   :  { %1495 = vmatprep.subr.bf16.mxu1 %v1255_v7  ;;  %v1223_v7 = vpack.c.bf16 %v1111_v0, %v1103_v63 }
  0xad   :  { %1315 = vmatmul.mubr.bf16.gmra.mxu0 %v3660_v10 }
  0xae   :  { %1388 = vmatmul.mubr.bf16.gmra.mxu1 %v3660_v10  ;;  %1423 = vmatpush1.bf16.msra.mxu0 %v1252_v14  ;;  %v1220_v14 = vpack.c.bf16 %v1108_v5, %v1100_v52 }
  0xaf   :  { %1496 = vmatpush1.bf16.msra.mxu1 %v1254_v18  ;;  %1424 = vmatprep.subr.bf16.mxu0 %v1245_v22  ;;  %v1092_v18 = vld [vmem:[%s5325_s8 + $0x60] sm:$0xff]  ;;  %v1215_v22 = vpack.c.bf16 %v1095_v21, %v1087_v13 }
  0xb0   :  { %1497 = vmatprep.subr.bf16.mxu1 %v1247_v25  ;;  %1324 = vmatprep.mubr.bf16.mxu0 %v2364_v3  ;;  %v1212_v19 = vpack.c.bf16 %v1092_v18, %v1084_v17  ;;  %v1214_v25 = vpack.c.bf16 %v1094_v24, %v1086_v23 }
  0xb1   :  { %1397 = vmatprep.mubr.bf16.mxu1 %v2364_v3 }
  0xb2   :  { %1425 = vmatpush1.bf16.msra.mxu0 %v1244_v32 }
  0xb3   :  { %1498 = vmatpush1.bf16.msra.mxu1 %v1246_v33  ;;  %1426 = vmatprep.subr.bf16.mxu0 %v1237_v34 }
  0xb4   :  { %1499 = vmatprep.subr.bf16.mxu1 %v1239_v38 }
  0xb5   :  { %1325 = vmatmul.mubr.bf16.gmra.mxu0 %v3726_v42 }
  0xb6   :  { %1398 = vmatmul.mubr.bf16.gmra.mxu1 %v3726_v42  ;;  %1427 = vmatpush1.bf16.msra.mxu0 %v1236_v48 }
  0xb7   :  { %1500 = vmatpush1.bf16.msra.mxu1 %v1238_v53  ;;  %1428 = vmatprep.subr.bf16.mxu0 %v1229_v54 }
  0xb8   :  { %1501 = vmatprep.subr.bf16.mxu1 %v1231_v57  ;;  %1334 = vmatprep.mubr.bf16.mxu0 %v2364_v3 }
  0xb9   :  { %1407 = vmatprep.mubr.bf16.mxu1 %v2364_v3 }
  0xba   :  { %1429 = vmatpush1.bf16.msra.mxu0 %v1228_v1 }
  0xbb   :  { %1502 = vmatpush1.bf16.msra.mxu1 %v1230_v2  ;;  %1430 = vmatprep.subr.bf16.mxu0 %v1221_v4 }
  0xbc   :  { %1503 = vmatprep.subr.bf16.mxu1 %v1223_v7 }
  0xbd   :  { %1335 = vmatmul.mubr.bf16.gmra.mxu0 %v1079_v12 }
  0xbe   :  { %1408 = vmatmul.mubr.bf16.gmra.mxu1 %v1079_v12  ;;  %1431 = vmatpush1.bf16.msra.mxu0 %v1220_v14 }
  0xbf   :  { %1504 = vmatpush1.bf16.msra.mxu1 %v1222_v15  ;;  %1432 = vmatprep.subr.bf16.mxu0 %v1213_v16 }
  0xc0   :  { %1505 = vmatprep.subr.bf16.mxu1 %v1215_v22  ;;  %1450 = vmatprep.mubr.bf16.mxu0 %v2364_v3 }
  0xc1   :  { %1523 = vmatprep.mubr.bf16.mxu1 %v2364_v3 }
  0xc2   :  { %1433 = vmatpush1.bf16.msra.mxu0 %v1212_v19 }
  0xc3   :  { %1506 = vmatpush1.bf16.msra.mxu1 %v1214_v25 }
  0xc5   :  { %1451 = vmatmul.mubr.bf16.vlgmr.msra.gmra.mxu0 %v3594_v43 }
  0xc6   :  { %1524 = vmatmul.mubr.bf16.vlgmr.msra.gmra.mxu1 %v3594_v43  ;;  %1460 = vmatprep.mubr.bf16.mxu0 %v2364_v3 }
  0xc7   :  { %1533 = vmatprep.mubr.bf16.mxu1 %v2364_v3 }
  0xcd   :  { %1461 = vmatmul.mubr.bf16.gmra.mxu0 %v3660_v10 }
  0xce   :  { %1534 = vmatmul.mubr.bf16.gmra.mxu1 %v3660_v10  ;;  %1470 = vmatprep.mubr.bf16.mxu0 %v2364_v3 }
  0xcf   :  { %1543 = vmatprep.mubr.bf16.mxu1 %v2364_v3 }
  0xd5   :  { %1471 = vmatmul.mubr.bf16.gmra.mxu0 %v3726_v42 }
  0xd6   :  { %1544 = vmatmul.mubr.bf16.gmra.mxu1 %v3726_v42  ;;  %1480 = vmatprep.mubr.bf16.mxu0 %v2364_v3 }
  0xd7   :  { %1553 = vmatprep.mubr.bf16.mxu1 %v2364_v3 }
  0xdd   :  { %1481 = vmatmul.mubr.bf16.gmra.mxu0 %v1079_v12 }
  0xde   :  { %1554 = vmatmul.mubr.bf16.gmra.mxu1 %v1079_v12 }
  0xe5   :  { %v3824_v43 = vpop.f32.mrf.mxu0 }
  0xe6   :  { %v3826_v26 = vpop.f32.mrf.mxu1 }
  0xe7   :  { %v3828_v27 = vpop.f32.mrf.mxu0 }
  0xe8   :  { %v3830_v10 = vpop.f32.mrf.mxu1 }
  0xe9   :  { %v3832_v28 = vpop.f32.mrf.mxu0 }
  0xea   :  { %v3834_v29 = vpop.f32.mrf.mxu1 }
  0xeb   :  { %v3836_v20 = vpop.f32.mrf.mxu0 }
  0xec   :  { %v3838_v30 = vpop.f32.mrf.mxu1 }
  0xed   :  { %v3840_v31 = vpop.f32.mrf.mxu0 }
  0xee   :  { %v3842_v3 = vpop.f32.mrf.mxu1 }
  0xef   :  { %v3844_v32 = vpop.f32.mrf.mxu0 }
  0xf0   :  { %v3846_v33 = vpop.f32.mrf.mxu1 }
  0xf1   :  { %v3848_v34 = vpop.f32.mrf.mxu0 }
  0xf2   :  { %v3850_v35 = vpop.f32.mrf.mxu1 }
  0xf3   :  { %v3852_v36 = vpop.f32.mrf.mxu0 }
  0xf4   :  { %v3854_v37 = vpop.f32.mrf.mxu1 }
  0xf5   :  { %v3856_v38 = vpop.f32.mrf.mxu0 }
  0xf6   :  { %v3858_v39 = vpop.f32.mrf.mxu1 }
  0xf7   :  { %v3860_v40 = vpop.f32.mrf.mxu0 }
  0xf8   :  { %v3862_v41 = vpop.f32.mrf.mxu1 }
  0xf9   :  { %v3864_v42 = vpop.f32.mrf.mxu0 }
  0xfa   :  { %v3866_v44 = vpop.f32.mrf.mxu1 }
  0xfb   :  { %v3868_v45 = vpop.f32.mrf.mxu0 }
  0xfc   :  { %v3870_v46 = vpop.f32.mrf.mxu1 }
  0xfd   :  { %v3872_v48 = vpop.f32.mrf.mxu0 }
  0xfe   :  { %5461 = vst [vmem:[#allocation10_spill] sm:$0xff] %v3872_v48  ;;  %v3874_v47 = vpop.f32.mrf.mxu1  ;;  %v4463_v48 = vld [vmem:[%s5330_s11 + $0x58] sm:$0xff] }
  0xff   :  { %5462 = vst [vmem:[#allocation11_spill] sm:$0xff] %v3874_v47  ;;  %v3876_v49 = vpop.f32.mrf.mxu0  ;;  %v4423_v47 = vld [vmem:[%s5330_s11 + $0x28] sm:$0xff]  ;;  %5583 = vst [vmem:[#allocation132_spill] sm:$0xff] %v4463_v48 }
 0x100   :  { %5463 = vst [vmem:[#allocation12_spill] sm:$0xff] %v3876_v49  ;;  %v3878_v50 = vpop.f32.mrf.mxu1  ;;  %v4364_v49 = vld [vmem:[%s5328_s10 + $0x1e0] sm:$0xff]  ;;  %5575 = vst [vmem:[#allocation124_spill] sm:$0xff] %v4423_v47 }
 0x101   :  { %5464 = vst [vmem:[#allocation13_spill] sm:$0xff] %v3878_v50  ;;  %v3880_v53 = vpop.f32.mrf.mxu0  ;;  %v4359_v50 = vld [vmem:[%s5328_s10 + $0x1d8] sm:$0xff]  ;;  %5563 = vst [vmem:[#allocation112_spill] sm:$0xff] %v4364_v49 }
 0x102   :  { %5465 = vst [vmem:[#allocation14_spill] sm:$0xff] %v3880_v53  ;;  %v3882_v54 = vpop.f32.mrf.mxu1  ;;  %v4303_v53 = vld [vmem:[%s5328_s10 + $0x198] sm:$0xff]  ;;  %5562 = vst [vmem:[#allocation111_spill] sm:$0xff] %v4359_v50 }
 0x103   :  { %5466 = vst [vmem:[#allocation15_spill] sm:$0xff] %v3882_v54  ;;  %v3884_v51 = vpop.f32.mrf.mxu0  ;;  %v4298_v54 = vld [vmem:[%s5328_s10 + $0x190] sm:$0xff]  ;;  %5553 = vst [vmem:[#allocation102_spill] sm:$0xff] %v4303_v53  ;;  %v4435_v50 = vld [vmem:[%s5330_s11 + $0x38] sm:$0xff] }
 0x104   :  { %5467 = vst [vmem:[#allocation16_spill] sm:$0xff] %v3884_v51  ;;  %v3886_v55 = vpop.f32.mrf.mxu1  ;;  %5552 = vst [vmem:[#allocation101_spill] sm:$0xff] %v4298_v54  ;;  %v4381_v54 = vld [vmem:[%s5328_s10 + $0x1f8] sm:$0xff]  ;;  %v4406_v53 = vld [vmem:[%s5330_s11 + $0x10] sm:$0xff] }
 0x105   :  { %5468 = vst [vmem:[#allocation17_spill] sm:$0xff] %v3886_v55  ;;  %v3888_v56 = vpop.f32.mrf.mxu0  ;;  %v4369_v55 = vld [vmem:[%s5328_s10 + $0x1e8] sm:$0xff]  ;;  %5567 = vst [vmem:[#allocation116_spill] sm:$0xff] %v4381_v54  ;;  %v4440_v54 = vld [vmem:[%s5330_s11 + $0x40] sm:$0xff] }
 0x106   :  { %5469 = vst [vmem:[#allocation18_spill] sm:$0xff] %v3888_v56  ;;  %v3890_v57 = vpop.f32.mrf.mxu1  ;;  %v4247_v56 = vld [vmem:[%s5328_s10 + $0x158] sm:$0xff]  ;;  %5564 = vst [vmem:[#allocation113_spill] sm:$0xff] %v4369_v55  ;;  %v4468_v55 = vld [vmem:[%s5330_s11 + $0x60] sm:$0xff] }
 0x107   :  { %5470 = vst [vmem:[#allocation19_spill] sm:$0xff] %v3890_v57  ;;  %v3892_v58 = vpop.f32.mrf.mxu0  ;;  %v4242_v57 = vld [vmem:[%s5328_s10 + $0x150] sm:$0xff]  ;;  %5545 = vst [vmem:[#allocation94_spill] sm:$0xff] %v4247_v56  ;;  %v4336_v56 = vld [vmem:[%s5328_s10 + $0x1c0] sm:$0xff] }
 0x108   :  { %5471 = vst [vmem:[#allocation20_spill] sm:$0xff] %v3892_v58  ;;  %v3894_v59 = vpop.f32.mrf.mxu1  ;;  %v4204_v58 = vld [vmem:[%s5328_s10 + $0x120] sm:$0xff]  ;;  %5544 = vst [vmem:[#allocation93_spill] sm:$0xff] %v4242_v57  ;;  %v4317_v57 = vld [vmem:[%s5328_s10 + $0x1a8] sm:$0xff] }
 0x109   :  { %5472 = vst [vmem:[#allocation21_spill] sm:$0xff] %v3894_v59  ;;  %v3896_v60 = vpop.f32.mrf.mxu0  ;;  %v4199_v59 = vld [vmem:[%s5328_s10 + $0x118] sm:$0xff]  ;;  %5538 = vst [vmem:[#allocation87_spill] sm:$0xff] %v4204_v58  ;;  %v4258_v58 = vld [vmem:[%s5328_s10 + $0x160] sm:$0xff] }
 0x10a   :  { %5473 = vst [vmem:[#allocation22_spill] sm:$0xff] %v3896_v60  ;;  %v3898_v61 = vpop.f32.mrf.mxu1  ;;  %v4143_v60 = vld [vmem:[%s5328_s10 + $0xd8] sm:$0xff]  ;;  %5537 = vst [vmem:[#allocation86_spill] sm:$0xff] %v4199_v59  ;;  %v4308_v59 = vld [vmem:[%s5328_s10 + $0x1a0] sm:$0xff] }
 0x10b   :  { %5474 = vst [vmem:[#allocation23_spill] sm:$0xff] %v3898_v61  ;;  %v3900_v62 = vpop.f32.mrf.mxu0  ;;  %v4138_v61 = vld [vmem:[%s5328_s10 + $0xd0] sm:$0xff]  ;;  %5529 = vst [vmem:[#allocation78_spill] sm:$0xff] %v4143_v60 }
 0x10c   :  { %5475 = vst [vmem:[#allocation24_spill] sm:$0xff] %v3900_v62  ;;  %v3902_v63 = vpop.f32.mrf.mxu1  ;;  %5528 = vst [vmem:[#allocation77_spill] sm:$0xff] %v4138_v61  ;;  %v4221_v61 = vld [vmem:[%s5328_s10 + $0x138] sm:$0xff] }
 0x10d   :  { %5476 = vst [vmem:[#allocation25_spill] sm:$0xff] %v3902_v63  ;;  %v3904_v0 = vpop.f32.mrf.mxu0  ;;  %v4209_v63 = vld [vmem:[%s5328_s10 + $0x128] sm:$0xff]  ;;  %5541 = vst [vmem:[#allocation90_spill] sm:$0xff] %v4221_v61 }
 0x10e   :  { %5477 = vst [vmem:[#allocation26_spill] sm:$0xff] %v3904_v0  ;;  %v3906_v1 = vpop.f32.mrf.mxu1  ;;  %v4087_v0 = vld [vmem:[%s5328_s10 + $0x98] sm:$0xff]  ;;  %5539 = vst [vmem:[#allocation88_spill] sm:$0xff] %v4209_v63  ;;  %v4268_v63 = vld [vmem:[%s5328_s10 + $0x170] sm:$0xff] }
 0x10f   :  { %5478 = vst [vmem:[#allocation27_spill] sm:$0xff] %v3906_v1  ;;  %v3908_v2 = vpop.f32.mrf.mxu0  ;;  %v4082_v1 = vld [vmem:[%s5328_s10 + $0x90] sm:$0xff]  ;;  %5521 = vst [vmem:[#allocation70_spill] sm:$0xff] %v4087_v0  ;;  %v4176_v0 = vld [vmem:[%s5328_s10 + $0x100] sm:$0xff] }
 0x110   :  { %5479 = vst [vmem:[#allocation28_spill] sm:$0xff] %v3908_v2  ;;  %v3910_v4 = vpop.f32.mrf.mxu1  ;;  %v4044_v2 = vld [vmem:[%s5328_s10 + $0x60] sm:$0xff]  ;;  %5520 = vst [vmem:[#allocation69_spill] sm:$0xff] %v4082_v1  ;;  %v4157_v1 = vld [vmem:[%s5328_s10 + $0xe8] sm:$0xff] }
 0x111   :  { %5480 = vst [vmem:[#allocation29_spill] sm:$0xff] %v3910_v4  ;;  %v3912_v52 = vpop.f32.mrf.mxu0  ;;  %v4039_v4 = vld [vmem:[%s5328_s10 + $0x58] sm:$0xff]  ;;  %5514 = vst [vmem:[#allocation63_spill] sm:$0xff] %v4044_v2  ;;  %v4098_v2 = vld [vmem:[%s5328_s10 + $0xa0] sm:$0xff] }
 0x112   :  { %5481 = vst [vmem:[#allocation30_spill] sm:$0xff] %v3912_v52  ;;  %v3914_v5 = vpop.f32.mrf.mxu1  ;;  %5513 = vst [vmem:[#allocation62_spill] sm:$0xff] %v4039_v4  ;;  %v4148_v4 = vld [vmem:[%s5328_s10 + $0xe0] sm:$0xff] }
 0x113   :  { %5482 = vst [vmem:[#allocation31_spill] sm:$0xff] %v3914_v5  ;;  %v3916_v6 = vpop.f32.mrf.mxu0  ;;  %v4026_v5 = vld [vmem:[%s5328_s10 + $0x50] sm:$0xff]  ;;  %5522 = vst [vmem:[#allocation71_spill] sm:$0xff] %v4098_v2 }
 0x114   :  { %5483 = vst [vmem:[#allocation32_spill] sm:$0xff] %v3916_v6  ;;  %v3918_v7 = vpop.f32.mrf.mxu1  ;;  %v4021_v6 = vld [vmem:[%s5328_s10 + $0x48] sm:$0xff]  ;;  %5512 = vst [vmem:[#allocation61_spill] sm:$0xff] %v4026_v5  ;;  %v4120_v5 = vld [vmem:[%s5328_s10 + $0xc0] sm:$0xff] }
 0x115   :  { %5484 = vst [vmem:[#allocation33_spill] sm:$0xff] %v3918_v7  ;;  %v3920_v8 = vpop.f32.mrf.mxu0  ;;  %v4016_v7 = vld [vmem:[%s5328_s10 + $0x40] sm:$0xff]  ;;  %5511 = vst [vmem:[#allocation60_spill] sm:$0xff] %v4021_v6  ;;  %v4103_v6 = vld [vmem:[%s5328_s10 + $0xa8] sm:$0xff] }
 0x116   :  { %5485 = vst [vmem:[#allocation34_spill] sm:$0xff] %v3920_v8  ;;  %v3922_v11 = vpop.f32.mrf.mxu1  ;;  %5510 = vst [vmem:[#allocation59_spill] sm:$0xff] %v4016_v7 }
 0x117   :  { %5486 = vst [vmem:[#allocation35_spill] sm:$0xff] %v3922_v11  ;;  %v3924_v9 = vpop.f32.mrf.mxu0  ;;  %v4049_v11 = vld [vmem:[%s5328_s10 + $0x68] sm:$0xff]  ;;  %5523 = vst [vmem:[#allocation72_spill] sm:$0xff] %v4103_v6 }
 0x118   :  { %5487 = vst [vmem:[#allocation36_spill] sm:$0xff] %v3924_v9  ;;  %v3926_v12 = vpop.f32.mrf.mxu1  ;;  %5515 = vst [vmem:[#allocation64_spill] sm:$0xff] %v4049_v11  ;;  %v4108_v11 = vld [vmem:[%s5328_s10 + $0xb0] sm:$0xff] }
 0x119   :  { %5488 = vst [vmem:[#allocation37_spill] sm:$0xff] %v3926_v12  ;;  %v3928_v13 = vpop.f32.mrf.mxu0  ;;  %v3990_v12 = vld [vmem:[%s5328_s10 + $0x20] sm:$0xff]  ;;  %5524 = vst [vmem:[#allocation73_spill] sm:$0xff] %v4108_v11  ;;  %v4162_v11 = vld [vmem:[%s5328_s10 + $0xf0] sm:$0xff] }
 0x11a   :  { %5489 = vst [vmem:[#allocation38_spill] sm:$0xff] %v3928_v13  ;;  %v3930_v21 = vpop.f32.mrf.mxu1  ;;  %v3985_v13 = vld [vmem:[%s5328_s10 + $0x18] sm:$0xff]  ;;  %5506 = vst [vmem:[#allocation55_spill] sm:$0xff] %v3990_v12  ;;  %v4056_v12 = vld [vmem:[%s5328_s10 + $0x70] sm:$0xff] }
 0x11b   :  { %5490 = vst [vmem:[#allocation39_spill] sm:$0xff] %v3930_v21  ;;  %v3932_v14 = vpop.f32.mrf.mxu0  ;;  %5505 = vst [vmem:[#allocation54_spill] sm:$0xff] %v3985_v13 }
 0x11c   :  { %5491 = vst [vmem:[#allocation40_spill] sm:$0xff] %v3932_v14  ;;  %v3934_v15 = vpop.f32.mrf.mxu1  ;;  %5516 = vst [vmem:[#allocation65_spill] sm:$0xff] %v4056_v12  ;;  %v4125_v12 = vld [vmem:[%s5328_s10 + $0xc8] sm:$0xff] }
 0x11d   :  { %5492 = vst [vmem:[#allocation41_spill] sm:$0xff] %v3934_v15  ;;  %v3936_v16 = vpop.f32.mrf.mxu0  ;;  %5526 = vst [vmem:[#allocation75_spill] sm:$0xff] %v4120_v5  ;;  %v4216_v5 = vld [vmem:[%s5328_s10 + $0x130] sm:$0xff] }
 0x11e   :  { %5493 = vst [vmem:[#allocation42_spill] sm:$0xff] %v3936_v16  ;;  %v3938_v17 = vpop.f32.mrf.mxu1  ;;  %5527 = vst [vmem:[#allocation76_spill] sm:$0xff] %v4125_v12 }
 0x11f   :  { %5494 = vst [vmem:[#allocation43_spill] sm:$0xff] %v3938_v17  ;;  %v3940_v18 = vpop.f32.mrf.mxu0  ;;  %v3980_v17 = vld [vmem:[%s5329_s0] sm:$0xff]  ;;  %5530 = vst [vmem:[#allocation79_spill] sm:$0xff] %v4148_v4 }
 0x120   :  { %5495 = vst [vmem:[#allocation44_spill] sm:$0xff] %v3940_v18  ;;  %v3942_v22 = vpop.f32.mrf.mxu1  ;;  %v2366_v18 = vmov -1e+30   ;;  %5504 = vst [vmem:[#allocation53_spill] sm:$0xff] %v3980_v17  ;;  %v4007_v17 = vld [vmem:[%s5328_s10 + $0x38] sm:$0xff] }
 0x121   :  { %5496 = vst [vmem:[#allocation45_spill] sm:$0xff] %v3942_v22  ;;  %v3944_v23 = vpop.f32.mrf.mxu0  ;;  %v3963_v22 = vld [vmem:[%s5328_s10] sm:$0xff]  ;;  %1802 = vst [vmem:[#allocation8] sm:$0xff] %v2366_v18 }
 0x122   :  { %5497 = vst [vmem:[#allocation46_spill] sm:$0xff] %v3944_v23  ;;  %v3946_v24 = vpop.f32.mrf.mxu1  ;;  %5501 = vst [vmem:[#allocation50_spill] sm:$0xff] %v3963_v22  ;;  %v2365_v23 = vmov 0.0  }
 0x123   :  { %5498 = vst [vmem:[#allocation47_spill] sm:$0xff] %v3946_v24  ;;  %v3948_v19 = vpop.f32.mrf.mxu0  ;;  %v3968_v24 = vld [vmem:[%s5328_s10 + $0x8] sm:$0xff]  ;;  %1798 = vst [vmem:[#allocation4] sm:$0xff] %v2365_v23 }
 0x124   :  { %5499 = vst [vmem:[#allocation48_spill] sm:$0xff] %v3948_v19  ;;  %v3950_v25 = vpop.f32.mrf.mxu1  ;;  %5502 = vst [vmem:[#allocation51_spill] sm:$0xff] %v3968_v24 }
 0x125   :  { %5500 = vst [vmem:[#allocation49_spill] sm:$0xff] %v3950_v25  ;;  %v3952_v21 = vpop.f32.mrf.mxu0  ;;  %v3973_v25 = vld [vmem:[%s5328_s10 + $0x10] sm:$0xff]  ;;  %1799 = vst [vmem:[#allocation5] sm:$0xff] %v2365_v23 }
 0x126   :  { %v3954_v14 = vpop.f32.mrf.mxu1  ;;  %5503 = vst [vmem:[#allocation52_spill] sm:$0xff] %v3973_v25  ;;  %1800 = vst [vmem:[#allocation6] sm:$0xff] %v2365_v23  ;;  %v4061_v25 = vld [vmem:[%s5328_s10 + $0x78] sm:$0xff] }
 0x127   :  { %v3956_v15 = vpop.f32.mrf.mxu0  ;;  %1801 = vst [vmem:[#allocation7] sm:$0xff] %v2365_v23  ;;  %1803 = vst [vmem:[#allocation9] sm:$0xff] %v2366_v18  ;;  %v3997_v18 = vld [vmem:[%s5328_s10 + $0x28] sm:$0xff]  ;;  %v4002_v23 = vld [vmem:[%s5328_s10 + $0x30] sm:$0xff] }
 0x128   :  { %v3958_v16 = vpop.f32.mrf.mxu1  ;;  %5507 = vst [vmem:[#allocation56_spill] sm:$0xff] %v3997_v18  ;;  %5508 = vst [vmem:[#allocation57_spill] sm:$0xff] %v4002_v23  ;;  %v4066_v23 = vld [vmem:[%s5328_s10 + $0x80] sm:$0xff]  ;;  %v4077_v18 = vld [vmem:[%s5328_s10 + $0x88] sm:$0xff] }
 0x129   :  { %v3975_v19 = vpop.f32.mrf.mxu0  ;;  %5509 = vst [vmem:[#allocation58_spill] sm:$0xff] %v4007_v17  ;;  %5517 = vst [vmem:[#allocation66_spill] sm:$0xff] %v4061_v25  ;;  %v4115_v17 = vld [vmem:[%s5328_s10 + $0xb8] sm:$0xff] }
 0x12a   :  { %v3992_v9 = vpop.f32.mrf.mxu1  ;;  %5518 = vst [vmem:[#allocation67_spill] sm:$0xff] %v4066_v23  ;;  %5519 = vst [vmem:[#allocation68_spill] sm:$0xff] %v4077_v18  ;;  %v4167_v23 = vld [vmem:[%s5328_s10 + $0xf8] sm:$0xff]  ;;  %v4186_v18 = vld [vmem:[%s5328_s10 + $0x110] sm:$0xff] }
 0x12b   :  { %v4011_v8 = vpop.f32.mrf.mxu0  ;;  %5525 = vst [vmem:[#allocation74_spill] sm:$0xff] %v4115_v17  ;;  %5531 = vst [vmem:[#allocation80_spill] sm:$0xff] %v4157_v1  ;;  %v4181_v17 = vld [vmem:[%s5328_s10 + $0x108] sm:$0xff] }
 0x12c   :  { %v4034_v52 = vpop.f32.mrf.mxu1  ;;  %5532 = vst [vmem:[#allocation81_spill] sm:$0xff] %v4162_v11  ;;  %5533 = vst [vmem:[#allocation82_spill] sm:$0xff] %v4167_v23  ;;  %v4226_v11 = vld [vmem:[%s5328_s10 + $0x140] sm:$0xff]  ;;  %v4237_v1 = vld [vmem:[%s5328_s10 + $0x148] sm:$0xff] }
 0x12d   :  { %v4051_v22 = vpop.f32.mrf.mxu0  ;;  %5534 = vst [vmem:[#allocation83_spill] sm:$0xff] %v4176_v0  ;;  %5535 = vst [vmem:[#allocation84_spill] sm:$0xff] %v4181_v17  ;;  %v4263_v17 = vld [vmem:[%s5328_s10 + $0x168] sm:$0xff]  ;;  %v4275_v23 = vld [vmem:[%s5328_s10 + $0x178] sm:$0xff] }
 0x12e   :  { %v4072_v24 = vpop.f32.mrf.mxu1  ;;  %5536 = vst [vmem:[#allocation85_spill] sm:$0xff] %v4186_v18  ;;  %5540 = vst [vmem:[#allocation89_spill] sm:$0xff] %v4216_v5  ;;  %v4280_v18 = vld [vmem:[%s5328_s10 + $0x180] sm:$0xff]  ;;  %v4285_v5 = vld [vmem:[%s5328_s10 + $0x188] sm:$0xff] }
 0x12f   :  { %v4093_v7 = vpop.f32.mrf.mxu0  ;;  %5542 = vst [vmem:[#allocation91_spill] sm:$0xff] %v4226_v11  ;;  %5543 = vst [vmem:[#allocation92_spill] sm:$0xff] %v4237_v1  ;;  %v4327_v11 = vld [vmem:[%s5328_s10 + $0x1b8] sm:$0xff]  ;;  %v4346_v1 = vld [vmem:[%s5328_s10 + $0x1d0] sm:$0xff] }
 0x130   :  { %v4110_v13 = vpop.f32.mrf.mxu1  ;;  %5546 = vst [vmem:[#allocation95_spill] sm:$0xff] %v4258_v58  ;;  %5547 = vst [vmem:[#allocation96_spill] sm:$0xff] %v4263_v17 }
 0x131   :  { %v4133_v62 = vpop.f32.mrf.mxu0  ;;  %5548 = vst [vmem:[#allocation97_spill] sm:$0xff] %v4268_v63  ;;  %5549 = vst [vmem:[#allocation98_spill] sm:$0xff] %v4275_v23  ;;  %v4322_v63 = vld [vmem:[%s5328_s10 + $0x1b0] sm:$0xff]  ;;  %v4341_v23 = vld [vmem:[%s5328_s10 + $0x1c8] sm:$0xff] }
 0x132   :  { %v4152_v25 = vpop.f32.mrf.mxu1  ;;  %5550 = vst [vmem:[#allocation99_spill] sm:$0xff] %v4280_v18  ;;  %5551 = vst [vmem:[#allocation100_spill] sm:$0xff] %v4285_v5  ;;  %v4376_v18 = vld [vmem:[%s5328_s10 + $0x1f0] sm:$0xff] }
 0x133   :  { %v4171_v2 = vpop.f32.mrf.mxu0  ;;  %5554 = vst [vmem:[#allocation103_spill] sm:$0xff] %v4308_v59  ;;  %5555 = vst [vmem:[#allocation104_spill] sm:$0xff] %v4317_v57  ;;  %v4418_v57 = vld [vmem:[%s5330_s11 + $0x20] sm:$0xff] }
 0x134   :  { %v4194_v4 = vpop.f32.mrf.mxu1  ;;  %5556 = vst [vmem:[#allocation105_spill] sm:$0xff] %v4322_v63  ;;  %5557 = vst [vmem:[#allocation106_spill] sm:$0xff] %v4327_v11  ;;  %v4390_v11 = vld [vmem:[%s5330_s11] sm:$0xff]  ;;  %v4401_v63 = vld [vmem:[%s5330_s11 + $0x8] sm:$0xff] }
 0x135   :  { %v4211_v6 = vpop.f32.mrf.mxu0  ;;  %5558 = vst [vmem:[#allocation107_spill] sm:$0xff] %v4336_v56  ;;  %5559 = vst [vmem:[#allocation108_spill] sm:$0xff] %v4341_v23  ;;  %v4411_v56 = vld [vmem:[%s5330_s11 + $0x18] sm:$0xff]  ;;  %v4445_v23 = vld [vmem:[%s5330_s11 + $0x48] sm:$0xff] }
 0x136   :  { %v4232_v12 = vpop.f32.mrf.mxu1  ;;  %5560 = vst [vmem:[#allocation109_spill] sm:$0xff] %v4346_v1  ;;  %5566 = vst [vmem:[#allocation115_spill] sm:$0xff] %v4376_v18  ;;  %v4428_v1 = vld [vmem:[%s5330_s11 + $0x30] sm:$0xff] }
 0x137   :  { %v4253_v0 = vpop.f32.mrf.mxu0  ;;  %5568 = vst [vmem:[#allocation117_spill] sm:$0xff] %v4390_v11  ;;  %5570 = vst [vmem:[#allocation119_spill] sm:$0xff] %v4401_v63  ;;  %v4487_v11 = vld [vmem:[%s5330_s11 + $0x78] sm:$0xff]  ;;  %v4506_v63 = vld [vmem:[%s5330_s11 + $0x90] sm:$0xff] }
 0x138   :  { %v4270_v60 = vpop.f32.mrf.mxu1  ;;  %5571 = vst [vmem:[#allocation120_spill] sm:$0xff] %v4406_v53  ;;  %5572 = vst [vmem:[#allocation121_spill] sm:$0xff] %v4411_v56  ;;  %v4477_v53 = vld [vmem:[%s5330_s11 + $0x68] sm:$0xff]  ;;  %v4496_v56 = vld [vmem:[%s5330_s11 + $0x80] sm:$0xff] }
 0x139   :  { %v4293_v51 = vpop.f32.mrf.mxu0  ;;  %5574 = vst [vmem:[#allocation123_spill] sm:$0xff] %v4418_v57  ;;  %5576 = vst [vmem:[#allocation125_spill] sm:$0xff] %v4428_v1  ;;  %v4482_v1 = vld [vmem:[%s5330_s11 + $0x70] sm:$0xff] }
 0x13a   :  { %v4312_v61 = vpop.f32.mrf.mxu1  ;;  %5578 = vst [vmem:[#allocation127_spill] sm:$0xff] %v4435_v50  ;;  %5579 = vst [vmem:[#allocation128_spill] sm:$0xff] %v4440_v54  ;;  %v4501_v50 = vld [vmem:[%s5330_s11 + $0x88] sm:$0xff]  ;;  %v4536_v54 = vld [vmem:[%s5330_s11 + $0xb0] sm:$0xff] }
 0x13b   :  { %v4331_v58 = vpop.f32.mrf.mxu0  ;;  %5580 = vst [vmem:[#allocation129_spill] sm:$0xff] %v4445_v23  ;;  %5584 = vst [vmem:[#allocation133_spill] sm:$0xff] %v4468_v55 }
 0x13c   :  { %v4354_v59 = vpop.f32.mrf.mxu1  ;;  %5586 = vst [vmem:[#allocation135_spill] sm:$0xff] %v4477_v53  ;;  %5587 = vst [vmem:[#allocation136_spill] sm:$0xff] %v4482_v1  ;;  %v4546_v1 = vld [vmem:[%s5330_s11 + $0xc0] sm:$0xff]  ;;  %v4557_v53 = vld [vmem:[%s5330_s11 + $0xc8] sm:$0xff] }
 0x13d   :  { %5561 = vst [vmem:[#allocation110_spill] sm:$0xff] %v4354_v59  ;;  %v4371_v17 = vpop.f32.mrf.mxu0  ;;  %5588 = vst [vmem:[#allocation137_spill] sm:$0xff] %v4487_v11  ;;  %v4595_v11 = vld [vmem:[%s5330_s11 + $0xf8] sm:$0xff] }
 0x13e   :  { %5565 = vst [vmem:[#allocation114_spill] sm:$0xff] %v4371_v17  ;;  %v4392_v5 = vpop.f32.mrf.mxu1  ;;  %v4458_v17 = vld [vmem:[%s5330_s11 + $0x50] sm:$0xff]  ;;  %5590 = vst [vmem:[#allocation139_spill] sm:$0xff] %v4496_v56 }
 0x13f   :  { %5569 = vst [vmem:[#allocation118_spill] sm:$0xff] %v4392_v5  ;;  %v4413_v49 = vpop.f32.mrf.mxu0  ;;  %5582 = vst [vmem:[#allocation131_spill] sm:$0xff] %v4458_v17  ;;  %v4541_v17 = vld [vmem:[%s5330_s11 + $0xb8] sm:$0xff] }
 0x140   :  { %5573 = vst [vmem:[#allocation122_spill] sm:$0xff] %v4413_v49  ;;  %v4430_v18 = vpop.f32.mrf.mxu1  ;;  %5591 = vst [vmem:[#allocation140_spill] sm:$0xff] %v4501_v50  ;;  %v4529_v49 = vld [vmem:[%s5330_s11 + $0xa8] sm:$0xff] }
 0x141   :  { %5577 = vst [vmem:[#allocation126_spill] sm:$0xff] %v4430_v18  ;;  %v4453_v5 = vpop.f32.mrf.mxu0  ;;  %5592 = vst [vmem:[#allocation141_spill] sm:$0xff] %v4506_v63  ;;  %v4583_v50 = vld [vmem:[%s5330_s11 + $0xe8] sm:$0xff]  ;;  %v4600_v63 = vld [vmem:[%s5330_s11 + $0x100] sm:$0xff] }
 0x142   :  { %5581 = vst [vmem:[#allocation130_spill] sm:$0xff] %v4453_v5  ;;  %v4472_v18 = vpop.f32.mrf.mxu1  ;;  %5596 = vst [vmem:[#allocation145_spill] sm:$0xff] %v4529_v49  ;;  %v4588_v49 = vld [vmem:[%s5330_s11 + $0xf0] sm:$0xff]  ;;  %v4623_v5 = vld [vmem:[%s5330_s11 + $0x118] sm:$0xff] }
 0x143   :  { %5585 = vst [vmem:[#allocation134_spill] sm:$0xff] %v4472_v18  ;;  %v4491_v57 = vpop.f32.mrf.mxu0  ;;  %v4524_v18 = vld [vmem:[%s5330_s11 + $0xa0] sm:$0xff]  ;;  %5598 = vst [vmem:[#allocation147_spill] sm:$0xff] %v4536_v54  ;;  %v4605_v54 = vld [vmem:[%s5330_s11 + $0x108] sm:$0xff] }
 0x144   :  { %5589 = vst [vmem:[#allocation138_spill] sm:$0xff] %v4491_v57  ;;  %v4514_v55 = vpop.f32.mrf.mxu1  ;;  %v4519_v57 = vld [vmem:[%s5330_s11 + $0x98] sm:$0xff]  ;;  %5595 = vst [vmem:[#allocation144_spill] sm:$0xff] %v4524_v18  ;;  %v4578_v18 = vld [vmem:[%s5330_s11 + $0xe0] sm:$0xff] }
 0x145   :  { %5593 = vst [vmem:[#allocation142_spill] sm:$0xff] %v4514_v55  ;;  %5594 = vst [vmem:[#allocation143_spill] sm:$0xff] %v4519_v57  ;;  %v4531_v47 = vpop.f32.mrf.mxu0  ;;  %v4567_v55 = vld [vmem:[%s5330_s11 + $0xd8] sm:$0xff]  ;;  %v4628_v57 = vld [vmem:[%s5330_s11 + $0x120] sm:$0xff] }
 0x146   :  { %5597 = vst [vmem:[#allocation146_spill] sm:$0xff] %v4531_v47  ;;  %5599 = vst [vmem:[#allocation148_spill] sm:$0xff] %v4541_v17  ;;  %v4552_v23 = vpop.f32.mrf.mxu1  ;;  %v4562_v47 = vld [vmem:[%s5330_s11 + $0xd0] sm:$0xff] }
 0x147   :  { %5600 = vst [vmem:[#allocation149_spill] sm:$0xff] %v4546_v1  ;;  %5601 = vst [vmem:[#allocation150_spill] sm:$0xff] %v4552_v23  ;;  %v4573_v56 = vpop.f32.mrf.mxu0  ;;  %v4618_v23 = vld [vmem:[%s5330_s11 + $0x110] sm:$0xff]  ;;  %v4647_v1 = vld [vmem:[%s5330_s11 + $0x138] sm:$0xff] }
 0x148   :  { %5602 = vst [vmem:[#allocation151_spill] sm:$0xff] %v4557_v53  ;;  %5603 = vst [vmem:[#allocation152_spill] sm:$0xff] %v4562_v47  ;;  %v4590_v48 = vpop.f32.mrf.mxu1  ;;  %v4637_v47 = vld [vmem:[%s5330_s11 + $0x128] sm:$0xff]  ;;  %v4666_v53 = vld [vmem:[%s5330_s11 + $0x150] sm:$0xff] }
 0x149   :  { %5604 = vst [vmem:[#allocation153_spill] sm:$0xff] %v4567_v55  ;;  %5605 = vst [vmem:[#allocation154_spill] sm:$0xff] %v4573_v56  ;;  %v4613_v56 = vpop.f32.mrf.mxu0  ;;  %v4656_v55 = vld [vmem:[%s5330_s11 + $0x140] sm:$0xff] }
 0x14a   :  { %5606 = vst [vmem:[#allocation155_spill] sm:$0xff] %v4578_v18  ;;  %5607 = vst [vmem:[#allocation156_spill] sm:$0xff] %v4583_v50  ;;  %v4632_v17 = vpop.f32.mrf.mxu1 }
 0x14b   :  { %5608 = vst [vmem:[#allocation157_spill] sm:$0xff] %v4588_v49  ;;  %5609 = vst [vmem:[#allocation158_spill] sm:$0xff] %v4590_v48  ;;  %v4642_v49 = vld [vmem:[%s5330_s11 + $0x130] sm:$0xff]  ;;  %v4651_v18 = vpop.f32.mrf.mxu0  ;;  %v4689_v48 = vld [vmem:[%s5330_s11 + $0x168] sm:$0xff] }
 0x14c   :  { %5610 = vst [vmem:[#allocation159_spill] sm:$0xff] %v4595_v11  ;;  %5611 = vst [vmem:[#allocation160_spill] sm:$0xff] %v4600_v63  ;;  %v4661_v11 = vld [vmem:[%s5330_s11 + $0x148] sm:$0xff]  ;;  %v4696_v63 = vld [vmem:[%s5330_s11 + $0x170] sm:$0xff] }
 0x14d   :  { %5612 = vst [vmem:[#allocation161_spill] sm:$0xff] %v4605_v54  ;;  %5613 = vst [vmem:[#allocation162_spill] sm:$0xff] %v4613_v56  ;;  %v4691_v50 = vpop.f32.mrf.mxu0  ;;  %v4783_v56 = vld [vmem:[%s5330_s11 + $0x1d8] sm:$0xff] }
 0x14e   :  { %5614 = vst [vmem:[#allocation163_spill] sm:$0xff] %v4618_v23  ;;  %5615 = vst [vmem:[#allocation164_spill] sm:$0xff] %v4623_v5  ;;  %v4701_v23 = vld [vmem:[%s5330_s11 + $0x178] sm:$0xff] }
 0x14f   :  { %5616 = vst [vmem:[#allocation165_spill] sm:$0xff] %v4628_v57  ;;  %5617 = vst [vmem:[#allocation166_spill] sm:$0xff] %v4632_v17  ;;  %v4674_v57 = vpop.f32.mrf.mxu1  ;;  %v4684_v17 = vld [vmem:[%s5330_s11 + $0x160] sm:$0xff] }
 0x150   :  { %5618 = vst [vmem:[#allocation167_spill] sm:$0xff] %v4637_v47  ;;  %5619 = vst [vmem:[#allocation168_spill] sm:$0xff] %v4642_v49  ;;  %v4706_v49 = vld [vmem:[%s5330_s11 + $0x180] sm:$0xff]  ;;  %v4717_v47 = vld [vmem:[%s5330_s11 + $0x188] sm:$0xff] }
 0x151   :  { %5620 = vst [vmem:[#allocation169_spill] sm:$0xff] %v4647_v1  ;;  %5621 = vst [vmem:[#allocation170_spill] sm:$0xff] %v4651_v18  ;;  %v4679_v18 = vld [vmem:[%s5330_s11 + $0x158] sm:$0xff]  ;;  %v4712_v54 = vpop.f32.mrf.mxu1 }
 0x152   :  { %5622 = vst [vmem:[#allocation171_spill] sm:$0xff] %v4656_v55  ;;  %5623 = vst [vmem:[#allocation172_spill] sm:$0xff] %v4661_v11  ;;  %v4733_v55 = vpop.f32.mrf.mxu0  ;;  %v4743_v11 = vld [vmem:[%s5330_s11 + $0x1a8] sm:$0xff]  ;;  %v4755_v1 = vld [vmem:[%s5330_s11 + $0x1b8] sm:$0xff] }
 0x153   :  { %5624 = vst [vmem:[#allocation173_spill] sm:$0xff] %v4666_v53  ;;  %5625 = vst [vmem:[#allocation174_spill] sm:$0xff] %v4674_v57  ;;  %v4727_v57 = vld [vmem:[%s5330_s11 + $0x198] sm:$0xff]  ;;  %v4750_v5 = vpop.f32.mrf.mxu1  ;;  %v4760_v53 = vld [vmem:[%s5330_s11 + $0x1c0] sm:$0xff] }
 0x154   :  { %5626 = vst [vmem:[#allocation175_spill] sm:$0xff] %v4679_v18  ;;  %5627 = vst [vmem:[#allocation176_spill] sm:$0xff] %v4684_v17  ;;  %v4738_v17 = vld [vmem:[%s5330_s11 + $0x1a0] sm:$0xff] }
 0x155   :  { %5628 = vst [vmem:[#allocation177_spill] sm:$0xff] %v4689_v48  ;;  %5629 = vst [vmem:[#allocation178_spill] sm:$0xff] %v4691_v50  ;;  %v4722_v50 = vld [vmem:[%s5330_s11 + $0x190] sm:$0xff]  ;;  %v4788_v18 = vld [vmem:[%s5330_s11 + $0x1e0] sm:$0xff] }
 0x156   :  { %5630 = vst [vmem:[#allocation179_spill] sm:$0xff] %v4696_v63  ;;  %5631 = vst [vmem:[#allocation180_spill] sm:$0xff] %v4701_v23  ;;  %v4748_v48 = vld [vmem:[%s5330_s11 + $0x1b0] sm:$0xff]  ;;  %v4765_v63 = vld [vmem:[%s5330_s11 + $0x1c8] sm:$0xff]  ;;  %v4792_v23 = vpop.f32.mrf.mxu1 }
 0x157   :  { %5632 = vst [vmem:[#allocation181_spill] sm:$0xff] %v4706_v49  ;;  %5633 = vst [vmem:[#allocation182_spill] sm:$0xff] %v4712_v54  ;;  %v4778_v54 = vld [vmem:[%s5330_s11 + $0x1d0] sm:$0xff]  ;;  %v4807_v49 = vld [vmem:[%s5330_s11 + $0x1f8] sm:$0xff] }
 0x158   :  { %5634 = vst [vmem:[#allocation183_spill] sm:$0xff] %v4717_v47  ;;  %5635 = vst [vmem:[#allocation184_spill] sm:$0xff] %v4722_v50  ;;  %v4797_v50 = vld [vmem:[%s5330_s11 + $0x1e8] sm:$0xff] }
 0x159   :  { %5636 = vst [vmem:[#allocation185_spill] sm:$0xff] %v4727_v57  ;;  %5637 = vst [vmem:[#allocation186_spill] sm:$0xff] %v4733_v55  ;;  %v4773_v55 = vpop.f32.mrf.mxu0 }
 0x15a   :  { %5638 = vst [vmem:[#allocation187_spill] sm:$0xff] %v4738_v17  ;;  %5639 = vst [vmem:[#allocation188_spill] sm:$0xff] %v4743_v11  ;;  %v4819_v11 = vpop.f32.mrf.mxu1 }
 0x15b   :  { %5640 = vst [vmem:[#allocation189_spill] sm:$0xff] %v4748_v48  ;;  %5641 = vst [vmem:[#allocation190_spill] sm:$0xff] %v4750_v5  ;;  %v4802_v48 = vld [vmem:[%s5330_s11 + $0x1f0] sm:$0xff]  ;;  %v4811_v17 = vpop.f32.mrf.mxu0 }
 0x15c   :  { %5642 = vst [vmem:[#allocation191_spill] sm:$0xff] %v4755_v1  ;;  %5643 = vst [vmem:[#allocation192_spill] sm:$0xff] %v4760_v53  ;;  %v1630_v53 = vlaneseq }
 0x15d   :  { %5644 = vst [vmem:[#allocation193_spill] sm:$0xff] %v4765_v63  ;;  %5645 = vst [vmem:[#allocation194_spill] sm:$0xff] %v4773_v55  ;;  %v4823_v55 = vpop.f32.mrf.mxu1 }
 0x15e   :  { %5646 = vst [vmem:[#allocation195_spill] sm:$0xff] %v4778_v54  ;;  %5647 = vst [vmem:[#allocation196_spill] sm:$0xff] %v4783_v56  ;;  %v4837_v47 = vshrl.u32 %v1630_v53, 7 }
 0x15f   :  { %5648 = vst [vmem:[#allocation197_spill] sm:$0xff] %v4788_v18  ;;  %5649 = vst [vmem:[#allocation198_spill] sm:$0xff] %v4792_v23  ;;  %v4821_v23 = vpop.f32.mrf.mxu0  ;;  %v4827_v5 = vpop.f32.mrf.mxu1 }
 0x160   :  { %5650 = vst [vmem:[#allocation199_spill] sm:$0xff] %v4797_v50  ;;  %5651 = vst [vmem:[#allocation200_spill] sm:$0xff] %v4802_v48  ;;  %v1632_v50 = vsub.s32 0, %v4837_v47  ;;  %v1640_v53 = vsub.s32 2, %v4837_v47 }
 0x161   :  { %5652 = vst [vmem:[#allocation201_spill] sm:$0xff] %v4807_v49  ;;  %5653 = vst [vmem:[#allocation202_spill] sm:$0xff] %v4819_v11  ;;  %v4825_v59 = vpop.f32.mrf.mxu0  ;;  %v4831_v57 = vpop.f32.mrf.mxu1 }
 0x162   :  { %5654 = vst [vmem:[#allocation203_spill] sm:$0xff] %v4821_v23  ;;  %5655 = vst [vmem:[#allocation204_spill] sm:$0xff] %v4823_v55 }
 0x163   :  { %5656 = vst [vmem:[#allocation205_spill] sm:$0xff] %v4825_v59  ;;  %5657 = vst [vmem:[#allocation206_spill] sm:$0xff] %v4827_v5  ;;  %v4829_v18 = vpop.f32.mrf.mxu0  ;;  %v4835_v1 = vpop.f32.mrf.mxu1 }
 0x164   :  { %5658 = vst [vmem:[#allocation207_spill] sm:$0xff] %v4829_v18  ;;  %5659 = vst [vmem:[#allocation208_spill] sm:$0xff] %v4831_v57  ;;  %v868_v18 = vadd.f32 %v3954_v14, %v3826_v26  ;;  %v799_v26 = vadd.f32 %v3975_v19, %v3832_v28  ;;  %v874_v28 = vadd.f32 %v4034_v52, %v3838_v30 }
 0x165   :  { %v4833_v63 = vpop.f32.mrf.mxu0  ;;  %5661 = vst [vmem:[#allocation210_spill] sm:$0xff] %v4835_v1  ;;  %v4841_v48 = vpop.f32.mrf.mxu1 }
 0x166   :  { %5660 = vst [vmem:[#allocation209_spill] sm:$0xff] %v4833_v63  ;;  %5663 = vst [vmem:[#allocation212_spill] sm:$0xff] %v4841_v48  ;;  %v4853_v63 = vld [vmem:[%s5331_s9] sm:$0xff]  ;;  %s5084_s9 = smov 0  }
 0x167   :  { %v4839_v54 = vpop.f32.mrf.mxu0  ;;  %v4845_v49 = vpop.f32.mrf.mxu1 }
 0x168   :  { %5662 = vst [vmem:[#allocation211_spill] sm:$0xff] %v4839_v54  ;;  %5665 = vst [vmem:[#allocation214_spill] sm:$0xff] %v4845_v49  ;;  %v1636_v54 = vsub.s32 1, %v4837_v47  ;;  %v795_v49 = vadd.f32 %v3952_v21, %v3824_v43  ;;  %v870_v43 = vadd.f32 %v3958_v16, %v3830_v10  ;;  %v801_v10 = vadd.f32 %v4011_v8, %v3836_v20 }
 0x169   :  { %v4843_v56 = vpop.f32.mrf.mxu0  ;;  %v4856_v1 = vpop.f32.mrf.mxu1 }
 0x16a   :  { %5664 = vst [vmem:[#allocation213_spill] sm:$0xff] %v4843_v56  ;;  %5667 = vst [vmem:[#allocation216_spill] sm:$0xff] %v4856_v1  ;;  %v1644_v56 = vsub.s32 3, %v4837_v47  ;;  %v4872_v1 = vrot.slane %v4853_v63, %v1640_v53  ;;  %v4877_v11 = vrot.slane %v4853_v63, %v1636_v54 }
 0x16b   :  { %v4848_v5 = vpop.f32.mrf.mxu0  ;;  %v4864_v57 = vpop.f32.mrf.mxu1 }
 0x16c   :  { %5666 = vst [vmem:[#allocation215_spill] sm:$0xff] %v4848_v5  ;;  %5669 = vst [vmem:[#allocation218_spill] sm:$0xff] %v4864_v57  ;;  %v4867_v5 = vrot.slane %v4853_v63, %v1632_v50  ;;  %v4882_v57 = vrot.slane %v4853_v63, %v1644_v56 }
 0x16d   :  { %v4859_v48 = vpop.f32.mrf.mxu0  ;;  %v1379_v23 = vpop.f32.mrf.mxu1 }
 0x16e   :  { %5668 = vst [vmem:[#allocation217_spill] sm:$0xff] %v4859_v48  ;;  %v797_v48 = vadd.f32 %v3956_v15, %v3828_v27  ;;  %v1566_v50 = vadd.f32 %v1379_v23, %v868_v18  ;;  %v878_v23 = vadd.f32 %v4072_v24, %v3842_v3 }
 0x16f   :  { %v1306_v59 = vpop.f32.mrf.mxu0  ;;  %v1381_v27 = vpop.f32.mrf.mxu1 }
 0x170   :  { %v1564_v55 = vadd.f32 %v1306_v59, %v795_v49  ;;  %v872_v49 = vadd.f32 %v3992_v9, %v3834_v29  ;;  %v1672_v54 = vadd.f32 %v4872_v1, %v1566_v50  ;;  %v1567_v59 = vadd.f32 %v1381_v27, %v870_v43 }
 0x171   :  { %v1308_v21 = vpop.f32.mrf.mxu0  ;;  %v1383_v18 = vpop.f32.mrf.mxu1  ;;  %v805_v9 = vadd.f32 %v4051_v22, %v3840_v31  ;;  %v807_v50 = vadd.f32 %v4093_v7, %v3844_v32 }
 0x172   :  { %v1670_v14 = vadd.f32 %v4867_v5, %v1564_v55  ;;  %v1565_v53 = vadd.f32 %v1308_v21, %v797_v48  ;;  %1736 = vst [vmem:[#allocation2 + $0x10] sm:$0xff] %v1672_v54  ;;  %v1673_v48 = vadd.f32 %v4882_v57, %v1567_v59  ;;  %v1574_v55 = vadd.f32 %v1383_v18, %v872_v49 }
 0x173   :  { %v1310_v15 = vpop.f32.mrf.mxu0  ;;  %v1385_v8 = vpop.f32.mrf.mxu1  ;;  %v882_v49 = vadd.f32 %v4152_v25, %v3850_v35  ;;  %v811_v59 = vadd.f32 %v4171_v2, %v3852_v36 }
 0x174   :  { %1734 = vst [vmem:[#allocation2] sm:$0xff] %v1670_v14  ;;  %v1671_v56 = vadd.f32 %v4877_v11, %v1565_v53  ;;  %v1572_v16 = vadd.f32 %v1310_v15, %v799_v26  ;;  %1737 = vst [vmem:[#allocation2 + $0x18] sm:$0xff] %v1673_v48  ;;  %v1680_v43 = vadd.f32 %v4872_v1, %v1574_v55 }
 0x175   :  { %v1312_v29 = vpop.f32.mrf.mxu0  ;;  %v1575_v30 = vadd.f32 %v1385_v8, %v874_v28  ;;  %v1389_v22 = vpop.f32.mrf.mxu1  ;;  %v880_v26 = vadd.f32 %v4110_v13, %v3846_v33  ;;  %v809_v53 = vadd.f32 %v4133_v62, %v3848_v34  ;;  %v888_v28 = vadd.f32 %v4232_v12, %v3858_v39 }
 0x176   :  { %1735 = vst [vmem:[#allocation2 + $0x8] sm:$0xff] %v1671_v56  ;;  %v1678_v19 = vadd.f32 %v4867_v5, %v1572_v16  ;;  %v1573_v20 = vadd.f32 %v1312_v29, %v801_v10  ;;  %1740 = vst [vmem:[#allocation2 + $0x30] sm:$0xff] %v1680_v43  ;;  %v1582_v3 = vadd.f32 %v1389_v22, %v878_v23  ;;  %v5671_v22 = vld [vmem:[#allocation10_spill] sm:$0xff] }
 0x177   :  { %v1316_v52 = vpop.f32.mrf.mxu0  ;;  %v1681_v14 = vadd.f32 %v4882_v57, %v1575_v30  ;;  %v1391_v7 = vpop.f32.mrf.mxu1  ;;  %v884_v10 = vadd.f32 %v4194_v4, %v3854_v37  ;;  %v815_v16 = vadd.f32 %v4211_v6, %v3856_v38  ;;  %v817_v55 = vadd.f32 %v4253_v0, %v3860_v40 }
 0x178   :  { %1738 = vst [vmem:[#allocation2 + $0x20] sm:$0xff] %v1678_v19  ;;  %v1679_v21 = vadd.f32 %v4877_v11, %v1573_v20  ;;  %v1580_v31 = vadd.f32 %v1316_v52, %v805_v9  ;;  %v1688_v54 = vadd.f32 %v4872_v1, %v1582_v3  ;;  %v1583_v33 = vadd.f32 %v1391_v7, %v880_v26  ;;  %v5672_v26 = vld [vmem:[#allocation114_spill] sm:$0xff] }
 0x179   :  { %v1318_v24 = vpop.f32.mrf.mxu0  ;;  %1741 = vst [vmem:[#allocation2 + $0x38] sm:$0xff] %v1681_v14  ;;  %v1393_v62 = vpop.f32.mrf.mxu1  ;;  %v890_v9 = vadd.f32 %v4270_v60, %v3862_v41  ;;  %v819_v20 = vadd.f32 %v4293_v51, %v3864_v42  ;;  %v892_v23 = vadd.f32 %v4312_v61, %v3866_v44  ;;  %v821_v30 = vadd.f32 %v4331_v58, %v3868_v45 }
 0x17a   :  { %1739 = vst [vmem:[#allocation2 + $0x28] sm:$0xff] %v1679_v21  ;;  %v1686_v27 = vadd.f32 %v4867_v5, %v1580_v31  ;;  %v1581_v32 = vadd.f32 %v1318_v24, %v807_v50  ;;  %1744 = vst [vmem:[#allocation2 + $0x50] sm:$0xff] %v1688_v54  ;;  %v1689_v56 = vadd.f32 %v4882_v57, %v1583_v33  ;;  %v5670_v50 = vld [vmem:[#allocation110_spill] sm:$0xff]  ;;  %v5673_v24 = vld [vmem:[#allocation11_spill] sm:$0xff] }
 0x17b   :  { %v1320_v13 = vpop.f32.mrf.mxu0  ;;  %v1590_v35 = vadd.f32 %v1393_v62, %v882_v49  ;;  %v1395_v2 = vpop.f32.mrf.mxu1  ;;  %v894_v21 = vadd.f32 %v5670_v50, %v3870_v46  ;;  %v825_v14 = vadd.f32 %v5672_v26, %v5671_v22  ;;  %v5675_v49 = vld [vmem:[#allocation12_spill] sm:$0xff]  ;;  %v5676_v54 = vld [vmem:[#allocation122_spill] sm:$0xff] }
 0x17c   :  { %1742 = vst [vmem:[#allocation2 + $0x40] sm:$0xff] %v1686_v27  ;;  %v1687_v15 = vadd.f32 %v4877_v11, %v1581_v32  ;;  %v1588_v34 = vadd.f32 %v1320_v13, %v809_v53  ;;  %1745 = vst [vmem:[#allocation2 + $0x58] sm:$0xff] %v1689_v56  ;;  %v1591_v37 = vadd.f32 %v1395_v2, %v884_v10  ;;  %v5674_v53 = vld [vmem:[#allocation118_spill] sm:$0xff] }
 0x17d   :  { %v1322_v25 = vpop.f32.mrf.mxu0  ;;  %v1696_v48 = vadd.f32 %v4872_v1, %v1590_v35  ;;  %v1399_v6 = vpop.f32.mrf.mxu1  ;;  %v898_v27 = vadd.f32 %v5674_v53, %v5673_v24  ;;  %v827_v33 = vadd.f32 %v5676_v54, %v5675_v49  ;;  %v5678_v62 = vld [vmem:[#allocation126_spill] sm:$0xff] }
 0x17e   :  { %1743 = vst [vmem:[#allocation2 + $0x48] sm:$0xff] %v1687_v15  ;;  %v1694_v18 = vadd.f32 %v4867_v5, %v1588_v34  ;;  %v1589_v36 = vadd.f32 %v1322_v25, %v811_v59  ;;  %v1697_v19 = vadd.f32 %v4882_v57, %v1591_v37  ;;  %v1598_v39 = vadd.f32 %v1399_v6, %v888_v28  ;;  %v5677_v34 = vld [vmem:[#allocation13_spill] sm:$0xff]  ;;  %v5687_v50 = vld [vmem:[#allocation18_spill] sm:$0xff] }
 0x17f   :  { %v1326_v4 = vpop.f32.mrf.mxu0  ;;  %1748 = vst [vmem:[#allocation2 + $0x70] sm:$0xff] %v1696_v48  ;;  %v1401_v0 = vpop.f32.mrf.mxu1  ;;  %v900_v10 = vadd.f32 %v5678_v62, %v5677_v34  ;;  %v1648_v37 = vsub.s32 4, %v4837_v47 }
 0x180   :  { %1746 = vst [vmem:[#allocation2 + $0x60] sm:$0xff] %v1694_v18  ;;  %v1695_v29 = vadd.f32 %v4877_v11, %v1589_v36  ;;  %v1596_v38 = vadd.f32 %v1326_v4, %v815_v16  ;;  %1749 = vst [vmem:[#allocation2 + $0x78] sm:$0xff] %v1697_v19  ;;  %v1704_v43 = vadd.f32 %v4872_v1, %v1598_v39  ;;  %v5679_v16 = vld [vmem:[#allocation14_spill] sm:$0xff]  ;;  %v5681_v4 = vld [vmem:[#allocation15_spill] sm:$0xff]  ;;  %v1656_v19 = vsub.s32 6, %v4837_v47 }
 0x181   :  { %v1328_v12 = vpop.f32.mrf.mxu0  ;;  %v1599_v41 = vadd.f32 %v1401_v0, %v890_v9  ;;  %v1403_v51 = vpop.f32.mrf.mxu1  ;;  %v5680_v18 = vld [vmem:[#allocation130_spill] sm:$0xff]  ;;  %v5683_v39 = vld [vmem:[#allocation16_spill] sm:$0xff]  ;;  %v4976_v26 = vrot.slane %v4853_v63, %v1648_v37 }
 0x182   :  { %1747 = vst [vmem:[#allocation2 + $0x68] sm:$0xff] %v1695_v29  ;;  %v1702_v8 = vadd.f32 %v4867_v5, %v1596_v38  ;;  %v1597_v40 = vadd.f32 %v1328_v12, %v817_v55  ;;  %1752 = vst [vmem:[#allocation2 + $0x90] sm:$0xff] %v1704_v43  ;;  %v1606_v44 = vadd.f32 %v1403_v51, %v892_v23  ;;  %v5682_v55 = vld [vmem:[#allocation134_spill] sm:$0xff]  ;;  %v1652_v23 = vsub.s32 5, %v4837_v47  ;;  %v5685_v43 = vld [vmem:[#allocation17_spill] sm:$0xff] }
 0x183   :  { %v1330_v60 = vpop.f32.mrf.mxu0  ;;  %v1705_v31 = vadd.f32 %v4882_v57, %v1599_v41  ;;  %v1405_v58 = vpop.f32.mrf.mxu1  ;;  %v829_v36 = vadd.f32 %v5680_v18, %v5679_v16  ;;  %v902_v29 = vadd.f32 %v5682_v55, %v5681_v4  ;;  %v5684_v12 = vld [vmem:[#allocation138_spill] sm:$0xff]  ;;  %v1660_v51 = vsub.s32 7, %v4837_v47  ;;  %v5697_v18 = vld [vmem:[#allocation23_spill] sm:$0xff]  ;;  %v5699_v37 = vld [vmem:[#allocation24_spill] sm:$0xff] }
 0x184   :  { %1750 = vst [vmem:[#allocation2 + $0x80] sm:$0xff] %v1702_v8  ;;  %v1703_v52 = vadd.f32 %v4877_v11, %v1597_v40  ;;  %v1604_v42 = vadd.f32 %v1330_v60, %v819_v20  ;;  %v1712_v32 = vadd.f32 %v4872_v1, %v1606_v44  ;;  %v1607_v46 = vadd.f32 %v1405_v58, %v894_v21  ;;  %v5686_v41 = vld [vmem:[#allocation142_spill] sm:$0xff] }
 0x185   :  { %v1332_v61 = vpop.f32.mrf.mxu0  ;;  %1753 = vst [vmem:[#allocation2 + $0x98] sm:$0xff] %v1705_v31  ;;  %v1409_v15 = vpop.f32.mrf.mxu1  ;;  %v831_v20 = vadd.f32 %v5684_v12, %v5683_v39  ;;  %v904_v60 = vadd.f32 %v5686_v41, %v5685_v43  ;;  %v5688_v21 = vld [vmem:[#allocation146_spill] sm:$0xff]  ;;  %v4982_v47 = vrot.slane %v4853_v63, %v1656_v19  ;;  %v4988_v54 = vrot.slane %v4853_v63, %v1652_v23 }
 0x186   :  { %1751 = vst [vmem:[#allocation2 + $0x88] sm:$0xff] %v1703_v52  ;;  %v1710_v3 = vadd.f32 %v4867_v5, %v1604_v42  ;;  %v1605_v45 = vadd.f32 %v1332_v61, %v821_v30  ;;  %1756 = vst [vmem:[#allocation2 + $0xb0] sm:$0xff] %v1712_v32  ;;  %v1713_v56 = vadd.f32 %v4882_v57, %v1607_v46  ;;  %v5692_v32 = vld [vmem:[#allocation154_spill] sm:$0xff] }
 0x187   :  { %v1336_v7 = vpop.f32.mrf.mxu0  ;;  %v1614_v35 = vadd.f32 %v1409_v15, %v898_v27  ;;  %v1411_v48 = vpop.f32.mrf.mxu1  ;;  %v941_v31 = vadd.f32 %v5688_v21, %v5687_v50  ;;  %v5691_v27 = vld [vmem:[#allocation20_spill] sm:$0xff]  ;;  %v4994_v62 = vrot.slane %v4853_v63, %v1660_v51  ;;  %v5700_v4 = vld [vmem:[#allocation170_spill] sm:$0xff] }
 0x188   :  { %1754 = vst [vmem:[#allocation2 + $0xa0] sm:$0xff] %v1710_v3  ;;  %v1711_v13 = vadd.f32 %v4877_v11, %v1605_v45  ;;  %v1612_v59 = vadd.f32 %v1336_v7, %v825_v14  ;;  %1757 = vst [vmem:[#allocation2 + $0xb8] sm:$0xff] %v1713_v56  ;;  %v1615_v6 = vadd.f32 %v1411_v48, %v900_v10  ;;  %v5689_v14 = vld [vmem:[#allocation19_spill] sm:$0xff]  ;;  %v5690_v3 = vld [vmem:[#allocation150_spill] sm:$0xff] }
 0x189   :  { %v1338_v25 = vpop.f32.mrf.mxu0  ;;  %v1720_v38 = vadd.f32 %v4872_v1, %v1614_v35  ;;  %v1413_v0 = vpop.f32.mrf.mxu1  ;;  %v1014_v45 = vadd.f32 %v5690_v3, %v5689_v14  ;;  %v943_v46 = vadd.f32 %v5692_v32, %v5691_v27  ;;  %v5695_v10 = vld [vmem:[#allocation22_spill] sm:$0xff]  ;;  %v947_v63 = vadd.f32 %v5700_v4, %v5699_v37  ;;  %v5707_v21 = vld [vmem:[#allocation28_spill] sm:$0xff]  ;;  %v5709_v3 = vld [vmem:[#allocation29_spill] sm:$0xff] }
 0x18a   :  { %1755 = vst [vmem:[#allocation2 + $0xa8] sm:$0xff] %v1711_v13  ;;  %v1718_v2 = vadd.f32 %v4867_v5, %v1612_v59  ;;  %v1613_v28 = vadd.f32 %v1338_v25, %v827_v33  ;;  %v1721_v30 = vadd.f32 %v4882_v57, %v1615_v6  ;;  %v1622_v52 = vadd.f32 %v1413_v0, %v902_v29  ;;  %v5693_v33 = vld [vmem:[#allocation21_spill] sm:$0xff]  ;;  %v5694_v13 = vld [vmem:[#allocation158_spill] sm:$0xff]  ;;  %v5719_v4 = vld [vmem:[#allocation203_spill] sm:$0xff] }
 0x18b   :  { %v1340_v9 = vpop.f32.mrf.mxu0  ;;  %1760 = vst [vmem:[#allocation2 + $0xd0] sm:$0xff] %v1720_v38  ;;  %v1415_v22 = vpop.f32.mrf.mxu1  ;;  %v1016_v59 = vadd.f32 %v5694_v13, %v5693_v33  ;;  %v5696_v56 = vld [vmem:[#allocation162_spill] sm:$0xff]  ;;  %v5701_v6 = vld [vmem:[#allocation25_spill] sm:$0xff]  ;;  %v5713_v13 = vld [vmem:[#allocation31_spill] sm:$0xff] }
 0x18c   :  { %1758 = vst [vmem:[#allocation2 + $0xc0] sm:$0xff] %v1718_v2  ;;  %v1719_v8 = vadd.f32 %v4877_v11, %v1613_v28  ;;  %v1620_v40 = vadd.f32 %v1340_v9, %v829_v36  ;;  %1761 = vst [vmem:[#allocation2 + $0xd8] sm:$0xff] %v1721_v30  ;;  %v1728_v58 = vadd.f32 %v4872_v1, %v1622_v52  ;;  %v5698_v36 = vld [vmem:[#allocation166_spill] sm:$0xff] }
 0x18d   :  { %v1342_v42 = vpop.f32.mrf.mxu0  ;;  %v1623_v24 = vadd.f32 %v1415_v22, %v904_v60  ;;  %v1525_v49 = vpop.f32.mrf.mxu1  ;;  %v945_v35 = vadd.f32 %v5696_v56, %v5695_v10  ;;  %v1018_v2 = vadd.f32 %v5698_v36, %v5697_v18  ;;  %v5702_v9 = vld [vmem:[#allocation174_spill] sm:$0xff]  ;;  %v5705_v60 = vld [vmem:[#allocation27_spill] sm:$0xff]  ;;  %v5715_v56 = vld [vmem:[#allocation32_spill] sm:$0xff] }
 0x18e   :  { %1759 = vst [vmem:[#allocation2 + $0xc8] sm:$0xff] %v1719_v8  ;;  %v1726_v44 = vadd.f32 %v4867_v5, %v1620_v40  ;;  %v1621_v61 = vadd.f32 %v1342_v42, %v831_v20  ;;  %1764 = vst [vmem:[#allocation2 + $0xf0] sm:$0xff] %v1728_v58  ;;  %v1570_v15 = vadd.f32 %v1525_v49, %v1014_v45  ;;  %v5703_v8 = vld [vmem:[#allocation26_spill] sm:$0xff]  ;;  %v5716_v18 = vld [vmem:[#allocation33_spill] sm:$0xff] }
 0x18f   :  { %v1452_v53 = vpop.f32.mrf.mxu0  ;;  %v1729_v1 = vadd.f32 %v4882_v57, %v1623_v24  ;;  %v1527_v16 = vpop.f32.mrf.mxu1  ;;  %v1020_v19 = vadd.f32 %v5702_v9, %v5701_v6  ;;  %v5704_v40 = vld [vmem:[#allocation178_spill] sm:$0xff]  ;;  %v5721_v6 = vld [vmem:[#allocation204_spill] sm:$0xff] }
 0x190   :  { %1762 = vst [vmem:[#allocation2 + $0xe0] sm:$0xff] %v1726_v44  ;;  %v1727_v5 = vadd.f32 %v4877_v11, %v1621_v61  ;;  %v1568_v7 = vadd.f32 %v1452_v53, %v941_v31  ;;  %v1676_v28 = vadd.f32 %v4982_v47, %v1570_v15  ;;  %v1571_v57 = vadd.f32 %v1527_v16, %v1016_v59  ;;  %v5706_v30 = vld [vmem:[#allocation182_spill] sm:$0xff] }
 0x191   :  { %v1454_v34 = vpop.f32.mrf.mxu0  ;;  %1765 = vst [vmem:[#allocation2 + $0xf8] sm:$0xff] %v1729_v1  ;;  %v1529_v38 = vpop.f32.mrf.mxu1  ;;  %v951_v0 = vadd.f32 %v5704_v40, %v5703_v8  ;;  %v1024_v52 = vadd.f32 %v5706_v30, %v5705_v60  ;;  %v5708_v31 = vld [vmem:[#allocation186_spill] sm:$0xff]  ;;  %v5723_v8 = vld [vmem:[#allocation205_spill] sm:$0xff] }
 0x192   :  { %1763 = vst [vmem:[#allocation2 + $0xe8] sm:$0xff] %v1727_v5  ;;  %v1674_v11 = vadd.f32 %v4976_v26, %v1568_v7  ;;  %v1569_v25 = vadd.f32 %v1454_v34, %v943_v46  ;;  %1768 = vst [vmem:[#allocation3 + $0x10] sm:$0xff] %v1676_v28  ;;  %v1677_v39 = vadd.f32 %v4994_v62, %v1571_v57  ;;  %v5710_v45 = vld [vmem:[#allocation190_spill] sm:$0xff] }
 0x193   :  { %v1456_v48 = vpop.f32.mrf.mxu0  ;;  %v1578_v12 = vadd.f32 %v1529_v38, %v1018_v2  ;;  %v1531_v41 = vpop.f32.mrf.mxu1  ;;  %v953_v44 = vadd.f32 %v5708_v31, %v5707_v21  ;;  %v1026_v58 = vadd.f32 %v5710_v45, %v5709_v3  ;;  %v5711_v32 = vld [vmem:[#allocation30_spill] sm:$0xff]  ;;  %v5720_v38 = vld [vmem:[#allocation35_spill] sm:$0xff]  ;;  %v5729_v3 = vld [vmem:[#allocation208_spill] sm:$0xff] }
 0x194   :  { %1766 = vst [vmem:[#allocation3] sm:$0xff] %v1674_v11  ;;  %v1675_v55 = vadd.f32 %v4988_v54, %v1569_v25  ;;  %v1576_v29 = vadd.f32 %v1456_v48, %v945_v35  ;;  %1769 = vst [vmem:[#allocation3 + $0x18] sm:$0xff] %v1677_v39  ;;  %v1579_v51 = vadd.f32 %v1531_v41, %v1020_v19  ;;  %v5712_v46 = vld [vmem:[#allocation194_spill] sm:$0xff]  ;;  %v5724_v41 = vld [vmem:[#allocation37_spill] sm:$0xff] }
 0x195   :  { %v1458_v20 = vpop.f32.mrf.mxu0  ;;  %v1684_v42 = vadd.f32 %v4982_v47, %v1578_v12  ;;  %v1535_v14 = vpop.f32.mrf.mxu1  ;;  %v955_v5 = vadd.f32 %v5712_v46, %v5711_v32  ;;  %v5714_v59 = vld [vmem:[#allocation198_spill] sm:$0xff]  ;;  %v957_v35 = vadd.f32 %v4811_v17, %v5715_v56  ;;  %v1034_v9 = vadd.f32 %v5721_v6, %v5720_v38  ;;  %v5727_v21 = vld [vmem:[#allocation207_spill] sm:$0xff]  ;;  %v5731_v32 = vld [vmem:[#allocation209_spill] sm:$0xff] }
 0x196   :  { %1767 = vst [vmem:[#allocation3 + $0x8] sm:$0xff] %v1675_v55  ;;  %v1682_v23 = vadd.f32 %v4976_v26, %v1576_v29  ;;  %v1577_v43 = vadd.f32 %v1458_v20, %v947_v63  ;;  %v1685_v24 = vadd.f32 %v4994_v62, %v1579_v51  ;;  %v1586_v53 = vadd.f32 %v1535_v14, %v1024_v52  ;;  %v5717_v36 = vld [vmem:[#allocation202_spill] sm:$0xff]  ;;  %v5722_v20 = vld [vmem:[#allocation36_spill] sm:$0xff]  ;;  %v5728_v14 = vld [vmem:[#allocation39_spill] sm:$0xff] }
 0x197   :  { %v1462_v50 = vpop.f32.mrf.mxu0  ;;  %1772 = vst [vmem:[#allocation3 + $0x30] sm:$0xff] %v1684_v42  ;;  %v1537_v33 = vpop.f32.mrf.mxu1  ;;  %v1028_v1 = vadd.f32 %v5714_v59, %v5713_v13  ;;  %v1030_v2 = vadd.f32 %v5717_v36, %v5716_v18  ;;  %v5718_v37 = vld [vmem:[#allocation34_spill] sm:$0xff]  ;;  %v963_v40 = vadd.f32 %v5723_v8, %v5722_v20  ;;  %v1038_v45 = vadd.f32 %v5729_v3, %v5728_v14  ;;  %v5735_v56 = vld [vmem:[#allocation211_spill] sm:$0xff]  ;;  %v5737_v36 = vld [vmem:[#allocation212_spill] sm:$0xff] }
 0x198   :  { %1770 = vst [vmem:[#allocation3 + $0x20] sm:$0xff] %v1682_v23  ;;  %v1683_v61 = vadd.f32 %v4988_v54, %v1577_v43  ;;  %v1584_v22 = vadd.f32 %v1462_v50, %v951_v0  ;;  %1773 = vst [vmem:[#allocation3 + $0x38] sm:$0xff] %v1685_v24  ;;  %v1692_v15 = vadd.f32 %v4982_v47, %v1586_v53  ;;  %v5725_v60 = vld [vmem:[#allocation206_spill] sm:$0xff]  ;;  %v5736_v18 = vld [vmem:[#allocation43_spill] sm:$0xff] }
 0x199   :  { %v1464_v27 = vpop.f32.mrf.mxu0  ;;  %v1587_v34 = vadd.f32 %v1537_v33, %v1026_v58  ;;  %v1539_v16 = vpop.f32.mrf.mxu1  ;;  %v961_v63 = vadd.f32 %v5719_v4, %v5718_v37  ;;  %v1036_v30 = vadd.f32 %v5725_v60, %v5724_v41  ;;  %v5726_v50 = vld [vmem:[#allocation38_spill] sm:$0xff]  ;;  %v5732_v33 = vld [vmem:[#allocation41_spill] sm:$0xff]  ;;  %v5738_v37 = vld [vmem:[#allocation44_spill] sm:$0xff] }
 0x19a   :  { %1771 = vst [vmem:[#allocation3 + $0x28] sm:$0xff] %v1683_v61  ;;  %v1690_v7 = vadd.f32 %v4976_v26, %v1584_v22  ;;  %v1585_v49 = vadd.f32 %v1464_v27, %v953_v44  ;;  %1776 = vst [vmem:[#allocation3 + $0x50] sm:$0xff] %v1692_v15  ;;  %v1594_v57 = vadd.f32 %v1539_v16, %v1028_v1  ;;  %v5730_v27 = vld [vmem:[#allocation40_spill] sm:$0xff]  ;;  %v5733_v13 = vld [vmem:[#allocation210_spill] sm:$0xff] }
 0x19b   :  { %v1466_v10 = vpop.f32.mrf.mxu0  ;;  %v1693_v28 = vadd.f32 %v4994_v62, %v1587_v34  ;;  %v1541_v29 = vpop.f32.mrf.mxu1  ;;  %v965_v31 = vadd.f32 %v5727_v21, %v5726_v50  ;;  %v967_v46 = vadd.f32 %v5731_v32, %v5730_v27  ;;  %v1040_v59 = vadd.f32 %v5733_v13, %v5732_v33  ;;  %v5739_v4 = vld [vmem:[#allocation213_spill] sm:$0xff]  ;;  %v5741_v6 = vld [vmem:[#allocation214_spill] sm:$0xff]  ;;  %v5743_v8 = vld [vmem:[#allocation215_spill] sm:$0xff] }
 0x19c   :  { %1774 = vst [vmem:[#allocation3 + $0x40] sm:$0xff] %v1690_v7  ;;  %v1691_v11 = vadd.f32 %v4988_v54, %v1585_v49  ;;  %v1592_v25 = vadd.f32 %v1466_v10, %v955_v5  ;;  %v1700_v19 = vadd.f32 %v4982_v47, %v1594_v57  ;;  %v1595_v39 = vadd.f32 %v1541_v29, %v1030_v2  ;;  %v5734_v10 = vld [vmem:[#allocation42_spill] sm:$0xff]  ;;  %v5740_v38 = vld [vmem:[#allocation45_spill] sm:$0xff]  ;;  %v5744_v41 = vld [vmem:[#allocation47_spill] sm:$0xff] }
 0x19d   :  { %v1468_v48 = vpop.f32.mrf.mxu0  ;;  %1777 = vst [vmem:[#allocation3 + $0x58] sm:$0xff] %v1693_v28  ;;  %v1545_v43 = vpop.f32.mrf.mxu1  ;;  %v1044_v2 = vadd.f32 %v5737_v36, %v5736_v18  ;;  %v5742_v20 = vld [vmem:[#allocation46_spill] sm:$0xff]  ;;  %v5745_v60 = vld [vmem:[#allocation216_spill] sm:$0xff]  ;;  %v5747_v21 = vld [vmem:[#allocation217_spill] sm:$0xff] }
 0x19e   :  { %1775 = vst [vmem:[#allocation3 + $0x48] sm:$0xff] %v1691_v11  ;;  %v1698_v55 = vadd.f32 %v4976_v26, %v1592_v25  ;;  %v1593_v17 = vadd.f32 %v1468_v48, %v957_v35  ;;  %1780 = vst [vmem:[#allocation3 + $0x70] sm:$0xff] %v1700_v19  ;;  %v1701_v52 = vadd.f32 %v4994_v62, %v1595_v39  ;;  %v5746_v50 = vld [vmem:[#allocation48_spill] sm:$0xff]  ;;  %v5748_v14 = vld [vmem:[#allocation49_spill] sm:$0xff] }
 0x19f   :  { %v1472_v12 = vpop.f32.mrf.mxu0  ;;  %v1602_v42 = vadd.f32 %v1545_v43, %v1034_v9  ;;  %v1547_v22 = vpop.f32.mrf.mxu1  ;;  %v971_v35 = vadd.f32 %v5735_v56, %v5734_v10  ;;  %v1046_v9 = vadd.f32 %v5741_v6, %v5740_v38  ;;  %v5749_v3 = vld [vmem:[#allocation218_spill] sm:$0xff] }
 0x1a0   :  { %1778 = vst [vmem:[#allocation3 + $0x60] sm:$0xff] %v1698_v55  ;;  %v1699_v0 = vadd.f32 %v4988_v54, %v1593_v17  ;;  %v1600_v23 = vadd.f32 %v1472_v12, %v961_v63  ;;  %1781 = vst [vmem:[#allocation3 + $0x78] sm:$0xff] %v1701_v52  ;;  %v1603_v24 = vadd.f32 %v1547_v22, %v1036_v30 }
 0x1a1   :  { %v1474_v51 = vpop.f32.mrf.mxu0  ;;  %v1708_v58 = vadd.f32 %v4982_v47, %v1602_v42  ;;  %v1549_v49 = vpop.f32.mrf.mxu1  ;;  %v973_v63 = vadd.f32 %v5739_v4, %v5738_v37  ;;  %v1048_v30 = vadd.f32 %v5745_v60, %v5744_v41 }
 0x1a2   :  { %1779 = vst [vmem:[#allocation3 + $0x68] sm:$0xff] %v1699_v0  ;;  %v1706_v44 = vadd.f32 %v4976_v26, %v1600_v23  ;;  %v1601_v61 = vadd.f32 %v1474_v51, %v963_v40  ;;  %v1709_v1 = vadd.f32 %v4994_v62, %v1603_v24  ;;  %v1610_v15 = vadd.f32 %v1549_v49, %v1038_v45 }
 0x1a3   :  { %v1476_v53 = vpop.f32.mrf.mxu0  ;;  %1784 = vst [vmem:[#allocation3 + $0x90] sm:$0xff] %v1708_v58  ;;  %v1551_v16 = vpop.f32.mrf.mxu1  ;;  %v975_v40 = vadd.f32 %v5743_v8, %v5742_v20  ;;  %v1050_v45 = vadd.f32 %v5749_v3, %v5748_v14 }
 0x1a4   :  { %1782 = vst [vmem:[#allocation3 + $0x80] sm:$0xff] %v1706_v44  ;;  %v1707_v5 = vadd.f32 %v4988_v54, %v1601_v61  ;;  %v1608_v7 = vadd.f32 %v1476_v53, %v965_v31  ;;  %1785 = vst [vmem:[#allocation3 + $0x98] sm:$0xff] %v1709_v1  ;;  %v1716_v28 = vadd.f32 %v4982_v47, %v1610_v15 }
 0x1a5   :  { %v1478_v34 = vpop.f32.mrf.mxu0  ;;  %v1611_v57 = vadd.f32 %v1551_v16, %v1040_v59  ;;  %v1555_v29 = vpop.f32.mrf.mxu1  ;;  %v977_v31 = vadd.f32 %v5747_v21, %v5746_v50 }
 0x1a6   :  { %1783 = vst [vmem:[#allocation3 + $0x88] sm:$0xff] %v1707_v5  ;;  %v1714_v11 = vadd.f32 %v4976_v26, %v1608_v7  ;;  %v1609_v25 = vadd.f32 %v1478_v34, %v967_v46  ;;  %1788 = vst [vmem:[#allocation3 + $0xb0] sm:$0xff] %v1716_v28  ;;  %v1618_v39 = vadd.f32 %v1555_v29, %v1044_v2 }
 0x1a7   :  { %v1482_v48 = vpop.f32.mrf.mxu0  ;;  %v1717_v19 = vadd.f32 %v4994_v62, %v1611_v57  ;;  %v1557_v43 = vpop.f32.mrf.mxu1 }
 0x1a8   :  { %1786 = vst [vmem:[#allocation3 + $0xa0] sm:$0xff] %v1714_v11  ;;  %v1715_v55 = vadd.f32 %v4988_v54, %v1609_v25  ;;  %v1616_v17 = vadd.f32 %v1482_v48, %v971_v35  ;;  %v1724_v52 = vadd.f32 %v4982_v47, %v1618_v39  ;;  %v1619_v42 = vadd.f32 %v1557_v43, %v1046_v9 }
 0x1a9   :  { %v1484_v12 = vpop.f32.mrf.mxu0  ;;  %1789 = vst [vmem:[#allocation3 + $0xb8] sm:$0xff] %v1717_v19  ;;  %v1559_v22 = vpop.f32.mrf.mxu1 }
 0x1aa   :  { %1787 = vst [vmem:[#allocation3 + $0xa8] sm:$0xff] %v1715_v55  ;;  %v1722_v0 = vadd.f32 %v4976_v26, %v1616_v17  ;;  %v1617_v23 = vadd.f32 %v1484_v12, %v973_v63  ;;  %1792 = vst [vmem:[#allocation3 + $0xd0] sm:$0xff] %v1724_v52  ;;  %v1725_v58 = vadd.f32 %v4994_v62, %v1619_v42 }
 0x1ab   :  { %v1486_v51 = vpop.f32.mrf.mxu0  ;;  %v1626_v24 = vadd.f32 %v1559_v22, %v1048_v30  ;;  %v1561_v46 = vpop.f32.mrf.mxu1 }
 0x1ac   :  { %1790 = vst [vmem:[#allocation3 + $0xc0] sm:$0xff] %v1722_v0  ;;  %v1723_v44 = vadd.f32 %v4988_v54, %v1617_v23  ;;  %v1624_v61 = vadd.f32 %v1486_v51, %v975_v40  ;;  %1793 = vst [vmem:[#allocation3 + $0xd8] sm:$0xff] %v1725_v58  ;;  %v1627_v7 = vadd.f32 %v1561_v46, %v1050_v45 }
 0x1ad   :  { %v1488_v53 = vpop.f32.mrf.mxu0  ;;  %v1732_v5 = vadd.f32 %v4982_v47, %v1626_v24 }
 0x1ae   :  { %1791 = vst [vmem:[#allocation3 + $0xc8] sm:$0xff] %v1723_v44  ;;  %v1730_v27 = vadd.f32 %v4976_v26, %v1624_v61  ;;  %v1625_v32 = vadd.f32 %v1488_v53, %v977_v31  ;;  %v1733_v33 = vadd.f32 %v4994_v62, %v1627_v7 }
 0x1af   :  { %1796 = vst [vmem:[#allocation3 + $0xf0] sm:$0xff] %v1732_v5 }
 0x1b0   :  { %1794 = vst [vmem:[#allocation3 + $0xe0] sm:$0xff] %v1730_v27  ;;  %v1731_v49 = vadd.f32 %v4988_v54, %v1625_v32  ;;  %1797 = vst [vmem:[#allocation3 + $0xf8] sm:$0xff] %v1733_v33 }
 0x1b2   :  { %1795 = vst [vmem:[#allocation3 + $0xe8] sm:$0xff] %v1731_v49 }
 0x1b3 LB: > { %v5750_v26 = vld [vmem:[#allocation113_spill] sm:$0xff]  ;;  %v5751_v13 = vld [vmem:[#allocation108_spill] sm:$0xff]  ;;  %v5754_v54 = vld [vmem:[#allocation111_spill] sm:$0xff]  ;;  %v2244_v28 = vstv %s2362_s9  ;;  %s2003_s22 = ssub.s32 7, %s2362_s9  ;;  %v2367_v57 = vmov 0   ;;  %s2309_s23 = sshll.u32 %s2362_s9, 5  ;;  %s2362_s9 = sphi %s5084_s9, %s2002_s9  }
 0x1b4   : > { %v5752_v59 = vpack.c.bf16 %v5750_v26, %v5751_v13  ;;  %v5753_v47 = vld [vmem:[#allocation116_spill] sm:$0xff]  ;;  %v5757_v15 = vld [vmem:[#allocation107_spill] sm:$0xff]  ;;  %v5760_v56 = vld [vmem:[#allocation109_spill] sm:$0xff]  ;;  %2048 = vmatprep.mubr.bf16.mxu0 %v2367_v57  ;;  %2089 = vmatprep.mubr.bf16.mxu1 %v2367_v57  ;;  %v2246_v37 = vstv %s2003_s22  ;;  %s2010_s3 = scalar_lea.vmem [#allocation2], %s2309_s23  ;;  %s2310_s24 = sshll.u32 %s2003_s22, 5 }
 0x1b5   : > { %v5755_v1 = vpack.c.bf16 %v5753_v47, %v5754_v54  ;;  %v5756_v62 = vld [vmem:[#allocation112_spill] sm:$0xff]  ;;  %v5759_v10 = vld [vmem:[#allocation115_spill] sm:$0xff]  ;;  %v5765_v18 = vld [vmem:[#allocation106_spill] sm:$0xff]  ;;  %2323 = vset.pattern.permute.xlu0 %v2367_v57  ;;  %s5298_s25 = scalar_lea.vmem [#allocation3], %s2310_s24  ;;  %s2002_s9 = sadd.s32 1, %s2362_s9  }
 0x1b6   : > { %2016 = vmatprep.subr.bf16.mxu0 %v5752_v59  ;;  %v5758_v34 = vpack.c.bf16 %v5756_v62, %v5757_v15  ;;  %v5761_v35 = vpack.c.bf16 %v5759_v10, %v5760_v56  ;;  %v5762_v11 = vld [vmem:[#allocation104_spill] sm:$0xff]  ;;  %v5766_v36 = vld [vmem:[#allocation102_spill] sm:$0xff]  ;;  %v5768_v48 = vld [vmem:[#allocation53_spill] sm:$0xff]  ;;  %p1999_p0 = scmp.ge.s32.totalorder %s2002_s9, 8  }
 0x1b7   : > { %2057 = vmatprep.subr.bf16.mxu1 %v5755_v1  ;;  %v5763_v25 = vld [vmem:[#allocation100_spill] sm:$0xff]  ;;  %v5767_v2 = vpack.c.bf16 %v5765_v18, %v5766_v36  ;;  %vm2245_vm0 = vcmp.gt.s32.totalorder %v5768_v48, %v2244_v28  ;;  %v5769_v63 = vld [vmem:[#allocation103_spill] sm:$0xff]  ;;  %v5772_v29 = vld [vmem:[#allocation105_spill] sm:$0xff]  ;;  %vm2247_vm1 = vcmp.gt.s32.totalorder %v5768_v48, %v2246_v37 }
 0x1b8   : > { %2017 = vmatpush1.bf16.msra.mxu0 %v5758_v34  ;;  %2058 = vmatpush1.bf16.msra.mxu1 %v5761_v35  ;;  %v5764_v16 = vpack.c.bf16 %v5762_v11, %v5763_v25  ;;  %v2248_v4 = vsel %vm2245_vm0, 1, %v2367_v57  ;;  %v5770_v55 = vld [vmem:[#allocation99_spill] sm:$0xff]  ;;  %v5773_v38 = vld [vmem:[#allocation101_spill] sm:$0xff]  ;;  %v5775_v9 = vld [vmem:[#allocation96_spill] sm:$0xff]  ;;  %v2257_v40 = vsel %vm2247_vm1, 1, %v2367_v57 }
 0x1b9   : > { %2059 = vmatprep.subr.bf16.mxu1 %v5767_v2  ;;  %v5771_v17 = vpack.c.bf16 %v5769_v63, %v5770_v55  ;;  %v5774_v6 = vpack.c.bf16 %v5772_v29, %v5773_v38  ;;  %v5776_v19 = vld [vmem:[#allocation92_spill] sm:$0xff]  ;;  %v5778_v12 = vld [vmem:[#allocation98_spill] sm:$0xff]  ;;  %2250 = vperm.xlu0 %2323, %v2248_v4   ;;  %v5781_v0 = vld [vmem:[#allocation95_spill] sm:$0xff] }
 0x1ba   : > { %2018 = vmatprep.subr.bf16.mxu0 %v5764_v16  ;;  %v5777_v39 = vpack.c.bf16 %v5775_v9, %v5776_v19  ;;  %v5779_v20 = vld [vmem:[#allocation94_spill] sm:$0xff]  ;;  %v5782_v23 = vld [vmem:[#allocation91_spill] sm:$0xff]  ;;  %v5784_v41 = vld [vmem:[#allocation97_spill] sm:$0xff] }
 0x1bb   : > { %v5780_v8 = vpack.c.bf16 %v5778_v12, %v5779_v20  ;;  %v5783_v43 = vpack.c.bf16 %v5781_v0, %v5782_v23  ;;  %v5785_v60 = vld [vmem:[#allocation93_spill] sm:$0xff]  ;;  %v5787_v52 = vld [vmem:[#allocation88_spill] sm:$0xff]  ;;  %v5790_v50 = vld [vmem:[#allocation90_spill] sm:$0xff] }
 0x1bc   : > { %2019 = vmatpush1.bf16.msra.mxu0 %v5771_v17  ;;  %2060 = vmatpush1.bf16.msra.mxu1 %v5774_v6  ;;  %v5786_v30 = vpack.c.bf16 %v5784_v41, %v5785_v60  ;;  %v5788_v42 = vld [vmem:[#allocation84_spill] sm:$0xff]  ;;  %v5791_v21 = vld [vmem:[#allocation86_spill] sm:$0xff]  ;;  %v5793_v44 = vld [vmem:[#allocation87_spill] sm:$0xff] }
 0x1bd   : > { %2020 = vmatprep.subr.bf16.mxu0 %v5777_v39  ;;  %2061 = vmatprep.subr.bf16.mxu1 %v5780_v8  ;;  %v5789_v51 = vpack.c.bf16 %v5787_v52, %v5788_v42  ;;  %v5792_v31 = vpack.c.bf16 %v5790_v50, %v5791_v21  ;;  %v5794_v61 = vld [vmem:[#allocation83_spill] sm:$0xff]  ;;  %v5796_v14 = vld [vmem:[#allocation89_spill] sm:$0xff]  ;;  %v5799_v58 = vld [vmem:[#allocation80_spill] sm:$0xff] }
 0x1be   : > { %2259 = vperm.xlu0 %2323, %v2257_v40   ;;  %v5795_v22 = vpack.c.bf16 %v5793_v44, %v5794_v61  ;;  %v5797_v3 = vld [vmem:[#allocation85_spill] sm:$0xff]  ;;  %v5800_v24 = vld [vmem:[#allocation76_spill] sm:$0xff]  ;;  %v5802_v27 = vld [vmem:[#allocation82_spill] sm:$0xff] }
 0x1bf   : > { %v5798_v45 = vpack.c.bf16 %v5796_v14, %v5797_v3  ;;  %v5801_v53 = vpack.c.bf16 %v5799_v58, %v5800_v24  ;;  %v5803_v32 = vld [vmem:[#allocation78_spill] sm:$0xff]  ;;  %v5805_v5 = vld [vmem:[#allocation79_spill] sm:$0xff]  ;;  %v5808_v33 = vld [vmem:[#allocation81_spill] sm:$0xff] }
 0x1c0   : > { %2021 = vmatpush1.bf16.msra.mxu0 %v5783_v43  ;;  %2062 = vmatpush1.bf16.msra.mxu1 %v5786_v30  ;;  %v5804_v46 = vpack.c.bf16 %v5802_v27, %v5803_v32  ;;  %v5806_v7 = vld [vmem:[#allocation75_spill] sm:$0xff]  ;;  %v5809_v26 = vld [vmem:[#allocation77_spill] sm:$0xff]  ;;  %v5811_v59 = vld [vmem:[#allocation72_spill] sm:$0xff] }
 0x1c1   : > { %2022 = vmatprep.subr.bf16.mxu0 %v5789_v51  ;;  %2063 = vmatprep.subr.bf16.mxu1 %v5792_v31  ;;  %v5807_v49 = vpack.c.bf16 %v5805_v5, %v5806_v7  ;;  %v5810_v13 = vpack.c.bf16 %v5808_v33, %v5809_v26  ;;  %v5812_v47 = vld [vmem:[#allocation68_spill] sm:$0xff]  ;;  %v5814_v1 = vld [vmem:[#allocation74_spill] sm:$0xff]  ;;  %v5817_v34 = vld [vmem:[#allocation71_spill] sm:$0xff] }
 0x1c2   : > { %v5813_v54 = vpack.c.bf16 %v5811_v59, %v5812_v47  ;;  %v5815_v62 = vld [vmem:[#allocation70_spill] sm:$0xff]  ;;  %v5818_v10 = vld [vmem:[#allocation67_spill] sm:$0xff]  ;;  %v5820_v35 = vld [vmem:[#allocation73_spill] sm:$0xff] }
 0x1c3   : > { %v5816_v15 = vpack.c.bf16 %v5814_v1, %v5815_v62  ;;  %v5819_v56 = vpack.c.bf16 %v5817_v34, %v5818_v10  ;;  %v5821_v11 = vld [vmem:[#allocation69_spill] sm:$0xff]  ;;  %v5823_v16 = vld [vmem:[#allocation64_spill] sm:$0xff]  ;;  %v5826_v2 = vld [vmem:[#allocation66_spill] sm:$0xff] }
 0x1c4   : > { %2023 = vmatpush1.bf16.msra.mxu0 %v5795_v22  ;;  %2064 = vmatpush1.bf16.msra.mxu1 %v5798_v45  ;;  %v5822_v25 = vpack.c.bf16 %v5820_v35, %v5821_v11  ;;  %v5824_v18 = vld [vmem:[#allocation60_spill] sm:$0xff]  ;;  %v5827_v28 = vld [vmem:[#allocation62_spill] sm:$0xff]  ;;  %v5829_v4 = vld [vmem:[#allocation63_spill] sm:$0xff] }
 0x1c5   : > { %2024 = vmatprep.subr.bf16.mxu0 %v5801_v53  ;;  %2065 = vmatprep.subr.bf16.mxu1 %v5804_v46  ;;  %v5825_v36 = vpack.c.bf16 %v5823_v16, %v5824_v18  ;;  %v5828_v37 = vpack.c.bf16 %v5826_v2, %v5827_v28  ;;  %v5830_v63 = vld [vmem:[#allocation59_spill] sm:$0xff]  ;;  %v5176_v17 = vld [vmem:[#allocation4] sm:$0xff]  ;;  %v5832_v29 = vld [vmem:[#allocation65_spill] sm:$0xff] }
 0x1c6   : > { %v5831_v55 = vpack.c.bf16 %v5829_v4, %v5830_v63  ;;  %v5833_v38 = vld [vmem:[#allocation61_spill] sm:$0xff]  ;;  %v5835_v9 = vld [vmem:[#allocation56_spill] sm:$0xff]  ;;  %v5836_v19 = vld [vmem:[#allocation51_spill] sm:$0xff]  ;;  %v2015_v40 = vpack.c.bf16 %v5176_v17, %v5176_v17 }
 0x1c7   : > { %v5834_v6 = vpack.c.bf16 %v5832_v29, %v5833_v38  ;;  %v5837_v39 = vpack.c.bf16 %v5835_v9, %v5836_v19  ;;  %v5838_v12 = vld [vmem:[#allocation58_spill] sm:$0xff]  ;;  %v5841_v0 = vld [vmem:[#allocation55_spill] sm:$0xff]  ;;  %v5844_v41 = vld [vmem:[#allocation57_spill] sm:$0xff] }
 0x1c8   : > { %2025 = vmatpush1.bf16.msra.mxu0 %v5807_v49  ;;  %2066 = vmatpush1.bf16.msra.mxu1 %v5810_v13  ;;  %v5839_v20 = vld [vmem:[#allocation54_spill] sm:$0xff]  ;;  %v5845_v60 = vld [vmem:[#allocation52_spill] sm:$0xff]  ;;  %v5847_v52 = vld [vmem:[#allocation199_spill] sm:$0xff] }
 0x1c9   : > { %2026 = vmatprep.subr.bf16.mxu0 %v5813_v54  ;;  %2067 = vmatprep.subr.bf16.mxu1 %v5816_v15  ;;  %v5840_v8 = vpack.c.bf16 %v5838_v12, %v5839_v20  ;;  %v5842_v23 = vld [vmem:[#allocation50_spill] sm:$0xff]  ;;  %v5846_v30 = vpack.c.bf16 %v5844_v41, %v5845_v60  ;;  %v5848_v42 = vld [vmem:[#allocation193_spill] sm:$0xff]  ;;  %v5851_v21 = vld [vmem:[#allocation196_spill] sm:$0xff] }
 0x1ca   : > { %v5843_v43 = vpack.c.bf16 %v5841_v0, %v5842_v23  ;;  %v5849_v51 = vpack.c.bf16 %v5847_v52, %v5848_v42  ;;  %v5850_v50 = vld [vmem:[#allocation201_spill] sm:$0xff]  ;;  %v5854_v61 = vld [vmem:[#allocation192_spill] sm:$0xff]  ;;  %v5857_v3 = vld [vmem:[#allocation195_spill] sm:$0xff] }
 0x1cb   : > { %v5852_v31 = vpack.c.bf16 %v5850_v50, %v5851_v21  ;;  %v5853_v44 = vld [vmem:[#allocation197_spill] sm:$0xff]  ;;  %v5856_v14 = vld [vmem:[#allocation200_spill] sm:$0xff]  ;;  %v5860_v24 = vld [vmem:[#allocation183_spill] sm:$0xff] }
 0x1cc   : > { %2027 = vmatpush1.bf16.msra.mxu0 %v5819_v56  ;;  %2068 = vmatpush1.bf16.msra.mxu1 %v5822_v25  ;;  %v5855_v22 = vpack.c.bf16 %v5853_v44, %v5854_v61  ;;  %v5858_v45 = vpack.c.bf16 %v5856_v14, %v5857_v3  ;;  %v5859_v58 = vld [vmem:[#allocation188_spill] sm:$0xff]  ;;  %v5862_v27 = vld [vmem:[#allocation191_spill] sm:$0xff]  ;;  %v5863_v32 = vld [vmem:[#allocation185_spill] sm:$0xff] }
 0x1cd   : > { %2028 = vmatprep.subr.bf16.mxu0 %v5825_v36  ;;  %2069 = vmatprep.subr.bf16.mxu1 %v5828_v37  ;;  %v5861_v53 = vpack.c.bf16 %v5859_v58, %v5860_v24  ;;  %v5864_v46 = vpack.c.bf16 %v5862_v27, %v5863_v32  ;;  %v5865_v5 = vld [vmem:[#allocation187_spill] sm:$0xff]  ;;  %v5866_v7 = vld [vmem:[#allocation181_spill] sm:$0xff]  ;;  %v5869_v26 = vld [vmem:[#allocation184_spill] sm:$0xff] }
 0x1ce   : > { %v5867_v49 = vpack.c.bf16 %v5865_v5, %v5866_v7  ;;  %v5868_v33 = vld [vmem:[#allocation189_spill] sm:$0xff]  ;;  %v5872_v47 = vld [vmem:[#allocation172_spill] sm:$0xff]  ;;  %v5875_v62 = vld [vmem:[#allocation175_spill] sm:$0xff] }
 0x1cf   : > { %v5870_v13 = vpack.c.bf16 %v5868_v33, %v5869_v26  ;;  %v5871_v59 = vld [vmem:[#allocation177_spill] sm:$0xff]  ;;  %v5874_v1 = vld [vmem:[#allocation180_spill] sm:$0xff]  ;;  %v5878_v10 = vld [vmem:[#allocation171_spill] sm:$0xff] }
 0x1d0   : > { %2029 = vmatpush1.bf16.msra.mxu0 %v5831_v55  ;;  %2070 = vmatpush1.bf16.msra.mxu1 %v5834_v6  ;;  %v5873_v54 = vpack.c.bf16 %v5871_v59, %v5872_v47  ;;  %v5876_v15 = vpack.c.bf16 %v5874_v1, %v5875_v62  ;;  %v5877_v34 = vld [vmem:[#allocation176_spill] sm:$0xff]  ;;  %v5881_v35 = vld [vmem:[#allocation173_spill] sm:$0xff]  ;;  %v5883_v25 = vld [vmem:[#allocation167_spill] sm:$0xff] }
 0x1d1   : > { %2030 = vmatprep.subr.bf16.mxu0 %v5837_v39  ;;  %2071 = vmatprep.subr.bf16.mxu1 %v5840_v8  ;;  %v5879_v56 = vpack.c.bf16 %v5877_v34, %v5878_v10  ;;  %v5884_v16 = vld [vmem:[#allocation161_spill] sm:$0xff]  ;;  %v5887_v2 = vld [vmem:[#allocation164_spill] sm:$0xff]  ;;  %v5893_v29 = vld [vmem:[#allocation163_spill] sm:$0xff] }
 0x1d2   : > { %v5885_v18 = vpack.c.bf16 %v5883_v25, %v5884_v16  ;;  %v5886_v36 = vld [vmem:[#allocation169_spill] sm:$0xff]  ;;  %v5890_v4 = vld [vmem:[#allocation160_spill] sm:$0xff]  ;;  %v5896_v9 = vld [vmem:[#allocation151_spill] sm:$0xff] }
 0x1d3   : > { %v5888_v28 = vpack.c.bf16 %v5886_v36, %v5887_v2  ;;  %v5889_v37 = vld [vmem:[#allocation165_spill] sm:$0xff]  ;;  %v5892_v55 = vld [vmem:[#allocation168_spill] sm:$0xff]  ;;  %v5898_v39 = vld [vmem:[#allocation159_spill] sm:$0xff] }
 0x1d4   : > { %2031 = vmatpush1.bf16.msra.mxu0 %v5843_v43  ;;  %2072 = vmatpush1.bf16.msra.mxu1 %v5846_v30  ;;  %v5891_v63 = vpack.c.bf16 %v5889_v37, %v5890_v4  ;;  %v5894_v38 = vpack.c.bf16 %v5892_v55, %v5893_v29  ;;  %v5895_v6 = vld [vmem:[#allocation156_spill] sm:$0xff]  ;;  %v5899_v12 = vld [vmem:[#allocation153_spill] sm:$0xff]  ;;  %v5901_v8 = vld [vmem:[#allocation155_spill] sm:$0xff] }
 0x1d5   : > { %2110 = vmatprep.subr.bf16.mxu0 %v5849_v51  ;;  %2151 = vmatprep.subr.bf16.mxu1 %v5852_v31  ;;  %v5897_v19 = vpack.c.bf16 %v5895_v6, %v5896_v9  ;;  %v5900_v20 = vpack.c.bf16 %v5898_v39, %v5899_v12  ;;  %v5904_v23 = vld [vmem:[#allocation157_spill] sm:$0xff]  ;;  %v5905_v43 = vld [vmem:[#allocation152_spill] sm:$0xff]  ;;  %v5911_v51 = vld [vmem:[#allocation143_spill] sm:$0xff] }
 0x1d6   : > { %v5906_v41 = vpack.c.bf16 %v5904_v23, %v5905_v43  ;;  %v5907_v60 = vld [vmem:[#allocation145_spill] sm:$0xff]  ;;  %v5908_v30 = vld [vmem:[#allocation140_spill] sm:$0xff]  ;;  %v5914_v31 = vld [vmem:[#allocation139_spill] sm:$0xff] }
 0x1d7   : > { %2049 = vmatmul.mubr.bf16.vlgmr.msra.gmra.mxu0 %v2015_v40  ;;  %2090 = vmatmul.mubr.bf16.vlgmr.msra.gmra.mxu1 %v2015_v40  ;;  %v5902_v40 = vld [vmem:[#allocation149_spill] sm:$0xff]  ;;  %v5909_v52 = vpack.c.bf16 %v5907_v60, %v5908_v30  ;;  %v5910_v42 = vld [vmem:[#allocation148_spill] sm:$0xff]  ;;  %v5916_v61 = vld [vmem:[#allocation147_spill] sm:$0xff] }
 0x1d8   : > { %2111 = vmatpush1.bf16.msra.mxu0 %v5855_v22  ;;  %2152 = vmatpush1.bf16.msra.mxu1 %v5858_v45  ;;  %v5903_v0 = vpack.c.bf16 %v5901_v8, %v5902_v40  ;;  %v5912_v50 = vpack.c.bf16 %v5910_v42, %v5911_v51  ;;  %v5913_v21 = vld [vmem:[#allocation144_spill] sm:$0xff]  ;;  %v5917_v22 = vld [vmem:[#allocation141_spill] sm:$0xff]  ;;  %v5919_v3 = vld [vmem:[#allocation135_spill] sm:$0xff] }
 0x1d9   : > { %2112 = vmatprep.subr.bf16.mxu0 %v5861_v53  ;;  %2153 = vmatprep.subr.bf16.mxu1 %v5864_v46  ;;  %v5915_v44 = vpack.c.bf16 %v5913_v21, %v5914_v31  ;;  %v5918_v14 = vpack.c.bf16 %v5916_v61, %v5917_v22  ;;  %v5920_v45 = vld [vmem:[#allocation129_spill] sm:$0xff]  ;;  %v5923_v53 = vld [vmem:[#allocation132_spill] sm:$0xff]  ;;  %v5276_v7 = vld [vmem:[#allocation6] sm:$0xff] }
 0x1da   : > { %2142 = vmatprep.mubr.bf16.mxu0 %v2367_v57  ;;  %2183 = vmatprep.mubr.bf16.mxu1 %v2367_v57  ;;  %v5880_v57 = vld [vmem:[#allocation179_spill] sm:$0xff]  ;;  %v5921_v58 = vpack.c.bf16 %v5919_v3, %v5920_v45  ;;  %v5922_v24 = vld [vmem:[#allocation137_spill] sm:$0xff]  ;;  %v5926_v46 = vld [vmem:[#allocation128_spill] sm:$0xff] }
 0x1db   : > { %v5882_v11 = vpack.c.bf16 %v5880_v57, %v5881_v35  ;;  %v5924_v27 = vpack.c.bf16 %v5922_v24, %v5923_v53  ;;  %v5925_v32 = vld [vmem:[#allocation133_spill] sm:$0xff]  ;;  %v5929_v33 = vld [vmem:[#allocation131_spill] sm:$0xff]  ;;  %v5941_v35 = vld [vmem:[#allocation120_spill] sm:$0xff] }
 0x1dc   : > { %2113 = vmatpush1.bf16.msra.mxu0 %v5867_v49  ;;  %2154 = vmatpush1.bf16.msra.mxu1 %v5870_v13  ;;  %v5927_v5 = vpack.c.bf16 %v5925_v32, %v5926_v46  ;;  %v5928_v49 = vld [vmem:[#allocation136_spill] sm:$0xff]  ;;  %v5932_v59 = vld [vmem:[#allocation119_spill] sm:$0xff]  ;;  %v5935_v1 = vld [vmem:[#allocation121_spill] sm:$0xff] }
 0x1dd   : > { %2114 = vmatprep.subr.bf16.mxu0 %v5873_v54  ;;  %2155 = vmatprep.subr.bf16.mxu1 %v5876_v15  ;;  %v5930_v26 = vpack.c.bf16 %v5928_v49, %v5929_v33  ;;  %v5931_v13 = vld [vmem:[#allocation124_spill] sm:$0xff]  ;;  %v5934_v54 = vld [vmem:[#allocation127_spill] sm:$0xff]  ;;  %v2109_v15 = vpack.c.bf16 %v5276_v7, %v5276_v7  ;;  %v5938_v10 = vld [vmem:[#allocation117_spill] sm:$0xff] }
 0x1de   : > { %v5933_v47 = vpack.c.bf16 %v5931_v13, %v5932_v59  ;;  %v5936_v62 = vpack.c.bf16 %v5934_v54, %v5935_v1  ;;  %v5937_v34 = vld [vmem:[#allocation123_spill] sm:$0xff]  ;;  %v5940_v57 = vld [vmem:[#allocation125_spill] sm:$0xff]  ;;  %v2011_v25 = vld [vmem:[%s2010_s3] sm:$0xff] }
 0x1df   : > { %v2013_v12 = vld [vmem:[%s2010_s3 + $0x10] sm:$0xff]  ;;  %v2106_v42 = vld [vmem:[%s5298_s25 + $0x8] sm:$0xff]  ;;  %v2108_v13 = vld [vmem:[%s5298_s25 + $0x18] sm:$0xff] }
 0x1e0   : > { %2115 = vmatpush1.bf16.msra.mxu0 %v5879_v56  ;;  %2156 = vmatpush1.bf16.msra.mxu1 %v5882_v11  ;;  %v5939_v56 = vpack.c.bf16 %v5937_v34, %v5938_v10  ;;  %v5942_v11 = vpack.c.bf16 %v5940_v57, %v5941_v35  ;;  %v2005_v61 = vld [vmem:[#allocation5] sm:$0xff]  ;;  %v2107_v59 = vld [vmem:[%s5298_s25 + $0x10] sm:$0xff]  ;;  %v2266_v35 = vld [vmem:[#allocation8] sm:$0xff] }
 0x1e1   : > { %2116 = vmatprep.subr.bf16.mxu0 %v5885_v18  ;;  %2157 = vmatprep.subr.bf16.mxu1 %v5888_v28  ;;  %v2012_v18 = vld [vmem:[%s2010_s3 + $0x8] sm:$0xff] }
 0x1e4   : > { %2117 = vmatpush1.bf16.msra.mxu0 %v5891_v63  ;;  %2158 = vmatpush1.bf16.msra.mxu1 %v5894_v38 }
 0x1e5   : > { %2118 = vmatprep.subr.bf16.mxu0 %v5897_v19  ;;  %2159 = vmatprep.subr.bf16.mxu1 %v5900_v20  ;;  %v2014_v19 = vld [vmem:[%s2010_s3 + $0x18] sm:$0xff] }
 0x1e8   : > { %2119 = vmatpush1.bf16.msra.mxu0 %v5903_v0  ;;  %2160 = vmatpush1.bf16.msra.mxu1 %v5906_v41  ;;  %v2105_v41 = vld [vmem:[%s5298_s25] sm:$0xff] }
 0x1e9   : > { %2120 = vmatprep.subr.bf16.mxu0 %v5909_v52  ;;  %2161 = vmatprep.subr.bf16.mxu1 %v5912_v50 }
 0x1ec   : > { %2121 = vmatpush1.bf16.msra.mxu0 %v5915_v44  ;;  %2162 = vmatpush1.bf16.msra.mxu1 %v5918_v14 }
 0x1ed   : > { %2122 = vmatprep.subr.bf16.mxu0 %v5921_v58  ;;  %2163 = vmatprep.subr.bf16.mxu1 %v5924_v27 }
 0x1f0   : > { %2123 = vmatpush1.bf16.msra.mxu0 %v5927_v5  ;;  %2164 = vmatpush1.bf16.msra.mxu1 %v5930_v26 }
 0x1f1   : > { %2124 = vmatprep.subr.bf16.mxu0 %v5933_v47  ;;  %2165 = vmatprep.subr.bf16.mxu1 %v5936_v62 }
 0x1f4   : > { %2125 = vmatpush1.bf16.msra.mxu0 %v5939_v56  ;;  %2166 = vmatpush1.bf16.msra.mxu1 %v5942_v11 }
 0x1f7   : > { %2143 = vmatmul.mubr.bf16.vlgmr.msra.gmra.mxu0 %v2109_v15  ;;  %2184 = vmatmul.mubr.bf16.vlgmr.msra.gmra.mxu1 %v2109_v15 }
 0x234   : > { %v2251_v45 = vpop.permute.xlu0 %2250 }
 0x235   : > { %vm2252_vm2 = vcmp.eq.s32.totalorder %v2251_v45, 1 }
 0x297   : > { %v2050_v16 = vpop.f32.mrf.mxu0  ;;  %v2091_v36 = vpop.f32.mrf.mxu1 }
 0x298   : > { %v2098_v2 = vadd.f32 %v2050_v16, %v2011_v25  ;;  %v2100_v8 = vadd.f32 %v2091_v36, %v2013_v12 }
 0x299   : > { %v2052_v28 = vpop.f32.mrf.mxu0  ;;  %v2093_v37 = vpop.f32.mrf.mxu1 }
 0x29a   : > { %v2303_v4 = vmul.f32 -1.442695, %v2098_v2  ;;  %v2099_v63 = vadd.f32 %v2052_v28, %v2012_v18  ;;  %v2101_v39 = vadd.f32 %v2093_v37, %v2014_v19  ;;  %v2007_v37 = vld [vmem:[#allocation7] sm:$0xff] }
 0x29b   : > { %v2054_v55 = vpop.f32.mrf.mxu0  ;;  %v2095_v29 = vpop.f32.mrf.mxu1 }
 0x29c   : > { %2324 = vpow2.f32 %v2303_v4  ;;  %v2304_v38 = vmul.f32 -1.442695, %v2099_v63  ;;  %v2305_v20 = vmul.f32 -1.442695, %v2101_v39  ;;  %v2260_v4 = vpop.permute.xlu0 %2259  ;;  %v2270_v39 = vld [vmem:[#allocation9] sm:$0xff] }
 0x29d   : > { %v2055_v6 = vpop.f32.mrf.mxu0  ;;  %v2096_v9 = vpop.f32.mrf.mxu1  ;;  %vm2261_vm3 = vcmp.eq.s32.totalorder %v2260_v4, 1 }
 0x29e   : > { %2326 = vpow2.f32 %v2304_v38 }
 0x29f   : > { %2328 = vpow2.f32 %v2305_v20 }
 0x2a0   : > { %2330 = vtanh.f32 %v2100_v8 }
 0x2a9   : > { %v2325_v40 = vpop.eup %2324 }
 0x2aa   : > { %v2199_v0 = vadd.f32 1.0, %v2325_v40 }
 0x2ab   : > { %v2327_v23 = vpop.eup %2326 }
 0x2ac   : > { %2332 = vrcp.f32 %v2199_v0  ;;  %v2205_v43 = vadd.f32 1.0, %v2327_v23  ;;  %v2329_v60 = vpop.eup %2328 }
 0x2ad   : > { %v2331_v30 = vpop.eup %2330  ;;  %v2212_v31 = vadd.f32 1.0, %v2329_v60 }
 0x2ae   : > { %2334 = vrcp.f32 %v2205_v43 }
 0x2b7   : > { %v2144_v52 = vpop.f32.mrf.mxu0  ;;  %v2185_v51 = vpop.f32.mrf.mxu1 }
 0x2b8   : > { %v2192_v50 = vadd.f32 %v2144_v52, %v2105_v41  ;;  %v2194_v54 = vadd.f32 %v2185_v51, %v2107_v59 }
 0x2b9   : > { %v2333_v21 = vpop.eup %2332  ;;  %v2146_v44 = vpop.f32.mrf.mxu0 }
 0x2ba   : > { %v2187_v22 = vpop.f32.mrf.mxu1  ;;  %v2306_v14 = vmul.f32 -1.442695, %v2192_v50  ;;  %v2193_v3 = vadd.f32 %v2146_v44, %v2106_v42  ;;  %v2216_v58 = vmul.f32 %v2333_v21, %v2331_v30 }
 0x2bb   : > { %v2335_v24 = vpop.eup %2334  ;;  %v2148_v53 = vpop.f32.mrf.mxu0  ;;  %v2195_v47 = vadd.f32 %v2187_v22, %v2108_v13 }
 0x2bc   : > { %v2189_v27 = vpop.f32.mrf.mxu1  ;;  %2336 = vpow2.f32 %v2306_v14  ;;  %v2307_v32 = vmul.f32 -1.442695, %v2193_v3  ;;  %v2215_v46 = vmul.f32 %v2335_v24, %v2005_v61 }
 0x2bd   : > { %2338 = vrcp.f32 %v2212_v31  ;;  %v2149_v5 = vpop.f32.mrf.mxu0  ;;  %v2308_v1 = vmul.f32 -1.442695, %v2195_v47 }
 0x2be   : > { %v2190_v49 = vpop.f32.mrf.mxu1  ;;  %2340 = vpow2.f32 %v2307_v32  ;;  %v2217_v33 = vadd.f32 %v2216_v58, %v2215_v46 }
 0x2c0   : > { %2342 = vtanh.f32 %v2217_v33  ;;  %v2255_v26 = vsel %vm2252_vm2, %v2217_v33, %v2005_v61 }
 0x2c1   : > { %2256 = vst [vmem:[#allocation5] sm:$0xff] %v2255_v26  ;;  %2344 = vtanh.f32 %v2194_v54 }
 0x2c2   : > { %2346 = vpow2.f32 %v2308_v1 }
 0x2c9   : > { %v2337_v62 = vpop.eup %2336 }
 0x2ca   : > { %v2339_v15 = vpop.eup %2338  ;;  %v2223_v34 = vadd.f32 1.0, %v2337_v62 }
 0x2cb   : > { %v2341_v10 = vpop.eup %2340 }
 0x2cc   : > { %2348 = vrcp.f32 %v2223_v34  ;;  %v2229_v56 = vadd.f32 1.0, %v2341_v10 }
 0x2cd   : > { %v2343_v57 = vpop.eup %2342 }
 0x2ce   : > { %2350 = vrcp.f32 %v2229_v56  ;;  %v2219_v11 = vmul.f32 %v2343_v57, %v2339_v15  ;;  %v2345_v36 = vpop.eup %2344 }
 0x2cf   : > { %v2347_v2 = vpop.eup %2346 }
 0x2d0   : > { %v2253_v25 = vsel %vm2252_vm2, %v2219_v11, %v5176_v17  ;;  %v2267_v16 = vsel %vm2252_vm2, %v2219_v11, -1e+30  ;;  %v2236_v55 = vadd.f32 1.0, %v2347_v2 }
 0x2d1   : > { %2254 = vst [vmem:[#allocation4] sm:$0xff] %v2253_v25  ;;  %v2268_v18 = vmax.f32 %v2266_v35, %v2267_v16 }
 0x2d2   : > { %2352 = vrcp.f32 %v2236_v55 }
 0x2d3   : > { %2269 = vst [vmem:[#allocation8] sm:$0xff] %v2268_v18 }
 0x2d9   : > { %v2349_v28 = vpop.eup %2348 }
 0x2da   : > { %v2240_v38 = vmul.f32 %v2349_v28, %v2345_v36  ;;  %v2274_v0 = vld [vmem:[#allocation8] sm:$0xff] (%p1999_p0) }
 0x2db   : > { %v2351_v63 = vpop.eup %2350  ;;  %vm2276_vm4 = vcmp.gt.f32.partialorder (%p1999_p0), %v2274_v0, -1e+29 }
 0x2dc   : > { %v2239_v29 = vmul.f32 %v2351_v63, %v2007_v37  ;;  %v2277_v43 = vsel (%p1999_p0), %vm2276_vm4, %v2274_v0, 0.0 }
 0x2dd   :  { %2278 = vst [vmem:[%s5319_s12] sm:$0xff] (%p1999_p0), %v2277_v43 }
 0x2de   : > { %v2241_v6 = vadd.f32 %v2240_v38, %v2239_v29 }
 0x2df   : > { %v2353_v17 = vpop.eup %2352 }
 0x2e0   : > { %2354 = vtanh.f32 %v2241_v6  ;;  %v2264_v9 = vsel %vm2261_vm3, %v2241_v6, %v2007_v37 }
 0x2e1   : > { %2265 = vst [vmem:[#allocation7] sm:$0xff] %v2264_v9 }
 0x2ed   : > { %v2355_v19 = vpop.eup %2354 }
 0x2ee   : > { %v2243_v12 = vmul.f32 %v2355_v19, %v2353_v17 }
 0x2ef   :  { %2001 = sbr.rel (!%p1999_p0) target bundleno = 435 (0x1b3), region = 85 }
 0x2f0   : > { %v2262_v20 = vsel %vm2261_vm3, %v2243_v12, %v5276_v7  ;;  %v2271_v8 = vsel %vm2261_vm3, %v2243_v12, -1e+30 }
 0x2f1   : > { %2263 = vst [vmem:[#allocation6] sm:$0xff] %v2262_v20  ;;  %v2272_v40 = vmax.f32 %v2270_v39, %v2271_v8 }
 0x2f3   : > { %2273 = vst [vmem:[#allocation9] sm:$0xff] %v2272_v40 }
 0x2fa   :  { %v2275_v23 = vld [vmem:[#allocation9] sm:$0xff] }
 0x2fb   :  { %vm2279_vm5 = vcmp.gt.f32.partialorder %v2275_v23, -1e+29 }
 0x2fc   :  { %v2280_v41 = vsel %vm2279_vm5, %v2275_v23, 0.0 }
 0x2fd   :  { %2281 = vst [vmem:[%s5320_s13] sm:$0xff] %v2280_v41 }

// kernel: res_encoder_forward.5
= control target key start
LH: loop header
LB: loop body
LE: loop exit
PB: predicated region body
PF: predicated region fallthrough
CT: control target
= control target key end

     0   :  { %v2321_v3 = vmov 0   ;;  %s5218_s5 = inlined_call_operand.vmem [shape: f32[128,1024], index: 5, kind: input, shape index: {}]   ;;  %s5219_s10 = inlined_call_operand.vmem [shape: f32[8,8,128], index: 10, kind: output, shape index: {0}]   ;;  %s5220_s11 = inlined_call_operand.vmem [shape: f32[8,8,128], index: 11, kind: output, shape index: {1}]   ;;  %s5221_s2 = inlined_call_operand.vmem [shape: f32[8,8,128], index: 2, kind: input, shape index: {}]   ;;  %s5222_s4 = inlined_call_operand.vmem [shape: f32[128,1024], index: 4, kind: input, shape index: {}]   ;;  %s5223_s1 = inlined_call_operand.vmem [shape: f32[8,8,128], index: 1, kind: input, shape index: {}]   ;;  %s5224_s6 = inlined_call_operand.vmem [shape: f32[128,1024], index: 6, kind: input, shape index: {}]   ;;  %s5225_s3 = inlined_call_operand.vmem [shape: f32[8,8,128], index: 3, kind: input, shape index: {}]   ;;  %s5226_s8 = inlined_call_operand.vmem [shape: f32[128,512], index: 8, kind: input, shape index: {}]   ;;  %s5227_s0 = inlined_call_operand.vmem [shape: s32[8,1], index: 0, kind: input, shape index: {}]   ;;  %s5228_s9 = inlined_call_operand.vmem [shape: f32[128,512], index: 9, kind: input, shape index: {}]   ;;  %s5229_s7 = inlined_call_operand.vmem [shape: f32[1,1024], index: 7, kind: input, shape index: {}]  }
   0x1   :  { %v367_v0 = vld [vmem:[%s5218_s5 + $0x388] sm:$0xff]  ;;  %v369_v2 = vld [vmem:[%s5218_s5 + $0x398] sm:$0xff]  ;;  %478 = vmatprep.mubr.bf16.mxu0 %v2321_v3  ;;  %551 = vmatprep.mubr.bf16.mxu1 %v2321_v3  ;;  %v366_v6 = vld [vmem:[%s5218_s5 + $0x380] sm:$0xff] }
   0x2   :  { %v375_v1 = vld [vmem:[%s5218_s5 + $0x3c8] sm:$0xff]  ;;  %v377_v5 = vld [vmem:[%s5218_s5 + $0x3d8] sm:$0xff]  ;;  %v374_v7 = vld [vmem:[%s5218_s5 + $0x3c0] sm:$0xff] }
   0x3   :  { %v439_v4 = vpack.c.bf16 %v375_v1, %v367_v0  ;;  %v441_v8 = vpack.c.bf16 %v377_v5, %v369_v2  ;;  %v438_v9 = vpack.c.bf16 %v374_v7, %v366_v6  ;;  %v368_v10 = vld [vmem:[%s5218_s5 + $0x390] sm:$0xff]  ;;  %v351_v12 = vld [vmem:[%s5218_s5 + $0x308] sm:$0xff]  ;;  %v353_v15 = vld [vmem:[%s5218_s5 + $0x318] sm:$0xff] }
   0x4   :  { %v376_v11 = vld [vmem:[%s5218_s5 + $0x3d0] sm:$0xff]  ;;  %v359_v14 = vld [vmem:[%s5218_s5 + $0x348] sm:$0xff]  ;;  %v361_v16 = vld [vmem:[%s5218_s5 + $0x358] sm:$0xff] }
   0x5   :  { %446 = vmatprep.subr.bf16.mxu0 %v439_v4  ;;  %v440_v13 = vpack.c.bf16 %v376_v11, %v368_v10  ;;  %519 = vmatprep.subr.bf16.mxu1 %v441_v8  ;;  %v431_v17 = vpack.c.bf16 %v359_v14, %v351_v12  ;;  %v433_v18 = vpack.c.bf16 %v361_v16, %v353_v15  ;;  %v350_v19 = vld [vmem:[%s5218_s5 + $0x300] sm:$0xff]  ;;  %v352_v21 = vld [vmem:[%s5218_s5 + $0x310] sm:$0xff]  ;;  %v335_v24 = vld [vmem:[%s5218_s5 + $0x288] sm:$0xff] }
   0x6   :  { %447 = vmatpush1.bf16.msra.mxu0 %v438_v9  ;;  %v358_v20 = vld [vmem:[%s5218_s5 + $0x340] sm:$0xff]  ;;  %v360_v23 = vld [vmem:[%s5218_s5 + $0x350] sm:$0xff]  ;;  %v343_v25 = vld [vmem:[%s5218_s5 + $0x2c8] sm:$0xff] }
   0x7   :  { %520 = vmatpush1.bf16.msra.mxu1 %v440_v13  ;;  %v430_v22 = vpack.c.bf16 %v358_v20, %v350_v19  ;;  %448 = vmatprep.subr.bf16.mxu0 %v431_v17  ;;  %v432_v26 = vpack.c.bf16 %v360_v23, %v352_v21  ;;  %v423_v27 = vpack.c.bf16 %v343_v25, %v335_v24  ;;  %v337_v28 = vld [vmem:[%s5218_s5 + $0x298] sm:$0xff]  ;;  %v334_v30 = vld [vmem:[%s5218_s5 + $0x280] sm:$0xff]  ;;  %v336_v33 = vld [vmem:[%s5218_s5 + $0x290] sm:$0xff] }
   0x8   :  { %521 = vmatprep.subr.bf16.mxu1 %v433_v18  ;;  %v345_v29 = vld [vmem:[%s5218_s5 + $0x2d8] sm:$0xff]  ;;  %v342_v32 = vld [vmem:[%s5218_s5 + $0x2c0] sm:$0xff]  ;;  %v344_v34 = vld [vmem:[%s5218_s5 + $0x2d0] sm:$0xff] }
   0x9   :  { %v425_v31 = vpack.c.bf16 %v345_v29, %v337_v28  ;;  %v422_v35 = vpack.c.bf16 %v342_v32, %v334_v30  ;;  %v319_v36 = vld [vmem:[%s5218_s5 + $0x208] sm:$0xff]  ;;  %v321_v38 = vld [vmem:[%s5218_s5 + $0x218] sm:$0xff]  ;;  %v424_v39 = vpack.c.bf16 %v344_v34, %v336_v33  ;;  %v318_v42 = vld [vmem:[%s5218_s5 + $0x200] sm:$0xff] }
   0xa   :  { %449 = vmatpush1.bf16.msra.mxu0 %v430_v22  ;;  %v327_v37 = vld [vmem:[%s5218_s5 + $0x248] sm:$0xff]  ;;  %v329_v41 = vld [vmem:[%s5218_s5 + $0x258] sm:$0xff]  ;;  %v326_v43 = vld [vmem:[%s5218_s5 + $0x240] sm:$0xff] }
   0xb   :  { %522 = vmatpush1.bf16.msra.mxu1 %v432_v26  ;;  %450 = vmatprep.subr.bf16.mxu0 %v423_v27  ;;  %v415_v40 = vpack.c.bf16 %v327_v37, %v319_v36  ;;  %v417_v44 = vpack.c.bf16 %v329_v41, %v321_v38  ;;  %v320_v45 = vld [vmem:[%s5218_s5 + $0x210] sm:$0xff]  ;;  %v303_v47 = vld [vmem:[%s5218_s5 + $0x188] sm:$0xff]  ;;  %v305_v49 = vld [vmem:[%s5218_s5 + $0x198] sm:$0xff]  ;;  %v414_v51 = vpack.c.bf16 %v326_v43, %v318_v42 }
   0xc   :  { %523 = vmatprep.subr.bf16.mxu1 %v425_v31  ;;  %v328_v46 = vld [vmem:[%s5218_s5 + $0x250] sm:$0xff]  ;;  %v311_v48 = vld [vmem:[%s5218_s5 + $0x1c8] sm:$0xff]  ;;  %v313_v50 = vld [vmem:[%s5218_s5 + $0x1d8] sm:$0xff] }
   0xd   :  { %v416_v52 = vpack.c.bf16 %v328_v46, %v320_v45  ;;  %v407_v53 = vpack.c.bf16 %v311_v48, %v303_v47  ;;  %v302_v54 = vld [vmem:[%s5218_s5 + $0x180] sm:$0xff]  ;;  %v304_v56 = vld [vmem:[%s5218_s5 + $0x190] sm:$0xff]  ;;  %v409_v57 = vpack.c.bf16 %v313_v50, %v305_v49  ;;  %v287_v59 = vld [vmem:[%s5218_s5 + $0x108] sm:$0xff] }
   0xe   :  { %451 = vmatpush1.bf16.msra.mxu0 %v422_v35  ;;  %v310_v55 = vld [vmem:[%s5218_s5 + $0x1c0] sm:$0xff]  ;;  %v312_v58 = vld [vmem:[%s5218_s5 + $0x1d0] sm:$0xff]  ;;  %v295_v60 = vld [vmem:[%s5218_s5 + $0x148] sm:$0xff] }
   0xf   :  { %524 = vmatpush1.bf16.msra.mxu1 %v424_v39  ;;  %452 = vmatprep.subr.bf16.mxu0 %v415_v40  ;;  %v289_v61 = vld [vmem:[%s5218_s5 + $0x118] sm:$0xff]  ;;  %v406_v63 = vpack.c.bf16 %v310_v55, %v302_v54  ;;  %v408_v0 = vpack.c.bf16 %v312_v58, %v304_v56  ;;  %v399_v1 = vpack.c.bf16 %v295_v60, %v287_v59  ;;  %v286_v2 = vld [vmem:[%s5218_s5 + $0x100] sm:$0xff]  ;;  %v288_v5 = vld [vmem:[%s5218_s5 + $0x110] sm:$0xff] }
  0x10   :  { %525 = vmatprep.subr.bf16.mxu1 %v417_v44  ;;  %v297_v62 = vld [vmem:[%s5218_s5 + $0x158] sm:$0xff]  ;;  %v294_v4 = vld [vmem:[%s5218_s5 + $0x140] sm:$0xff]  ;;  %v296_v7 = vld [vmem:[%s5218_s5 + $0x150] sm:$0xff] }
  0x11   :  { %v401_v6 = vpack.c.bf16 %v297_v62, %v289_v61  ;;  %v271_v8 = vld [vmem:[%s5218_s5 + $0x88] sm:$0xff]  ;;  %v273_v10 = vld [vmem:[%s5218_s5 + $0x98] sm:$0xff]  ;;  %v398_v12 = vpack.c.bf16 %v294_v4, %v286_v2  ;;  %v400_v13 = vpack.c.bf16 %v296_v7, %v288_v5  ;;  %v270_v15 = vld [vmem:[%s5218_s5 + $0x80] sm:$0xff] }
  0x12   :  { %453 = vmatpush1.bf16.msra.mxu0 %v414_v51  ;;  %v279_v9 = vld [vmem:[%s5218_s5 + $0xc8] sm:$0xff]  ;;  %v281_v11 = vld [vmem:[%s5218_s5 + $0xd8] sm:$0xff]  ;;  %v278_v16 = vld [vmem:[%s5218_s5 + $0xc0] sm:$0xff] }
  0x13   :  { %526 = vmatpush1.bf16.msra.mxu1 %v416_v52  ;;  %454 = vmatprep.subr.bf16.mxu0 %v407_v53  ;;  %v391_v14 = vpack.c.bf16 %v279_v9, %v271_v8  ;;  %v272_v17 = vld [vmem:[%s5218_s5 + $0x90] sm:$0xff]  ;;  %v393_v18 = vpack.c.bf16 %v281_v11, %v273_v10  ;;  %v255_v20 = vld [vmem:[%s5218_s5 + $0x8] sm:$0xff]  ;;  %v257_v22 = vld [vmem:[%s5218_s5 + $0x18] sm:$0xff]  ;;  %v390_v24 = vpack.c.bf16 %v278_v16, %v270_v15 }
  0x14   :  { %527 = vmatprep.subr.bf16.mxu1 %v409_v57  ;;  %v280_v19 = vld [vmem:[%s5218_s5 + $0xd0] sm:$0xff]  ;;  %v263_v21 = vld [vmem:[%s5218_s5 + $0x48] sm:$0xff]  ;;  %v265_v23 = vld [vmem:[%s5218_s5 + $0x58] sm:$0xff] }
  0x15   :  { %v392_v25 = vpack.c.bf16 %v280_v19, %v272_v17  ;;  %v383_v26 = vpack.c.bf16 %v263_v21, %v255_v20  ;;  %v254_v27 = vld [vmem:[%s5218_s5] sm:$0xff]  ;;  %v256_v29 = vld [vmem:[%s5218_s5 + $0x10] sm:$0xff]  ;;  %v385_v30 = vpack.c.bf16 %v265_v23, %v257_v22  ;;  %v371_v32 = vld [vmem:[%s5218_s5 + $0x3a8] sm:$0xff] }
  0x16   :  { %455 = vmatpush1.bf16.msra.mxu0 %v406_v63  ;;  %v262_v28 = vld [vmem:[%s5218_s5 + $0x40] sm:$0xff]  ;;  %v264_v31 = vld [vmem:[%s5218_s5 + $0x50] sm:$0xff]  ;;  %v379_v33 = vld [vmem:[%s5218_s5 + $0x3e8] sm:$0xff] }
  0x17   :  { %528 = vmatpush1.bf16.msra.mxu1 %v408_v0  ;;  %456 = vmatprep.subr.bf16.mxu0 %v399_v1  ;;  %v373_v34 = vld [vmem:[%s5218_s5 + $0x3b8] sm:$0xff]  ;;  %v382_v36 = vpack.c.bf16 %v262_v28, %v254_v27  ;;  %v242_v37 = vld [vmem:[%s5221_s2] sm:$0xff]  ;;  %v243_v38 = vld [vmem:[%s5221_s2 + $0x8] sm:$0xff]  ;;  %v384_v39 = vpack.c.bf16 %v264_v31, %v256_v29  ;;  %v443_v40 = vpack.c.bf16 %v379_v33, %v371_v32 }
  0x18   :  { %529 = vmatprep.subr.bf16.mxu1 %v401_v6  ;;  %v381_v35 = vld [vmem:[%s5218_s5 + $0x3f8] sm:$0xff]  ;;  %v370_v41 = vld [vmem:[%s5218_s5 + $0x3a0] sm:$0xff]  ;;  %v372_v43 = vld [vmem:[%s5218_s5 + $0x3b0] sm:$0xff]  ;;  %v2614_v48 = vpack.c.bf16 %v243_v38, %v242_v37 }
  0x19   :  { %v378_v42 = vld [vmem:[%s5218_s5 + $0x3e0] sm:$0xff]  ;;  %v445_v44 = vpack.c.bf16 %v381_v35, %v373_v34  ;;  %v380_v45 = vld [vmem:[%s5218_s5 + $0x3f0] sm:$0xff]  ;;  %v355_v46 = vld [vmem:[%s5218_s5 + $0x328] sm:$0xff] }
  0x1a   :  { %457 = vmatpush1.bf16.msra.mxu0 %v398_v12  ;;  %v363_v47 = vld [vmem:[%s5218_s5 + $0x368] sm:$0xff]  ;;  %v357_v49 = vld [vmem:[%s5218_s5 + $0x338] sm:$0xff]  ;;  %v442_v51 = vpack.c.bf16 %v378_v42, %v370_v41  ;;  %v444_v52 = vpack.c.bf16 %v380_v45, %v372_v43  ;;  %v354_v54 = vld [vmem:[%s5218_s5 + $0x320] sm:$0xff] }
  0x1b   :  { %530 = vmatpush1.bf16.msra.mxu1 %v400_v13  ;;  %458 = vmatprep.subr.bf16.mxu0 %v391_v14  ;;  %v365_v50 = vld [vmem:[%s5218_s5 + $0x378] sm:$0xff]  ;;  %v435_v53 = vpack.c.bf16 %v363_v47, %v355_v46  ;;  %v362_v55 = vld [vmem:[%s5218_s5 + $0x360] sm:$0xff]  ;;  %v356_v56 = vld [vmem:[%s5218_s5 + $0x330] sm:$0xff] }
  0x1c   :  { %531 = vmatprep.subr.bf16.mxu1 %v393_v18  ;;  %v437_v57 = vpack.c.bf16 %v365_v50, %v357_v49  ;;  %v364_v58 = vld [vmem:[%s5218_s5 + $0x370] sm:$0xff]  ;;  %v339_v59 = vld [vmem:[%s5218_s5 + $0x2a8] sm:$0xff]  ;;  %v341_v61 = vld [vmem:[%s5218_s5 + $0x2b8] sm:$0xff]  ;;  %v434_v63 = vpack.c.bf16 %v362_v55, %v354_v54 }
  0x1d   :  { %v347_v60 = vld [vmem:[%s5218_s5 + $0x2e8] sm:$0xff]  ;;  %v349_v62 = vld [vmem:[%s5218_s5 + $0x2f8] sm:$0xff]  ;;  %v244_v0 = vld [vmem:[%s5221_s2 + $0x10] sm:$0xff]  ;;  %v436_v2 = vpack.c.bf16 %v364_v58, %v356_v56 }
  0x1e   :  { %459 = vmatpush1.bf16.msra.mxu0 %v390_v24  ;;  %v245_v1 = vld [vmem:[%s5221_s2 + $0x18] sm:$0xff]  ;;  %v427_v4 = vpack.c.bf16 %v347_v60, %v339_v59  ;;  %v338_v5 = vld [vmem:[%s5218_s5 + $0x2a0] sm:$0xff]  ;;  %v340_v7 = vld [vmem:[%s5218_s5 + $0x2b0] sm:$0xff]  ;;  %v429_v8 = vpack.c.bf16 %v349_v62, %v341_v61 }
  0x1f   :  { %532 = vmatpush1.bf16.msra.mxu1 %v392_v25  ;;  %460 = vmatprep.subr.bf16.mxu0 %v383_v26  ;;  %v346_v6 = vld [vmem:[%s5218_s5 + $0x2e0] sm:$0xff]  ;;  %v348_v9 = vld [vmem:[%s5218_s5 + $0x2f0] sm:$0xff]  ;;  %v323_v10 = vld [vmem:[%s5218_s5 + $0x228] sm:$0xff]  ;;  %v2674_v12 = vpack.c.bf16 %v245_v1, %v244_v0 }
  0x20   :  { %533 = vmatprep.subr.bf16.mxu1 %v385_v30  ;;  %v331_v11 = vld [vmem:[%s5218_s5 + $0x268] sm:$0xff]  ;;  %v325_v13 = vld [vmem:[%s5218_s5 + $0x238] sm:$0xff]  ;;  %v426_v15 = vpack.c.bf16 %v346_v6, %v338_v5  ;;  %v428_v16 = vpack.c.bf16 %v348_v9, %v340_v7  ;;  %v322_v18 = vld [vmem:[%s5218_s5 + $0x220] sm:$0xff] }
  0x21   :  { %v333_v14 = vld [vmem:[%s5218_s5 + $0x278] sm:$0xff]  ;;  %v419_v17 = vpack.c.bf16 %v331_v11, %v323_v10  ;;  %v330_v19 = vld [vmem:[%s5218_s5 + $0x260] sm:$0xff]  ;;  %v324_v20 = vld [vmem:[%s5218_s5 + $0x230] sm:$0xff] }
  0x22   :  { %461 = vmatpush1.bf16.msra.mxu0 %v382_v36  ;;  %v421_v21 = vpack.c.bf16 %v333_v14, %v325_v13  ;;  %v332_v22 = vld [vmem:[%s5218_s5 + $0x270] sm:$0xff]  ;;  %v307_v23 = vld [vmem:[%s5218_s5 + $0x1a8] sm:$0xff]  ;;  %v309_v25 = vld [vmem:[%s5218_s5 + $0x1b8] sm:$0xff]  ;;  %v418_v27 = vpack.c.bf16 %v330_v19, %v322_v18 }
  0x23   :  { %534 = vmatpush1.bf16.msra.mxu1 %v384_v39  ;;  %592 = vmatprep.subr.bf16.mxu0 %v443_v40  ;;  %v315_v24 = vld [vmem:[%s5218_s5 + $0x1e8] sm:$0xff]  ;;  %v317_v26 = vld [vmem:[%s5218_s5 + $0x1f8] sm:$0xff]  ;;  %v246_v28 = vld [vmem:[%s5221_s2 + $0x20] sm:$0xff]  ;;  %v420_v30 = vpack.c.bf16 %v332_v22, %v324_v20 }
  0x24   :  { %665 = vmatprep.subr.bf16.mxu1 %v445_v44  ;;  %v247_v29 = vld [vmem:[%s5221_s2 + $0x28] sm:$0xff]  ;;  %v411_v31 = vpack.c.bf16 %v315_v24, %v307_v23  ;;  %v306_v32 = vld [vmem:[%s5218_s5 + $0x1a0] sm:$0xff]  ;;  %v308_v34 = vld [vmem:[%s5218_s5 + $0x1b0] sm:$0xff]  ;;  %v413_v35 = vpack.c.bf16 %v317_v26, %v309_v25 }
  0x25   :  { %479 = vmatmul.mubr.bf16.vlgmr.msra.gmra.mxu0 %v2614_v48  ;;  %v314_v33 = vld [vmem:[%s5218_s5 + $0x1e0] sm:$0xff]  ;;  %v316_v36 = vld [vmem:[%s5218_s5 + $0x1f0] sm:$0xff]  ;;  %v291_v37 = vld [vmem:[%s5218_s5 + $0x128] sm:$0xff]  ;;  %v2734_v39 = vpack.c.bf16 %v247_v29, %v246_v28 }
  0x26   :  { %552 = vmatmul.mubr.bf16.vlgmr.msra.gmra.mxu1 %v2614_v48  ;;  %593 = vmatpush1.bf16.msra.mxu0 %v442_v51  ;;  %v299_v38 = vld [vmem:[%s5218_s5 + $0x168] sm:$0xff]  ;;  %v293_v40 = vld [vmem:[%s5218_s5 + $0x138] sm:$0xff]  ;;  %v410_v42 = vpack.c.bf16 %v314_v33, %v306_v32  ;;  %v412_v43 = vpack.c.bf16 %v316_v36, %v308_v34  ;;  %v290_v45 = vld [vmem:[%s5218_s5 + $0x120] sm:$0xff] }
  0x27   :  { %666 = vmatpush1.bf16.msra.mxu1 %v444_v52  ;;  %594 = vmatprep.subr.bf16.mxu0 %v435_v53  ;;  %v301_v41 = vld [vmem:[%s5218_s5 + $0x178] sm:$0xff]  ;;  %v403_v44 = vpack.c.bf16 %v299_v38, %v291_v37  ;;  %v298_v46 = vld [vmem:[%s5218_s5 + $0x160] sm:$0xff]  ;;  %v292_v47 = vld [vmem:[%s5218_s5 + $0x130] sm:$0xff] }
  0x28   :  { %667 = vmatprep.subr.bf16.mxu1 %v437_v57  ;;  %488 = vmatprep.mubr.bf16.mxu0 %v2321_v3  ;;  %v405_v49 = vpack.c.bf16 %v301_v41, %v293_v40  ;;  %v300_v50 = vld [vmem:[%s5218_s5 + $0x170] sm:$0xff]  ;;  %v275_v51 = vld [vmem:[%s5218_s5 + $0xa8] sm:$0xff]  ;;  %v277_v53 = vld [vmem:[%s5218_s5 + $0xb8] sm:$0xff]  ;;  %v402_v55 = vpack.c.bf16 %v298_v46, %v290_v45 }
  0x29   :  { %561 = vmatprep.mubr.bf16.mxu1 %v2321_v3  ;;  %v283_v52 = vld [vmem:[%s5218_s5 + $0xe8] sm:$0xff]  ;;  %v285_v54 = vld [vmem:[%s5218_s5 + $0xf8] sm:$0xff]  ;;  %v248_v56 = vld [vmem:[%s5221_s2 + $0x30] sm:$0xff]  ;;  %v404_v58 = vpack.c.bf16 %v300_v50, %v292_v47 }
  0x2a   :  { %595 = vmatpush1.bf16.msra.mxu0 %v434_v63  ;;  %v249_v57 = vld [vmem:[%s5221_s2 + $0x38] sm:$0xff]  ;;  %v395_v59 = vpack.c.bf16 %v283_v52, %v275_v51  ;;  %v274_v60 = vld [vmem:[%s5218_s5 + $0xa0] sm:$0xff]  ;;  %v276_v62 = vld [vmem:[%s5218_s5 + $0xb0] sm:$0xff]  ;;  %v397_v63 = vpack.c.bf16 %v285_v54, %v277_v53 }
  0x2b   :  { %668 = vmatpush1.bf16.msra.mxu1 %v436_v2  ;;  %596 = vmatprep.subr.bf16.mxu0 %v427_v4  ;;  %v282_v61 = vld [vmem:[%s5218_s5 + $0xe0] sm:$0xff]  ;;  %v284_v0 = vld [vmem:[%s5218_s5 + $0xf0] sm:$0xff]  ;;  %v259_v1 = vld [vmem:[%s5218_s5 + $0x28] sm:$0xff]  ;;  %v2794_v4 = vpack.c.bf16 %v249_v57, %v248_v56 }
  0x2c   :  { %669 = vmatprep.subr.bf16.mxu1 %v429_v8  ;;  %v267_v2 = vld [vmem:[%s5218_s5 + $0x68] sm:$0xff]  ;;  %v261_v5 = vld [vmem:[%s5218_s5 + $0x38] sm:$0xff]  ;;  %v394_v7 = vpack.c.bf16 %v282_v61, %v274_v60  ;;  %v396_v8 = vpack.c.bf16 %v284_v0, %v276_v62  ;;  %v258_v10 = vld [vmem:[%s5218_s5 + $0x20] sm:$0xff] }
  0x2d   :  { %489 = vmatmul.mubr.bf16.gmra.mxu0 %v2674_v12  ;;  %v269_v6 = vld [vmem:[%s5218_s5 + $0x78] sm:$0xff]  ;;  %v387_v9 = vpack.c.bf16 %v267_v2, %v259_v1  ;;  %v266_v11 = vld [vmem:[%s5218_s5 + $0x60] sm:$0xff]  ;;  %v260_v13 = vld [vmem:[%s5218_s5 + $0x30] sm:$0xff] }
  0x2e   :  { %562 = vmatmul.mubr.bf16.gmra.mxu1 %v2674_v12  ;;  %597 = vmatpush1.bf16.msra.mxu0 %v426_v15  ;;  %v389_v14 = vpack.c.bf16 %v269_v6, %v261_v5  ;;  %v268_v15 = vld [vmem:[%s5218_s5 + $0x70] sm:$0xff]  ;;  %v165_v18 = vld [vmem:[%s5222_s4 + $0x398] sm:$0xff]  ;;  %v386_v20 = vpack.c.bf16 %v266_v11, %v258_v10  ;;  %v162_v23 = vld [vmem:[%s5222_s4 + $0x380] sm:$0xff] }
  0x2f   :  { %670 = vmatpush1.bf16.msra.mxu1 %v428_v16  ;;  %598 = vmatprep.subr.bf16.mxu0 %v419_v17  ;;  %v163_v16 = vld [vmem:[%s5222_s4 + $0x388] sm:$0xff]  ;;  %v173_v19 = vld [vmem:[%s5222_s4 + $0x3d8] sm:$0xff]  ;;  %v170_v24 = vld [vmem:[%s5222_s4 + $0x3c0] sm:$0xff] }
  0x30   :  { %671 = vmatprep.subr.bf16.mxu1 %v421_v21  ;;  %498 = vmatprep.mubr.bf16.mxu0 %v2321_v3  ;;  %v171_v17 = vld [vmem:[%s5222_s4 + $0x3c8] sm:$0xff]  ;;  %v388_v21 = vpack.c.bf16 %v268_v15, %v260_v13  ;;  %v164_v25 = vld [vmem:[%s5222_s4 + $0x390] sm:$0xff]  ;;  %v237_v26 = vpack.c.bf16 %v173_v19, %v165_v18  ;;  %v234_v32 = vpack.c.bf16 %v170_v24, %v162_v23  ;;  %v154_v36 = vld [vmem:[%s5222_s4 + $0x340] sm:$0xff] }
  0x31   :  { %571 = vmatprep.mubr.bf16.mxu1 %v2321_v3  ;;  %v235_v22 = vpack.c.bf16 %v171_v17, %v163_v16  ;;  %v147_v28 = vld [vmem:[%s5222_s4 + $0x308] sm:$0xff]  ;;  %v148_v37 = vld [vmem:[%s5222_s4 + $0x310] sm:$0xff]  ;;  %v138_v50 = vld [vmem:[%s5222_s4 + $0x2c0] sm:$0xff] }
  0x32   :  { %599 = vmatpush1.bf16.msra.mxu0 %v418_v27  ;;  %v172_v27 = vld [vmem:[%s5222_s4 + $0x3d0] sm:$0xff]  ;;  %v155_v29 = vld [vmem:[%s5222_s4 + $0x348] sm:$0xff]  ;;  %v125_v56 = vld [vmem:[%s5222_s4 + $0x258] sm:$0xff] }
  0x33   :  { %672 = vmatpush1.bf16.msra.mxu1 %v420_v30  ;;  %600 = vmatprep.subr.bf16.mxu0 %v411_v31  ;;  %v149_v30 = vld [vmem:[%s5222_s4 + $0x318] sm:$0xff]  ;;  %v236_v33 = vpack.c.bf16 %v172_v27, %v164_v25  ;;  %v227_v34 = vpack.c.bf16 %v155_v29, %v147_v28  ;;  %v156_v40 = vld [vmem:[%s5222_s4 + $0x350] sm:$0xff]  ;;  %v131_v41 = vld [vmem:[%s5222_s4 + $0x288] sm:$0xff] }
  0x34   :  { %673 = vmatprep.subr.bf16.mxu1 %v413_v35  ;;  %v157_v31 = vld [vmem:[%s5222_s4 + $0x358] sm:$0xff]  ;;  %v146_v35 = vld [vmem:[%s5222_s4 + $0x300] sm:$0xff]  ;;  %v228_v46 = vpack.c.bf16 %v156_v40, %v148_v37  ;;  %v132_v51 = vld [vmem:[%s5222_s4 + $0x290] sm:$0xff] }
  0x35   :  { %499 = vmatmul.mubr.bf16.gmra.mxu0 %v2734_v39  ;;  %v229_v38 = vpack.c.bf16 %v157_v31, %v149_v30  ;;  %v226_v45 = vpack.c.bf16 %v154_v36, %v146_v35  ;;  %v140_v52 = vld [vmem:[%s5222_s4 + $0x2d0] sm:$0xff]  ;;  %v115_v53 = vld [vmem:[%s5222_s4 + $0x208] sm:$0xff]  ;;  %v114_v60 = vld [vmem:[%s5222_s4 + $0x200] sm:$0xff] }
  0x36   :  { %572 = vmatmul.mubr.bf16.gmra.mxu1 %v2734_v39  ;;  %601 = vmatpush1.bf16.msra.mxu0 %v410_v42  ;;  %v139_v42 = vld [vmem:[%s5222_s4 + $0x2c8] sm:$0xff]  ;;  %v122_v61 = vld [vmem:[%s5222_s4 + $0x240] sm:$0xff]  ;;  %v116_v62 = vld [vmem:[%s5222_s4 + $0x210] sm:$0xff] }
  0x37   :  { %674 = vmatpush1.bf16.msra.mxu1 %v412_v43  ;;  %602 = vmatprep.subr.bf16.mxu0 %v403_v44  ;;  %v133_v43 = vld [vmem:[%s5222_s4 + $0x298] sm:$0xff]  ;;  %v219_v47 = vpack.c.bf16 %v139_v42, %v131_v41  ;;  %v123_v54 = vld [vmem:[%s5222_s4 + $0x248] sm:$0xff]  ;;  %v124_v0 = vld [vmem:[%s5222_s4 + $0x250] sm:$0xff] }
  0x38   :  { %675 = vmatprep.subr.bf16.mxu1 %v405_v49  ;;  %508 = vmatprep.mubr.bf16.mxu0 %v2321_v3  ;;  %v141_v44 = vld [vmem:[%s5222_s4 + $0x2d8] sm:$0xff]  ;;  %v130_v49 = vld [vmem:[%s5222_s4 + $0x280] sm:$0xff]  ;;  %v99_v1 = vld [vmem:[%s5222_s4 + $0x188] sm:$0xff] }
  0x39   :  { %581 = vmatprep.mubr.bf16.mxu1 %v2321_v3  ;;  %v218_v57 = vpack.c.bf16 %v138_v50, %v130_v49  ;;  %v107_v2 = vld [vmem:[%s5222_s4 + $0x1c8] sm:$0xff]  ;;  %v101_v5 = vld [vmem:[%s5222_s4 + $0x198] sm:$0xff]  ;;  %v98_v10 = vld [vmem:[%s5222_s4 + $0x180] sm:$0xff] }
  0x3a   :  { %603 = vmatpush1.bf16.msra.mxu0 %v402_v55  ;;  %v117_v55 = vld [vmem:[%s5222_s4 + $0x218] sm:$0xff]  ;;  %v106_v11 = vld [vmem:[%s5222_s4 + $0x1c0] sm:$0xff]  ;;  %v100_v13 = vld [vmem:[%s5222_s4 + $0x190] sm:$0xff] }
  0x3b   :  { %676 = vmatpush1.bf16.msra.mxu1 %v404_v58  ;;  %604 = vmatprep.subr.bf16.mxu0 %v395_v59  ;;  %v220_v58 = vpack.c.bf16 %v140_v52, %v132_v51  ;;  %v211_v59 = vpack.c.bf16 %v123_v54, %v115_v53  ;;  %v109_v6 = vld [vmem:[%s5222_s4 + $0x1d8] sm:$0xff]  ;;  %v83_v15 = vld [vmem:[%s5222_s4 + $0x108] sm:$0xff]  ;;  %v202_v19 = vpack.c.bf16 %v106_v11, %v98_v10  ;;  %v90_v23 = vld [vmem:[%s5222_s4 + $0x140] sm:$0xff] }
  0x3c   :  { %677 = vmatprep.subr.bf16.mxu1 %v397_v63  ;;  %v213_v63 = vpack.c.bf16 %v125_v56, %v117_v55  ;;  %v91_v16 = vld [vmem:[%s5222_s4 + $0x148] sm:$0xff]  ;;  %v85_v17 = vld [vmem:[%s5222_s4 + $0x118] sm:$0xff]  ;;  %v84_v24 = vld [vmem:[%s5222_s4 + $0x110] sm:$0xff] }
  0x3d   :  { %509 = vmatmul.mubr.bf16.gmra.mxu0 %v2794_v4  ;;  %v93_v18 = vld [vmem:[%s5222_s4 + $0x158] sm:$0xff]  ;;  %v67_v27 = vld [vmem:[%s5222_s4 + $0x88] sm:$0xff]  ;;  %v74_v35 = vld [vmem:[%s5222_s4 + $0xc0] sm:$0xff] }
  0x3e   :  { %582 = vmatmul.mubr.bf16.gmra.mxu1 %v2794_v4  ;;  %605 = vmatpush1.bf16.msra.mxu0 %v394_v7  ;;  %v210_v7 = vpack.c.bf16 %v122_v61, %v114_v60  ;;  %v197_v25 = vpack.c.bf16 %v93_v18, %v85_v17  ;;  %v75_v28 = vld [vmem:[%s5222_s4 + $0xc8] sm:$0xff]  ;;  %v69_v29 = vld [vmem:[%s5222_s4 + $0x98] sm:$0xff]  ;;  %v68_v36 = vld [vmem:[%s5222_s4 + $0x90] sm:$0xff] }
  0x3f   :  { %678 = vmatpush1.bf16.msra.mxu1 %v396_v8  ;;  %606 = vmatprep.subr.bf16.mxu0 %v387_v9  ;;  %v212_v8 = vpack.c.bf16 %v124_v0, %v116_v62  ;;  %v203_v9 = vpack.c.bf16 %v107_v2, %v99_v1  ;;  %v77_v30 = vld [vmem:[%s5222_s4 + $0xd8] sm:$0xff]  ;;  %v76_v37 = vld [vmem:[%s5222_s4 + $0xd0] sm:$0xff]  ;;  %v59_v40 = vld [vmem:[%s5222_s4 + $0x48] sm:$0xff] }
  0x40   :  { %679 = vmatprep.subr.bf16.mxu1 %v389_v14  ;;  %624 = vmatprep.mubr.bf16.mxu0 %v2321_v3  ;;  %v108_v14 = vld [vmem:[%s5222_s4 + $0x1d0] sm:$0xff]  ;;  %v53_v41 = vld [vmem:[%s5222_s4 + $0x18] sm:$0xff]  ;;  %v175_v52 = vld [vmem:[%s5222_s4 + $0x3e8] sm:$0xff] }
  0x41   :  { %697 = vmatprep.mubr.bf16.mxu1 %v2321_v3  ;;  %v61_v42 = vld [vmem:[%s5222_s4 + $0x58] sm:$0xff]  ;;  %v52_v49 = vld [vmem:[%s5222_s4 + $0x10] sm:$0xff]  ;;  %v38_v56 = vld [vmem:[%s5223_s1] sm:$0xff] }
  0x42   :  { %607 = vmatpush1.bf16.msra.mxu0 %v386_v20  ;;  %v204_v20 = vpack.c.bf16 %v108_v14, %v100_v13  ;;  %v181_v50 = vpack.c.bf16 %v61_v42, %v53_v41  ;;  %v60_v51 = vld [vmem:[%s5222_s4 + $0x50] sm:$0xff]  ;;  %v169_v53 = vld [vmem:[%s5222_s4 + $0x3b8] sm:$0xff]  ;;  %v166_v60 = vld [vmem:[%s5222_s4 + $0x3a0] sm:$0xff] }
  0x43   :  { %680 = vmatpush1.bf16.msra.mxu1 %v388_v21  ;;  %738 = vmatprep.subr.bf16.mxu0 %v235_v22  ;;  %v195_v21 = vpack.c.bf16 %v91_v16, %v83_v15  ;;  %v82_v22 = vld [vmem:[%s5222_s4 + $0x100] sm:$0xff]  ;;  %v177_v54 = vld [vmem:[%s5222_s4 + $0x3f8] sm:$0xff]  ;;  %v168_v61 = vld [vmem:[%s5222_s4 + $0x3b0] sm:$0xff] }
  0x44   :  { %811 = vmatprep.subr.bf16.mxu1 %v237_v26  ;;  %v92_v26 = vld [vmem:[%s5222_s4 + $0x150] sm:$0xff]  ;;  %v194_v31 = vpack.c.bf16 %v90_v23, %v82_v22  ;;  %v241_v62 = vpack.c.bf16 %v177_v54, %v169_v53  ;;  %v151_v0 = vld [vmem:[%s5222_s4 + $0x328] sm:$0xff]  ;;  %v150_v10 = vld [vmem:[%s5222_s4 + $0x320] sm:$0xff] }
  0x45   :  { %625 = vmatmul.mubr.bf16.vlgmr.msra.gmra.mxu0 %v2614_v48  ;;  %v159_v1 = vld [vmem:[%s5222_s4 + $0x368] sm:$0xff]  ;;  %v158_v11 = vld [vmem:[%s5222_s4 + $0x360] sm:$0xff]  ;;  %v152_v13 = vld [vmem:[%s5222_s4 + $0x330] sm:$0xff] }
  0x46   :  { %698 = vmatmul.mubr.bf16.vlgmr.msra.gmra.mxu1 %v2614_v48  ;;  %739 = vmatpush1.bf16.msra.mxu0 %v234_v32  ;;  %v221_v48 = vpack.c.bf16 %v141_v44, %v133_v43  ;;  %v196_v32 = vpack.c.bf16 %v92_v26, %v84_v24  ;;  %v188_v44 = vpack.c.bf16 %v76_v37, %v68_v36  ;;  %v160_v14 = vld [vmem:[%s5222_s4 + $0x370] sm:$0xff]  ;;  %v135_v15 = vld [vmem:[%s5222_s4 + $0x2a8] sm:$0xff]  ;;  %v137_v17 = vld [vmem:[%s5222_s4 + $0x2b8] sm:$0xff] }
  0x47   :  { %812 = vmatpush1.bf16.msra.mxu1 %v236_v33  ;;  %740 = vmatprep.subr.bf16.mxu0 %v227_v34  ;;  %v187_v33 = vpack.c.bf16 %v75_v28, %v67_v27  ;;  %v66_v34 = vld [vmem:[%s5222_s4 + $0x80] sm:$0xff]  ;;  %v143_v16 = vld [vmem:[%s5222_s4 + $0x2e8] sm:$0xff]  ;;  %v145_v18 = vld [vmem:[%s5222_s4 + $0x2f8] sm:$0xff]  ;;  %v232_v22 = vpack.c.bf16 %v160_v14, %v152_v13 }
  0x48   :  { %813 = vmatprep.subr.bf16.mxu1 %v229_v38  ;;  %634 = vmatprep.mubr.bf16.mxu0 %v2321_v3  ;;  %v51_v38 = vld [vmem:[%s5222_s4 + $0x8] sm:$0xff]  ;;  %v186_v43 = vpack.c.bf16 %v74_v35, %v66_v34  ;;  %v223_v23 = vpack.c.bf16 %v143_v16, %v135_v15  ;;  %v134_v24 = vld [vmem:[%s5222_s4 + $0x2a0] sm:$0xff]  ;;  %v136_v26 = vld [vmem:[%s5222_s4 + $0x2b0] sm:$0xff]  ;;  %v225_v27 = vpack.c.bf16 %v145_v18, %v137_v17 }
  0x49   :  { %707 = vmatprep.mubr.bf16.mxu1 %v2321_v3  ;;  %v144_v28 = vld [vmem:[%s5222_s4 + $0x2f0] sm:$0xff]  ;;  %v126_v37 = vld [vmem:[%s5222_s4 + $0x260] sm:$0xff]  ;;  %v103_v42 = vld [vmem:[%s5222_s4 + $0x1a8] sm:$0xff] }
  0x4a   :  { %741 = vmatpush1.bf16.msra.mxu0 %v226_v45  ;;  %v179_v45 = vpack.c.bf16 %v59_v40, %v51_v38  ;;  %v224_v35 = vpack.c.bf16 %v144_v28, %v136_v26  ;;  %v120_v38 = vld [vmem:[%s5222_s4 + $0x230] sm:$0xff]  ;;  %v70_v16 = vld [vmem:[%s5222_s4 + $0xa0] sm:$0xff] }
  0x4b   :  { %814 = vmatpush1.bf16.msra.mxu1 %v228_v46  ;;  %742 = vmatprep.subr.bf16.mxu0 %v219_v47  ;;  %v50_v46 = vld [vmem:[%s5222_s4] sm:$0xff]  ;;  %v128_v41 = vld [vmem:[%s5222_s4 + $0x270] sm:$0xff] }
  0x4c   :  { %815 = vmatprep.subr.bf16.mxu1 %v221_v48  ;;  %v58_v47 = vld [vmem:[%s5222_s4 + $0x40] sm:$0xff]  ;;  %v167_v48 = vld [vmem:[%s5222_s4 + $0x3a8] sm:$0xff]  ;;  %v104_v53 = vld [vmem:[%s5222_s4 + $0x1b0] sm:$0xff] }
  0x4d   :  { %635 = vmatmul.mubr.bf16.gmra.mxu0 %v2674_v12  ;;  %v178_v55 = vpack.c.bf16 %v58_v47, %v50_v46  ;;  %v42_v47 = vld [vmem:[%s5223_s1 + $0x20] sm:$0xff]  ;;  %v44_v13 = vld [vmem:[%s5223_s1 + $0x30] sm:$0xff] }
  0x4e   :  { %708 = vmatmul.mubr.bf16.gmra.mxu1 %v2674_v12  ;;  %743 = vmatpush1.bf16.msra.mxu0 %v218_v57  ;;  %v205_v12 = vpack.c.bf16 %v109_v6, %v101_v5  ;;  %v39_v57 = vld [vmem:[%s5223_s1 + $0x8] sm:$0xff]  ;;  %v153_v5 = vld [vmem:[%s5222_s4 + $0x338] sm:$0xff]  ;;  %v78_v17 = vld [vmem:[%s5222_s4 + $0xe0] sm:$0xff] }
  0x4f   :  { %816 = vmatpush1.bf16.msra.mxu1 %v220_v58  ;;  %744 = vmatprep.subr.bf16.mxu0 %v211_v59  ;;  %v180_v58 = vpack.c.bf16 %v60_v51, %v52_v49  ;;  %v239_v59 = vpack.c.bf16 %v175_v52, %v167_v48  ;;  %v3062_v2 = vpack.c.bf16 %v39_v57, %v38_v56  ;;  %v161_v6 = vld [vmem:[%s5222_s4 + $0x378] sm:$0xff]  ;;  %v43_v49 = vld [vmem:[%s5223_s1 + $0x28] sm:$0xff]  ;;  %v102_v48 = vld [vmem:[%s5222_s4 + $0x1a0] sm:$0xff] }
  0x50   :  { %817 = vmatprep.subr.bf16.mxu1 %v213_v63  ;;  %644 = vmatprep.mubr.bf16.mxu0 %v2321_v3  ;;  %v176_v63 = vld [vmem:[%s5222_s4 + $0x3f0] sm:$0xff]  ;;  %v110_v52 = vld [vmem:[%s5222_s4 + $0x1e0] sm:$0xff]  ;;  %v87_v56 = vld [vmem:[%s5222_s4 + $0x128] sm:$0xff]  ;;  %v190_v26 = vpack.c.bf16 %v78_v17, %v70_v16 }
  0x51   :  { %717 = vmatprep.mubr.bf16.mxu1 %v2321_v3  ;;  %v95_v57 = vld [vmem:[%s5222_s4 + $0x168] sm:$0xff]  ;;  %v72_v18 = vld [vmem:[%s5222_s4 + $0xb0] sm:$0xff]  ;;  %v1106_v16 = vld [vmem:[%s5224_s6 + $0x200] sm:$0xff] }
  0x52   :  { %745 = vmatpush1.bf16.msra.mxu0 %v210_v7  ;;  %v1114_v17 = vld [vmem:[%s5224_s6 + $0x240] sm:$0xff] }
  0x53   :  { %818 = vmatpush1.bf16.msra.mxu1 %v212_v8  ;;  %746 = vmatprep.subr.bf16.mxu0 %v203_v9  ;;  %v240_v8 = vpack.c.bf16 %v176_v63, %v168_v61  ;;  %v231_v9 = vpack.c.bf16 %v159_v1, %v151_v0  ;;  %v86_v63 = vld [vmem:[%s5222_s4 + $0x120] sm:$0xff]  ;;  %v88_v1 = vld [vmem:[%s5222_s4 + $0x130] sm:$0xff] }
  0x54   :  { %819 = vmatprep.subr.bf16.mxu1 %v205_v12  ;;  %v233_v12 = vpack.c.bf16 %v161_v6, %v153_v5  ;;  %v94_v0 = vld [vmem:[%s5222_s4 + $0x160] sm:$0xff]  ;;  %v96_v6 = vld [vmem:[%s5222_s4 + $0x170] sm:$0xff] }
  0x55   :  { %645 = vmatmul.mubr.bf16.gmra.mxu0 %v2734_v39  ;;  %v200_v14 = vpack.c.bf16 %v96_v6, %v88_v1  ;;  %v1130_v6 = vld [vmem:[%s5224_s6 + $0x2c0] sm:$0xff] }
  0x56   :  { %718 = vmatmul.mubr.bf16.gmra.mxu1 %v2734_v39  ;;  %747 = vmatpush1.bf16.msra.mxu0 %v202_v19  ;;  %v189_v39 = vpack.c.bf16 %v77_v30, %v69_v29  ;;  %v230_v19 = vpack.c.bf16 %v158_v11, %v150_v10  ;;  %v119_v29 = vld [vmem:[%s5222_s4 + $0x228] sm:$0xff]  ;;  %v81_v10 = vld [vmem:[%s5222_s4 + $0xf8] sm:$0xff]  ;;  %v198_v11 = vpack.c.bf16 %v94_v0, %v86_v63 }
  0x57   :  { %820 = vmatpush1.bf16.msra.mxu1 %v204_v20  ;;  %748 = vmatprep.subr.bf16.mxu0 %v195_v21  ;;  %v40_v20 = vld [vmem:[%s5223_s1 + $0x10] sm:$0xff]  ;;  %v41_v21 = vld [vmem:[%s5223_s1 + $0x18] sm:$0xff]  ;;  %v127_v30 = vld [vmem:[%s5222_s4 + $0x268] sm:$0xff] }
  0x58   :  { %821 = vmatprep.subr.bf16.mxu1 %v197_v25  ;;  %654 = vmatprep.mubr.bf16.mxu0 %v2321_v3  ;;  %v142_v25 = vld [vmem:[%s5222_s4 + $0x2e0] sm:$0xff]  ;;  %v215_v36 = vpack.c.bf16 %v127_v30, %v119_v29 }
  0x59   :  { %727 = vmatprep.mubr.bf16.mxu1 %v2321_v3  ;;  %v222_v34 = vpack.c.bf16 %v142_v25, %v134_v24  ;;  %v57_v24 = vld [vmem:[%s5222_s4 + $0x38] sm:$0xff]  ;;  %v54_v29 = vld [vmem:[%s5222_s4 + $0x20] sm:$0xff] }
  0x5a   :  { %749 = vmatpush1.bf16.msra.mxu0 %v194_v31  ;;  %v3122_v31 = vpack.c.bf16 %v41_v21, %v40_v20  ;;  %v80_v20 = vld [vmem:[%s5222_s4 + $0xf0] sm:$0xff]  ;;  %v55_v21 = vld [vmem:[%s5222_s4 + $0x28] sm:$0xff]  ;;  %v65_v25 = vld [vmem:[%s5222_s4 + $0x78] sm:$0xff] }
  0x5b   :  { %822 = vmatpush1.bf16.msra.mxu1 %v196_v32  ;;  %750 = vmatprep.subr.bf16.mxu0 %v187_v33  ;;  %v121_v32 = vld [vmem:[%s5222_s4 + $0x238] sm:$0xff]  ;;  %v62_v30 = vld [vmem:[%s5222_s4 + $0x60] sm:$0xff] }
  0x5c   :  { %823 = vmatprep.subr.bf16.mxu1 %v189_v39  ;;  %v129_v33 = vld [vmem:[%s5222_s4 + $0x278] sm:$0xff]  ;;  %v118_v39 = vld [vmem:[%s5222_s4 + $0x220] sm:$0xff] }
  0x5d   :  { %655 = vmatmul.mubr.bf16.gmra.mxu0 %v2794_v4  ;;  %v217_v40 = vpack.c.bf16 %v129_v33, %v121_v32  ;;  %v214_v46 = vpack.c.bf16 %v126_v37, %v118_v39  ;;  %v56_v32 = vld [vmem:[%s5222_s4 + $0x30] sm:$0xff]  ;;  %v185_v33 = vpack.c.bf16 %v65_v25, %v57_v24  ;;  %v1157_v39 = vld [vmem:[%s5224_s6 + $0x398] sm:$0xff] }
  0x5e   :  { %728 = vmatmul.mubr.bf16.gmra.mxu1 %v2794_v4  ;;  %751 = vmatpush1.bf16.msra.mxu0 %v186_v43  ;;  %v174_v4 = vld [vmem:[%s5222_s4 + $0x3e0] sm:$0xff]  ;;  %v111_v43 = vld [vmem:[%s5222_s4 + $0x1e8] sm:$0xff]  ;;  %v1165_v37 = vld [vmem:[%s5224_s6 + $0x3d8] sm:$0xff] }
  0x5f   :  { %824 = vmatpush1.bf16.msra.mxu1 %v188_v44  ;;  %752 = vmatprep.subr.bf16.mxu0 %v179_v45  ;;  %v238_v7 = vpack.c.bf16 %v174_v4, %v166_v60  ;;  %v105_v44 = vld [vmem:[%s5222_s4 + $0x1b8] sm:$0xff]  ;;  %v207_v51 = vpack.c.bf16 %v111_v43, %v103_v42  ;;  %v206_v4 = vpack.c.bf16 %v110_v52, %v102_v48  ;;  %v1154_v42 = vld [vmem:[%s5224_s6 + $0x380] sm:$0xff] }
  0x60   :  { %825 = vmatprep.subr.bf16.mxu1 %v181_v50  ;;  %770 = vmatprep.mubr.bf16.mxu0 %v2321_v3  ;;  %v113_v45 = vld [vmem:[%s5222_s4 + $0x1f8] sm:$0xff]  ;;  %v216_v50 = vpack.c.bf16 %v128_v41, %v120_v38  ;;  %v182_v38 = vpack.c.bf16 %v62_v30, %v54_v29  ;;  %v1162_v43 = vld [vmem:[%s5224_s6 + $0x3c0] sm:$0xff] }
  0x61   :  { %843 = vmatprep.mubr.bf16.mxu1 %v2321_v3  ;;  %v209_v54 = vpack.c.bf16 %v113_v45, %v105_v44  ;;  %v97_v60 = vld [vmem:[%s5222_s4 + $0x178] sm:$0xff]  ;;  %v1156_v44 = vld [vmem:[%s5224_s6 + $0x390] sm:$0xff]  ;;  %v1229_v45 = vpack.c.bf16 %v1165_v37, %v1157_v39  ;;  %v1226_v48 = vpack.c.bf16 %v1162_v43, %v1154_v42  ;;  %v1090_v29 = vld [vmem:[%s5224_s6 + $0x180] sm:$0xff] }
  0x62   :  { %753 = vmatpush1.bf16.msra.mxu0 %v178_v55  ;;  %v112_v55 = vld [vmem:[%s5222_s4 + $0x1f0] sm:$0xff]  ;;  %v1093_v24 = vld [vmem:[%s5224_s6 + $0x198] sm:$0xff]  ;;  %v1098_v30 = vld [vmem:[%s5224_s6 + $0x1c0] sm:$0xff] }
  0x63   :  { %826 = vmatpush1.bf16.msra.mxu1 %v180_v58  ;;  %884 = vmatprep.subr.bf16.mxu0 %v239_v59  ;;  %v3182_v58 = vpack.c.bf16 %v43_v49, %v42_v47  ;;  %v89_v59 = vld [vmem:[%s5222_s4 + $0x138] sm:$0xff]  ;;  %v208_v61 = vpack.c.bf16 %v112_v55, %v104_v53  ;;  %v1139_v47 = vld [vmem:[%s5224_s6 + $0x308] sm:$0xff]  ;;  %v1146_v55 = vld [vmem:[%s5224_s6 + $0x340] sm:$0xff]  ;;  %v1194_v37 = vpack.c.bf16 %v1098_v30, %v1090_v29 }
  0x64   :  { %957 = vmatprep.subr.bf16.mxu1 %v241_v62  ;;  %v199_v62 = vpack.c.bf16 %v95_v57, %v87_v56  ;;  %v201_v5 = vpack.c.bf16 %v97_v60, %v89_v59  ;;  %v1147_v49 = vld [vmem:[%s5224_s6 + $0x348] sm:$0xff]  ;;  %v1140_v56 = vld [vmem:[%s5224_s6 + $0x310] sm:$0xff]  ;;  %v1101_v25 = vld [vmem:[%s5224_s6 + $0x1d8] sm:$0xff] }
  0x65   :  { %771 = vmatmul.mubr.bf16.vlgmr.msra.gmra.mxu0 %v3062_v2  ;;  %v1219_v53 = vpack.c.bf16 %v1147_v49, %v1139_v47  ;;  %v1148_v59 = vld [vmem:[%s5224_s6 + $0x350] sm:$0xff]  ;;  %v1123_v60 = vld [vmem:[%s5224_s6 + $0x288] sm:$0xff]  ;;  %v1085_v39 = vld [vmem:[%s5224_s6 + $0x158] sm:$0xff] }
  0x66   :  { %844 = vmatmul.mubr.bf16.vlgmr.msra.gmra.mxu1 %v3062_v2  ;;  %885 = vmatpush1.bf16.msra.mxu0 %v238_v7  ;;  %v71_v7 = vld [vmem:[%s5222_s4 + $0xa8] sm:$0xff]  ;;  %v1220_v0 = vpack.c.bf16 %v1148_v59, %v1140_v56  ;;  %v1082_v42 = vld [vmem:[%s5224_s6 + $0x140] sm:$0xff]  ;;  %v1076_v43 = vld [vmem:[%s5224_s6 + $0x110] sm:$0xff] }
  0x67   :  { %958 = vmatpush1.bf16.msra.mxu1 %v240_v8  ;;  %886 = vmatprep.subr.bf16.mxu0 %v231_v9  ;;  %v79_v8 = vld [vmem:[%s5222_s4 + $0xe8] sm:$0xff]  ;;  %v73_v9 = vld [vmem:[%s5222_s4 + $0xb8] sm:$0xff]  ;;  %v1068_v56 = vld [vmem:[%s5224_s6 + $0xd0] sm:$0xff] }
  0x68   :  { %959 = vmatprep.subr.bf16.mxu1 %v233_v12  ;;  %780 = vmatprep.mubr.bf16.mxu0 %v2321_v3  ;;  %v45_v12 = vld [vmem:[%s5223_s1 + $0x38] sm:$0xff]  ;;  %v191_v15 = vpack.c.bf16 %v79_v8, %v71_v7  ;;  %v1124_v7 = vld [vmem:[%s5224_s6 + $0x290] sm:$0xff]  ;;  %v1067_v47 = vld [vmem:[%s5224_s6 + $0xc8] sm:$0xff] }
  0x69   :  { %853 = vmatprep.mubr.bf16.mxu1 %v2321_v3  ;;  %v1132_v8 = vld [vmem:[%s5224_s6 + $0x2d0] sm:$0xff]  ;;  %v1061_v49 = vld [vmem:[%s5224_s6 + $0x98] sm:$0xff]  ;;  %v1051_v59 = vld [vmem:[%s5224_s6 + $0x48] sm:$0xff] }
  0x6a   :  { %887 = vmatpush1.bf16.msra.mxu0 %v230_v19  ;;  %v193_v19 = vpack.c.bf16 %v81_v10, %v73_v9  ;;  %v1107_v9 = vld [vmem:[%s5224_s6 + $0x208] sm:$0xff]  ;;  %v1142_v29 = vld [vmem:[%s5224_s6 + $0x320] sm:$0xff] }
  0x6b   :  { %960 = vmatpush1.bf16.msra.mxu1 %v232_v22  ;;  %888 = vmatprep.subr.bf16.mxu0 %v223_v23  ;;  %v63_v22 = vld [vmem:[%s5222_s4 + $0x68] sm:$0xff]  ;;  %v3242_v23 = vpack.c.bf16 %v45_v12, %v44_v13  ;;  %v1117_v13 = vld [vmem:[%s5224_s6 + $0x258] sm:$0xff]  ;;  %v1150_v30 = vld [vmem:[%s5224_s6 + $0x360] sm:$0xff] }
  0x6c   :  { %961 = vmatprep.subr.bf16.mxu1 %v225_v27  ;;  %v192_v27 = vpack.c.bf16 %v80_v20, %v72_v18  ;;  %v183_v28 = vpack.c.bf16 %v63_v22, %v55_v21  ;;  %v1115_v10 = vld [vmem:[%s5224_s6 + $0x248] sm:$0xff]  ;;  %v1108_v18 = vld [vmem:[%s5224_s6 + $0x210] sm:$0xff] }
  0x6d   :  { %781 = vmatmul.mubr.bf16.gmra.mxu0 %v3122_v31  ;;  %v1116_v20 = vld [vmem:[%s5224_s6 + $0x250] sm:$0xff]  ;;  %v1091_v21 = vld [vmem:[%s5224_s6 + $0x188] sm:$0xff] }
  0x6e   :  { %854 = vmatmul.mubr.bf16.gmra.mxu1 %v3122_v31  ;;  %889 = vmatpush1.bf16.msra.mxu0 %v222_v34  ;;  %v64_v34 = vld [vmem:[%s5222_s4 + $0x70] sm:$0xff]  ;;  %v1099_v22 = vld [vmem:[%s5224_s6 + $0x1c8] sm:$0xff] }
  0x6f   :  { %962 = vmatpush1.bf16.msra.mxu1 %v224_v35  ;;  %890 = vmatprep.subr.bf16.mxu0 %v215_v36  ;;  %v1155_v35 = vld [vmem:[%s5224_s6 + $0x388] sm:$0xff] }
  0x70   :  { %963 = vmatprep.subr.bf16.mxu1 %v217_v40  ;;  %790 = vmatprep.mubr.bf16.mxu0 %v2321_v3  ;;  %v1163_v36 = vld [vmem:[%s5224_s6 + $0x3c8] sm:$0xff]  ;;  %v184_v40 = vpack.c.bf16 %v64_v34, %v56_v32  ;;  %v1092_v32 = vld [vmem:[%s5224_s6 + $0x190] sm:$0xff] }
  0x71   :  { %863 = vmatprep.mubr.bf16.mxu1 %v2321_v3  ;;  %v1227_v41 = vpack.c.bf16 %v1163_v36, %v1155_v35  ;;  %v1075_v34 = vld [vmem:[%s5224_s6 + $0x108] sm:$0xff]  ;;  %v1077_v36 = vld [vmem:[%s5224_s6 + $0x118] sm:$0xff] }
  0x72   :  { %891 = vmatpush1.bf16.msra.mxu0 %v214_v46  ;;  %v1164_v46 = vld [vmem:[%s5224_s6 + $0x3d0] sm:$0xff]  ;;  %v1083_v35 = vld [vmem:[%s5224_s6 + $0x148] sm:$0xff] }
  0x73   :  { %964 = vmatpush1.bf16.msra.mxu1 %v216_v50  ;;  %892 = vmatprep.subr.bf16.mxu0 %v207_v51  ;;  %v1141_v50 = vld [vmem:[%s5224_s6 + $0x318] sm:$0xff]  ;;  %v1228_v52 = vpack.c.bf16 %v1164_v46, %v1156_v44  ;;  %v1189_v44 = vpack.c.bf16 %v1085_v39, %v1077_v36  ;;  %v1059_v46 = vld [vmem:[%s5224_s6 + $0x88] sm:$0xff] }
  0x74   :  { %965 = vmatprep.subr.bf16.mxu1 %v209_v54  ;;  %v1149_v51 = vld [vmem:[%s5224_s6 + $0x358] sm:$0xff]  ;;  %v1138_v54 = vld [vmem:[%s5224_s6 + $0x300] sm:$0xff] }
  0x75   :  { %791 = vmatmul.mubr.bf16.gmra.mxu0 %v3182_v58  ;;  %v1221_v57 = vpack.c.bf16 %v1149_v51, %v1141_v50  ;;  %v1218_v63 = vpack.c.bf16 %v1146_v55, %v1138_v54  ;;  %v1069_v50 = vld [vmem:[%s5224_s6 + $0xd8] sm:$0xff]  ;;  %v1066_v54 = vld [vmem:[%s5224_s6 + $0xc0] sm:$0xff]  ;;  %v1060_v55 = vld [vmem:[%s5224_s6 + $0x90] sm:$0xff] }
  0x76   :  { %864 = vmatmul.mubr.bf16.gmra.mxu1 %v3182_v58  ;;  %893 = vmatpush1.bf16.msra.mxu0 %v206_v4  ;;  %v1131_v4 = vld [vmem:[%s5224_s6 + $0x2c8] sm:$0xff]  ;;  %v1129_v36 = vld [vmem:[%s5224_s6 + $0x2b8] sm:$0xff] }
  0x77   :  { %966 = vmatpush1.bf16.msra.mxu1 %v208_v61  ;;  %894 = vmatprep.subr.bf16.mxu0 %v199_v62  ;;  %v1125_v61 = vld [vmem:[%s5224_s6 + $0x298] sm:$0xff]  ;;  %v1211_v1 = vpack.c.bf16 %v1131_v4, %v1123_v60 }
  0x78   :  { %967 = vmatprep.subr.bf16.mxu1 %v201_v5  ;;  %800 = vmatprep.mubr.bf16.mxu0 %v2321_v3  ;;  %v1133_v62 = vld [vmem:[%s5224_s6 + $0x2d8] sm:$0xff]  ;;  %v1122_v5 = vld [vmem:[%s5224_s6 + $0x280] sm:$0xff] }
  0x79   :  { %873 = vmatprep.mubr.bf16.mxu1 %v2321_v3  ;;  %v1210_v12 = vpack.c.bf16 %v1130_v6, %v1122_v5  ;;  %v1045_v60 = vld [vmem:[%s5224_s6 + $0x18] sm:$0xff]  ;;  %v1044_v5 = vld [vmem:[%s5224_s6 + $0x10] sm:$0xff] }
  0x7a   :  { %895 = vmatpush1.bf16.msra.mxu0 %v198_v11  ;;  %v1109_v11 = vld [vmem:[%s5224_s6 + $0x218] sm:$0xff] }
  0x7b   :  { %968 = vmatpush1.bf16.msra.mxu1 %v200_v14  ;;  %896 = vmatprep.subr.bf16.mxu0 %v191_v15  ;;  %v1212_v14 = vpack.c.bf16 %v1132_v8, %v1124_v7  ;;  %v1203_v15 = vpack.c.bf16 %v1115_v10, %v1107_v9  ;;  %v1053_v4 = vld [vmem:[%s5224_s6 + $0x58] sm:$0xff]  ;;  %v1052_v7 = vld [vmem:[%s5224_s6 + $0x50] sm:$0xff]  ;;  %v1167_v8 = vld [vmem:[%s5224_s6 + $0x3e8] sm:$0xff] }
  0x7c   :  { %969 = vmatprep.subr.bf16.mxu1 %v193_v19  ;;  %v1205_v19 = vpack.c.bf16 %v1117_v13, %v1109_v11  ;;  %v1173_v6 = vpack.c.bf16 %v1053_v4, %v1045_v60  ;;  %v1161_v9 = vld [vmem:[%s5224_s6 + $0x3b8] sm:$0xff]  ;;  %v1030_v13 = vld [vmem:[%s5225_s3] sm:$0xff]  ;;  %v1120_v60 = vld [vmem:[%s5224_s6 + $0x270] sm:$0xff] }
  0x7d   :  { %801 = vmatmul.mubr.bf16.gmra.mxu0 %v3242_v23  ;;  %v1169_v10 = vld [vmem:[%s5224_s6 + $0x3f8] sm:$0xff]  ;;  %v1095_v4 = vld [vmem:[%s5224_s6 + $0x1a8] sm:$0xff] }
  0x7e   :  { %874 = vmatmul.mubr.bf16.gmra.mxu1 %v3242_v23  ;;  %897 = vmatpush1.bf16.msra.mxu0 %v190_v26  ;;  %v1202_v26 = vpack.c.bf16 %v1114_v17, %v1106_v16  ;;  %v1158_v16 = vld [vmem:[%s5224_s6 + $0x3a0] sm:$0xff]  ;;  %v1160_v17 = vld [vmem:[%s5224_s6 + $0x3b0] sm:$0xff]  ;;  %v1137_v39 = vld [vmem:[%s5224_s6 + $0x2f8] sm:$0xff] }
  0x7f   :  { %970 = vmatpush1.bf16.msra.mxu1 %v192_v27  ;;  %898 = vmatprep.subr.bf16.mxu0 %v183_v28  ;;  %v1204_v27 = vpack.c.bf16 %v1116_v20, %v1108_v18  ;;  %v1195_v28 = vpack.c.bf16 %v1099_v22, %v1091_v21  ;;  %v1233_v18 = vpack.c.bf16 %v1169_v10, %v1161_v9  ;;  %v1143_v20 = vld [vmem:[%s5224_s6 + $0x328] sm:$0xff]  ;;  %v1096_v9 = vld [vmem:[%s5224_s6 + $0x1b0] sm:$0xff] }
  0x80   :  { %971 = vmatprep.subr.bf16.mxu1 %v185_v33  ;;  %916 = vmatprep.mubr.bf16.mxu0 %v2321_v3  ;;  %v1100_v33 = vld [vmem:[%s5224_s6 + $0x1d0] sm:$0xff]  ;;  %v1151_v21 = vld [vmem:[%s5224_s6 + $0x368] sm:$0xff] }
  0x81   :  { %989 = vmatprep.mubr.bf16.mxu1 %v2321_v3 }
  0x82   :  { %899 = vmatpush1.bf16.msra.mxu0 %v182_v38  ;;  %v1196_v38 = vpack.c.bf16 %v1100_v33, %v1092_v32  ;;  %v1144_v32 = vld [vmem:[%s5224_s6 + $0x330] sm:$0xff] }
  0x83   :  { %972 = vmatpush1.bf16.msra.mxu1 %v184_v40  ;;  %1234 = vmatprep.subr.bf16.mxu0 %v1227_v41  ;;  %v1187_v40 = vpack.c.bf16 %v1083_v35, %v1075_v34  ;;  %v1074_v41 = vld [vmem:[%s5224_s6 + $0x100] sm:$0xff]  ;;  %v1152_v33 = vld [vmem:[%s5224_s6 + $0x370] sm:$0xff]  ;;  %v1127_v34 = vld [vmem:[%s5224_s6 + $0x2a8] sm:$0xff] }
  0x84   :  { %1307 = vmatprep.subr.bf16.mxu1 %v1229_v45  ;;  %v1084_v45 = vld [vmem:[%s5224_s6 + $0x150] sm:$0xff]  ;;  %v1186_v51 = vpack.c.bf16 %v1082_v42, %v1074_v41  ;;  %v1135_v35 = vld [vmem:[%s5224_s6 + $0x2e8] sm:$0xff]  ;;  %v1224_v41 = vpack.c.bf16 %v1152_v33, %v1144_v32 }
  0x85   :  { %917 = vmatmul.mubr.bf16.vlgmr.msra.gmra.mxu0 %v3062_v2  ;;  %v1215_v42 = vpack.c.bf16 %v1135_v35, %v1127_v34  ;;  %v1036_v32 = vld [vmem:[%s5225_s3 + $0x30] sm:$0xff]  ;;  %v1062_v35 = vld [vmem:[%s5224_s6 + $0xa0] sm:$0xff] }
  0x86   :  { %990 = vmatmul.mubr.bf16.vlgmr.msra.gmra.mxu1 %v3062_v2  ;;  %1235 = vmatpush1.bf16.msra.mxu0 %v1226_v48  ;;  %v1213_v2 = vpack.c.bf16 %v1133_v62, %v1125_v61  ;;  %v1188_v48 = vpack.c.bf16 %v1084_v45, %v1076_v43  ;;  %v1180_v62 = vpack.c.bf16 %v1068_v56, %v1060_v55  ;;  %v1126_v43 = vld [vmem:[%s5224_s6 + $0x2a0] sm:$0xff]  ;;  %v1128_v45 = vld [vmem:[%s5224_s6 + $0x2b0] sm:$0xff] }
  0x87   :  { %1308 = vmatpush1.bf16.msra.mxu1 %v1228_v52  ;;  %1236 = vmatprep.subr.bf16.mxu0 %v1219_v53  ;;  %v1179_v52 = vpack.c.bf16 %v1067_v47, %v1059_v46  ;;  %v1058_v53 = vld [vmem:[%s5224_s6 + $0x80] sm:$0xff]  ;;  %v1217_v46 = vpack.c.bf16 %v1137_v39, %v1129_v36  ;;  %v1136_v47 = vld [vmem:[%s5224_s6 + $0x2f0] sm:$0xff] }
  0x88   :  { %1309 = vmatprep.subr.bf16.mxu1 %v1221_v57  ;;  %926 = vmatprep.mubr.bf16.mxu0 %v2321_v3  ;;  %v1043_v57 = vld [vmem:[%s5224_s6 + $0x8] sm:$0xff]  ;;  %v1178_v61 = vpack.c.bf16 %v1066_v54, %v1058_v53  ;;  %v1216_v54 = vpack.c.bf16 %v1136_v47, %v1128_v45  ;;  %v1118_v56 = vld [vmem:[%s5224_s6 + $0x260] sm:$0xff]  ;;  %v1064_v39 = vld [vmem:[%s5224_s6 + $0xb0] sm:$0xff] }
  0x89   :  { %999 = vmatprep.mubr.bf16.mxu1 %v2321_v3  ;;  %v1070_v36 = vld [vmem:[%s5224_s6 + $0xe0] sm:$0xff] }
  0x8a   :  { %1237 = vmatpush1.bf16.msra.mxu0 %v1218_v63  ;;  %v1171_v63 = vpack.c.bf16 %v1051_v59, %v1043_v57  ;;  %v1112_v57 = vld [vmem:[%s5224_s6 + $0x230] sm:$0xff]  ;;  %v1182_v45 = vpack.c.bf16 %v1070_v36, %v1062_v35 }
  0x8b   :  { %1310 = vmatpush1.bf16.msra.mxu1 %v1220_v0  ;;  %1238 = vmatprep.subr.bf16.mxu0 %v1211_v1  ;;  %v1042_v0 = vld [vmem:[%s5224_s6] sm:$0xff] }
  0x8c   :  { %1311 = vmatprep.subr.bf16.mxu1 %v1213_v2  ;;  %v1050_v1 = vld [vmem:[%s5224_s6 + $0x40] sm:$0xff]  ;;  %v1159_v2 = vld [vmem:[%s5224_s6 + $0x3a8] sm:$0xff] }
  0x8d   :  { %927 = vmatmul.mubr.bf16.gmra.mxu0 %v3122_v31  ;;  %v1170_v11 = vpack.c.bf16 %v1050_v1, %v1042_v0  ;;  %v1034_v1 = vld [vmem:[%s5225_s3 + $0x20] sm:$0xff] }
  0x8e   :  { %1000 = vmatmul.mubr.bf16.gmra.mxu1 %v3122_v31  ;;  %1239 = vmatpush1.bf16.msra.mxu0 %v1210_v12  ;;  %v1197_v31 = vpack.c.bf16 %v1101_v25, %v1093_v24  ;;  %v1031_v12 = vld [vmem:[%s5225_s3 + $0x8] sm:$0xff]  ;;  %v1145_v24 = vld [vmem:[%s5224_s6 + $0x338] sm:$0xff] }
  0x8f   :  { %1312 = vmatpush1.bf16.msra.mxu1 %v1212_v14  ;;  %1240 = vmatprep.subr.bf16.mxu0 %v1203_v15  ;;  %v1172_v14 = vpack.c.bf16 %v1052_v7, %v1044_v5  ;;  %v1231_v15 = vpack.c.bf16 %v1167_v8, %v1159_v2  ;;  %v3510_v22 = vpack.c.bf16 %v1031_v12, %v1030_v13  ;;  %v1153_v25 = vld [vmem:[%s5224_s6 + $0x378] sm:$0xff]  ;;  %v1035_v5 = vld [vmem:[%s5225_s3 + $0x28] sm:$0xff]  ;;  %v1094_v2 = vld [vmem:[%s5224_s6 + $0x1a0] sm:$0xff] }
  0x90   :  { %1313 = vmatprep.subr.bf16.mxu1 %v1205_v19  ;;  %936 = vmatprep.mubr.bf16.mxu0 %v2321_v3  ;;  %v1168_v19 = vld [vmem:[%s5224_s6 + $0x3f0] sm:$0xff]  ;;  %v1102_v8 = vld [vmem:[%s5224_s6 + $0x1e0] sm:$0xff]  ;;  %v1079_v13 = vld [vmem:[%s5224_s6 + $0x128] sm:$0xff] }
  0x91   :  { %1009 = vmatprep.mubr.bf16.mxu1 %v2321_v3  ;;  %v1087_v12 = vld [vmem:[%s5224_s6 + $0x168] sm:$0xff] }
  0x92   :  { %1241 = vmatpush1.bf16.msra.mxu0 %v1202_v26 }
  0x93   :  { %1314 = vmatpush1.bf16.msra.mxu1 %v1204_v27  ;;  %1242 = vmatprep.subr.bf16.mxu0 %v1195_v28  ;;  %v1232_v27 = vpack.c.bf16 %v1168_v19, %v1160_v17  ;;  %v1223_v28 = vpack.c.bf16 %v1151_v21, %v1143_v20  ;;  %v1078_v19 = vld [vmem:[%s5224_s6 + $0x120] sm:$0xff]  ;;  %v1080_v21 = vld [vmem:[%s5224_s6 + $0x130] sm:$0xff] }
  0x94   :  { %1315 = vmatprep.subr.bf16.mxu1 %v1197_v31  ;;  %v1225_v31 = vpack.c.bf16 %v1153_v25, %v1145_v24  ;;  %v1086_v20 = vld [vmem:[%s5224_s6 + $0x160] sm:$0xff]  ;;  %v1088_v25 = vld [vmem:[%s5224_s6 + $0x170] sm:$0xff] }
  0x95   :  { %937 = vmatmul.mubr.bf16.gmra.mxu0 %v3182_v58  ;;  %v1192_v33 = vpack.c.bf16 %v1088_v25, %v1080_v21 }
  0x96   :  { %1010 = vmatmul.mubr.bf16.gmra.mxu1 %v3182_v58  ;;  %1243 = vmatpush1.bf16.msra.mxu0 %v1194_v37  ;;  %v1181_v58 = vpack.c.bf16 %v1069_v50, %v1061_v49  ;;  %v1222_v37 = vpack.c.bf16 %v1150_v30, %v1142_v29  ;;  %v1111_v49 = vld [vmem:[%s5224_s6 + $0x228] sm:$0xff]  ;;  %v1073_v29 = vld [vmem:[%s5224_s6 + $0xf8] sm:$0xff]  ;;  %v1190_v30 = vpack.c.bf16 %v1086_v20, %v1078_v19 }
  0x97   :  { %1316 = vmatpush1.bf16.msra.mxu1 %v1196_v38  ;;  %1244 = vmatprep.subr.bf16.mxu0 %v1187_v40  ;;  %v1032_v38 = vld [vmem:[%s5225_s3 + $0x10] sm:$0xff]  ;;  %v1033_v40 = vld [vmem:[%s5225_s3 + $0x18] sm:$0xff]  ;;  %v1119_v50 = vld [vmem:[%s5224_s6 + $0x268] sm:$0xff] }
  0x98   :  { %1317 = vmatprep.subr.bf16.mxu1 %v1189_v44  ;;  %946 = vmatprep.mubr.bf16.mxu0 %v2321_v3  ;;  %v1134_v44 = vld [vmem:[%s5224_s6 + $0x2e0] sm:$0xff]  ;;  %v1207_v55 = vpack.c.bf16 %v1119_v50, %v1111_v49 }
  0x99   :  { %1019 = vmatprep.mubr.bf16.mxu1 %v2321_v3  ;;  %v1214_v53 = vpack.c.bf16 %v1134_v44, %v1126_v43  ;;  %v1049_v43 = vld [vmem:[%s5224_s6 + $0x38] sm:$0xff]  ;;  %v1046_v49 = vld [vmem:[%s5224_s6 + $0x20] sm:$0xff] }
  0x9a   :  { %1245 = vmatpush1.bf16.msra.mxu0 %v1186_v51  ;;  %v3570_v51 = vpack.c.bf16 %v1033_v40, %v1032_v38  ;;  %v1072_v38 = vld [vmem:[%s5224_s6 + $0xf0] sm:$0xff]  ;;  %v1047_v40 = vld [vmem:[%s5224_s6 + $0x28] sm:$0xff]  ;;  %v1057_v44 = vld [vmem:[%s5224_s6 + $0x78] sm:$0xff] }
  0x9b   :  { %1318 = vmatpush1.bf16.msra.mxu1 %v1188_v48  ;;  %1246 = vmatprep.subr.bf16.mxu0 %v1179_v52  ;;  %v1113_v48 = vld [vmem:[%s5224_s6 + $0x238] sm:$0xff]  ;;  %v1054_v50 = vld [vmem:[%s5224_s6 + $0x60] sm:$0xff] }
  0x9c   :  { %1319 = vmatprep.subr.bf16.mxu1 %v1181_v58  ;;  %v1121_v52 = vld [vmem:[%s5224_s6 + $0x278] sm:$0xff]  ;;  %v1110_v58 = vld [vmem:[%s5224_s6 + $0x220] sm:$0xff] }
  0x9d   :  { %947 = vmatmul.mubr.bf16.gmra.mxu0 %v3242_v23  ;;  %v1209_v59 = vpack.c.bf16 %v1121_v52, %v1113_v48  ;;  %v1206_v0 = vpack.c.bf16 %v1118_v56, %v1110_v58  ;;  %v1177_v48 = vpack.c.bf16 %v1057_v44, %v1049_v43  ;;  %v1048_v52 = vld [vmem:[%s5224_s6 + $0x30] sm:$0xff] }
  0x9e   :  { %1020 = vmatmul.mubr.bf16.gmra.mxu1 %v3242_v23  ;;  %1247 = vmatpush1.bf16.msra.mxu0 %v1178_v61  ;;  %v1166_v23 = vld [vmem:[%s5224_s6 + $0x3e0] sm:$0xff]  ;;  %v1103_v61 = vld [vmem:[%s5224_s6 + $0x1e8] sm:$0xff] }
  0x9f   :  { %1320 = vmatpush1.bf16.msra.mxu1 %v1180_v62  ;;  %1248 = vmatprep.subr.bf16.mxu0 %v1171_v63  ;;  %v1230_v26 = vpack.c.bf16 %v1166_v23, %v1158_v16  ;;  %v1097_v62 = vld [vmem:[%s5224_s6 + $0x1b8] sm:$0xff]  ;;  %v1199_v7 = vpack.c.bf16 %v1103_v61, %v1095_v4  ;;  %v1198_v23 = vpack.c.bf16 %v1102_v8, %v1094_v2 }
  0xa0   :  { %1321 = vmatprep.subr.bf16.mxu1 %v1173_v6  ;;  %1266 = vmatprep.mubr.bf16.mxu0 %v2321_v3  ;;  %v1105_v63 = vld [vmem:[%s5224_s6 + $0x1f8] sm:$0xff]  ;;  %v1208_v6 = vpack.c.bf16 %v1120_v60, %v1112_v57 }
  0xa1   :  { %1339 = vmatprep.mubr.bf16.mxu1 %v2321_v3  ;;  %v1201_v10 = vpack.c.bf16 %v1105_v63, %v1097_v62  ;;  %v1089_v16 = vld [vmem:[%s5224_s6 + $0x178] sm:$0xff] }
  0xa2   :  { %1249 = vmatpush1.bf16.msra.mxu0 %v1170_v11  ;;  %v1104_v11 = vld [vmem:[%s5224_s6 + $0x1f0] sm:$0xff] }
  0xa3   :  { %1322 = vmatpush1.bf16.msra.mxu1 %v1172_v14  ;;  %1380 = vmatprep.subr.bf16.mxu0 %v1231_v15  ;;  %v3630_v14 = vpack.c.bf16 %v1035_v5, %v1034_v1  ;;  %v1081_v15 = vld [vmem:[%s5224_s6 + $0x138] sm:$0xff]  ;;  %v1200_v17 = vpack.c.bf16 %v1104_v11, %v1096_v9 }
  0xa4   :  { %1453 = vmatprep.subr.bf16.mxu1 %v1233_v18  ;;  %v1191_v18 = vpack.c.bf16 %v1087_v12, %v1079_v13  ;;  %v1193_v24 = vpack.c.bf16 %v1089_v16, %v1081_v15 }
  0xa5   :  { %1267 = vmatmul.mubr.bf16.vlgmr.msra.gmra.mxu0 %v3510_v22 }
  0xa6   :  { %1340 = vmatmul.mubr.bf16.vlgmr.msra.gmra.mxu1 %v3510_v22  ;;  %1381 = vmatpush1.bf16.msra.mxu0 %v1230_v26  ;;  %v1063_v26 = vld [vmem:[%s5224_s6 + $0xa8] sm:$0xff] }
  0xa7   :  { %1454 = vmatpush1.bf16.msra.mxu1 %v1232_v27  ;;  %1382 = vmatprep.subr.bf16.mxu0 %v1223_v28  ;;  %v1071_v27 = vld [vmem:[%s5224_s6 + $0xe8] sm:$0xff]  ;;  %v1065_v28 = vld [vmem:[%s5224_s6 + $0xb8] sm:$0xff] }
  0xa8   :  { %1455 = vmatprep.subr.bf16.mxu1 %v1225_v31  ;;  %1276 = vmatprep.mubr.bf16.mxu0 %v2321_v3  ;;  %v1037_v31 = vld [vmem:[%s5225_s3 + $0x38] sm:$0xff]  ;;  %v1183_v34 = vpack.c.bf16 %v1071_v27, %v1063_v26 }
  0xa9   :  { %1349 = vmatprep.mubr.bf16.mxu1 %v2321_v3 }
  0xaa   :  { %1383 = vmatpush1.bf16.msra.mxu0 %v1222_v37  ;;  %v1185_v37 = vpack.c.bf16 %v1073_v29, %v1065_v28 }
  0xab   :  { %1456 = vmatpush1.bf16.msra.mxu1 %v1224_v41  ;;  %1384 = vmatprep.subr.bf16.mxu0 %v1215_v42  ;;  %v1055_v41 = vld [vmem:[%s5224_s6 + $0x68] sm:$0xff]  ;;  %v1041_v42 = vpack.c.bf16 %v1037_v31, %v1036_v32 }
  0xac   :  { %1457 = vmatprep.subr.bf16.mxu1 %v1217_v46  ;;  %v1184_v46 = vpack.c.bf16 %v1072_v38, %v1064_v39  ;;  %v1175_v47 = vpack.c.bf16 %v1055_v41, %v1047_v40 }
  0xad   :  { %1277 = vmatmul.mubr.bf16.gmra.mxu0 %v3570_v51 }
  0xae   :  { %1350 = vmatmul.mubr.bf16.gmra.mxu1 %v3570_v51  ;;  %1385 = vmatpush1.bf16.msra.mxu0 %v1214_v53  ;;  %v1056_v53 = vld [vmem:[%s5224_s6 + $0x70] sm:$0xff] }
  0xaf   :  { %1458 = vmatpush1.bf16.msra.mxu1 %v1216_v54  ;;  %1386 = vmatprep.subr.bf16.mxu0 %v1207_v55  ;;  %v1174_v54 = vpack.c.bf16 %v1054_v50, %v1046_v49  ;;  %v1176_v55 = vpack.c.bf16 %v1056_v53, %v1048_v52 }
  0xb0   :  { %1459 = vmatprep.subr.bf16.mxu1 %v1209_v59  ;;  %1286 = vmatprep.mubr.bf16.mxu0 %v2321_v3 }
  0xb1   :  { %1359 = vmatprep.mubr.bf16.mxu1 %v2321_v3 }
  0xb2   :  { %1387 = vmatpush1.bf16.msra.mxu0 %v1206_v0 }
  0xb3   :  { %1460 = vmatpush1.bf16.msra.mxu1 %v1208_v6  ;;  %1388 = vmatprep.subr.bf16.mxu0 %v1199_v7 }
  0xb4   :  { %1461 = vmatprep.subr.bf16.mxu1 %v1201_v10 }
  0xb5   :  { %1287 = vmatmul.mubr.bf16.gmra.mxu0 %v3630_v14 }
  0xb6   :  { %1360 = vmatmul.mubr.bf16.gmra.mxu1 %v3630_v14  ;;  %1389 = vmatpush1.bf16.msra.mxu0 %v1198_v23 }
  0xb7   :  { %1462 = vmatpush1.bf16.msra.mxu1 %v1200_v17  ;;  %1390 = vmatprep.subr.bf16.mxu0 %v1191_v18 }
  0xb8   :  { %1463 = vmatprep.subr.bf16.mxu1 %v1193_v24  ;;  %1296 = vmatprep.mubr.bf16.mxu0 %v2321_v3 }
  0xb9   :  { %1369 = vmatprep.mubr.bf16.mxu1 %v2321_v3 }
  0xba   :  { %1391 = vmatpush1.bf16.msra.mxu0 %v1190_v30 }
  0xbb   :  { %1464 = vmatpush1.bf16.msra.mxu1 %v1192_v33  ;;  %1392 = vmatprep.subr.bf16.mxu0 %v1183_v34 }
  0xbc   :  { %1465 = vmatprep.subr.bf16.mxu1 %v1185_v37 }
  0xbd   :  { %1297 = vmatmul.mubr.bf16.gmra.mxu0 %v1041_v42 }
  0xbe   :  { %1370 = vmatmul.mubr.bf16.gmra.mxu1 %v1041_v42  ;;  %1393 = vmatpush1.bf16.msra.mxu0 %v1182_v45 }
  0xbf   :  { %1466 = vmatpush1.bf16.msra.mxu1 %v1184_v46  ;;  %1394 = vmatprep.subr.bf16.mxu0 %v1175_v47 }
  0xc0   :  { %1467 = vmatprep.subr.bf16.mxu1 %v1177_v48  ;;  %1412 = vmatprep.mubr.bf16.mxu0 %v2321_v3 }
  0xc1   :  { %1485 = vmatprep.mubr.bf16.mxu1 %v2321_v3 }
  0xc2   :  { %1395 = vmatpush1.bf16.msra.mxu0 %v1174_v54 }
  0xc3   :  { %1468 = vmatpush1.bf16.msra.mxu1 %v1176_v55 }
  0xc5   :  { %1413 = vmatmul.mubr.bf16.vlgmr.msra.gmra.mxu0 %v3510_v22 }
  0xc6   :  { %1486 = vmatmul.mubr.bf16.vlgmr.msra.gmra.mxu1 %v3510_v22  ;;  %1422 = vmatprep.mubr.bf16.mxu0 %v2321_v3 }
  0xc7   :  { %1495 = vmatprep.mubr.bf16.mxu1 %v2321_v3 }
  0xcd   :  { %1423 = vmatmul.mubr.bf16.gmra.mxu0 %v3570_v51 }
  0xce   :  { %1496 = vmatmul.mubr.bf16.gmra.mxu1 %v3570_v51  ;;  %1432 = vmatprep.mubr.bf16.mxu0 %v2321_v3 }
  0xcf   :  { %1505 = vmatprep.mubr.bf16.mxu1 %v2321_v3 }
  0xd5   :  { %1433 = vmatmul.mubr.bf16.gmra.mxu0 %v3630_v14 }
  0xd6   :  { %1506 = vmatmul.mubr.bf16.gmra.mxu1 %v3630_v14  ;;  %1442 = vmatprep.mubr.bf16.mxu0 %v2321_v3 }
  0xd7   :  { %1515 = vmatprep.mubr.bf16.mxu1 %v2321_v3 }
  0xdd   :  { %1443 = vmatmul.mubr.bf16.gmra.mxu0 %v1041_v42 }
  0xde   :  { %1516 = vmatmul.mubr.bf16.gmra.mxu1 %v1041_v42 }
  0xe5   :  { %v3722_v22 = vpop.f32.mrf.mxu0 }
  0xe6   :  { %v3724_v58 = vpop.f32.mrf.mxu1 }
  0xe7   :  { %v3726_v56 = vpop.f32.mrf.mxu0 }
  0xe8   :  { %v3728_v51 = vpop.f32.mrf.mxu1 }
  0xe9   :  { %v3730_v57 = vpop.f32.mrf.mxu0 }
  0xea   :  { %v3732_v59 = vpop.f32.mrf.mxu1 }
  0xeb   :  { %v3734_v60 = vpop.f32.mrf.mxu0 }
  0xec   :  { %v3736_v4 = vpop.f32.mrf.mxu1 }
  0xed   :  { %v3738_v61 = vpop.f32.mrf.mxu0 }
  0xee   :  { %v3740_v3 = vpop.f32.mrf.mxu1 }
  0xef   :  { %v3742_v62 = vpop.f32.mrf.mxu0 }
  0xf0   :  { %v3744_v63 = vpop.f32.mrf.mxu1 }
  0xf1   :  { %v3746_v0 = vpop.f32.mrf.mxu0 }
  0xf2   :  { %v3748_v1 = vpop.f32.mrf.mxu1 }
  0xf3   :  { %v3750_v5 = vpop.f32.mrf.mxu0 }
  0xf4   :  { %v3752_v6 = vpop.f32.mrf.mxu1 }
  0xf5   :  { %v3754_v7 = vpop.f32.mrf.mxu0 }
  0xf6   :  { %v3756_v2 = vpop.f32.mrf.mxu1 }
  0xf7   :  { %v3758_v8 = vpop.f32.mrf.mxu0 }
  0xf8   :  { %v3760_v9 = vpop.f32.mrf.mxu1 }
  0xf9   :  { %v3762_v10 = vpop.f32.mrf.mxu0 }
  0xfa   :  { %v3764_v11 = vpop.f32.mrf.mxu1 }
  0xfb   :  { %v3766_v13 = vpop.f32.mrf.mxu0 }
  0xfc   :  { %v3768_v12 = vpop.f32.mrf.mxu1 }
  0xfd   :  { %v3770_v14 = vpop.f32.mrf.mxu0 }
  0xfe   :  { %5359 = vst [vmem:[#allocation8_spill] sm:$0xff] %v3770_v14  ;;  %v3772_v15 = vpop.f32.mrf.mxu1  ;;  %v4361_v14 = vld [vmem:[%s5228_s9 + $0x58] sm:$0xff] }
  0xff   :  { %5360 = vst [vmem:[#allocation9_spill] sm:$0xff] %v3772_v15  ;;  %v3774_v16 = vpop.f32.mrf.mxu0  ;;  %v4321_v15 = vld [vmem:[%s5228_s9 + $0x28] sm:$0xff]  ;;  %5481 = vst [vmem:[#allocation130_spill] sm:$0xff] %v4361_v14 }
 0x100   :  { %5361 = vst [vmem:[#allocation10_spill] sm:$0xff] %v3774_v16  ;;  %v3776_v23 = vpop.f32.mrf.mxu1  ;;  %v4262_v16 = vld [vmem:[%s5226_s8 + $0x1e0] sm:$0xff]  ;;  %5473 = vst [vmem:[#allocation122_spill] sm:$0xff] %v4321_v15 }
 0x101   :  { %5362 = vst [vmem:[#allocation11_spill] sm:$0xff] %v3776_v23  ;;  %v3778_v17 = vpop.f32.mrf.mxu0  ;;  %v4257_v23 = vld [vmem:[%s5226_s8 + $0x1d8] sm:$0xff]  ;;  %5461 = vst [vmem:[#allocation110_spill] sm:$0xff] %v4262_v16 }
 0x102   :  { %5363 = vst [vmem:[#allocation12_spill] sm:$0xff] %v3778_v17  ;;  %v3780_v18 = vpop.f32.mrf.mxu1  ;;  %v4201_v17 = vld [vmem:[%s5226_s8 + $0x198] sm:$0xff]  ;;  %5460 = vst [vmem:[#allocation109_spill] sm:$0xff] %v4257_v23 }
 0x103   :  { %5364 = vst [vmem:[#allocation13_spill] sm:$0xff] %v3780_v18  ;;  %v3782_v19 = vpop.f32.mrf.mxu0  ;;  %v4196_v18 = vld [vmem:[%s5226_s8 + $0x190] sm:$0xff]  ;;  %5451 = vst [vmem:[#allocation100_spill] sm:$0xff] %v4201_v17  ;;  %v4333_v23 = vld [vmem:[%s5228_s9 + $0x38] sm:$0xff] }
 0x104   :  { %5365 = vst [vmem:[#allocation14_spill] sm:$0xff] %v3782_v19  ;;  %v3784_v20 = vpop.f32.mrf.mxu1  ;;  %5450 = vst [vmem:[#allocation99_spill] sm:$0xff] %v4196_v18  ;;  %v4279_v18 = vld [vmem:[%s5226_s8 + $0x1f8] sm:$0xff]  ;;  %v4304_v17 = vld [vmem:[%s5228_s9 + $0x10] sm:$0xff] }
 0x105   :  { %5366 = vst [vmem:[#allocation15_spill] sm:$0xff] %v3784_v20  ;;  %v3786_v21 = vpop.f32.mrf.mxu0  ;;  %v4267_v20 = vld [vmem:[%s5226_s8 + $0x1e8] sm:$0xff]  ;;  %5465 = vst [vmem:[#allocation114_spill] sm:$0xff] %v4279_v18  ;;  %v4338_v18 = vld [vmem:[%s5228_s9 + $0x40] sm:$0xff] }
 0x106   :  { %5367 = vst [vmem:[#allocation16_spill] sm:$0xff] %v3786_v21  ;;  %v3788_v24 = vpop.f32.mrf.mxu1  ;;  %v4145_v21 = vld [vmem:[%s5226_s8 + $0x158] sm:$0xff]  ;;  %5462 = vst [vmem:[#allocation111_spill] sm:$0xff] %v4267_v20  ;;  %v4366_v20 = vld [vmem:[%s5228_s9 + $0x60] sm:$0xff] }
 0x107   :  { %5368 = vst [vmem:[#allocation17_spill] sm:$0xff] %v3788_v24  ;;  %v3790_v25 = vpop.f32.mrf.mxu0  ;;  %v4140_v24 = vld [vmem:[%s5226_s8 + $0x150] sm:$0xff]  ;;  %5443 = vst [vmem:[#allocation92_spill] sm:$0xff] %v4145_v21  ;;  %v4234_v21 = vld [vmem:[%s5226_s8 + $0x1c0] sm:$0xff] }
 0x108   :  { %5369 = vst [vmem:[#allocation18_spill] sm:$0xff] %v3790_v25  ;;  %v3792_v26 = vpop.f32.mrf.mxu1  ;;  %v4102_v25 = vld [vmem:[%s5226_s8 + $0x120] sm:$0xff]  ;;  %5442 = vst [vmem:[#allocation91_spill] sm:$0xff] %v4140_v24  ;;  %v4215_v24 = vld [vmem:[%s5226_s8 + $0x1a8] sm:$0xff] }
 0x109   :  { %5370 = vst [vmem:[#allocation19_spill] sm:$0xff] %v3792_v26  ;;  %v3794_v27 = vpop.f32.mrf.mxu0  ;;  %v4097_v26 = vld [vmem:[%s5226_s8 + $0x118] sm:$0xff]  ;;  %5436 = vst [vmem:[#allocation85_spill] sm:$0xff] %v4102_v25  ;;  %v4156_v25 = vld [vmem:[%s5226_s8 + $0x160] sm:$0xff] }
 0x10a   :  { %5371 = vst [vmem:[#allocation20_spill] sm:$0xff] %v3794_v27  ;;  %v3796_v28 = vpop.f32.mrf.mxu1  ;;  %v4041_v27 = vld [vmem:[%s5226_s8 + $0xd8] sm:$0xff]  ;;  %5435 = vst [vmem:[#allocation84_spill] sm:$0xff] %v4097_v26  ;;  %v4206_v26 = vld [vmem:[%s5226_s8 + $0x1a0] sm:$0xff] }
 0x10b   :  { %5372 = vst [vmem:[#allocation21_spill] sm:$0xff] %v3796_v28  ;;  %v3798_v29 = vpop.f32.mrf.mxu0  ;;  %v4036_v28 = vld [vmem:[%s5226_s8 + $0xd0] sm:$0xff]  ;;  %5427 = vst [vmem:[#allocation76_spill] sm:$0xff] %v4041_v27 }
 0x10c   :  { %5373 = vst [vmem:[#allocation22_spill] sm:$0xff] %v3798_v29  ;;  %v3800_v30 = vpop.f32.mrf.mxu1  ;;  %5426 = vst [vmem:[#allocation75_spill] sm:$0xff] %v4036_v28  ;;  %v4119_v28 = vld [vmem:[%s5226_s8 + $0x138] sm:$0xff] }
 0x10d   :  { %5374 = vst [vmem:[#allocation23_spill] sm:$0xff] %v3800_v30  ;;  %v3802_v32 = vpop.f32.mrf.mxu0  ;;  %v4107_v30 = vld [vmem:[%s5226_s8 + $0x128] sm:$0xff]  ;;  %5439 = vst [vmem:[#allocation88_spill] sm:$0xff] %v4119_v28 }
 0x10e   :  { %5375 = vst [vmem:[#allocation24_spill] sm:$0xff] %v3802_v32  ;;  %v3804_v31 = vpop.f32.mrf.mxu1  ;;  %v3985_v32 = vld [vmem:[%s5226_s8 + $0x98] sm:$0xff]  ;;  %5437 = vst [vmem:[#allocation86_spill] sm:$0xff] %v4107_v30  ;;  %v4166_v30 = vld [vmem:[%s5226_s8 + $0x170] sm:$0xff] }
 0x10f   :  { %5376 = vst [vmem:[#allocation25_spill] sm:$0xff] %v3804_v31  ;;  %v3806_v33 = vpop.f32.mrf.mxu0  ;;  %v3980_v31 = vld [vmem:[%s5226_s8 + $0x90] sm:$0xff]  ;;  %5419 = vst [vmem:[#allocation68_spill] sm:$0xff] %v3985_v32  ;;  %v4074_v32 = vld [vmem:[%s5226_s8 + $0x100] sm:$0xff] }
 0x110   :  { %5377 = vst [vmem:[#allocation26_spill] sm:$0xff] %v3806_v33  ;;  %v3808_v34 = vpop.f32.mrf.mxu1  ;;  %v3942_v33 = vld [vmem:[%s5226_s8 + $0x60] sm:$0xff]  ;;  %5418 = vst [vmem:[#allocation67_spill] sm:$0xff] %v3980_v31  ;;  %v4055_v31 = vld [vmem:[%s5226_s8 + $0xe8] sm:$0xff] }
 0x111   :  { %5378 = vst [vmem:[#allocation27_spill] sm:$0xff] %v3808_v34  ;;  %v3810_v35 = vpop.f32.mrf.mxu0  ;;  %v3937_v34 = vld [vmem:[%s5226_s8 + $0x58] sm:$0xff]  ;;  %5412 = vst [vmem:[#allocation61_spill] sm:$0xff] %v3942_v33  ;;  %v3996_v33 = vld [vmem:[%s5226_s8 + $0xa0] sm:$0xff] }
 0x112   :  { %5379 = vst [vmem:[#allocation28_spill] sm:$0xff] %v3810_v35  ;;  %v3812_v36 = vpop.f32.mrf.mxu1  ;;  %5411 = vst [vmem:[#allocation60_spill] sm:$0xff] %v3937_v34  ;;  %v4046_v34 = vld [vmem:[%s5226_s8 + $0xe0] sm:$0xff] }
 0x113   :  { %5380 = vst [vmem:[#allocation29_spill] sm:$0xff] %v3812_v36  ;;  %v3814_v39 = vpop.f32.mrf.mxu0  ;;  %v3924_v36 = vld [vmem:[%s5226_s8 + $0x50] sm:$0xff]  ;;  %5420 = vst [vmem:[#allocation69_spill] sm:$0xff] %v3996_v33 }
 0x114   :  { %5381 = vst [vmem:[#allocation30_spill] sm:$0xff] %v3814_v39  ;;  %v3816_v37 = vpop.f32.mrf.mxu1  ;;  %v3919_v39 = vld [vmem:[%s5226_s8 + $0x48] sm:$0xff]  ;;  %5410 = vst [vmem:[#allocation59_spill] sm:$0xff] %v3924_v36  ;;  %v4018_v36 = vld [vmem:[%s5226_s8 + $0xc0] sm:$0xff] }
 0x115   :  { %5382 = vst [vmem:[#allocation31_spill] sm:$0xff] %v3816_v37  ;;  %v3818_v38 = vpop.f32.mrf.mxu0  ;;  %v3914_v37 = vld [vmem:[%s5226_s8 + $0x40] sm:$0xff]  ;;  %5409 = vst [vmem:[#allocation58_spill] sm:$0xff] %v3919_v39  ;;  %v4001_v39 = vld [vmem:[%s5226_s8 + $0xa8] sm:$0xff] }
 0x116   :  { %5383 = vst [vmem:[#allocation32_spill] sm:$0xff] %v3818_v38  ;;  %v3820_v40 = vpop.f32.mrf.mxu1  ;;  %5408 = vst [vmem:[#allocation57_spill] sm:$0xff] %v3914_v37 }
 0x117   :  { %5384 = vst [vmem:[#allocation33_spill] sm:$0xff] %v3820_v40  ;;  %v3822_v41 = vpop.f32.mrf.mxu0  ;;  %v3947_v40 = vld [vmem:[%s5226_s8 + $0x68] sm:$0xff]  ;;  %5421 = vst [vmem:[#allocation70_spill] sm:$0xff] %v4001_v39 }
 0x118   :  { %5385 = vst [vmem:[#allocation34_spill] sm:$0xff] %v3822_v41  ;;  %v3824_v42 = vpop.f32.mrf.mxu1  ;;  %v3905_v41 = vld [vmem:[%s5226_s8 + $0x38] sm:$0xff]  ;;  %5413 = vst [vmem:[#allocation62_spill] sm:$0xff] %v3947_v40  ;;  %v4006_v40 = vld [vmem:[%s5226_s8 + $0xb0] sm:$0xff] }
 0x119   :  { %5386 = vst [vmem:[#allocation35_spill] sm:$0xff] %v3824_v42  ;;  %v3826_v43 = vpop.f32.mrf.mxu0  ;;  %5407 = vst [vmem:[#allocation56_spill] sm:$0xff] %v3905_v41  ;;  %v4013_v41 = vld [vmem:[%s5226_s8 + $0xb8] sm:$0xff] }
 0x11a   :  { %5387 = vst [vmem:[#allocation36_spill] sm:$0xff] %v3826_v43  ;;  %v3828_v44 = vpop.f32.mrf.mxu1  ;;  %v3888_v43 = vld [vmem:[%s5226_s8 + $0x20] sm:$0xff]  ;;  %5422 = vst [vmem:[#allocation71_spill] sm:$0xff] %v4006_v40  ;;  %v4060_v40 = vld [vmem:[%s5226_s8 + $0xf0] sm:$0xff] }
 0x11b   :  { %5388 = vst [vmem:[#allocation37_spill] sm:$0xff] %v3828_v44  ;;  %v3830_v45 = vpop.f32.mrf.mxu0  ;;  %5404 = vst [vmem:[#allocation53_spill] sm:$0xff] %v3888_v43  ;;  %v3954_v43 = vld [vmem:[%s5226_s8 + $0x70] sm:$0xff] }
 0x11c   :  { %5389 = vst [vmem:[#allocation38_spill] sm:$0xff] %v3830_v45  ;;  %v3832_v46 = vpop.f32.mrf.mxu1  ;;  %5414 = vst [vmem:[#allocation63_spill] sm:$0xff] %v3954_v43  ;;  %v4023_v43 = vld [vmem:[%s5226_s8 + $0xc8] sm:$0xff] }
 0x11d   :  { %5390 = vst [vmem:[#allocation39_spill] sm:$0xff] %v3832_v46  ;;  %v3834_v47 = vpop.f32.mrf.mxu0  ;;  %5423 = vst [vmem:[#allocation72_spill] sm:$0xff] %v4013_v41  ;;  %v4079_v41 = vld [vmem:[%s5226_s8 + $0x108] sm:$0xff] }
 0x11e   :  { %5391 = vst [vmem:[#allocation40_spill] sm:$0xff] %v3834_v47  ;;  %v3836_v49 = vpop.f32.mrf.mxu1  ;;  %5424 = vst [vmem:[#allocation73_spill] sm:$0xff] %v4018_v36  ;;  %v4114_v36 = vld [vmem:[%s5226_s8 + $0x130] sm:$0xff] }
 0x11f   :  { %5392 = vst [vmem:[#allocation41_spill] sm:$0xff] %v3836_v49  ;;  %v3838_v50 = vpop.f32.mrf.mxu0  ;;  %v3883_v49 = vld [vmem:[%s5226_s8 + $0x18] sm:$0xff]  ;;  %5425 = vst [vmem:[#allocation74_spill] sm:$0xff] %v4023_v43 }
 0x120   :  { %5393 = vst [vmem:[#allocation42_spill] sm:$0xff] %v3838_v50  ;;  %v3840_v48 = vpop.f32.mrf.mxu1  ;;  %v3878_v50 = vld [vmem:[%s5227_s0] sm:$0xff]  ;;  %5403 = vst [vmem:[#allocation52_spill] sm:$0xff] %v3883_v49 }
 0x121   :  { %5394 = vst [vmem:[#allocation43_spill] sm:$0xff] %v3840_v48  ;;  %v3842_v52 = vpop.f32.mrf.mxu0  ;;  %v3861_v48 = vld [vmem:[%s5226_s8] sm:$0xff]  ;;  %5402 = vst [vmem:[#allocation51_spill] sm:$0xff] %v3878_v50  ;;  %v3900_v50 = vld [vmem:[%s5226_s8 + $0x30] sm:$0xff] }
 0x122   :  { %5395 = vst [vmem:[#allocation44_spill] sm:$0xff] %v3842_v52  ;;  %v3844_v53 = vpop.f32.mrf.mxu1  ;;  %5399 = vst [vmem:[#allocation48_spill] sm:$0xff] %v3861_v48  ;;  %v2322_v52 = vmov 0.0  }
 0x123   :  { %5396 = vst [vmem:[#allocation45_spill] sm:$0xff] %v3844_v53  ;;  %v3846_v54 = vpop.f32.mrf.mxu0  ;;  %v3866_v53 = vld [vmem:[%s5226_s8 + $0x8] sm:$0xff]  ;;  %1760 = vst [vmem:[#allocation4] sm:$0xff] %v2322_v52 }
 0x124   :  { %5397 = vst [vmem:[#allocation46_spill] sm:$0xff] %v3846_v54  ;;  %v3848_v55 = vpop.f32.mrf.mxu1  ;;  %5400 = vst [vmem:[#allocation49_spill] sm:$0xff] %v3866_v53 }
 0x125   :  { %5398 = vst [vmem:[#allocation47_spill] sm:$0xff] %v3848_v55  ;;  %v3850_v44 = vpop.f32.mrf.mxu0  ;;  %v3871_v55 = vld [vmem:[%s5226_s8 + $0x10] sm:$0xff]  ;;  %1761 = vst [vmem:[#allocation5] sm:$0xff] %v2322_v52 }
 0x126   :  { %v3852_v45 = vpop.f32.mrf.mxu1  ;;  %5401 = vst [vmem:[#allocation50_spill] sm:$0xff] %v3871_v55  ;;  %1762 = vst [vmem:[#allocation6] sm:$0xff] %v2322_v52  ;;  %v3959_v55 = vld [vmem:[%s5226_s8 + $0x78] sm:$0xff] }
 0x127   :  { %v3854_v46 = vpop.f32.mrf.mxu0  ;;  %1763 = vst [vmem:[#allocation7] sm:$0xff] %v2322_v52  ;;  %v3895_v52 = vld [vmem:[%s5226_s8 + $0x28] sm:$0xff]  ;;  %5406 = vst [vmem:[#allocation55_spill] sm:$0xff] %v3900_v50  ;;  %v3964_v50 = vld [vmem:[%s5226_s8 + $0x80] sm:$0xff] }
 0x128   :  { %v3856_v47 = vpop.f32.mrf.mxu1  ;;  %5405 = vst [vmem:[#allocation54_spill] sm:$0xff] %v3895_v52  ;;  %5415 = vst [vmem:[#allocation64_spill] sm:$0xff] %v3959_v55  ;;  %v3975_v52 = vld [vmem:[%s5226_s8 + $0x88] sm:$0xff] }
 0x129   :  { %v3873_v54 = vpop.f32.mrf.mxu0  ;;  %5416 = vst [vmem:[#allocation65_spill] sm:$0xff] %v3964_v50  ;;  %5417 = vst [vmem:[#allocation66_spill] sm:$0xff] %v3975_v52  ;;  %v4065_v50 = vld [vmem:[%s5226_s8 + $0xf8] sm:$0xff]  ;;  %v4084_v52 = vld [vmem:[%s5226_s8 + $0x110] sm:$0xff] }
 0x12a   :  { %v3890_v42 = vpop.f32.mrf.mxu1  ;;  %5428 = vst [vmem:[#allocation77_spill] sm:$0xff] %v4046_v34  ;;  %5429 = vst [vmem:[#allocation78_spill] sm:$0xff] %v4055_v31  ;;  %v4135_v31 = vld [vmem:[%s5226_s8 + $0x148] sm:$0xff] }
 0x12b   :  { %v3909_v38 = vpop.f32.mrf.mxu0  ;;  %5430 = vst [vmem:[#allocation79_spill] sm:$0xff] %v4060_v40  ;;  %5431 = vst [vmem:[#allocation80_spill] sm:$0xff] %v4065_v50  ;;  %v4124_v40 = vld [vmem:[%s5226_s8 + $0x140] sm:$0xff]  ;;  %v4173_v50 = vld [vmem:[%s5226_s8 + $0x178] sm:$0xff] }
 0x12c   :  { %v3932_v35 = vpop.f32.mrf.mxu1  ;;  %5432 = vst [vmem:[#allocation81_spill] sm:$0xff] %v4074_v32  ;;  %5433 = vst [vmem:[#allocation82_spill] sm:$0xff] %v4079_v41  ;;  %v4161_v41 = vld [vmem:[%s5226_s8 + $0x168] sm:$0xff] }
 0x12d   :  { %v3949_v48 = vpop.f32.mrf.mxu0  ;;  %5434 = vst [vmem:[#allocation83_spill] sm:$0xff] %v4084_v52  ;;  %5438 = vst [vmem:[#allocation87_spill] sm:$0xff] %v4114_v36  ;;  %v4178_v52 = vld [vmem:[%s5226_s8 + $0x180] sm:$0xff]  ;;  %v4183_v36 = vld [vmem:[%s5226_s8 + $0x188] sm:$0xff] }
 0x12e   :  { %v3970_v53 = vpop.f32.mrf.mxu1  ;;  %5440 = vst [vmem:[#allocation89_spill] sm:$0xff] %v4124_v40  ;;  %5441 = vst [vmem:[#allocation90_spill] sm:$0xff] %v4135_v31  ;;  %v4225_v40 = vld [vmem:[%s5226_s8 + $0x1b8] sm:$0xff]  ;;  %v4244_v31 = vld [vmem:[%s5226_s8 + $0x1d0] sm:$0xff] }
 0x12f   :  { %v3991_v37 = vpop.f32.mrf.mxu0  ;;  %5444 = vst [vmem:[#allocation93_spill] sm:$0xff] %v4156_v25  ;;  %5445 = vst [vmem:[#allocation94_spill] sm:$0xff] %v4161_v41 }
 0x130   :  { %v4008_v49 = vpop.f32.mrf.mxu1  ;;  %5446 = vst [vmem:[#allocation95_spill] sm:$0xff] %v4166_v30  ;;  %5447 = vst [vmem:[#allocation96_spill] sm:$0xff] %v4173_v50  ;;  %v4220_v30 = vld [vmem:[%s5226_s8 + $0x1b0] sm:$0xff]  ;;  %v4239_v50 = vld [vmem:[%s5226_s8 + $0x1c8] sm:$0xff] }
 0x131   :  { %v4031_v29 = vpop.f32.mrf.mxu0  ;;  %5448 = vst [vmem:[#allocation97_spill] sm:$0xff] %v4178_v52  ;;  %5449 = vst [vmem:[#allocation98_spill] sm:$0xff] %v4183_v36  ;;  %v4274_v52 = vld [vmem:[%s5226_s8 + $0x1f0] sm:$0xff] }
 0x132   :  { %v4050_v55 = vpop.f32.mrf.mxu1  ;;  %5452 = vst [vmem:[#allocation101_spill] sm:$0xff] %v4206_v26  ;;  %5453 = vst [vmem:[#allocation102_spill] sm:$0xff] %v4215_v24  ;;  %v4316_v24 = vld [vmem:[%s5228_s9 + $0x20] sm:$0xff] }
 0x133   :  { %v4069_v33 = vpop.f32.mrf.mxu0  ;;  %5454 = vst [vmem:[#allocation103_spill] sm:$0xff] %v4220_v30  ;;  %5455 = vst [vmem:[#allocation104_spill] sm:$0xff] %v4225_v40  ;;  %v4288_v40 = vld [vmem:[%s5228_s9] sm:$0xff]  ;;  %v4299_v30 = vld [vmem:[%s5228_s9 + $0x8] sm:$0xff] }
 0x134   :  { %v4092_v34 = vpop.f32.mrf.mxu1  ;;  %5456 = vst [vmem:[#allocation105_spill] sm:$0xff] %v4234_v21  ;;  %5457 = vst [vmem:[#allocation106_spill] sm:$0xff] %v4239_v50  ;;  %v4309_v21 = vld [vmem:[%s5228_s9 + $0x18] sm:$0xff]  ;;  %v4343_v50 = vld [vmem:[%s5228_s9 + $0x48] sm:$0xff] }
 0x135   :  { %v4109_v39 = vpop.f32.mrf.mxu0  ;;  %5458 = vst [vmem:[#allocation107_spill] sm:$0xff] %v4244_v31  ;;  %5464 = vst [vmem:[#allocation113_spill] sm:$0xff] %v4274_v52  ;;  %v4326_v31 = vld [vmem:[%s5228_s9 + $0x30] sm:$0xff] }
 0x136   :  { %v4130_v43 = vpop.f32.mrf.mxu1  ;;  %5466 = vst [vmem:[#allocation115_spill] sm:$0xff] %v4288_v40  ;;  %5468 = vst [vmem:[#allocation117_spill] sm:$0xff] %v4299_v30  ;;  %v4385_v40 = vld [vmem:[%s5228_s9 + $0x78] sm:$0xff]  ;;  %v4404_v30 = vld [vmem:[%s5228_s9 + $0x90] sm:$0xff] }
 0x137   :  { %v4151_v32 = vpop.f32.mrf.mxu0  ;;  %5469 = vst [vmem:[#allocation118_spill] sm:$0xff] %v4304_v17  ;;  %5470 = vst [vmem:[#allocation119_spill] sm:$0xff] %v4309_v21  ;;  %v4375_v17 = vld [vmem:[%s5228_s9 + $0x68] sm:$0xff]  ;;  %v4394_v21 = vld [vmem:[%s5228_s9 + $0x80] sm:$0xff] }
 0x138   :  { %v4168_v27 = vpop.f32.mrf.mxu1  ;;  %5472 = vst [vmem:[#allocation121_spill] sm:$0xff] %v4316_v24  ;;  %5474 = vst [vmem:[#allocation123_spill] sm:$0xff] %v4326_v31  ;;  %v4380_v31 = vld [vmem:[%s5228_s9 + $0x70] sm:$0xff] }
 0x139   :  { %v4191_v19 = vpop.f32.mrf.mxu0  ;;  %5476 = vst [vmem:[#allocation125_spill] sm:$0xff] %v4333_v23  ;;  %5477 = vst [vmem:[#allocation126_spill] sm:$0xff] %v4338_v18  ;;  %v4399_v23 = vld [vmem:[%s5228_s9 + $0x88] sm:$0xff]  ;;  %v4434_v18 = vld [vmem:[%s5228_s9 + $0xb0] sm:$0xff] }
 0x13a   :  { %v4210_v28 = vpop.f32.mrf.mxu1  ;;  %5478 = vst [vmem:[#allocation127_spill] sm:$0xff] %v4343_v50  ;;  %5482 = vst [vmem:[#allocation131_spill] sm:$0xff] %v4366_v20 }
 0x13b   :  { %v4229_v25 = vpop.f32.mrf.mxu0  ;;  %5484 = vst [vmem:[#allocation133_spill] sm:$0xff] %v4375_v17  ;;  %5485 = vst [vmem:[#allocation134_spill] sm:$0xff] %v4380_v31  ;;  %v4444_v31 = vld [vmem:[%s5228_s9 + $0xc0] sm:$0xff]  ;;  %v4455_v17 = vld [vmem:[%s5228_s9 + $0xc8] sm:$0xff] }
 0x13c   :  { %v4252_v26 = vpop.f32.mrf.mxu1  ;;  %5486 = vst [vmem:[#allocation135_spill] sm:$0xff] %v4385_v40  ;;  %5488 = vst [vmem:[#allocation137_spill] sm:$0xff] %v4394_v21  ;;  %v4493_v40 = vld [vmem:[%s5228_s9 + $0xf8] sm:$0xff] }
 0x13d   :  { %5459 = vst [vmem:[#allocation108_spill] sm:$0xff] %v4252_v26  ;;  %v4269_v41 = vpop.f32.mrf.mxu0  ;;  %5489 = vst [vmem:[#allocation138_spill] sm:$0xff] %v4399_v23  ;;  %v4481_v23 = vld [vmem:[%s5228_s9 + $0xe8] sm:$0xff] }
 0x13e   :  { %5463 = vst [vmem:[#allocation112_spill] sm:$0xff] %v4269_v41  ;;  %v4290_v36 = vpop.f32.mrf.mxu1  ;;  %v4356_v41 = vld [vmem:[%s5228_s9 + $0x50] sm:$0xff]  ;;  %5490 = vst [vmem:[#allocation139_spill] sm:$0xff] %v4404_v30  ;;  %v4498_v30 = vld [vmem:[%s5228_s9 + $0x100] sm:$0xff] }
 0x13f   :  { %5467 = vst [vmem:[#allocation116_spill] sm:$0xff] %v4290_v36  ;;  %v4311_v16 = vpop.f32.mrf.mxu0  ;;  %5480 = vst [vmem:[#allocation129_spill] sm:$0xff] %v4356_v41  ;;  %v4439_v41 = vld [vmem:[%s5228_s9 + $0xb8] sm:$0xff] }
 0x140   :  { %5471 = vst [vmem:[#allocation120_spill] sm:$0xff] %v4311_v16  ;;  %v4328_v52 = vpop.f32.mrf.mxu1  ;;  %v4427_v16 = vld [vmem:[%s5228_s9 + $0xa8] sm:$0xff]  ;;  %5496 = vst [vmem:[#allocation145_spill] sm:$0xff] %v4434_v18 }
 0x141   :  { %5475 = vst [vmem:[#allocation124_spill] sm:$0xff] %v4328_v52  ;;  %v4351_v36 = vpop.f32.mrf.mxu0  ;;  %5494 = vst [vmem:[#allocation143_spill] sm:$0xff] %v4427_v16  ;;  %v4486_v16 = vld [vmem:[%s5228_s9 + $0xf0] sm:$0xff]  ;;  %v4503_v18 = vld [vmem:[%s5228_s9 + $0x108] sm:$0xff] }
 0x142   :  { %5479 = vst [vmem:[#allocation128_spill] sm:$0xff] %v4351_v36  ;;  %v4370_v52 = vpop.f32.mrf.mxu1  ;;  %5497 = vst [vmem:[#allocation146_spill] sm:$0xff] %v4439_v41  ;;  %v4521_v36 = vld [vmem:[%s5228_s9 + $0x118] sm:$0xff] }
 0x143   :  { %5483 = vst [vmem:[#allocation132_spill] sm:$0xff] %v4370_v52  ;;  %v4389_v24 = vpop.f32.mrf.mxu0  ;;  %v4422_v52 = vld [vmem:[%s5228_s9 + $0xa0] sm:$0xff]  ;;  %5498 = vst [vmem:[#allocation147_spill] sm:$0xff] %v4444_v31  ;;  %v4545_v31 = vld [vmem:[%s5228_s9 + $0x138] sm:$0xff] }
 0x144   :  { %5487 = vst [vmem:[#allocation136_spill] sm:$0xff] %v4389_v24  ;;  %v4412_v20 = vpop.f32.mrf.mxu1  ;;  %v4417_v24 = vld [vmem:[%s5228_s9 + $0x98] sm:$0xff]  ;;  %5493 = vst [vmem:[#allocation142_spill] sm:$0xff] %v4422_v52  ;;  %v4476_v52 = vld [vmem:[%s5228_s9 + $0xe0] sm:$0xff] }
 0x145   :  { %5491 = vst [vmem:[#allocation140_spill] sm:$0xff] %v4412_v20  ;;  %5492 = vst [vmem:[#allocation141_spill] sm:$0xff] %v4417_v24  ;;  %v4429_v15 = vpop.f32.mrf.mxu0  ;;  %v4465_v20 = vld [vmem:[%s5228_s9 + $0xd8] sm:$0xff]  ;;  %v4526_v24 = vld [vmem:[%s5228_s9 + $0x120] sm:$0xff] }
 0x146   :  { %5495 = vst [vmem:[#allocation144_spill] sm:$0xff] %v4429_v15  ;;  %v4450_v50 = vpop.f32.mrf.mxu1  ;;  %5500 = vst [vmem:[#allocation149_spill] sm:$0xff] %v4455_v17  ;;  %v4460_v15 = vld [vmem:[%s5228_s9 + $0xd0] sm:$0xff] }
 0x147   :  { %5499 = vst [vmem:[#allocation148_spill] sm:$0xff] %v4450_v50  ;;  %5501 = vst [vmem:[#allocation150_spill] sm:$0xff] %v4460_v15  ;;  %v4471_v21 = vpop.f32.mrf.mxu0  ;;  %v4516_v50 = vld [vmem:[%s5228_s9 + $0x110] sm:$0xff]  ;;  %v4535_v15 = vld [vmem:[%s5228_s9 + $0x128] sm:$0xff] }
 0x148   :  { %5502 = vst [vmem:[#allocation151_spill] sm:$0xff] %v4465_v20  ;;  %5503 = vst [vmem:[#allocation152_spill] sm:$0xff] %v4471_v21  ;;  %v4488_v14 = vpop.f32.mrf.mxu1  ;;  %v4554_v20 = vld [vmem:[%s5228_s9 + $0x140] sm:$0xff]  ;;  %v4564_v17 = vld [vmem:[%s5228_s9 + $0x150] sm:$0xff] }
 0x149   :  { %5504 = vst [vmem:[#allocation153_spill] sm:$0xff] %v4476_v52  ;;  %5505 = vst [vmem:[#allocation154_spill] sm:$0xff] %v4481_v23  ;;  %v4511_v21 = vpop.f32.mrf.mxu0 }
 0x14a   :  { %5506 = vst [vmem:[#allocation155_spill] sm:$0xff] %v4486_v16  ;;  %5507 = vst [vmem:[#allocation156_spill] sm:$0xff] %v4488_v14  ;;  %v4530_v41 = vpop.f32.mrf.mxu1  ;;  %v4540_v16 = vld [vmem:[%s5228_s9 + $0x130] sm:$0xff]  ;;  %v4587_v14 = vld [vmem:[%s5228_s9 + $0x168] sm:$0xff] }
 0x14b   :  { %5508 = vst [vmem:[#allocation157_spill] sm:$0xff] %v4493_v40  ;;  %5509 = vst [vmem:[#allocation158_spill] sm:$0xff] %v4498_v30  ;;  %v4549_v52 = vpop.f32.mrf.mxu0  ;;  %v4559_v40 = vld [vmem:[%s5228_s9 + $0x148] sm:$0xff]  ;;  %v4594_v30 = vld [vmem:[%s5228_s9 + $0x170] sm:$0xff] }
 0x14c   :  { %5510 = vst [vmem:[#allocation159_spill] sm:$0xff] %v4503_v18  ;;  %5511 = vst [vmem:[#allocation160_spill] sm:$0xff] %v4511_v21  ;;  %v4681_v21 = vld [vmem:[%s5228_s9 + $0x1d8] sm:$0xff] }
 0x14d   :  { %5512 = vst [vmem:[#allocation161_spill] sm:$0xff] %v4516_v50  ;;  %5513 = vst [vmem:[#allocation162_spill] sm:$0xff] %v4521_v36  ;;  %v4589_v23 = vpop.f32.mrf.mxu0  ;;  %v4599_v50 = vld [vmem:[%s5228_s9 + $0x178] sm:$0xff] }
 0x14e   :  { %5514 = vst [vmem:[#allocation163_spill] sm:$0xff] %v4526_v24  ;;  %5515 = vst [vmem:[#allocation164_spill] sm:$0xff] %v4530_v41  ;;  %v4572_v24 = vpop.f32.mrf.mxu1  ;;  %v4582_v41 = vld [vmem:[%s5228_s9 + $0x160] sm:$0xff] }
 0x14f   :  { %5516 = vst [vmem:[#allocation165_spill] sm:$0xff] %v4535_v15  ;;  %5517 = vst [vmem:[#allocation166_spill] sm:$0xff] %v4540_v16  ;;  %v4604_v16 = vld [vmem:[%s5228_s9 + $0x180] sm:$0xff]  ;;  %v4615_v15 = vld [vmem:[%s5228_s9 + $0x188] sm:$0xff] }
 0x150   :  { %5518 = vst [vmem:[#allocation167_spill] sm:$0xff] %v4545_v31  ;;  %5519 = vst [vmem:[#allocation168_spill] sm:$0xff] %v4549_v52  ;;  %v4577_v52 = vld [vmem:[%s5228_s9 + $0x158] sm:$0xff]  ;;  %v4610_v18 = vpop.f32.mrf.mxu1 }
 0x151   :  { %5520 = vst [vmem:[#allocation169_spill] sm:$0xff] %v4554_v20  ;;  %5521 = vst [vmem:[#allocation170_spill] sm:$0xff] %v4559_v40  ;;  %v4631_v20 = vpop.f32.mrf.mxu0  ;;  %v4641_v40 = vld [vmem:[%s5228_s9 + $0x1a8] sm:$0xff]  ;;  %v4653_v31 = vld [vmem:[%s5228_s9 + $0x1b8] sm:$0xff] }
 0x152   :  { %5522 = vst [vmem:[#allocation171_spill] sm:$0xff] %v4564_v17  ;;  %5523 = vst [vmem:[#allocation172_spill] sm:$0xff] %v4572_v24  ;;  %v4625_v24 = vld [vmem:[%s5228_s9 + $0x198] sm:$0xff]  ;;  %v4648_v36 = vpop.f32.mrf.mxu1  ;;  %v4658_v17 = vld [vmem:[%s5228_s9 + $0x1c0] sm:$0xff] }
 0x153   :  { %5524 = vst [vmem:[#allocation173_spill] sm:$0xff] %v4577_v52  ;;  %5525 = vst [vmem:[#allocation174_spill] sm:$0xff] %v4582_v41  ;;  %v4636_v41 = vld [vmem:[%s5228_s9 + $0x1a0] sm:$0xff] }
 0x154   :  { %5526 = vst [vmem:[#allocation175_spill] sm:$0xff] %v4587_v14  ;;  %5527 = vst [vmem:[#allocation176_spill] sm:$0xff] %v4589_v23  ;;  %v4620_v23 = vld [vmem:[%s5228_s9 + $0x190] sm:$0xff]  ;;  %v4686_v52 = vld [vmem:[%s5228_s9 + $0x1e0] sm:$0xff] }
 0x155   :  { %5528 = vst [vmem:[#allocation177_spill] sm:$0xff] %v4594_v30  ;;  %5529 = vst [vmem:[#allocation178_spill] sm:$0xff] %v4599_v50  ;;  %v4646_v14 = vld [vmem:[%s5228_s9 + $0x1b0] sm:$0xff]  ;;  %v4663_v30 = vld [vmem:[%s5228_s9 + $0x1c8] sm:$0xff]  ;;  %v4690_v50 = vpop.f32.mrf.mxu1 }
 0x156   :  { %5530 = vst [vmem:[#allocation179_spill] sm:$0xff] %v4604_v16  ;;  %5531 = vst [vmem:[#allocation180_spill] sm:$0xff] %v4610_v18  ;;  %v4676_v18 = vld [vmem:[%s5228_s9 + $0x1d0] sm:$0xff]  ;;  %v4705_v16 = vld [vmem:[%s5228_s9 + $0x1f8] sm:$0xff] }
 0x157   :  { %5532 = vst [vmem:[#allocation181_spill] sm:$0xff] %v4615_v15  ;;  %5533 = vst [vmem:[#allocation182_spill] sm:$0xff] %v4620_v23  ;;  %v4695_v23 = vld [vmem:[%s5228_s9 + $0x1e8] sm:$0xff] }
 0x158   :  { %5534 = vst [vmem:[#allocation183_spill] sm:$0xff] %v4625_v24  ;;  %5535 = vst [vmem:[#allocation184_spill] sm:$0xff] %v4631_v20  ;;  %v4671_v20 = vpop.f32.mrf.mxu0 }
 0x159   :  { %5536 = vst [vmem:[#allocation185_spill] sm:$0xff] %v4636_v41  ;;  %5537 = vst [vmem:[#allocation186_spill] sm:$0xff] %v4641_v40  ;;  %v4717_v40 = vpop.f32.mrf.mxu1 }
 0x15a   :  { %5538 = vst [vmem:[#allocation187_spill] sm:$0xff] %v4646_v14  ;;  %5539 = vst [vmem:[#allocation188_spill] sm:$0xff] %v4648_v36  ;;  %v4700_v14 = vld [vmem:[%s5228_s9 + $0x1f0] sm:$0xff]  ;;  %v4709_v41 = vpop.f32.mrf.mxu0 }
 0x15b   :  { %5540 = vst [vmem:[#allocation189_spill] sm:$0xff] %v4653_v31  ;;  %5541 = vst [vmem:[#allocation190_spill] sm:$0xff] %v4658_v17  ;;  %v1592_v17 = vlaneseq }
 0x15c   :  { %5542 = vst [vmem:[#allocation191_spill] sm:$0xff] %v4663_v30  ;;  %5543 = vst [vmem:[#allocation192_spill] sm:$0xff] %v4671_v20  ;;  %v4721_v20 = vpop.f32.mrf.mxu1 }
 0x15d   :  { %5544 = vst [vmem:[#allocation193_spill] sm:$0xff] %v4676_v18  ;;  %5545 = vst [vmem:[#allocation194_spill] sm:$0xff] %v4681_v21  ;;  %v4735_v15 = vshrl.u32 %v1592_v17, 7 }
 0x15e   :  { %5546 = vst [vmem:[#allocation195_spill] sm:$0xff] %v4686_v52  ;;  %5547 = vst [vmem:[#allocation196_spill] sm:$0xff] %v4690_v50  ;;  %v4719_v50 = vpop.f32.mrf.mxu0  ;;  %v4725_v36 = vpop.f32.mrf.mxu1 }
 0x15f   :  { %5548 = vst [vmem:[#allocation197_spill] sm:$0xff] %v4695_v23  ;;  %5549 = vst [vmem:[#allocation198_spill] sm:$0xff] %v4700_v14  ;;  %v1594_v23 = vsub.s32 0, %v4735_v15  ;;  %v1602_v17 = vsub.s32 2, %v4735_v15 }
 0x160   :  { %5550 = vst [vmem:[#allocation199_spill] sm:$0xff] %v4705_v16  ;;  %5551 = vst [vmem:[#allocation200_spill] sm:$0xff] %v4717_v40  ;;  %v4723_v26 = vpop.f32.mrf.mxu0  ;;  %v4729_v24 = vpop.f32.mrf.mxu1 }
 0x161   :  { %5552 = vst [vmem:[#allocation201_spill] sm:$0xff] %v4719_v50  ;;  %5553 = vst [vmem:[#allocation202_spill] sm:$0xff] %v4721_v20 }
 0x162   :  { %5554 = vst [vmem:[#allocation203_spill] sm:$0xff] %v4723_v26  ;;  %5555 = vst [vmem:[#allocation204_spill] sm:$0xff] %v4725_v36  ;;  %v4727_v52 = vpop.f32.mrf.mxu0  ;;  %v4733_v31 = vpop.f32.mrf.mxu1 }
 0x163   :  { %5556 = vst [vmem:[#allocation205_spill] sm:$0xff] %v4727_v52  ;;  %5557 = vst [vmem:[#allocation206_spill] sm:$0xff] %v4729_v24  ;;  %v846_v52 = vadd.f32 %v3852_v45, %v3724_v58  ;;  %v777_v58 = vadd.f32 %v3873_v54, %v3730_v57  ;;  %v852_v57 = vadd.f32 %v3932_v35, %v3736_v4 }
 0x164   :  { %v4731_v30 = vpop.f32.mrf.mxu0  ;;  %5559 = vst [vmem:[#allocation208_spill] sm:$0xff] %v4733_v31  ;;  %v4739_v14 = vpop.f32.mrf.mxu1 }
 0x165   :  { %5558 = vst [vmem:[#allocation207_spill] sm:$0xff] %v4731_v30  ;;  %5561 = vst [vmem:[#allocation210_spill] sm:$0xff] %v4739_v14  ;;  %v4751_v30 = vld [vmem:[%s5229_s7] sm:$0xff]  ;;  %s4982_s7 = smov 0  }
 0x166   :  { %v4737_v18 = vpop.f32.mrf.mxu0  ;;  %v4743_v16 = vpop.f32.mrf.mxu1 }
 0x167   :  { %5560 = vst [vmem:[#allocation209_spill] sm:$0xff] %v4737_v18  ;;  %5563 = vst [vmem:[#allocation212_spill] sm:$0xff] %v4743_v16  ;;  %v1598_v18 = vsub.s32 1, %v4735_v15  ;;  %v773_v16 = vadd.f32 %v3850_v44, %v3722_v22  ;;  %v848_v22 = vadd.f32 %v3856_v47, %v3728_v51  ;;  %v779_v51 = vadd.f32 %v3909_v38, %v3734_v60 }
 0x168   :  { %v4741_v21 = vpop.f32.mrf.mxu0  ;;  %v4754_v31 = vpop.f32.mrf.mxu1 }
 0x169   :  { %5562 = vst [vmem:[#allocation211_spill] sm:$0xff] %v4741_v21  ;;  %5565 = vst [vmem:[#allocation214_spill] sm:$0xff] %v4754_v31  ;;  %v1606_v21 = vsub.s32 3, %v4735_v15  ;;  %v4770_v31 = vrot.slane %v4751_v30, %v1602_v17  ;;  %v4775_v40 = vrot.slane %v4751_v30, %v1598_v18 }
 0x16a   :  { %v4746_v36 = vpop.f32.mrf.mxu0  ;;  %v4762_v24 = vpop.f32.mrf.mxu1 }
 0x16b   :  { %5564 = vst [vmem:[#allocation213_spill] sm:$0xff] %v4746_v36  ;;  %5567 = vst [vmem:[#allocation216_spill] sm:$0xff] %v4762_v24  ;;  %v4765_v36 = vrot.slane %v4751_v30, %v1594_v23  ;;  %v4780_v24 = vrot.slane %v4751_v30, %v1606_v21 }
 0x16c   :  { %v4757_v14 = vpop.f32.mrf.mxu0  ;;  %v1341_v50 = vpop.f32.mrf.mxu1 }
 0x16d   :  { %5566 = vst [vmem:[#allocation215_spill] sm:$0xff] %v4757_v14  ;;  %v775_v14 = vadd.f32 %v3854_v46, %v3726_v56  ;;  %v1528_v23 = vadd.f32 %v1341_v50, %v846_v52  ;;  %v856_v52 = vadd.f32 %v3970_v53, %v3740_v3 }
 0x16e   :  { %v1268_v26 = vpop.f32.mrf.mxu0  ;;  %v1343_v56 = vpop.f32.mrf.mxu1 }
 0x16f   :  { %v1526_v20 = vadd.f32 %v1268_v26, %v773_v16  ;;  %v850_v16 = vadd.f32 %v3890_v42, %v3732_v59  ;;  %v1634_v18 = vadd.f32 %v4770_v31, %v1528_v23  ;;  %v1529_v26 = vadd.f32 %v1343_v56, %v848_v22 }
 0x170   :  { %v1270_v44 = vpop.f32.mrf.mxu0  ;;  %v1345_v50 = vpop.f32.mrf.mxu1  ;;  %v783_v42 = vadd.f32 %v3949_v48, %v3738_v61  ;;  %v785_v23 = vadd.f32 %v3991_v37, %v3742_v62 }
 0x171   :  { %v1632_v45 = vadd.f32 %v4765_v36, %v1526_v20  ;;  %v1527_v17 = vadd.f32 %v1270_v44, %v775_v14  ;;  %1698 = vst [vmem:[#allocation2 + $0x10] sm:$0xff] %v1634_v18  ;;  %v1635_v14 = vadd.f32 %v4780_v24, %v1529_v26  ;;  %v1536_v20 = vadd.f32 %v1345_v50, %v850_v16 }
 0x172   :  { %v1272_v46 = vpop.f32.mrf.mxu0  ;;  %v1347_v38 = vpop.f32.mrf.mxu1  ;;  %v860_v16 = vadd.f32 %v4050_v55, %v3748_v1  ;;  %v789_v26 = vadd.f32 %v4069_v33, %v3750_v5 }
 0x173   :  { %1696 = vst [vmem:[#allocation2] sm:$0xff] %v1632_v45  ;;  %v1633_v21 = vadd.f32 %v4775_v40, %v1527_v17  ;;  %v1534_v47 = vadd.f32 %v1272_v46, %v777_v58  ;;  %1699 = vst [vmem:[#allocation2 + $0x18] sm:$0xff] %v1635_v14  ;;  %v1642_v22 = vadd.f32 %v4770_v31, %v1536_v20 }
 0x174   :  { %v1274_v59 = vpop.f32.mrf.mxu0  ;;  %v1537_v4 = vadd.f32 %v1347_v38, %v852_v57  ;;  %v1351_v48 = vpop.f32.mrf.mxu1  ;;  %v858_v58 = vadd.f32 %v4008_v49, %v3744_v63  ;;  %v787_v17 = vadd.f32 %v4031_v29, %v3746_v0  ;;  %v866_v57 = vadd.f32 %v4130_v43, %v3756_v2 }
 0x175   :  { %1697 = vst [vmem:[#allocation2 + $0x8] sm:$0xff] %v1633_v21  ;;  %v1640_v54 = vadd.f32 %v4765_v36, %v1534_v47  ;;  %v1535_v60 = vadd.f32 %v1274_v59, %v779_v51  ;;  %1702 = vst [vmem:[#allocation2 + $0x30] sm:$0xff] %v1642_v22  ;;  %v1544_v3 = vadd.f32 %v1351_v48, %v856_v52  ;;  %v5569_v48 = vld [vmem:[#allocation8_spill] sm:$0xff] }
 0x176   :  { %v1278_v35 = vpop.f32.mrf.mxu0  ;;  %v1643_v45 = vadd.f32 %v4780_v24, %v1537_v4  ;;  %v1353_v37 = vpop.f32.mrf.mxu1  ;;  %v862_v51 = vadd.f32 %v4092_v34, %v3752_v6  ;;  %v793_v47 = vadd.f32 %v4109_v39, %v3754_v7  ;;  %v795_v20 = vadd.f32 %v4151_v32, %v3758_v8 }
 0x177   :  { %1700 = vst [vmem:[#allocation2 + $0x20] sm:$0xff] %v1640_v54  ;;  %v1641_v44 = vadd.f32 %v4775_v40, %v1535_v60  ;;  %v1542_v61 = vadd.f32 %v1278_v35, %v783_v42  ;;  %v1650_v18 = vadd.f32 %v4770_v31, %v1544_v3  ;;  %v1545_v63 = vadd.f32 %v1353_v37, %v858_v58  ;;  %v5570_v58 = vld [vmem:[#allocation112_spill] sm:$0xff] }
 0x178   :  { %v1280_v53 = vpop.f32.mrf.mxu0  ;;  %1703 = vst [vmem:[#allocation2 + $0x38] sm:$0xff] %v1643_v45  ;;  %v1355_v29 = vpop.f32.mrf.mxu1  ;;  %v868_v42 = vadd.f32 %v4168_v27, %v3760_v9  ;;  %v797_v60 = vadd.f32 %v4191_v19, %v3762_v10  ;;  %v870_v52 = vadd.f32 %v4210_v28, %v3764_v11  ;;  %v799_v4 = vadd.f32 %v4229_v25, %v3766_v13 }
 0x179   :  { %1701 = vst [vmem:[#allocation2 + $0x28] sm:$0xff] %v1641_v44  ;;  %v1648_v56 = vadd.f32 %v4765_v36, %v1542_v61  ;;  %v1543_v62 = vadd.f32 %v1280_v53, %v785_v23  ;;  %1706 = vst [vmem:[#allocation2 + $0x50] sm:$0xff] %v1650_v18  ;;  %v1651_v21 = vadd.f32 %v4780_v24, %v1545_v63  ;;  %v5568_v23 = vld [vmem:[#allocation108_spill] sm:$0xff]  ;;  %v5571_v53 = vld [vmem:[#allocation9_spill] sm:$0xff] }
 0x17a   :  { %v1282_v49 = vpop.f32.mrf.mxu0  ;;  %v1552_v1 = vadd.f32 %v1355_v29, %v860_v16  ;;  %v1357_v33 = vpop.f32.mrf.mxu1  ;;  %v872_v44 = vadd.f32 %v5568_v23, %v3768_v12  ;;  %v803_v45 = vadd.f32 %v5570_v58, %v5569_v48  ;;  %v5573_v16 = vld [vmem:[#allocation10_spill] sm:$0xff]  ;;  %v5574_v18 = vld [vmem:[#allocation120_spill] sm:$0xff] }
 0x17b   :  { %1704 = vst [vmem:[#allocation2 + $0x40] sm:$0xff] %v1648_v56  ;;  %v1649_v46 = vadd.f32 %v4775_v40, %v1543_v62  ;;  %v1550_v0 = vadd.f32 %v1282_v49, %v787_v17  ;;  %1707 = vst [vmem:[#allocation2 + $0x58] sm:$0xff] %v1651_v21  ;;  %v1553_v6 = vadd.f32 %v1357_v33, %v862_v51  ;;  %v5572_v17 = vld [vmem:[#allocation116_spill] sm:$0xff] }
 0x17c   :  { %v1284_v55 = vpop.f32.mrf.mxu0  ;;  %v1658_v14 = vadd.f32 %v4770_v31, %v1552_v1  ;;  %v1361_v39 = vpop.f32.mrf.mxu1  ;;  %v876_v56 = vadd.f32 %v5572_v17, %v5571_v53  ;;  %v805_v63 = vadd.f32 %v5574_v18, %v5573_v16  ;;  %v5576_v29 = vld [vmem:[#allocation124_spill] sm:$0xff] }
 0x17d   :  { %1705 = vst [vmem:[#allocation2 + $0x48] sm:$0xff] %v1649_v46  ;;  %v1656_v50 = vadd.f32 %v4765_v36, %v1550_v0  ;;  %v1551_v5 = vadd.f32 %v1284_v55, %v789_v26  ;;  %v1659_v54 = vadd.f32 %v4780_v24, %v1553_v6  ;;  %v1560_v2 = vadd.f32 %v1361_v39, %v866_v57  ;;  %v5575_v0 = vld [vmem:[#allocation11_spill] sm:$0xff]  ;;  %v5585_v23 = vld [vmem:[#allocation16_spill] sm:$0xff] }
 0x17e   :  { %v1288_v34 = vpop.f32.mrf.mxu0  ;;  %1710 = vst [vmem:[#allocation2 + $0x70] sm:$0xff] %v1658_v14  ;;  %v1363_v32 = vpop.f32.mrf.mxu1  ;;  %v878_v51 = vadd.f32 %v5576_v29, %v5575_v0  ;;  %v1610_v6 = vsub.s32 4, %v4735_v15 }
 0x17f   :  { %1708 = vst [vmem:[#allocation2 + $0x60] sm:$0xff] %v1656_v50  ;;  %v1657_v59 = vadd.f32 %v4775_v40, %v1551_v5  ;;  %v1558_v7 = vadd.f32 %v1288_v34, %v793_v47  ;;  %1711 = vst [vmem:[#allocation2 + $0x78] sm:$0xff] %v1659_v54  ;;  %v1666_v22 = vadd.f32 %v4770_v31, %v1560_v2  ;;  %v5577_v47 = vld [vmem:[#allocation12_spill] sm:$0xff]  ;;  %v5579_v34 = vld [vmem:[#allocation13_spill] sm:$0xff]  ;;  %v1618_v54 = vsub.s32 6, %v4735_v15 }
 0x180   :  { %v1290_v43 = vpop.f32.mrf.mxu0  ;;  %v1561_v9 = vadd.f32 %v1363_v32, %v868_v42  ;;  %v1365_v19 = vpop.f32.mrf.mxu1  ;;  %v5578_v50 = vld [vmem:[#allocation128_spill] sm:$0xff]  ;;  %v5581_v2 = vld [vmem:[#allocation14_spill] sm:$0xff]  ;;  %v4874_v58 = vrot.slane %v4751_v30, %v1610_v6 }
 0x181   :  { %1709 = vst [vmem:[#allocation2 + $0x68] sm:$0xff] %v1657_v59  ;;  %v1664_v38 = vadd.f32 %v4765_v36, %v1558_v7  ;;  %v1559_v8 = vadd.f32 %v1290_v43, %v795_v20  ;;  %1714 = vst [vmem:[#allocation2 + $0x90] sm:$0xff] %v1666_v22  ;;  %v1568_v11 = vadd.f32 %v1365_v19, %v870_v52  ;;  %v5580_v20 = vld [vmem:[#allocation132_spill] sm:$0xff]  ;;  %v1614_v52 = vsub.s32 5, %v4735_v15  ;;  %v5583_v22 = vld [vmem:[#allocation15_spill] sm:$0xff] }
 0x182   :  { %v1292_v27 = vpop.f32.mrf.mxu0  ;;  %v1667_v61 = vadd.f32 %v4780_v24, %v1561_v9  ;;  %v1367_v25 = vpop.f32.mrf.mxu1  ;;  %v807_v5 = vadd.f32 %v5578_v50, %v5577_v47  ;;  %v880_v59 = vadd.f32 %v5580_v20, %v5579_v34  ;;  %v5582_v43 = vld [vmem:[#allocation136_spill] sm:$0xff]  ;;  %v1622_v19 = vsub.s32 7, %v4735_v15  ;;  %v5595_v50 = vld [vmem:[#allocation21_spill] sm:$0xff]  ;;  %v5597_v6 = vld [vmem:[#allocation22_spill] sm:$0xff] }
 0x183   :  { %1712 = vst [vmem:[#allocation2 + $0x80] sm:$0xff] %v1664_v38  ;;  %v1665_v35 = vadd.f32 %v4775_v40, %v1559_v8  ;;  %v1566_v10 = vadd.f32 %v1292_v27, %v797_v60  ;;  %v1674_v62 = vadd.f32 %v4770_v31, %v1568_v11  ;;  %v1569_v12 = vadd.f32 %v1367_v25, %v872_v44  ;;  %v5584_v9 = vld [vmem:[#allocation140_spill] sm:$0xff] }
 0x184   :  { %v1294_v28 = vpop.f32.mrf.mxu0  ;;  %1715 = vst [vmem:[#allocation2 + $0x98] sm:$0xff] %v1667_v61  ;;  %v1371_v46 = vpop.f32.mrf.mxu1  ;;  %v809_v60 = vadd.f32 %v5582_v43, %v5581_v2  ;;  %v882_v27 = vadd.f32 %v5584_v9, %v5583_v22  ;;  %v5586_v44 = vld [vmem:[#allocation144_spill] sm:$0xff]  ;;  %v4880_v15 = vrot.slane %v4751_v30, %v1618_v54  ;;  %v4886_v18 = vrot.slane %v4751_v30, %v1614_v52 }
 0x185   :  { %1713 = vst [vmem:[#allocation2 + $0x88] sm:$0xff] %v1665_v35  ;;  %v1672_v3 = vadd.f32 %v4765_v36, %v1566_v10  ;;  %v1567_v13 = vadd.f32 %v1294_v28, %v799_v4  ;;  %1718 = vst [vmem:[#allocation2 + $0xb0] sm:$0xff] %v1674_v62  ;;  %v1675_v21 = vadd.f32 %v4780_v24, %v1569_v12  ;;  %v5590_v62 = vld [vmem:[#allocation152_spill] sm:$0xff] }
 0x186   :  { %v1298_v37 = vpop.f32.mrf.mxu0  ;;  %v1576_v1 = vadd.f32 %v1371_v46, %v876_v56  ;;  %v1373_v14 = vpop.f32.mrf.mxu1  ;;  %v919_v61 = vadd.f32 %v5586_v44, %v5585_v23  ;;  %v5589_v56 = vld [vmem:[#allocation18_spill] sm:$0xff]  ;;  %v4892_v29 = vrot.slane %v4751_v30, %v1622_v19  ;;  %v5598_v34 = vld [vmem:[#allocation168_spill] sm:$0xff] }
 0x187   :  { %1716 = vst [vmem:[#allocation2 + $0xa0] sm:$0xff] %v1672_v3  ;;  %v1673_v49 = vadd.f32 %v4775_v40, %v1567_v13  ;;  %v1574_v26 = vadd.f32 %v1298_v37, %v803_v45  ;;  %1719 = vst [vmem:[#allocation2 + $0xb8] sm:$0xff] %v1675_v21  ;;  %v1577_v39 = vadd.f32 %v1373_v14, %v878_v51  ;;  %v5587_v45 = vld [vmem:[#allocation17_spill] sm:$0xff]  ;;  %v5588_v3 = vld [vmem:[#allocation148_spill] sm:$0xff] }
 0x188   :  { %v1300_v55 = vpop.f32.mrf.mxu0  ;;  %v1682_v7 = vadd.f32 %v4770_v31, %v1576_v1  ;;  %v1375_v32 = vpop.f32.mrf.mxu1  ;;  %v992_v13 = vadd.f32 %v5588_v3, %v5587_v45  ;;  %v921_v12 = vadd.f32 %v5590_v62, %v5589_v56  ;;  %v5593_v51 = vld [vmem:[#allocation20_spill] sm:$0xff]  ;;  %v925_v30 = vadd.f32 %v5598_v34, %v5597_v6  ;;  %v5605_v44 = vld [vmem:[#allocation26_spill] sm:$0xff]  ;;  %v5607_v3 = vld [vmem:[#allocation27_spill] sm:$0xff] }
 0x189   :  { %1717 = vst [vmem:[#allocation2 + $0xa8] sm:$0xff] %v1673_v49  ;;  %v1680_v33 = vadd.f32 %v4765_v36, %v1574_v26  ;;  %v1575_v57 = vadd.f32 %v1300_v55, %v805_v63  ;;  %v1683_v4 = vadd.f32 %v4780_v24, %v1577_v39  ;;  %v1584_v35 = vadd.f32 %v1375_v32, %v880_v59  ;;  %v5591_v63 = vld [vmem:[#allocation19_spill] sm:$0xff]  ;;  %v5592_v49 = vld [vmem:[#allocation156_spill] sm:$0xff]  ;;  %v5617_v34 = vld [vmem:[#allocation201_spill] sm:$0xff] }
 0x18a   :  { %v1302_v42 = vpop.f32.mrf.mxu0  ;;  %1722 = vst [vmem:[#allocation2 + $0xd0] sm:$0xff] %v1682_v7  ;;  %v1377_v48 = vpop.f32.mrf.mxu1  ;;  %v994_v26 = vadd.f32 %v5592_v49, %v5591_v63  ;;  %v5594_v21 = vld [vmem:[#allocation160_spill] sm:$0xff]  ;;  %v5599_v39 = vld [vmem:[#allocation23_spill] sm:$0xff]  ;;  %v5611_v49 = vld [vmem:[#allocation29_spill] sm:$0xff] }
 0x18b   :  { %1720 = vst [vmem:[#allocation2 + $0xc0] sm:$0xff] %v1680_v33  ;;  %v1681_v38 = vadd.f32 %v4775_v40, %v1575_v57  ;;  %v1582_v8 = vadd.f32 %v1302_v42, %v807_v5  ;;  %1723 = vst [vmem:[#allocation2 + $0xd8] sm:$0xff] %v1683_v4  ;;  %v1690_v25 = vadd.f32 %v4770_v31, %v1584_v35  ;;  %v5596_v5 = vld [vmem:[#allocation164_spill] sm:$0xff] }
 0x18c   :  { %v1304_v10 = vpop.f32.mrf.mxu0  ;;  %v1585_v53 = vadd.f32 %v1377_v48, %v882_v27  ;;  %v1487_v16 = vpop.f32.mrf.mxu1  ;;  %v923_v1 = vadd.f32 %v5594_v21, %v5593_v51  ;;  %v996_v33 = vadd.f32 %v5596_v5, %v5595_v50  ;;  %v5600_v42 = vld [vmem:[#allocation172_spill] sm:$0xff]  ;;  %v5603_v27 = vld [vmem:[#allocation25_spill] sm:$0xff]  ;;  %v5613_v21 = vld [vmem:[#allocation30_spill] sm:$0xff] }
 0x18d   :  { %1721 = vst [vmem:[#allocation2 + $0xc8] sm:$0xff] %v1681_v38  ;;  %v1688_v11 = vadd.f32 %v4765_v36, %v1582_v8  ;;  %v1583_v28 = vadd.f32 %v1304_v10, %v809_v60  ;;  %1726 = vst [vmem:[#allocation2 + $0xf0] sm:$0xff] %v1690_v25  ;;  %v1532_v46 = vadd.f32 %v1487_v16, %v992_v13  ;;  %v5601_v38 = vld [vmem:[#allocation24_spill] sm:$0xff]  ;;  %v5614_v50 = vld [vmem:[#allocation31_spill] sm:$0xff] }
 0x18e   :  { %v1414_v17 = vpop.f32.mrf.mxu0  ;;  %v1691_v31 = vadd.f32 %v4780_v24, %v1585_v53  ;;  %v1489_v47 = vpop.f32.mrf.mxu1  ;;  %v998_v54 = vadd.f32 %v5600_v42, %v5599_v39  ;;  %v5602_v8 = vld [vmem:[#allocation176_spill] sm:$0xff]  ;;  %v5619_v39 = vld [vmem:[#allocation202_spill] sm:$0xff] }
 0x18f   :  { %1724 = vst [vmem:[#allocation2 + $0xe0] sm:$0xff] %v1688_v11  ;;  %v1689_v36 = vadd.f32 %v4775_v40, %v1583_v28  ;;  %v1530_v37 = vadd.f32 %v1414_v17, %v919_v61  ;;  %v1638_v57 = vadd.f32 %v4880_v15, %v1532_v46  ;;  %v1533_v24 = vadd.f32 %v1489_v47, %v994_v26  ;;  %v5604_v4 = vld [vmem:[#allocation180_spill] sm:$0xff] }
 0x190   :  { %v1416_v0 = vpop.f32.mrf.mxu0  ;;  %1727 = vst [vmem:[#allocation2 + $0xf8] sm:$0xff] %v1691_v31  ;;  %v1491_v7 = vpop.f32.mrf.mxu1  ;;  %v929_v32 = vadd.f32 %v5602_v8, %v5601_v38  ;;  %v1002_v35 = vadd.f32 %v5604_v4, %v5603_v27  ;;  %v5606_v61 = vld [vmem:[#allocation184_spill] sm:$0xff]  ;;  %v5621_v38 = vld [vmem:[#allocation203_spill] sm:$0xff] }
 0x191   :  { %1725 = vst [vmem:[#allocation2 + $0xe8] sm:$0xff] %v1689_v36  ;;  %v1636_v40 = vadd.f32 %v4874_v58, %v1530_v37  ;;  %v1531_v55 = vadd.f32 %v1416_v0, %v921_v12  ;;  %1730 = vst [vmem:[#allocation3 + $0x10] sm:$0xff] %v1638_v57  ;;  %v1639_v2 = vadd.f32 %v4892_v29, %v1533_v24  ;;  %v5608_v13 = vld [vmem:[#allocation188_spill] sm:$0xff] }
 0x192   :  { %v1418_v14 = vpop.f32.mrf.mxu0  ;;  %v1540_v43 = vadd.f32 %v1491_v7, %v996_v33  ;;  %v1493_v9 = vpop.f32.mrf.mxu1  ;;  %v931_v11 = vadd.f32 %v5606_v61, %v5605_v44  ;;  %v1004_v25 = vadd.f32 %v5608_v13, %v5607_v3  ;;  %v5609_v62 = vld [vmem:[#allocation28_spill] sm:$0xff]  ;;  %v5618_v7 = vld [vmem:[#allocation33_spill] sm:$0xff]  ;;  %v5627_v3 = vld [vmem:[#allocation206_spill] sm:$0xff] }
 0x193   :  { %1728 = vst [vmem:[#allocation3] sm:$0xff] %v1636_v40  ;;  %v1637_v20 = vadd.f32 %v4886_v18, %v1531_v55  ;;  %v1538_v59 = vadd.f32 %v1418_v14, %v923_v1  ;;  %1731 = vst [vmem:[#allocation3 + $0x18] sm:$0xff] %v1639_v2  ;;  %v1541_v19 = vadd.f32 %v1493_v9, %v998_v54  ;;  %v5610_v12 = vld [vmem:[#allocation192_spill] sm:$0xff]  ;;  %v5622_v9 = vld [vmem:[#allocation35_spill] sm:$0xff] }
 0x194   :  { %v1420_v60 = vpop.f32.mrf.mxu0  ;;  %v1646_v10 = vadd.f32 %v4880_v15, %v1540_v43  ;;  %v1497_v45 = vpop.f32.mrf.mxu1  ;;  %v933_v36 = vadd.f32 %v5610_v12, %v5609_v62  ;;  %v5612_v26 = vld [vmem:[#allocation196_spill] sm:$0xff]  ;;  %v935_v1 = vadd.f32 %v4709_v41, %v5613_v21  ;;  %v1012_v42 = vadd.f32 %v5619_v39, %v5618_v7  ;;  %v5625_v44 = vld [vmem:[#allocation205_spill] sm:$0xff]  ;;  %v5629_v62 = vld [vmem:[#allocation207_spill] sm:$0xff] }
 0x195   :  { %1729 = vst [vmem:[#allocation3 + $0x8] sm:$0xff] %v1637_v20  ;;  %v1644_v52 = vadd.f32 %v4874_v58, %v1538_v59  ;;  %v1539_v22 = vadd.f32 %v1420_v60, %v925_v30  ;;  %v1647_v53 = vadd.f32 %v4892_v29, %v1541_v19  ;;  %v1548_v17 = vadd.f32 %v1497_v45, %v1002_v35  ;;  %v5615_v5 = vld [vmem:[#allocation200_spill] sm:$0xff]  ;;  %v5620_v60 = vld [vmem:[#allocation34_spill] sm:$0xff]  ;;  %v5626_v45 = vld [vmem:[#allocation37_spill] sm:$0xff] }
 0x196   :  { %v1424_v23 = vpop.f32.mrf.mxu0  ;;  %1734 = vst [vmem:[#allocation3 + $0x30] sm:$0xff] %v1646_v10  ;;  %v1499_v63 = vpop.f32.mrf.mxu1  ;;  %v1006_v31 = vadd.f32 %v5612_v26, %v5611_v49  ;;  %v1008_v33 = vadd.f32 %v5615_v5, %v5614_v50  ;;  %v5616_v6 = vld [vmem:[#allocation32_spill] sm:$0xff]  ;;  %v941_v8 = vadd.f32 %v5621_v38, %v5620_v60  ;;  %v1016_v13 = vadd.f32 %v5627_v3, %v5626_v45  ;;  %v5633_v21 = vld [vmem:[#allocation209_spill] sm:$0xff]  ;;  %v5635_v5 = vld [vmem:[#allocation210_spill] sm:$0xff] }
 0x197   :  { %1732 = vst [vmem:[#allocation3 + $0x20] sm:$0xff] %v1644_v52  ;;  %v1645_v28 = vadd.f32 %v4886_v18, %v1539_v22  ;;  %v1546_v48 = vadd.f32 %v1424_v23, %v929_v32  ;;  %1735 = vst [vmem:[#allocation3 + $0x38] sm:$0xff] %v1647_v53  ;;  %v1654_v46 = vadd.f32 %v4880_v15, %v1548_v17  ;;  %v5623_v27 = vld [vmem:[#allocation204_spill] sm:$0xff]  ;;  %v5634_v50 = vld [vmem:[#allocation41_spill] sm:$0xff] }
 0x198   :  { %v1426_v56 = vpop.f32.mrf.mxu0  ;;  %v1549_v0 = vadd.f32 %v1499_v63, %v1004_v25  ;;  %v1501_v47 = vpop.f32.mrf.mxu1  ;;  %v939_v30 = vadd.f32 %v5617_v34, %v5616_v6  ;;  %v1014_v4 = vadd.f32 %v5623_v27, %v5622_v9  ;;  %v5624_v23 = vld [vmem:[#allocation36_spill] sm:$0xff]  ;;  %v5630_v63 = vld [vmem:[#allocation39_spill] sm:$0xff]  ;;  %v5636_v6 = vld [vmem:[#allocation42_spill] sm:$0xff] }
 0x199   :  { %1733 = vst [vmem:[#allocation3 + $0x28] sm:$0xff] %v1645_v28  ;;  %v1652_v37 = vadd.f32 %v4874_v58, %v1546_v48  ;;  %v1547_v16 = vadd.f32 %v1426_v56, %v931_v11  ;;  %1738 = vst [vmem:[#allocation3 + $0x50] sm:$0xff] %v1654_v46  ;;  %v1556_v24 = vadd.f32 %v1501_v47, %v1006_v31  ;;  %v5628_v56 = vld [vmem:[#allocation38_spill] sm:$0xff]  ;;  %v5631_v49 = vld [vmem:[#allocation208_spill] sm:$0xff] }
 0x19a   :  { %v1428_v51 = vpop.f32.mrf.mxu0  ;;  %v1655_v57 = vadd.f32 %v4892_v29, %v1549_v0  ;;  %v1503_v59 = vpop.f32.mrf.mxu1  ;;  %v943_v61 = vadd.f32 %v5625_v44, %v5624_v23  ;;  %v945_v12 = vadd.f32 %v5629_v62, %v5628_v56  ;;  %v1018_v26 = vadd.f32 %v5631_v49, %v5630_v63  ;;  %v5637_v34 = vld [vmem:[#allocation211_spill] sm:$0xff]  ;;  %v5639_v39 = vld [vmem:[#allocation212_spill] sm:$0xff]  ;;  %v5641_v38 = vld [vmem:[#allocation213_spill] sm:$0xff] }
 0x19b   :  { %1736 = vst [vmem:[#allocation3 + $0x40] sm:$0xff] %v1652_v37  ;;  %v1653_v40 = vadd.f32 %v4886_v18, %v1547_v16  ;;  %v1554_v55 = vadd.f32 %v1428_v51, %v933_v36  ;;  %v1662_v54 = vadd.f32 %v4880_v15, %v1556_v24  ;;  %v1557_v2 = vadd.f32 %v1503_v59, %v1008_v33  ;;  %v5632_v51 = vld [vmem:[#allocation40_spill] sm:$0xff]  ;;  %v5638_v7 = vld [vmem:[#allocation43_spill] sm:$0xff]  ;;  %v5642_v9 = vld [vmem:[#allocation45_spill] sm:$0xff] }
 0x19c   :  { %v1430_v14 = vpop.f32.mrf.mxu0  ;;  %1739 = vst [vmem:[#allocation3 + $0x58] sm:$0xff] %v1655_v57  ;;  %v1507_v22 = vpop.f32.mrf.mxu1  ;;  %v1022_v33 = vadd.f32 %v5635_v5, %v5634_v50  ;;  %v5640_v60 = vld [vmem:[#allocation44_spill] sm:$0xff]  ;;  %v5643_v27 = vld [vmem:[#allocation214_spill] sm:$0xff]  ;;  %v5645_v44 = vld [vmem:[#allocation215_spill] sm:$0xff] }
 0x19d   :  { %1737 = vst [vmem:[#allocation3 + $0x48] sm:$0xff] %v1653_v40  ;;  %v1660_v20 = vadd.f32 %v4874_v58, %v1554_v55  ;;  %v1555_v41 = vadd.f32 %v1430_v14, %v935_v1  ;;  %1742 = vst [vmem:[#allocation3 + $0x70] sm:$0xff] %v1662_v54  ;;  %v1663_v35 = vadd.f32 %v4892_v29, %v1557_v2  ;;  %v5644_v23 = vld [vmem:[#allocation46_spill] sm:$0xff]  ;;  %v5646_v45 = vld [vmem:[#allocation47_spill] sm:$0xff] }
 0x19e   :  { %v1434_v43 = vpop.f32.mrf.mxu0  ;;  %v1564_v10 = vadd.f32 %v1507_v22, %v1012_v42  ;;  %v1509_v48 = vpop.f32.mrf.mxu1  ;;  %v949_v1 = vadd.f32 %v5633_v21, %v5632_v51  ;;  %v1024_v42 = vadd.f32 %v5639_v39, %v5638_v7  ;;  %v5647_v3 = vld [vmem:[#allocation216_spill] sm:$0xff] }
 0x19f   :  { %1740 = vst [vmem:[#allocation3 + $0x60] sm:$0xff] %v1660_v20  ;;  %v1661_v32 = vadd.f32 %v4886_v18, %v1555_v41  ;;  %v1562_v52 = vadd.f32 %v1434_v43, %v939_v30  ;;  %1743 = vst [vmem:[#allocation3 + $0x78] sm:$0xff] %v1663_v35  ;;  %v1565_v53 = vadd.f32 %v1509_v48, %v1014_v4 }
 0x1a0   :  { %v1436_v19 = vpop.f32.mrf.mxu0  ;;  %v1670_v25 = vadd.f32 %v4880_v15, %v1564_v10  ;;  %v1511_v16 = vpop.f32.mrf.mxu1  ;;  %v951_v30 = vadd.f32 %v5637_v34, %v5636_v6  ;;  %v1026_v4 = vadd.f32 %v5643_v27, %v5642_v9 }
 0x1a1   :  { %1741 = vst [vmem:[#allocation3 + $0x68] sm:$0xff] %v1661_v32  ;;  %v1668_v11 = vadd.f32 %v4874_v58, %v1562_v52  ;;  %v1563_v28 = vadd.f32 %v1436_v19, %v941_v8  ;;  %v1671_v31 = vadd.f32 %v4892_v29, %v1565_v53  ;;  %v1572_v46 = vadd.f32 %v1511_v16, %v1016_v13 }
 0x1a2   :  { %v1438_v17 = vpop.f32.mrf.mxu0  ;;  %1746 = vst [vmem:[#allocation3 + $0x90] sm:$0xff] %v1670_v25  ;;  %v1513_v47 = vpop.f32.mrf.mxu1  ;;  %v953_v8 = vadd.f32 %v5641_v38, %v5640_v60  ;;  %v1028_v13 = vadd.f32 %v5647_v3, %v5646_v45 }
 0x1a3   :  { %1744 = vst [vmem:[#allocation3 + $0x80] sm:$0xff] %v1668_v11  ;;  %v1669_v36 = vadd.f32 %v4886_v18, %v1563_v28  ;;  %v1570_v37 = vadd.f32 %v1438_v17, %v943_v61  ;;  %1747 = vst [vmem:[#allocation3 + $0x98] sm:$0xff] %v1671_v31  ;;  %v1678_v57 = vadd.f32 %v4880_v15, %v1572_v46 }
 0x1a4   :  { %v1440_v0 = vpop.f32.mrf.mxu0  ;;  %v1573_v24 = vadd.f32 %v1513_v47, %v1018_v26  ;;  %v1517_v59 = vpop.f32.mrf.mxu1  ;;  %v955_v61 = vadd.f32 %v5645_v44, %v5644_v23 }
 0x1a5   :  { %1745 = vst [vmem:[#allocation3 + $0x88] sm:$0xff] %v1669_v36  ;;  %v1676_v40 = vadd.f32 %v4874_v58, %v1570_v37  ;;  %v1571_v55 = vadd.f32 %v1440_v0, %v945_v12  ;;  %1750 = vst [vmem:[#allocation3 + $0xb0] sm:$0xff] %v1678_v57  ;;  %v1580_v2 = vadd.f32 %v1517_v59, %v1022_v33 }
 0x1a6   :  { %v1444_v14 = vpop.f32.mrf.mxu0  ;;  %v1679_v54 = vadd.f32 %v4892_v29, %v1573_v24  ;;  %v1519_v22 = vpop.f32.mrf.mxu1 }
 0x1a7   :  { %1748 = vst [vmem:[#allocation3 + $0xa0] sm:$0xff] %v1676_v40  ;;  %v1677_v20 = vadd.f32 %v4886_v18, %v1571_v55  ;;  %v1578_v41 = vadd.f32 %v1444_v14, %v949_v1  ;;  %v1686_v35 = vadd.f32 %v4880_v15, %v1580_v2  ;;  %v1581_v10 = vadd.f32 %v1519_v22, %v1024_v42 }
 0x1a8   :  { %v1446_v43 = vpop.f32.mrf.mxu0  ;;  %1751 = vst [vmem:[#allocation3 + $0xb8] sm:$0xff] %v1679_v54  ;;  %v1521_v48 = vpop.f32.mrf.mxu1 }
 0x1a9   :  { %1749 = vst [vmem:[#allocation3 + $0xa8] sm:$0xff] %v1677_v20  ;;  %v1684_v32 = vadd.f32 %v4874_v58, %v1578_v41  ;;  %v1579_v52 = vadd.f32 %v1446_v43, %v951_v30  ;;  %1754 = vst [vmem:[#allocation3 + $0xd0] sm:$0xff] %v1686_v35  ;;  %v1687_v25 = vadd.f32 %v4892_v29, %v1581_v10 }
 0x1aa   :  { %v1448_v19 = vpop.f32.mrf.mxu0  ;;  %v1588_v53 = vadd.f32 %v1521_v48, %v1026_v4  ;;  %v1523_v12 = vpop.f32.mrf.mxu1 }
 0x1ab   :  { %1752 = vst [vmem:[#allocation3 + $0xc0] sm:$0xff] %v1684_v32  ;;  %v1685_v11 = vadd.f32 %v4886_v18, %v1579_v52  ;;  %v1586_v28 = vadd.f32 %v1448_v19, %v953_v8  ;;  %1755 = vst [vmem:[#allocation3 + $0xd8] sm:$0xff] %v1687_v25  ;;  %v1589_v37 = vadd.f32 %v1523_v12, %v1028_v13 }
 0x1ac   :  { %v1450_v17 = vpop.f32.mrf.mxu0  ;;  %v1694_v36 = vadd.f32 %v4880_v15, %v1588_v53 }
 0x1ad   :  { %1753 = vst [vmem:[#allocation3 + $0xc8] sm:$0xff] %v1685_v11  ;;  %v1692_v56 = vadd.f32 %v4874_v58, %v1586_v28  ;;  %v1587_v62 = vadd.f32 %v1450_v17, %v955_v61  ;;  %v1695_v63 = vadd.f32 %v4892_v29, %v1589_v37 }
 0x1ae   :  { %1758 = vst [vmem:[#allocation3 + $0xf0] sm:$0xff] %v1694_v36 }
 0x1af   :  { %1756 = vst [vmem:[#allocation3 + $0xe0] sm:$0xff] %v1692_v56  ;;  %v1693_v16 = vadd.f32 %v4886_v18, %v1587_v62  ;;  %1759 = vst [vmem:[#allocation3 + $0xf8] sm:$0xff] %v1695_v63 }
 0x1b1   :  { %1757 = vst [vmem:[#allocation3 + $0xe8] sm:$0xff] %v1693_v16 }
 0x1b2 LB: > { %v5648_v58 = vld [vmem:[#allocation111_spill] sm:$0xff]  ;;  %v5649_v49 = vld [vmem:[#allocation106_spill] sm:$0xff]  ;;  %v5652_v18 = vld [vmem:[#allocation109_spill] sm:$0xff]  ;;  %v2204_v57 = vstv %s2319_s7  ;;  %s5007_s5 = ssub.s32 7, %s2319_s7  ;;  %v2323_v24 = vmov 0   ;;  %s2267_s29 = sshll.u32 %s2319_s7, 5  ;;  %s2319_s7 = sphi %s4982_s7, %s1962_s7  }
 0x1b3   : > { %v5650_v26 = vpack.c.bf16 %v5648_v58, %v5649_v49  ;;  %v5651_v15 = vld [vmem:[#allocation114_spill] sm:$0xff]  ;;  %v5655_v46 = vld [vmem:[#allocation105_spill] sm:$0xff]  ;;  %v5658_v21 = vld [vmem:[#allocation107_spill] sm:$0xff]  ;;  %2008 = vmatprep.mubr.bf16.mxu0 %v2323_v24  ;;  %2049 = vmatprep.mubr.bf16.mxu1 %v2323_v24  ;;  %v2206_v6 = vstv %s5007_s5  ;;  %s1970_s30 = scalar_lea.vmem [#allocation2], %s2267_s29  ;;  %s2268_s12 = sshll.u32 %s5007_s5, 5 }
 0x1b4   : > { %v5653_v31 = vpack.c.bf16 %v5651_v15, %v5652_v18  ;;  %v5654_v29 = vld [vmem:[#allocation110_spill] sm:$0xff]  ;;  %v5657_v51 = vld [vmem:[#allocation113_spill] sm:$0xff]  ;;  %v5663_v50 = vld [vmem:[#allocation104_spill] sm:$0xff]  ;;  %2280 = vset.pattern.permute.xlu0 %v2323_v24  ;;  %s5196_s13 = scalar_lea.vmem [#allocation3], %s2268_s12  ;;  %s2265_s14 = sshll.u32 %s2319_s7, 3 }
 0x1b5   : > { %1976 = vmatprep.subr.bf16.mxu0 %v5650_v26  ;;  %v5656_v0 = vpack.c.bf16 %v5654_v29, %v5655_v46  ;;  %v5659_v1 = vpack.c.bf16 %v5657_v51, %v5658_v21  ;;  %v5660_v40 = vld [vmem:[#allocation102_spill] sm:$0xff]  ;;  %v5664_v5 = vld [vmem:[#allocation100_spill] sm:$0xff]  ;;  %v5666_v14 = vld [vmem:[#allocation51_spill] sm:$0xff]  ;;  %s2228_s8 = scalar_lea.vmem %s5219_s10, %s2265_s14  ;;  %s2266_s16 = sshll.u32 %s5007_s5, 3 }
 0x1b6   : > { %2017 = vmatprep.subr.bf16.mxu1 %v5653_v31  ;;  %v5661_v55 = vld [vmem:[#allocation98_spill] sm:$0xff]  ;;  %v5665_v33 = vpack.c.bf16 %v5663_v50, %v5664_v5  ;;  %vm2205_vm0 = vcmp.gt.s32.totalorder %v5666_v14, %v2204_v57  ;;  %v5667_v30 = vld [vmem:[#allocation101_spill] sm:$0xff]  ;;  %v5670_v59 = vld [vmem:[#allocation103_spill] sm:$0xff]  ;;  %vm2207_vm1 = vcmp.gt.s32.totalorder %v5666_v14, %v2206_v6  ;;  %s2232_s19 = scalar_lea.vmem %s5220_s11, %s2266_s16  ;;  %s1962_s7 = sadd.s32 1, %s2319_s7  }
 0x1b7   : > { %1977 = vmatpush1.bf16.msra.mxu0 %v5656_v0  ;;  %2018 = vmatpush1.bf16.msra.mxu1 %v5659_v1  ;;  %v5662_v47 = vpack.c.bf16 %v5660_v40, %v5661_v55  ;;  %v2208_v34 = vsel %vm2205_vm0, 1, %v2323_v24  ;;  %v5668_v20 = vld [vmem:[#allocation97_spill] sm:$0xff]  ;;  %v5671_v7 = vld [vmem:[#allocation99_spill] sm:$0xff]  ;;  %v5673_v42 = vld [vmem:[#allocation94_spill] sm:$0xff]  ;;  %v2217_v8 = vsel %vm2207_vm1, 1, %v2323_v24  ;;  %p1959_p0 = scmp.ge.s32.totalorder %s1962_s7, 8  }
 0x1b8   : > { %2019 = vmatprep.subr.bf16.mxu1 %v5665_v33  ;;  %v5669_v41 = vpack.c.bf16 %v5667_v30, %v5668_v20  ;;  %v5672_v39 = vpack.c.bf16 %v5670_v59, %v5671_v7  ;;  %v5674_v54 = vld [vmem:[#allocation90_spill] sm:$0xff]  ;;  %v5676_v43 = vld [vmem:[#allocation96_spill] sm:$0xff]  ;;  %2210 = vperm.xlu0 %2280, %v2208_v34   ;;  %v5679_v32 = vld [vmem:[#allocation93_spill] sm:$0xff] }
 0x1b9   : > { %1978 = vmatprep.subr.bf16.mxu0 %v5662_v47  ;;  %v5675_v2 = vpack.c.bf16 %v5673_v42, %v5674_v54  ;;  %v5677_v60 = vld [vmem:[#allocation92_spill] sm:$0xff]  ;;  %v5680_v52 = vld [vmem:[#allocation89_spill] sm:$0xff]  ;;  %v5682_v9 = vld [vmem:[#allocation95_spill] sm:$0xff] }
 0x1ba   : > { %v5678_v38 = vpack.c.bf16 %v5676_v43, %v5677_v60  ;;  %v5681_v22 = vpack.c.bf16 %v5679_v32, %v5680_v52  ;;  %v5683_v27 = vld [vmem:[#allocation91_spill] sm:$0xff]  ;;  %v5685_v35 = vld [vmem:[#allocation86_spill] sm:$0xff]  ;;  %v5688_v23 = vld [vmem:[#allocation88_spill] sm:$0xff] }
 0x1bb   : > { %1979 = vmatpush1.bf16.msra.mxu0 %v5669_v41  ;;  %2020 = vmatpush1.bf16.msra.mxu1 %v5672_v39  ;;  %v5684_v4 = vpack.c.bf16 %v5682_v9, %v5683_v27  ;;  %v5686_v10 = vld [vmem:[#allocation82_spill] sm:$0xff]  ;;  %v5689_v44 = vld [vmem:[#allocation84_spill] sm:$0xff]  ;;  %v5691_v11 = vld [vmem:[#allocation85_spill] sm:$0xff] }
 0x1bc   : > { %1980 = vmatprep.subr.bf16.mxu0 %v5675_v2  ;;  %2021 = vmatprep.subr.bf16.mxu1 %v5678_v38  ;;  %v5687_v19 = vpack.c.bf16 %v5685_v35, %v5686_v10  ;;  %v5690_v61 = vpack.c.bf16 %v5688_v23, %v5689_v44  ;;  %v5692_v28 = vld [vmem:[#allocation81_spill] sm:$0xff]  ;;  %v5694_v45 = vld [vmem:[#allocation87_spill] sm:$0xff]  ;;  %v5697_v25 = vld [vmem:[#allocation78_spill] sm:$0xff] }
 0x1bd   : > { %2219 = vperm.xlu0 %2280, %v2217_v8   ;;  %v5693_v48 = vpack.c.bf16 %v5691_v11, %v5692_v28  ;;  %v5695_v3 = vld [vmem:[#allocation83_spill] sm:$0xff]  ;;  %v5698_v53 = vld [vmem:[#allocation74_spill] sm:$0xff]  ;;  %v5700_v56 = vld [vmem:[#allocation80_spill] sm:$0xff] }
 0x1be   : > { %v5696_v13 = vpack.c.bf16 %v5694_v45, %v5695_v3  ;;  %v5699_v17 = vpack.c.bf16 %v5697_v25, %v5698_v53  ;;  %v5701_v62 = vld [vmem:[#allocation76_spill] sm:$0xff]  ;;  %v5703_v36 = vld [vmem:[#allocation77_spill] sm:$0xff]  ;;  %v5706_v63 = vld [vmem:[#allocation79_spill] sm:$0xff] }
 0x1bf   : > { %1981 = vmatpush1.bf16.msra.mxu0 %v5681_v22  ;;  %2022 = vmatpush1.bf16.msra.mxu1 %v5684_v4  ;;  %v5702_v12 = vpack.c.bf16 %v5700_v56, %v5701_v62  ;;  %v5704_v37 = vld [vmem:[#allocation73_spill] sm:$0xff]  ;;  %v5707_v58 = vld [vmem:[#allocation75_spill] sm:$0xff]  ;;  %v5709_v26 = vld [vmem:[#allocation70_spill] sm:$0xff] }
 0x1c0   : > { %1982 = vmatprep.subr.bf16.mxu0 %v5687_v19  ;;  %2023 = vmatprep.subr.bf16.mxu1 %v5690_v61  ;;  %v5705_v16 = vpack.c.bf16 %v5703_v36, %v5704_v37  ;;  %v5708_v49 = vpack.c.bf16 %v5706_v63, %v5707_v58  ;;  %v5710_v15 = vld [vmem:[#allocation66_spill] sm:$0xff]  ;;  %v5712_v31 = vld [vmem:[#allocation72_spill] sm:$0xff]  ;;  %v5715_v0 = vld [vmem:[#allocation69_spill] sm:$0xff] }
 0x1c1   : > { %v5711_v18 = vpack.c.bf16 %v5709_v26, %v5710_v15  ;;  %v5713_v29 = vld [vmem:[#allocation68_spill] sm:$0xff]  ;;  %v5716_v51 = vld [vmem:[#allocation65_spill] sm:$0xff]  ;;  %v5718_v1 = vld [vmem:[#allocation71_spill] sm:$0xff] }
 0x1c2   : > { %v5714_v46 = vpack.c.bf16 %v5712_v31, %v5713_v29  ;;  %v5717_v21 = vpack.c.bf16 %v5715_v0, %v5716_v51  ;;  %v5719_v40 = vld [vmem:[#allocation67_spill] sm:$0xff]  ;;  %v5721_v47 = vld [vmem:[#allocation62_spill] sm:$0xff]  ;;  %v5724_v33 = vld [vmem:[#allocation64_spill] sm:$0xff] }
 0x1c3   : > { %1983 = vmatpush1.bf16.msra.mxu0 %v5693_v48  ;;  %2024 = vmatpush1.bf16.msra.mxu1 %v5696_v13  ;;  %v5720_v55 = vpack.c.bf16 %v5718_v1, %v5719_v40  ;;  %v5722_v50 = vld [vmem:[#allocation58_spill] sm:$0xff]  ;;  %v5725_v57 = vld [vmem:[#allocation60_spill] sm:$0xff]  ;;  %v5727_v34 = vld [vmem:[#allocation61_spill] sm:$0xff] }
 0x1c4   : > { %1984 = vmatprep.subr.bf16.mxu0 %v5699_v17  ;;  %2025 = vmatprep.subr.bf16.mxu1 %v5702_v12  ;;  %v5723_v5 = vpack.c.bf16 %v5721_v47, %v5722_v50  ;;  %v5726_v6 = vpack.c.bf16 %v5724_v33, %v5725_v57  ;;  %v5728_v30 = vld [vmem:[#allocation57_spill] sm:$0xff]  ;;  %v5075_v41 = vld [vmem:[#allocation4] sm:$0xff]  ;;  %v5730_v59 = vld [vmem:[#allocation63_spill] sm:$0xff] }
 0x1c5   : > { %v5729_v20 = vpack.c.bf16 %v5727_v34, %v5728_v30  ;;  %v5731_v7 = vld [vmem:[#allocation59_spill] sm:$0xff]  ;;  %v5733_v42 = vld [vmem:[#allocation54_spill] sm:$0xff]  ;;  %v5734_v54 = vld [vmem:[#allocation49_spill] sm:$0xff]  ;;  %v1975_v8 = vpack.c.bf16 %v5075_v41, %v5075_v41 }
 0x1c6   : > { %v5732_v39 = vpack.c.bf16 %v5730_v59, %v5731_v7  ;;  %v5735_v2 = vpack.c.bf16 %v5733_v42, %v5734_v54  ;;  %v5736_v43 = vld [vmem:[#allocation56_spill] sm:$0xff]  ;;  %v5739_v32 = vld [vmem:[#allocation53_spill] sm:$0xff]  ;;  %v5742_v9 = vld [vmem:[#allocation55_spill] sm:$0xff] }
 0x1c7   : > { %1985 = vmatpush1.bf16.msra.mxu0 %v5705_v16  ;;  %2026 = vmatpush1.bf16.msra.mxu1 %v5708_v49  ;;  %v5737_v60 = vld [vmem:[#allocation52_spill] sm:$0xff]  ;;  %v5743_v27 = vld [vmem:[#allocation50_spill] sm:$0xff]  ;;  %v5745_v35 = vld [vmem:[#allocation197_spill] sm:$0xff] }
 0x1c8   : > { %1986 = vmatprep.subr.bf16.mxu0 %v5711_v18  ;;  %2027 = vmatprep.subr.bf16.mxu1 %v5714_v46  ;;  %v5738_v38 = vpack.c.bf16 %v5736_v43, %v5737_v60  ;;  %v5740_v52 = vld [vmem:[#allocation48_spill] sm:$0xff]  ;;  %v5744_v4 = vpack.c.bf16 %v5742_v9, %v5743_v27  ;;  %v5746_v10 = vld [vmem:[#allocation191_spill] sm:$0xff]  ;;  %v5749_v44 = vld [vmem:[#allocation194_spill] sm:$0xff] }
 0x1c9   : > { %v5741_v22 = vpack.c.bf16 %v5739_v32, %v5740_v52  ;;  %v5747_v19 = vpack.c.bf16 %v5745_v35, %v5746_v10  ;;  %v5748_v23 = vld [vmem:[#allocation199_spill] sm:$0xff]  ;;  %v5752_v28 = vld [vmem:[#allocation190_spill] sm:$0xff]  ;;  %v5755_v3 = vld [vmem:[#allocation193_spill] sm:$0xff] }
 0x1ca   : > { %v5750_v61 = vpack.c.bf16 %v5748_v23, %v5749_v44  ;;  %v5751_v11 = vld [vmem:[#allocation195_spill] sm:$0xff]  ;;  %v5754_v45 = vld [vmem:[#allocation198_spill] sm:$0xff]  ;;  %v5758_v53 = vld [vmem:[#allocation181_spill] sm:$0xff] }
 0x1cb   : > { %1987 = vmatpush1.bf16.msra.mxu0 %v5717_v21  ;;  %2028 = vmatpush1.bf16.msra.mxu1 %v5720_v55  ;;  %v5753_v48 = vpack.c.bf16 %v5751_v11, %v5752_v28  ;;  %v5756_v13 = vpack.c.bf16 %v5754_v45, %v5755_v3  ;;  %v5757_v25 = vld [vmem:[#allocation186_spill] sm:$0xff]  ;;  %v5760_v56 = vld [vmem:[#allocation189_spill] sm:$0xff]  ;;  %v5761_v62 = vld [vmem:[#allocation183_spill] sm:$0xff] }
 0x1cc   : > { %1988 = vmatprep.subr.bf16.mxu0 %v5723_v5  ;;  %2029 = vmatprep.subr.bf16.mxu1 %v5726_v6  ;;  %v5759_v17 = vpack.c.bf16 %v5757_v25, %v5758_v53  ;;  %v5762_v12 = vpack.c.bf16 %v5760_v56, %v5761_v62  ;;  %v5763_v36 = vld [vmem:[#allocation185_spill] sm:$0xff]  ;;  %v5764_v37 = vld [vmem:[#allocation179_spill] sm:$0xff]  ;;  %v5767_v58 = vld [vmem:[#allocation182_spill] sm:$0xff] }
 0x1cd   : > { %v5765_v16 = vpack.c.bf16 %v5763_v36, %v5764_v37  ;;  %v5766_v63 = vld [vmem:[#allocation187_spill] sm:$0xff]  ;;  %v5770_v15 = vld [vmem:[#allocation170_spill] sm:$0xff]  ;;  %v5773_v29 = vld [vmem:[#allocation173_spill] sm:$0xff] }
 0x1ce   : > { %v5768_v49 = vpack.c.bf16 %v5766_v63, %v5767_v58  ;;  %v5769_v26 = vld [vmem:[#allocation175_spill] sm:$0xff]  ;;  %v5772_v31 = vld [vmem:[#allocation178_spill] sm:$0xff]  ;;  %v5776_v51 = vld [vmem:[#allocation169_spill] sm:$0xff] }
 0x1cf   : > { %1989 = vmatpush1.bf16.msra.mxu0 %v5729_v20  ;;  %2030 = vmatpush1.bf16.msra.mxu1 %v5732_v39  ;;  %v5771_v18 = vpack.c.bf16 %v5769_v26, %v5770_v15  ;;  %v5774_v46 = vpack.c.bf16 %v5772_v31, %v5773_v29  ;;  %v5775_v0 = vld [vmem:[#allocation174_spill] sm:$0xff]  ;;  %v5779_v1 = vld [vmem:[#allocation171_spill] sm:$0xff]  ;;  %v5781_v55 = vld [vmem:[#allocation165_spill] sm:$0xff] }
 0x1d0   : > { %1990 = vmatprep.subr.bf16.mxu0 %v5735_v2  ;;  %2031 = vmatprep.subr.bf16.mxu1 %v5738_v38  ;;  %v5777_v21 = vpack.c.bf16 %v5775_v0, %v5776_v51  ;;  %v5782_v47 = vld [vmem:[#allocation159_spill] sm:$0xff]  ;;  %v5785_v33 = vld [vmem:[#allocation162_spill] sm:$0xff]  ;;  %v5791_v59 = vld [vmem:[#allocation161_spill] sm:$0xff] }
 0x1d1   : > { %v5783_v50 = vpack.c.bf16 %v5781_v55, %v5782_v47  ;;  %v5784_v5 = vld [vmem:[#allocation167_spill] sm:$0xff]  ;;  %v5788_v34 = vld [vmem:[#allocation158_spill] sm:$0xff]  ;;  %v5794_v42 = vld [vmem:[#allocation149_spill] sm:$0xff] }
 0x1d2   : > { %v5786_v57 = vpack.c.bf16 %v5784_v5, %v5785_v33  ;;  %v5787_v6 = vld [vmem:[#allocation163_spill] sm:$0xff]  ;;  %v5790_v20 = vld [vmem:[#allocation166_spill] sm:$0xff]  ;;  %v5796_v2 = vld [vmem:[#allocation157_spill] sm:$0xff] }
 0x1d3   : > { %1991 = vmatpush1.bf16.msra.mxu0 %v5741_v22  ;;  %2032 = vmatpush1.bf16.msra.mxu1 %v5744_v4  ;;  %v5789_v30 = vpack.c.bf16 %v5787_v6, %v5788_v34  ;;  %v5792_v7 = vpack.c.bf16 %v5790_v20, %v5791_v59  ;;  %v5793_v39 = vld [vmem:[#allocation154_spill] sm:$0xff]  ;;  %v5797_v43 = vld [vmem:[#allocation151_spill] sm:$0xff]  ;;  %v5799_v38 = vld [vmem:[#allocation153_spill] sm:$0xff] }
 0x1d4   : > { %2070 = vmatprep.subr.bf16.mxu0 %v5747_v19  ;;  %2111 = vmatprep.subr.bf16.mxu1 %v5750_v61  ;;  %v5795_v54 = vpack.c.bf16 %v5793_v39, %v5794_v42  ;;  %v5798_v60 = vpack.c.bf16 %v5796_v2, %v5797_v43  ;;  %v5802_v52 = vld [vmem:[#allocation155_spill] sm:$0xff]  ;;  %v5803_v22 = vld [vmem:[#allocation150_spill] sm:$0xff]  ;;  %v5809_v19 = vld [vmem:[#allocation141_spill] sm:$0xff] }
 0x1d5   : > { %v5804_v9 = vpack.c.bf16 %v5802_v52, %v5803_v22  ;;  %v5805_v27 = vld [vmem:[#allocation143_spill] sm:$0xff]  ;;  %v5806_v4 = vld [vmem:[#allocation138_spill] sm:$0xff]  ;;  %v5812_v61 = vld [vmem:[#allocation137_spill] sm:$0xff] }
 0x1d6   : > { %2009 = vmatmul.mubr.bf16.vlgmr.msra.gmra.mxu0 %v1975_v8  ;;  %2050 = vmatmul.mubr.bf16.vlgmr.msra.gmra.mxu1 %v1975_v8  ;;  %v5800_v8 = vld [vmem:[#allocation147_spill] sm:$0xff]  ;;  %v5807_v35 = vpack.c.bf16 %v5805_v27, %v5806_v4  ;;  %v5808_v10 = vld [vmem:[#allocation146_spill] sm:$0xff]  ;;  %v5814_v28 = vld [vmem:[#allocation145_spill] sm:$0xff] }
 0x1d7   : > { %2071 = vmatpush1.bf16.msra.mxu0 %v5753_v48  ;;  %2112 = vmatpush1.bf16.msra.mxu1 %v5756_v13  ;;  %v5801_v32 = vpack.c.bf16 %v5799_v38, %v5800_v8  ;;  %v5810_v23 = vpack.c.bf16 %v5808_v10, %v5809_v19  ;;  %v5811_v44 = vld [vmem:[#allocation142_spill] sm:$0xff]  ;;  %v5815_v48 = vld [vmem:[#allocation139_spill] sm:$0xff]  ;;  %v5817_v3 = vld [vmem:[#allocation133_spill] sm:$0xff] }
 0x1d8   : > { %2072 = vmatprep.subr.bf16.mxu0 %v5759_v17  ;;  %2113 = vmatprep.subr.bf16.mxu1 %v5762_v12  ;;  %v5813_v11 = vpack.c.bf16 %v5811_v44, %v5812_v61  ;;  %v5816_v45 = vpack.c.bf16 %v5814_v28, %v5815_v48  ;;  %v5818_v13 = vld [vmem:[#allocation127_spill] sm:$0xff]  ;;  %v5821_v17 = vld [vmem:[#allocation130_spill] sm:$0xff]  ;;  %v5827_v63 = vld [vmem:[#allocation129_spill] sm:$0xff] }
 0x1d9   : > { %2102 = vmatprep.mubr.bf16.mxu0 %v2323_v24  ;;  %2143 = vmatprep.mubr.bf16.mxu1 %v2323_v24  ;;  %v5778_v24 = vld [vmem:[#allocation177_spill] sm:$0xff]  ;;  %v5819_v25 = vpack.c.bf16 %v5817_v3, %v5818_v13  ;;  %v5820_v53 = vld [vmem:[#allocation135_spill] sm:$0xff]  ;;  %v5824_v12 = vld [vmem:[#allocation126_spill] sm:$0xff] }
 0x1da   : > { %v5780_v40 = vpack.c.bf16 %v5778_v24, %v5779_v1  ;;  %v5822_v56 = vpack.c.bf16 %v5820_v53, %v5821_v17  ;;  %v5823_v62 = vld [vmem:[#allocation131_spill] sm:$0xff]  ;;  %v5175_v37 = vld [vmem:[#allocation6] sm:$0xff]  ;;  %v5830_v26 = vld [vmem:[#allocation117_spill] sm:$0xff] }
 0x1db   : > { %2073 = vmatpush1.bf16.msra.mxu0 %v5765_v16  ;;  %2114 = vmatpush1.bf16.msra.mxu1 %v5768_v49  ;;  %v5825_v36 = vpack.c.bf16 %v5823_v62, %v5824_v12  ;;  %v5826_v16 = vld [vmem:[#allocation134_spill] sm:$0xff]  ;;  %v5833_v31 = vld [vmem:[#allocation119_spill] sm:$0xff]  ;;  %v5835_v0 = vld [vmem:[#allocation121_spill] sm:$0xff] }
 0x1dc   : > { %2074 = vmatprep.subr.bf16.mxu0 %v5771_v18  ;;  %2115 = vmatprep.subr.bf16.mxu1 %v5774_v46  ;;  %v5828_v58 = vpack.c.bf16 %v5826_v16, %v5827_v63  ;;  %v5829_v49 = vld [vmem:[#allocation122_spill] sm:$0xff]  ;;  %v5832_v18 = vld [vmem:[#allocation125_spill] sm:$0xff]  ;;  %v2069_v46 = vpack.c.bf16 %v5175_v37, %v5175_v37  ;;  %v5836_v51 = vld [vmem:[#allocation115_spill] sm:$0xff] }
 0x1dd   : > { %v5831_v15 = vpack.c.bf16 %v5829_v49, %v5830_v26  ;;  %v5834_v29 = vpack.c.bf16 %v5832_v18, %v5833_v31  ;;  %v5838_v24 = vld [vmem:[#allocation123_spill] sm:$0xff]  ;;  %v5839_v1 = vld [vmem:[#allocation118_spill] sm:$0xff]  ;;  %v1971_v55 = vld [vmem:[%s1970_s30] sm:$0xff] }
 0x1de   : > { %v1973_v43 = vld [vmem:[%s1970_s30 + $0x10] sm:$0xff]  ;;  %v2066_v10 = vld [vmem:[%s5196_s13 + $0x8] sm:$0xff]  ;;  %v2068_v49 = vld [vmem:[%s5196_s13 + $0x18] sm:$0xff] }
 0x1df   : > { %2075 = vmatpush1.bf16.msra.mxu0 %v5777_v21  ;;  %2116 = vmatpush1.bf16.msra.mxu1 %v5780_v40  ;;  %v5837_v21 = vpack.c.bf16 %v5835_v0, %v5836_v51  ;;  %v5840_v40 = vpack.c.bf16 %v5838_v24, %v5839_v1  ;;  %v1965_v28 = vld [vmem:[#allocation5] sm:$0xff]  ;;  %v2067_v26 = vld [vmem:[%s5196_s13 + $0x10] sm:$0xff] }
 0x1e0   : > { %2076 = vmatprep.subr.bf16.mxu0 %v5783_v50  ;;  %2117 = vmatprep.subr.bf16.mxu1 %v5786_v57  ;;  %v1972_v50 = vld [vmem:[%s1970_s30 + $0x8] sm:$0xff] }
 0x1e3   : > { %2077 = vmatpush1.bf16.msra.mxu0 %v5789_v30  ;;  %2118 = vmatpush1.bf16.msra.mxu1 %v5792_v7 }
 0x1e4   : > { %2078 = vmatprep.subr.bf16.mxu0 %v5795_v54  ;;  %2119 = vmatprep.subr.bf16.mxu1 %v5798_v60  ;;  %v1974_v54 = vld [vmem:[%s1970_s30 + $0x18] sm:$0xff] }
 0x1e7   : > { %2079 = vmatpush1.bf16.msra.mxu0 %v5801_v32  ;;  %2120 = vmatpush1.bf16.msra.mxu1 %v5804_v9  ;;  %v2065_v9 = vld [vmem:[%s5196_s13] sm:$0xff] }
 0x1e8   : > { %2080 = vmatprep.subr.bf16.mxu0 %v5807_v35  ;;  %2121 = vmatprep.subr.bf16.mxu1 %v5810_v23 }
 0x1eb   : > { %2081 = vmatpush1.bf16.msra.mxu0 %v5813_v11  ;;  %2122 = vmatpush1.bf16.msra.mxu1 %v5816_v45 }
 0x1ec   : > { %2082 = vmatprep.subr.bf16.mxu0 %v5819_v25  ;;  %2123 = vmatprep.subr.bf16.mxu1 %v5822_v56 }
 0x1ef   : > { %2083 = vmatpush1.bf16.msra.mxu0 %v5825_v36  ;;  %2124 = vmatpush1.bf16.msra.mxu1 %v5828_v58 }
 0x1f0   : > { %2084 = vmatprep.subr.bf16.mxu0 %v5831_v15  ;;  %2125 = vmatprep.subr.bf16.mxu1 %v5834_v29 }
 0x1f3   : > { %2085 = vmatpush1.bf16.msra.mxu0 %v5837_v21  ;;  %2126 = vmatpush1.bf16.msra.mxu1 %v5840_v40 }
 0x1f6   : > { %2103 = vmatmul.mubr.bf16.vlgmr.msra.gmra.mxu0 %v2069_v46  ;;  %2144 = vmatmul.mubr.bf16.vlgmr.msra.gmra.mxu1 %v2069_v46 }
 0x233   : > { %v2211_v13 = vpop.permute.xlu0 %2210 }
 0x234   : > { %vm2212_vm2 = vcmp.eq.s32.totalorder %v2211_v13, 1 }
 0x296   : > { %v2010_v47 = vpop.f32.mrf.mxu0  ;;  %v2051_v5 = vpop.f32.mrf.mxu1 }
 0x297   : > { %v2058_v33 = vadd.f32 %v2010_v47, %v1971_v55  ;;  %v2060_v38 = vadd.f32 %v2051_v5, %v1973_v43 }
 0x298   : > { %v2012_v57 = vpop.f32.mrf.mxu0  ;;  %v2053_v6 = vpop.f32.mrf.mxu1 }
 0x299   : > { %v2259_v34 = vmul.f32 -1.442695, %v2058_v33  ;;  %v2059_v30 = vadd.f32 %v2012_v57, %v1972_v50  ;;  %v2061_v2 = vadd.f32 %v2053_v6, %v1974_v54  ;;  %v1967_v33 = vld [vmem:[#allocation7] sm:$0xff]  ;;  %v2220_v57 = vpop.permute.xlu0 %2219 }
 0x29a   : > { %v2014_v20 = vpop.f32.mrf.mxu0  ;;  %v2055_v59 = vpop.f32.mrf.mxu1  ;;  %vm2221_vm3 = vcmp.eq.s32.totalorder %v2220_v57, 1 }
 0x29b   : > { %2281 = vpow2.f32 %v2259_v34  ;;  %v2260_v7 = vmul.f32 -1.442695, %v2059_v30  ;;  %v2261_v60 = vmul.f32 -1.442695, %v2061_v2 }
 0x29c   : > { %v2015_v39 = vpop.f32.mrf.mxu0  ;;  %v2056_v42 = vpop.f32.mrf.mxu1 }
 0x29d   : > { %2283 = vpow2.f32 %v2260_v7 }
 0x29e   : > { %2285 = vpow2.f32 %v2261_v60 }
 0x29f   : > { %2287 = vtanh.f32 %v2060_v38 }
 0x2a8   : > { %v2282_v8 = vpop.eup %2281 }
 0x2a9   : > { %v2159_v32 = vadd.f32 1.0, %v2282_v8 }
 0x2aa   : > { %v2284_v52 = vpop.eup %2283 }
 0x2ab   : > { %2289 = vrcp.f32 %v2159_v32  ;;  %v2165_v22 = vadd.f32 1.0, %v2284_v52  ;;  %v2286_v27 = vpop.eup %2285 }
 0x2ac   : > { %v2288_v4 = vpop.eup %2287  ;;  %v2172_v61 = vadd.f32 1.0, %v2286_v27 }
 0x2ad   : > { %2291 = vrcp.f32 %v2165_v22 }
 0x2b6   : > { %v2104_v35 = vpop.f32.mrf.mxu0  ;;  %v2145_v19 = vpop.f32.mrf.mxu1 }
 0x2b7   : > { %v2152_v23 = vadd.f32 %v2104_v35, %v2065_v9  ;;  %v2154_v18 = vadd.f32 %v2145_v19, %v2067_v26 }
 0x2b8   : > { %v2290_v44 = vpop.eup %2289  ;;  %v2106_v11 = vpop.f32.mrf.mxu0 }
 0x2b9   : > { %v2147_v48 = vpop.f32.mrf.mxu1  ;;  %v2262_v45 = vmul.f32 -1.442695, %v2152_v23  ;;  %v2153_v3 = vadd.f32 %v2106_v11, %v2066_v10  ;;  %v2176_v25 = vmul.f32 %v2290_v44, %v2288_v4 }
 0x2ba   : > { %v2292_v53 = vpop.eup %2291  ;;  %v2108_v17 = vpop.f32.mrf.mxu0  ;;  %v2155_v15 = vadd.f32 %v2147_v48, %v2068_v49 }
 0x2bb   : > { %v2149_v56 = vpop.f32.mrf.mxu1  ;;  %2293 = vpow2.f32 %v2262_v45  ;;  %v2263_v62 = vmul.f32 -1.442695, %v2153_v3  ;;  %v2175_v12 = vmul.f32 %v2292_v53, %v1965_v28 }
 0x2bc   : > { %2295 = vrcp.f32 %v2172_v61  ;;  %v2109_v36 = vpop.f32.mrf.mxu0  ;;  %v2264_v31 = vmul.f32 -1.442695, %v2155_v15 }
 0x2bd   : > { %v2150_v16 = vpop.f32.mrf.mxu1  ;;  %2297 = vpow2.f32 %v2263_v62  ;;  %v2177_v63 = vadd.f32 %v2176_v25, %v2175_v12 }
 0x2bf   : > { %2299 = vtanh.f32 %v2177_v63  ;;  %v2215_v58 = vsel %vm2212_vm2, %v2177_v63, %v1965_v28 }
 0x2c0   : > { %2216 = vst [vmem:[#allocation5] sm:$0xff] %v2215_v58  ;;  %2301 = vtanh.f32 %v2154_v18 }
 0x2c1   : > { %2303 = vpow2.f32 %v2264_v31 }
 0x2c8   : > { %v2294_v29 = vpop.eup %2293 }
 0x2c9   : > { %v2296_v46 = vpop.eup %2295  ;;  %v2183_v0 = vadd.f32 1.0, %v2294_v29 }
 0x2ca   : > { %v2298_v51 = vpop.eup %2297 }
 0x2cb   : > { %2305 = vrcp.f32 %v2183_v0  ;;  %v2189_v21 = vadd.f32 1.0, %v2298_v51 }
 0x2cc   : > { %v2300_v24 = vpop.eup %2299 }
 0x2cd   : > { %2307 = vrcp.f32 %v2189_v21  ;;  %v2179_v1 = vmul.f32 %v2300_v24, %v2296_v46  ;;  %v2302_v47 = vpop.eup %2301 }
 0x2ce   : > { %v2304_v50 = vpop.eup %2303 }
 0x2cf   : > { %v2213_v40 = vsel %vm2212_vm2, %v2179_v1, %v5075_v41  ;;  %v2226_v55 = vsel %vm2212_vm2, %v2179_v1, 0.0  ;;  %v2196_v34 = vadd.f32 1.0, %v2304_v50 }
 0x2d0   : > { %2214 = vst [vmem:[#allocation4] sm:$0xff] %v2213_v40  ;;  %2229 = vst [vmem:[%s2228_s8] sm:$0xff] %v2226_v55 }
 0x2d1   : > { %2309 = vrcp.f32 %v2196_v34 }
 0x2d8   : > { %v2306_v5 = vpop.eup %2305 }
 0x2d9   : > { %v2200_v20 = vmul.f32 %v2306_v5, %v2302_v47 }
 0x2da   : > { %v2308_v6 = vpop.eup %2307 }
 0x2db   : > { %v2199_v30 = vmul.f32 %v2308_v6, %v1967_v33 }
 0x2dd   : > { %v2201_v59 = vadd.f32 %v2200_v20, %v2199_v30 }
 0x2de   : > { %v2310_v41 = vpop.eup %2309 }
 0x2df   : > { %2311 = vtanh.f32 %v2201_v59  ;;  %v2224_v7 = vsel %vm2221_vm3, %v2201_v59, %v1967_v33 }
 0x2e0   : > { %2225 = vst [vmem:[#allocation7] sm:$0xff] %v2224_v7 }
 0x2ec   : > { %v2312_v39 = vpop.eup %2311  ;;  %1961 = sbr.rel (!%p1959_p0) target bundleno = 434 (0x1b2), region = 79 }
 0x2ed   : > { %v2203_v42 = vmul.f32 %v2312_v39, %v2310_v41 }
 0x2ef   : > { %v2222_v54 = vsel %vm2221_vm3, %v2203_v42, %v5175_v37  ;;  %v2230_v2 = vsel %vm2221_vm3, %v2203_v42, 0.0 }
 0x2f0   : > { %2223 = vst [vmem:[#allocation6] sm:$0xff] %v2222_v54  ;;  %2233 = vst [vmem:[%s2232_s19] sm:$0xff] %v2230_v2 }

</bundles_post_ra>
